<compile_context>
chip_gen: v7x
topology: tpu7x:2x2x1
jax: 0.10.0
libtpu: 0.0.40
codegen_flags: <defaults>
</compile_context>

<pallas_src>
import functools

import jax
import jax.numpy as jnp
from jax import lax
from jax.experimental import pallas as pl
from jax.experimental.pallas import tpu as pltpu

EPS = 1e-5
LANES = 128


def _round_up(x, m):
    return ((x + m - 1) // m) * m


def _fill_padded(pad_ref, interior):
    """Write `interior` (N,H,W,C) into pad_ref (N,H+2,W+2,C) with a zero halo.

    Whole-buffer memset (wide unmasked stores) + one interior store; the
    interior is cast once to the scratch dtype (bf16 taps by default).
    """
    _, Hp, Wp, _ = pad_ref.shape
    H, W = Hp - 2, Wp - 2
    pad_ref[...] = jnp.zeros_like(pad_ref)
    pad_ref[:, 1:H + 1, 1:W + 1, :] = interior.astype(pad_ref.dtype)


def _conv3x3_dy_grouped(pad_ref, w_ref):
    """'same' 3x3 conv as 3 dy-grouped accumulating MXU matmuls (K = 3*C each).

    Avoids the full (M, 9*C) im2col temp: only one (M, 3*C) row window is live
    at a time; accumulation is a single f32 (M, Cout) buffer.
    """
    N, Hp, Wp, C = pad_ref.shape
    H, W = Hp - 2, Wp - 2
    Cout = w_ref.shape[-1]
    gk = 3 * C
    acc = jnp.zeros((N * H * W, Cout), jnp.float32)
    for dy in range(3):
        row = jnp.concatenate(
            [pad_ref[:, dy:dy + H, dx:dx + W, :] for dx in range(3)],
            axis=-1).reshape(N * H * W, gk)
        acc = acc + jnp.dot(row, w_ref[dy * gk:(dy + 1) * gk, :],
                            preferred_element_type=jnp.float32)
    return acc


def _bn_relu(acc, g_ref, be_ref, relu):
    """Training-mode BatchNorm2d (+ optional ReLU) folded into one FMA.

    Two-pass variance (mean, then centered sum-of-squares) for numerical
    robustness; biased variance as PyTorch uses for normalization. Any
    per-channel conv bias is absorbed by the batch-mean subtraction.
    """
    m = acc.shape[0]
    inv_m = 1.0 / m
    mean = jnp.sum(acc, axis=0, keepdims=True) * inv_m
    var = jnp.sum(jnp.square(acc - mean), axis=0, keepdims=True) * inv_m
    s = g_ref[...].astype(jnp.float32) * lax.rsqrt(var + EPS)   # (1, Cout)
    t = be_ref[...].astype(jnp.float32) - mean * s              # (1, Cout)
    y = acc * s + t                                             # one FMA pass
    if relu:
        y = jnp.maximum(y, 0.0)
    return y


def double_conv_kernel(x_ref, w1_ref, g1_ref, be1_ref, w2_ref, g2_ref, be2_ref,
                       o_ref, *scratch, relu, conv1_pretiled):
    N, H, W, Cop = o_ref.shape

    if conv1_pretiled:
        # conv1 input already im2col'd in the wrapper (K padded to 128):
        # one lane-dense MXU matmul, no padded scratch needed for conv1.
        (ypad_ref,) = scratch
        k1 = x_ref.shape[-1]
        patches = x_ref[...].reshape(N * H * W, k1)
        acc = jnp.dot(patches, w1_ref[...], preferred_element_type=jnp.float32)
    else:
        xpad_ref, ypad_ref = scratch
        _fill_padded(xpad_ref, x_ref[...])
        acc = _conv3x3_dy_grouped(xpad_ref, w1_ref)

    y = _bn_relu(acc, g1_ref, be1_ref, relu)                     # (M, Cop) f32
    _fill_padded(ypad_ref, y.reshape(N, H, W, Cop))              # cast -> bf16
    acc2 = _conv3x3_dy_grouped(ypad_ref, w2_ref)
    z = _bn_relu(acc2, g2_ref, be2_ref, relu)
    o_ref[...] = z.reshape(N, H, W, Cop).astype(o_ref.dtype)


def double_convolution_block(x_nchw, params, relu=True, mxu_dtype=jnp.bfloat16):
    """NCHW in, NCHW out (PyTorch convention). Kernel runs lane-dense NHWC.

    bf16 MXU operands by default (bf16-native MXUs on v5e/v6e/v7x); f32
    accumulation and f32 BatchNorm math either way. mxu_dtype=jnp.float32
    reproduces exact f32 operand semantics.
    """
    w1, b1, g1, be1, w2, b2, g2, be2 = params
    del b1, b2  # absorbed by training-mode BN batch-mean subtraction
    N, Cin, H, W = x_nchw.shape
    Cout = w1.shape[0]
    Cop = _round_up(Cout, LANES)
    x_nhwc = jnp.transpose(x_nchw, (0, 2, 3, 1)).astype(jnp.float32)

    conv1_pretiled = (9 * Cin <= LANES)

    def prep_w_grouped(w, cin_p, cout_p):
        # PyTorch (Cout,Cin,3,3) -> (9*cin_p, cout_p), tap order (dy, dx, cin).
        cout, cin = w.shape[0], w.shape[1]
        wk = jnp.transpose(w, (2, 3, 1, 0)).astype(jnp.float32)   # (3,3,Cin,Cout)
        wk = jnp.pad(wk, ((0, 0), (0, 0), (0, cin_p - cin), (0, cout_p - cout)))
        return wk.reshape(9 * cin_p, cout_p).astype(mxu_dtype)

    def prep_v(v, cp):
        return jnp.pad(v.astype(jnp.float32), (0, cp - v.shape[0])).reshape(1, cp)

    if conv1_pretiled:
        # Small Cin: pad the im2col contraction axis (9*Cin -> 128), not Cin.
        k1 = 9 * Cin
        k1p = _round_up(k1, LANES)
        xp = jnp.pad(x_nhwc, ((0, 0), (1, 1), (1, 1), (0, 0)))
        x_in = jnp.concatenate(
            [xp[:, dy:dy + H, dx:dx + W, :]
             for dy in range(3) for dx in range(3)], axis=-1)      # (N,H,W,9*Cin)
        x_in = jnp.pad(x_in, ((0, 0), (0, 0), (0, 0), (0, k1p - k1))
                       ).astype(mxu_dtype)
        wk = jnp.transpose(w1, (2, 3, 1, 0)).astype(jnp.float32).reshape(k1, Cout)
        w1_in = jnp.pad(wk, ((0, k1p - k1), (0, Cop - Cout))).astype(mxu_dtype)
        scratch_defs = [((N, H + 2, W + 2, Cop), mxu_dtype)]
        k1_eff = k1p
    else:
        Cip = _round_up(Cin, LANES)
        x_in = jnp.pad(x_nhwc, ((0, 0), (0, 0), (0, 0), (0, Cip - Cin))
                       ).astype(mxu_dtype)
        w1_in = prep_w_grouped(w1, Cip, Cop)
        scratch_defs = [((N, H + 2, W + 2, Cip), mxu_dtype),
                        ((N, H + 2, W + 2, Cop), mxu_dtype)]
        k1_eff = 9 * Cip

    w2_in = prep_w_grouped(w2, Cop, Cop)
    inputs = (x_in, w1_in, prep_v(g1, Cop), prep_v(be1, Cop),
              w2_in, prep_v(g2, Cop), prep_v(be2, Cop))
    out_shape = jax.ShapeDtypeStruct((N, H, W, Cop), jnp.float32)

    # Advisory cost estimate so XLA schedules the surrounding layout ops.
    M = N * H * W
    flops = 2 * M * k1_eff * Cop + 2 * M * 9 * Cop * Cop
    bytes_accessed = (sum(int(a.size) * a.dtype.itemsize for a in inputs)
                      + M * Cop * 4)
    cost = pl.CostEstimate(flops=flops, transcendentals=2 * Cop,
                           bytes_accessed=bytes_accessed)

    # VMEM budget derived from the actual buffers (+ headroom), clamped to the
    # chip's physical VMEM (64 MiB on v7x, 128 MiB on v5e/v6e).
    def _nbytes(shape, dtype):
        n = 1
        for d in shape:
            n *= int(d)
        return n * jnp.dtype(dtype).itemsize

    itm = jnp.dtype(mxu_dtype).itemsize
    buf_bytes = (sum(int(a.size) * a.dtype.itemsize for a in inputs)
                 + _nbytes(out_shape.shape, out_shape.dtype)
                 + sum(_nbytes(s, d) for s, d in scratch_defs))
    temp_bytes = 3 * M * Cop * 4 + M * 3 * Cop * itm + M * k1_eff * itm
    try:
        phys = int(pltpu.get_tpu_info().vmem_capacity_bytes)
    except Exception:
        phys = 64 * 1024 * 1024
    vmem_limit = min(max(int((buf_bytes + temp_bytes) * 1.25) + (8 << 20),
                         32 << 20),
                     phys - (8 << 20))

    kernel = functools.partial(double_conv_kernel, relu=relu,
                               conv1_pretiled=conv1_pretiled)
    vmem = pl.BlockSpec(memory_space=pltpu.MemorySpace.VMEM)
    out_nhwc = pl.pallas_call(
        kernel,
        out_shape=out_shape,
        in_specs=[vmem] * 7,
        out_specs=vmem,
        scratch_shapes=[pltpu.VMEM(s, d) for s, d in scratch_defs],
        compiler_params=pltpu.CompilerParams(vmem_limit_bytes=vmem_limit),
        cost_estimate=cost,
    )(*inputs)

    # Drop padded channels and return to PyTorch NCHW.
    return jnp.transpose(out_nhwc[..., :Cout], (0, 3, 1, 2))


# ---------------------------------------------------------------------------
# Pure-JAX reference (mirrors PyTorch nn.Sequential forward in training mode).
# `operand_dtype` lets the reference apply the same bf16 operand truncation as
# the kernel so the bf16 path can be checked at tight tolerance.
# ---------------------------------------------------------------------------
def reference(x, params, relu=True, operand_dtype=jnp.float32):
    w1, b1, g1, be1, w2, b2, g2, be2 = params

    def conv(x, w, b):
        y = lax.conv_general_dilated(
            x.astype(operand_dtype), w.astype(operand_dtype), (1, 1),
            ((1, 1), (1, 1)), dimension_numbers=('NCHW', 'OIHW', 'NCHW'),
            preferred_element_type=jnp.float32)
        return y + b[None, :, None, None]

    def bn(x, g, be):
        mean = jnp.mean(x, axis=(0, 2, 3), keepdims=True)
        var = jnp.mean(jnp.square(x - mean), axis=(0, 2, 3), keepdims=True)
        return ((x - mean) * lax.rsqrt(var + EPS) * g[None, :, None, None]
                + be[None, :, None, None])

    y = bn(conv(x, w1, b1), g1, be1)
    if relu:
        y = jnp.maximum(y, 0.0)
    y = bn(conv(y, w2, b2), g2, be2)
    if relu:
        y = jnp.maximum(y, 0.0)
    return y


if __name__ == "__main__":
    def make_params(key, cin, cout):
        ks = jax.random.split(key, 8)
        w1 = jax.random.normal(ks[0], (cout, cin, 3, 3), jnp.float32) * 0.1
        b1 = jax.random.normal(ks[1], (cout,), jnp.float32) * 0.1
        g1 = 1.0 + 0.1 * jax.random.normal(ks[2], (cout,), jnp.float32)
        be1 = 0.1 * jax.random.normal(ks[3], (cout,), jnp.float32)
        w2 = jax.random.normal(ks[4], (cout, cout, 3, 3), jnp.float32) * 0.1
        b2 = jax.random.normal(ks[5], (cout,), jnp.float32) * 0.1
        g2 = 1.0 + 0.1 * jax.random.normal(ks[6], (cout,), jnp.float32)
        be2 = 0.1 * jax.random.normal(ks[7], (cout,), jnp.float32)
        return (w1, b1, g1, be1, w2, b2, g2, be2)

    key = jax.random.PRNGKey(0)
    k_small, k_big, kx1, kx2 = jax.random.split(key, 4)

    # Primary test: module-spec shapes (small-Cin pretiled-conv1 path).
    N, Cin, Cout, H, W = 2, 4, 8, 16, 16
    x_small = jax.random.normal(kx1, (N, Cin, H, W), jnp.float32)
    p_small = make_params(k_small, Cin, Cout)

    # Secondary test: channel-dense shapes (in-kernel dy-grouped conv1 path).
    x_big = jax.random.normal(kx2, (2, 128, 8, 8), jnp.float32)
    p_big = make_params(k_big, 128, 128)

    cases = []
    for relu in (True, False):
        for dt in (jnp.bfloat16, jnp.float32):
            cases.append((x_small, p_small, relu, dt, (N, Cout, H, W)))
    cases.append((x_big, p_big, True, jnp.bfloat16, (2, 128, 8, 8)))

    ok = True
    for x_t, p_t, relu, dt, eshape in cases:
        out = jax.block_until_ready(
            double_convolution_block(x_t, p_t, relu=relu, mxu_dtype=dt))
        ref = jax.block_until_ready(
            reference(x_t, p_t, relu=relu, operand_dtype=dt))
        assert out.shape == eshape, (out.shape, eshape)
        if not jnp.allclose(out, ref, atol=2e-3, rtol=2e-3):
            ok = False
            print("MISMATCH relu=", relu, "mxu_dtype=", dt,
                  "max abs err:", float(jnp.max(jnp.abs(out - ref))))

    if ok:
        print("KERNEL_OK")
</pallas_src>

<mosaic_0001>
module attributes {stable_mosaic.version = 11 : i64} {
  func.func @double_conv_kernel(%arg0: memref<2x16x16x128xbf16, #tpu.memory_space<vmem>>, %arg1: memref<128x128xbf16, #tpu.memory_space<vmem>>, %arg2: memref<1x128xf32, #tpu.memory_space<vmem>>, %arg3: memref<1x128xf32, #tpu.memory_space<vmem>>, %arg4: memref<1152x128xbf16, #tpu.memory_space<vmem>>, %arg5: memref<1x128xf32, #tpu.memory_space<vmem>>, %arg6: memref<1x128xf32, #tpu.memory_space<vmem>>, %arg7: memref<2x16x16x128xf32, #tpu.memory_space<vmem>>, %arg8: memref<2x18x18x128xbf16, #tpu.memory_space<vmem>>) attributes {dimension_semantics = [], scalar_prefetch = 0 : i64, scratch_operands = 1 : i64, tpu.core_type = #tpu.core_type<tc>} {
    %c0 = arith.constant 0 : index
    %c0_0 = arith.constant 0 : index
    %c0_1 = arith.constant 0 : index
    %c0_2 = arith.constant 0 : index
    %0 = vector.load %arg0[%c0, %c0_0, %c0_1, %c0_2] : memref<2x16x16x128xbf16, #tpu.memory_space<vmem>>, vector<2x16x16x128xbf16>
    %1 = vector.shape_cast %0 : vector<2x16x16x128xbf16> to vector<512x128xbf16>
    %c0_3 = arith.constant 0 : index
    %c0_4 = arith.constant 0 : index
    %2 = vector.load %arg1[%c0_3, %c0_4] : memref<128x128xbf16, #tpu.memory_space<vmem>>, vector<128x128xbf16>
    %cst = arith.constant dense<0.000000e+00> : vector<512x128xf32>
    %3 = tpu.matmul %1, %2, %cst {dimension_numbers = #tpu.dot_dimension_numbers<[1], [0], [0], [1], [0, 0, 1, 1], [], []>} : vector<512x128xbf16>, vector<128x128xbf16>, vector<512x128xf32> -> vector<512x128xf32>
    %cst_5 = arith.constant dense<0.000000e+00> : vector<128xf32>
    %4 = vector.multi_reduction <add>, %3, %cst_5 [0] : vector<512x128xf32> to vector<128xf32>
    %5 = vector.shape_cast %4 : vector<128xf32> to vector<1x128xf32>
    %cst_6 = arith.constant 0.001953125 : f32
    %6 = vector.broadcast %cst_6 : f32 to vector<1x128xf32>
    %7 = arith.mulf %5, %6 : vector<1x128xf32>
    %8 = vector.broadcast %7 : vector<1x128xf32> to vector<512x128xf32>
    %9 = arith.subf %3, %8 : vector<512x128xf32>
    %10 = arith.mulf %9, %9 : vector<512x128xf32>
    %cst_7 = arith.constant dense<0.000000e+00> : vector<128xf32>
    %11 = vector.multi_reduction <add>, %10, %cst_7 [0] : vector<512x128xf32> to vector<128xf32>
    %12 = vector.shape_cast %11 : vector<128xf32> to vector<1x128xf32>
    %cst_8 = arith.constant 0.001953125 : f32
    %13 = vector.broadcast %cst_8 : f32 to vector<1x128xf32>
    %14 = arith.mulf %12, %13 : vector<1x128xf32>
    %c0_9 = arith.constant 0 : index
    %c0_10 = arith.constant 0 : index
    %15 = vector.load %arg2[%c0_9, %c0_10] : memref<1x128xf32, #tpu.memory_space<vmem>>, vector<1x128xf32>
    %cst_11 = arith.constant 9.99999974E-6 : f32
    %16 = vector.broadcast %cst_11 : f32 to vector<1x128xf32>
    %17 = arith.addf %14, %16 : vector<1x128xf32>
    %18 = math.rsqrt %17 : vector<1x128xf32>
    %19 = arith.mulf %15, %18 : vector<1x128xf32>
    %c0_12 = arith.constant 0 : index
    %c0_13 = arith.constant 0 : index
    %20 = vector.load %arg3[%c0_12, %c0_13] : memref<1x128xf32, #tpu.memory_space<vmem>>, vector<1x128xf32>
    %21 = arith.mulf %7, %19 : vector<1x128xf32>
    %22 = arith.subf %20, %21 : vector<1x128xf32>
    %23 = vector.broadcast %19 : vector<1x128xf32> to vector<512x128xf32>
    %24 = arith.mulf %3, %23 : vector<512x128xf32>
    %25 = vector.broadcast %22 : vector<1x128xf32> to vector<512x128xf32>
    %26 = arith.addf %24, %25 : vector<512x128xf32>
    %cst_14 = arith.constant 0.000000e+00 : f32
    %27 = vector.broadcast %cst_14 : f32 to vector<512x128xf32>
    %28 = arith.maximumf %26, %27 : vector<512x128xf32>
    %29 = vector.shape_cast %28 : vector<512x128xf32> to vector<2x16x16x128xf32>
    %cst_15 = arith.constant 0.000000e+00 : bf16
    %30 = vector.broadcast %cst_15 : bf16 to vector<2x18x18x128xbf16>
    %c0_16 = arith.constant 0 : index
    %c0_17 = arith.constant 0 : index
    %c0_18 = arith.constant 0 : index
    %c0_19 = arith.constant 0 : index
    %31 = vector.load %arg8[%c0_16, %c0_17, %c0_18, %c0_19] : memref<2x18x18x128xbf16, #tpu.memory_space<vmem>>, vector<2x18x18x128xbf16>
    tpu.vector_store %arg8[%c0_16, %c0_17, %c0_18, %c0_19], %30 {strides = array<i32>} : memref<2x18x18x128xbf16, #tpu.memory_space<vmem>>, vector<2x18x18x128xbf16>,
    %32 = arith.truncf %29 : vector<2x16x16x128xf32> to vector<2x16x16x128xbf16>
    %c0_20 = arith.constant 0 : index
    %c1 = arith.constant 1 : index
    %c1_21 = arith.constant 1 : index
    %c0_22 = arith.constant 0 : index
    %33 = vector.load %arg8[%c0_20, %c1, %c1_21, %c0_22] : memref<2x18x18x128xbf16, #tpu.memory_space<vmem>>, vector<2x16x16x128xbf16>
    tpu.vector_store %arg8[%c0_20, %c1, %c1_21, %c0_22], %32 {strides = array<i32>} : memref<2x18x18x128xbf16, #tpu.memory_space<vmem>>, vector<2x16x16x128xbf16>,
    %cst_23 = arith.constant 0.000000e+00 : f32
    %34 = vector.broadcast %cst_23 : f32 to vector<512x128xf32>
    %c0_24 = arith.constant 0 : index
    %c0_25 = arith.constant 0 : index
    %c0_26 = arith.constant 0 : index
    %c0_27 = arith.constant 0 : index
    %35 = vector.load %arg8[%c0_24, %c0_25, %c0_26, %c0_27] : memref<2x18x18x128xbf16, #tpu.memory_space<vmem>>, vector<2x16x16x128xbf16>
    %c0_28 = arith.constant 0 : index
    %c0_29 = arith.constant 0 : index
    %c1_30 = arith.constant 1 : index
    %c0_31 = arith.constant 0 : index
    %36 = vector.load %arg8[%c0_28, %c0_29, %c1_30, %c0_31] : memref<2x18x18x128xbf16, #tpu.memory_space<vmem>>, vector<2x16x16x128xbf16>
    %c0_32 = arith.constant 0 : index
    %c0_33 = arith.constant 0 : index
    %c2 = arith.constant 2 : index
    %c0_34 = arith.constant 0 : index
    %37 = vector.load %arg8[%c0_32, %c0_33, %c2, %c0_34] : memref<2x18x18x128xbf16, #tpu.memory_space<vmem>>, vector<2x16x16x128xbf16>
    %38 = tpu.concatenate %35, %36, %37 in 3 : vector<2x16x16x128xbf16>, vector<2x16x16x128xbf16>, vector<2x16x16x128xbf16> -> vector<2x16x16x384xbf16>
    %39 = vector.shape_cast %38 : vector<2x16x16x384xbf16> to vector<512x384xbf16>
    %c0_35 = arith.constant 0 : index
    %c0_36 = arith.constant 0 : index
    %40 = vector.load %arg4[%c0_35, %c0_36] : memref<1152x128xbf16, #tpu.memory_space<vmem>>, vector<384x128xbf16>
    %cst_37 = arith.constant dense<0.000000e+00> : vector<512x128xf32>
    %41 = tpu.matmul %39, %40, %cst_37 {dimension_numbers = #tpu.dot_dimension_numbers<[1], [0], [0], [1], [0, 0, 1, 1], [], []>} : vector<512x384xbf16>, vector<384x128xbf16>, vector<512x128xf32> -> vector<512x128xf32>
    %42 = arith.addf %34, %41 : vector<512x128xf32>
    %c0_38 = arith.constant 0 : index
    %c1_39 = arith.constant 1 : index
    %c0_40 = arith.constant 0 : index
    %c0_41 = arith.constant 0 : index
    %43 = vector.load %arg8[%c0_38, %c1_39, %c0_40, %c0_41] : memref<2x18x18x128xbf16, #tpu.memory_space<vmem>>, vector<2x16x16x128xbf16>
    %c0_42 = arith.constant 0 : index
    %c1_43 = arith.constant 1 : index
    %c1_44 = arith.constant 1 : index
    %c0_45 = arith.constant 0 : index
    %44 = vector.load %arg8[%c0_42, %c1_43, %c1_44, %c0_45] : memref<2x18x18x128xbf16, #tpu.memory_space<vmem>>, vector<2x16x16x128xbf16>
    %c0_46 = arith.constant 0 : index
    %c1_47 = arith.constant 1 : index
    %c2_48 = arith.constant 2 : index
    %c0_49 = arith.constant 0 : index
    %45 = vector.load %arg8[%c0_46, %c1_47, %c2_48, %c0_49] : memref<2x18x18x128xbf16, #tpu.memory_space<vmem>>, vector<2x16x16x128xbf16>
    %46 = tpu.concatenate %43, %44, %45 in 3 : vector<2x16x16x128xbf16>, vector<2x16x16x128xbf16>, vector<2x16x16x128xbf16> -> vector<2x16x16x384xbf16>
    %47 = vector.shape_cast %46 : vector<2x16x16x384xbf16> to vector<512x384xbf16>
    %c384 = arith.constant 384 : index
    %c0_50 = arith.constant 0 : index
    %48 = vector.load %arg4[%c384, %c0_50] : memref<1152x128xbf16, #tpu.memory_space<vmem>>, vector<384x128xbf16>
    %cst_51 = arith.constant dense<0.000000e+00> : vector<512x128xf32>
    %49 = tpu.matmul %47, %48, %cst_51 {dimension_numbers = #tpu.dot_dimension_numbers<[1], [0], [0], [1], [0, 0, 1, 1], [], []>} : vector<512x384xbf16>, vector<384x128xbf16>, vector<512x128xf32> -> vector<512x128xf32>
    %50 = arith.addf %42, %49 : vector<512x128xf32>
    %c0_52 = arith.constant 0 : index
    %c2_53 = arith.constant 2 : index
    %c0_54 = arith.constant 0 : index
    %c0_55 = arith.constant 0 : index
    %51 = vector.load %arg8[%c0_52, %c2_53, %c0_54, %c0_55] : memref<2x18x18x128xbf16, #tpu.memory_space<vmem>>, vector<2x16x16x128xbf16>
    %c0_56 = arith.constant 0 : index
    %c2_57 = arith.constant 2 : index
    %c1_58 = arith.constant 1 : index
    %c0_59 = arith.constant 0 : index
    %52 = vector.load %arg8[%c0_56, %c2_57, %c1_58, %c0_59] : memref<2x18x18x128xbf16, #tpu.memory_space<vmem>>, vector<2x16x16x128xbf16>
    %c0_60 = arith.constant 0 : index
    %c2_61 = arith.constant 2 : index
    %c2_62 = arith.constant 2 : index
    %c0_63 = arith.constant 0 : index
    %53 = vector.load %arg8[%c0_60, %c2_61, %c2_62, %c0_63] : memref<2x18x18x128xbf16, #tpu.memory_space<vmem>>, vector<2x16x16x128xbf16>
    %54 = tpu.concatenate %51, %52, %53 in 3 : vector<2x16x16x128xbf16>, vector<2x16x16x128xbf16>, vector<2x16x16x128xbf16> -> vector<2x16x16x384xbf16>
    %55 = vector.shape_cast %54 : vector<2x16x16x384xbf16> to vector<512x384xbf16>
    %c768 = arith.constant 768 : index
    %c0_64 = arith.constant 0 : index
    %56 = vector.load %arg4[%c768, %c0_64] : memref<1152x128xbf16, #tpu.memory_space<vmem>>, vector<384x128xbf16>
    %cst_65 = arith.constant dense<0.000000e+00> : vector<512x128xf32>
    %57 = tpu.matmul %55, %56, %cst_65 {dimension_numbers = #tpu.dot_dimension_numbers<[1], [0], [0], [1], [0, 0, 1, 1], [], []>} : vector<512x384xbf16>, vector<384x128xbf16>, vector<512x128xf32> -> vector<512x128xf32>
    %58 = arith.addf %50, %57 : vector<512x128xf32>
    %cst_66 = arith.constant dense<0.000000e+00> : vector<128xf32>
    %59 = vector.multi_reduction <add>, %58, %cst_66 [0] : vector<512x128xf32> to vector<128xf32>
    %60 = vector.shape_cast %59 : vector<128xf32> to vector<1x128xf32>
    %cst_67 = arith.constant 0.001953125 : f32
    %61 = vector.broadcast %cst_67 : f32 to vector<1x128xf32>
    %62 = arith.mulf %60, %61 : vector<1x128xf32>
    %63 = vector.broadcast %62 : vector<1x128xf32> to vector<512x128xf32>
    %64 = arith.subf %58, %63 : vector<512x128xf32>
    %65 = arith.mulf %64, %64 : vector<512x128xf32>
    %cst_68 = arith.constant dense<0.000000e+00> : vector<128xf32>
    %66 = vector.multi_reduction <add>, %65, %cst_68 [0] : vector<512x128xf32> to vector<128xf32>
    %67 = vector.shape_cast %66 : vector<128xf32> to vector<1x128xf32>
    %cst_69 = arith.constant 0.001953125 : f32
    %68 = vector.broadcast %cst_69 : f32 to vector<1x128xf32>
    %69 = arith.mulf %67, %68 : vector<1x128xf32>
    %c0_70 = arith.constant 0 : index
    %c0_71 = arith.constant 0 : index
    %70 = vector.load %arg5[%c0_70, %c0_71] : memref<1x128xf32, #tpu.memory_space<vmem>>, vector<1x128xf32>
    %cst_72 = arith.constant 9.99999974E-6 : f32
    %71 = vector.broadcast %cst_72 : f32 to vector<1x128xf32>
    %72 = arith.addf %69, %71 : vector<1x128xf32>
    %73 = math.rsqrt %72 : vector<1x128xf32>
    %74 = arith.mulf %70, %73 : vector<1x128xf32>
    %c0_73 = arith.constant 0 : index
    %c0_74 = arith.constant 0 : index
    %75 = vector.load %arg6[%c0_73, %c0_74] : memref<1x128xf32, #tpu.memory_space<vmem>>, vector<1x128xf32>
    %76 = arith.mulf %62, %74 : vector<1x128xf32>
    %77 = arith.subf %75, %76 : vector<1x128xf32>
    %78 = vector.broadcast %74 : vector<1x128xf32> to vector<512x128xf32>
    %79 = arith.mulf %58, %78 : vector<512x128xf32>
    %80 = vector.broadcast %77 : vector<1x128xf32> to vector<512x128xf32>
    %81 = arith.addf %79, %80 : vector<512x128xf32>
    %cst_75 = arith.constant 0.000000e+00 : f32
    %82 = vector.broadcast %cst_75 : f32 to vector<512x128xf32>
    %83 = arith.maximumf %81, %82 : vector<512x128xf32>
    %84 = vector.shape_cast %83 : vector<512x128xf32> to vector<2x16x16x128xf32>
    %c0_76 = arith.constant 0 : index
    %c0_77 = arith.constant 0 : index
    %c0_78 = arith.constant 0 : index
    %c0_79 = arith.constant 0 : index
    %85 = vector.load %arg7[%c0_76, %c0_77, %c0_78, %c0_79] : memref<2x16x16x128xf32, #tpu.memory_space<vmem>>, vector<2x16x16x128xf32>
    tpu.vector_store %arg7[%c0_76, %c0_77, %c0_78, %c0_79], %84 {strides = array<i32>} : memref<2x16x16x128xf32, #tpu.memory_space<vmem>>, vector<2x16x16x128xf32>,
    return
  }
}

</mosaic_0001>

<bundles_post_ra>
// kernel: tpu_custom_call.1
= control target key start
LH: loop header
LB: loop body
LE: loop exit
PB: predicated region body
PF: predicated region fallthrough
CT: control target
= control target key end

     0   :  { %12 = vsyncpa [#allocation4], 0  ;;  %s15299_s0 = inlined_call_operand.hbm [shape: bf16[2,16,16,128], index: 0, kind: input, shape index: {}]   ;;  %s15300_s1 = inlined_call_operand.hbm [shape: bf16[128,128], index: 1, kind: input, shape index: {}]   ;;  %s15301_s2 = inlined_call_operand.vmem [shape: f32[1,128], index: 2, kind: input, shape index: {}]   ;;  %s15302_s3 = inlined_call_operand.vmem [shape: f32[1,128], index: 3, kind: input, shape index: {}]   ;;  %s15303_s4 = inlined_call_operand.hbm [shape: bf16[1152,128], index: 4, kind: input, shape index: {}]   ;;  %s15304_s5 = inlined_call_operand.vmem [shape: f32[1,128], index: 5, kind: input, shape index: {}]   ;;  %s15305_s6 = inlined_call_operand.vmem [shape: f32[1,128], index: 6, kind: input, shape index: {}]   ;;  %s15306_s7 = inlined_call_operand.hbm [shape: f32[2,16,16,128], index: 7, kind: output, shape index: {}]  }
   0x1   :  { %13 = vsyncpa [#allocation7], 0 }
   0x2   :  { %14 = vsyncpa [#allocation5], 0  ;;  %s9985_s24 = smov [#allocation6]   ;;  %s9986_s26 = smov [#allocation3]  }
   0x3   :  { %s32_s25 = sshll.u32 %s9985_s24, 4  ;;  %s20_s27 = sshll.u32 %s9986_s26, 4  ;;  %s33_s25 = int_to_ptr.vmem [resolvable:$true] %s32_s25  ;;  %s10034_s27 = int_to_ptr.vmem [resolvable:$true] %s20_s27 }
   0x4   :  { %s9891_s30 = scalar_lea.hbm %s15300_s1, 1024 }
   0x5   :  { %p9892_p0 = scmp.ne.s32.totalorder %s15300_s1, %s9891_s30  ;;  %p9895_p1 = scmp.lt.u32.totalorder %s9891_s30, %s15300_s1 }
   0x7   :  { %p9897_p2 = pnand %p9895_p1, %p9892_p0 }
   0x9   :  { %9900 = shalt.err (!%p9897_p2)
}
   0xa   :  { %s9901_s12 = scalar_lea.vmem %s33_s25, 1024  ;;  %p9906_p4 = scmp.lt.s32.totalorder %s33_s25, %s33_s25 }
   0xb   :  { %p9902_p3 = scmp.ne.s32.totalorder %s33_s25, %s9901_s12  ;;  %p9907_p5 = scmp.lt.s32.totalorder %s9901_s12, %s9901_s12 }
   0xd   :  { %p9908_p6 = por %p9907_p5, %p9906_p4 }
   0xf   :  { %p9909_p7 = pnand %p9908_p6, %p9902_p3 }
  0x11   :  { %9912 = shalt.err (!%p9909_p7)
}
  0x12   :  { %s9987_s13 = smov 64   ;;  %s9988_s14 = smov 4  }
  0x13   :  { %38 = dma.hbm_to_vmem [thread:$0]  %s15300_s1, 1024, %s33_s25, [#allocation7], %s9987_s13, %s9987_s13, %s9988_s14  }
  0x14   :  { %s9913_s19 = scalar_lea.hbm %s15299_s0, 4096 }
  0x15   :  { %p9914_p8 = scmp.ne.s32.totalorder %s15299_s0, %s9913_s19  ;;  %p9917_p9 = scmp.lt.u32.totalorder %s9913_s19, %s15299_s0 }
  0x17   :  { %p9919_p10 = pnand %p9917_p9, %p9914_p8 }
  0x19   :  { %9922 = shalt.err (!%p9919_p10)
}
  0x1a   :  { %s9923_s24 = scalar_lea.vmem %s10034_s27, 4096  ;;  %p9928_p12 = scmp.lt.s32.totalorder %s10034_s27, %s10034_s27 }
  0x1b   :  { %p9924_p11 = scmp.ne.s32.totalorder %s10034_s27, %s9923_s24  ;;  %p9929_p13 = scmp.lt.s32.totalorder %s9923_s24, %s9923_s24 }
  0x1d   :  { %p9930_p0 = por %p9929_p13, %p9928_p12 }
  0x1f   :  { %p9931_p1 = pnand %p9930_p0, %p9924_p11 }
  0x21   :  { %9934 = shalt.err (!%p9931_p1)
}
  0x22   :  { %26 = dma.hbm_to_vmem [thread:$0]  %s15299_s0, 4096, %s10034_s27, [#allocation4], %s9987_s13, %s9987_s13, %s9988_s14  }
  0x23   :  { %s9989_s26 = smov [#allocation8]   ;;  %s9935_s8 = scalar_lea.hbm %s15303_s4, 9216 }
  0x24   :  { %s48_s28 = sshll.u32 %s9989_s26, 4  ;;  %p9936_p2 = scmp.ne.s32.totalorder %s15303_s4, %s9935_s8  ;;  %s49_s28 = int_to_ptr.vmem [resolvable:$true] %s48_s28 }
  0x25   :  { %p9939_p3 = scmp.lt.u32.totalorder %s9935_s8, %s15303_s4 }
  0x27   :  { %p9941_p4 = pnand %p9939_p3, %p9936_p2 }
  0x29   :  { %9944 = shalt.err (!%p9941_p4)
}
  0x2a   :  { %s9945_s15 = scalar_lea.vmem %s49_s28, 9216  ;;  %p9950_p6 = scmp.lt.s32.totalorder %s49_s28, %s49_s28 }
  0x2b   :  { %p9946_p5 = scmp.ne.s32.totalorder %s49_s28, %s9945_s15  ;;  %p9951_p7 = scmp.lt.s32.totalorder %s9945_s15, %s9945_s15 }
  0x2d   :  { %p9952_p8 = por %p9951_p7, %p9950_p6 }
  0x2f   :  { %p9953_p9 = pnand %p9952_p8, %p9946_p5 }
  0x31   :  { %9956 = shalt.err (!%p9953_p9)
}
  0x32   :  { %54 = dma.hbm_to_vmem [thread:$0]  %s15303_s4, 9216, %s49_s28, [#allocation7], %s9987_s13, %s9987_s13, %s9988_s14  }
  0x33   :  { %9979 = dma.done.wait [#allocation4], 4096  }
  0x34   :  { %9980 = vsyncadd [#allocation4], 4294963200 }
  0x35   :  { %9981 = dma.done.wait [#allocation7], 10240  }
  0x36   :  { %9982 = vsyncadd [#allocation7], 4294957056  ;;  %v9453_v0 = vld [vmem:[#allocation6] sm:$0xff]   ;;  %v9454_v1 = vld [vmem:[#allocation6 + $0x8] sm:$0xff]   ;;  %v15307_v32 = vmov 0   ;;  %vm2108_vm2 = vcmask 1040384  }
  0x37   :  { %9124 = vmatprep.subr.bf16.mxu0 %v9453_v0  ;;  %v9455_v2 = vld [vmem:[#allocation6 + $0x10] sm:$0xff]   ;;  %v9456_v3 = vld [vmem:[#allocation6 + $0x18] sm:$0xff]   ;;  %v9461_v4 = vld [vmem:[#allocation3] sm:$0xff]   ;;  %1163 = vst [vmem:[#allocation2 + $0x18] sm:$0xf] %v15307_v32  ;;  %4684 = vmatprep.subr.bf16.mxu1 %v15307_v32  ;;  %vm2101_vm5 = vcmask 1043456  }
  0x38   :  { %9125 = vmatpush3.bf16.msra.mxu0 %v9453_v0  ;;  %9140 = vmatprep.mubr.bf16.mxu0 %v9461_v4  ;;  %v9457_v5 = vld [vmem:[#allocation6 + $0x20] sm:$0xff]   ;;  %v9458_v6 = vld [vmem:[#allocation6 + $0x28] sm:$0xff]   ;;  %v9459_v7 = vld [vmem:[#allocation6 + $0x30] sm:$0xff]   ;;  %1157 = vst [vmem:[#allocation2] sm:$0xf] %v15307_v32  ;;  %vm3259_vm8 = vcmask 1046528  }
  0x39   :  { %9126 = vmatprep.subr.bf16.mxu0 %v9454_v1  ;;  %v9460_v8 = vld [vmem:[#allocation6 + $0x38] sm:$0xff]   ;;  %v9462_v9 = vld [vmem:[#allocation3 + $0x8] sm:$0xff]   ;;  %v9463_v10 = vld [vmem:[#allocation3 + $0x10] sm:$0xff]   ;;  %1158 = vst [vmem:[#allocation2 + $0x4] sm:$0xf] %v15307_v32 }
  0x3a   :  { %v9464_v11 = vld [vmem:[#allocation3 + $0x18] sm:$0xff]   ;;  %v9465_v12 = vld [vmem:[#allocation3 + $0x20] sm:$0xff]   ;;  %v9466_v13 = vld [vmem:[#allocation3 + $0x28] sm:$0xff]   ;;  %1159 = vst [vmem:[#allocation2 + $0x8] sm:$0x1] %v15307_v32 }
  0x3b   :  { %v9467_v14 = vld [vmem:[#allocation3 + $0x30] sm:$0xff]   ;;  %v9468_v15 = vld [vmem:[#allocation3 + $0x38] sm:$0xff]   ;;  %v9469_v16 = vld [vmem:[#allocation3 + $0x40] sm:$0xff]   ;;  %1160 = vst [vmem:[#allocation2 + $0xc] sm:$0xf] %v15307_v32 }
  0x3c   :  { %9127 = vmatpush3.bf16.msra.mxu0 %v9454_v1  ;;  %v9470_v17 = vld [vmem:[#allocation3 + $0x48] sm:$0xff]   ;;  %v9471_v18 = vld [vmem:[#allocation3 + $0x50] sm:$0xff]   ;;  %v9472_v19 = vld [vmem:[#allocation3 + $0x58] sm:$0xff]   ;;  %1161 = vst [vmem:[#allocation2 + $0x10] sm:$0xf] %v15307_v32 }
  0x3d   :  { %9128 = vmatprep.subr.bf16.mxu0 %v9455_v2  ;;  %v9473_v20 = vld [vmem:[#allocation3 + $0x60] sm:$0xff]   ;;  %v9474_v21 = vld [vmem:[#allocation3 + $0x68] sm:$0xff]   ;;  %v9475_v22 = vld [vmem:[#allocation3 + $0x70] sm:$0xff]   ;;  %1162 = vst [vmem:[#allocation2 + $0x14] sm:$0x1] %v15307_v32 }
  0x3e   :  { %v9476_v23 = vld [vmem:[#allocation3 + $0x78] sm:$0xff]   ;;  %v9477_v24 = vld [vmem:[#allocation3 + $0x80] sm:$0xff]   ;;  %v9478_v25 = vld [vmem:[#allocation3 + $0x88] sm:$0xff]   ;;  %1164 = vst [vmem:[#allocation2 + $0x1c] sm:$0xf] %v15307_v32 }
  0x3f   :  { %v9479_v26 = vld [vmem:[#allocation3 + $0x90] sm:$0xff]   ;;  %v9480_v27 = vld [vmem:[#allocation3 + $0x98] sm:$0xff]   ;;  %v9481_v28 = vld [vmem:[#allocation3 + $0xa0] sm:$0xff]   ;;  %1165 = vst [vmem:[#allocation2 + $0x20] sm:$0x1] %v15307_v32 }
  0x40   :  { %9129 = vmatpush3.bf16.msra.mxu0 %v9455_v2  ;;  %v9482_v29 = vld [vmem:[#allocation3 + $0xa8] sm:$0xff]   ;;  %v9483_v30 = vld [vmem:[#allocation3 + $0xb0] sm:$0xff]   ;;  %v10086_v31 = vld [vmem:[#allocation3 + $0xb8] sm:$0xff]   ;;  %1166 = vst [vmem:[#allocation2 + $0x24] sm:$0xf] %v15307_v32 }
  0x41   :  { %9130 = vmatprep.subr.bf16.mxu0 %v9456_v3  ;;  %1167 = vst [vmem:[#allocation2 + $0x28] sm:$0xf] %v15307_v32  ;;  %1168 = vst [vmem:[#allocation2 + $0x2c] sm:$0x1] %v15307_v32  ;;  %v9485_v33 = vld [vmem:[#allocation3 + $0xc0] sm:$0xff]   ;;  %v9486_v34 = vld [vmem:[#allocation3 + $0xc8] sm:$0xff]  }
  0x42   :  { %1169 = vst [vmem:[#allocation2 + $0x30] sm:$0xf] %v15307_v32  ;;  %1170 = vst [vmem:[#allocation2 + $0x34] sm:$0xf] %v15307_v32  ;;  %v9487_v35 = vld [vmem:[#allocation3 + $0xd0] sm:$0xff]   ;;  %v9488_v36 = vld [vmem:[#allocation3 + $0xd8] sm:$0xff]  }
  0x43   :  { %1171 = vst [vmem:[#allocation2 + $0x38] sm:$0x1] %v15307_v32  ;;  %1172 = vst [vmem:[#allocation2 + $0x3c] sm:$0xf] %v15307_v32  ;;  %v9489_v37 = vld [vmem:[#allocation3 + $0xe0] sm:$0xff]   ;;  %v9490_v38 = vld [vmem:[#allocation3 + $0xe8] sm:$0xff]  }
  0x44   :  { %9131 = vmatpush3.bf16.msra.mxu0 %v9456_v3  ;;  %1173 = vst [vmem:[#allocation2 + $0x40] sm:$0xf] %v15307_v32  ;;  %1174 = vst [vmem:[#allocation2 + $0x44] sm:$0x1] %v15307_v32  ;;  %v9491_v39 = vld [vmem:[#allocation3 + $0xf0] sm:$0xff]   ;;  %v9492_v40 = vld [vmem:[#allocation3 + $0xf8] sm:$0xff]  }
  0x45   :  { %9132 = vmatprep.subr.bf16.mxu0 %v9457_v5  ;;  %1175 = vst [vmem:[#allocation2 + $0x48] sm:$0xf] %v15307_v32  ;;  %1176 = vst [vmem:[#allocation2 + $0x4c] sm:$0xf] %v15307_v32  ;;  %vm1457_vm0 = vsmask.f32 256 }
  0x46   :  { %1177 = vst [vmem:[#allocation2 + $0x50] sm:$0x1] %v15307_v32  ;;  %1178 = vst [vmem:[#allocation2 + $0x54] sm:$0xf] %v15307_v32  ;;  %vm1458_vm1 = vsmask.f32 4368 }
  0x47   :  { %1179 = vst [vmem:[#allocation2 + $0x58] sm:$0xf] %v15307_v32  ;;  %1180 = vst [vmem:[#allocation2 + $0x5c] sm:$0x1] %v15307_v32  ;;  %vm2102_vm6 = vsmask.f32 7938 }
  0x48   :  { %9133 = vmatpush3.bf16.msra.mxu0 %v9457_v5  ;;  %1181 = vst [vmem:[#allocation2 + $0x60] sm:$0xf] %v15307_v32  ;;  %1182 = vst [vmem:[#allocation2 + $0x64] sm:$0xf] %v15307_v32  ;;  %vm2746_vm9 = vsmask.f32 7424 }
  0x49   :  { %9134 = vmatprep.subr.bf16.mxu0 %v9458_v6  ;;  %1183 = vst [vmem:[#allocation2 + $0x68] sm:$0x1] %v15307_v32  ;;  %1184 = vst [vmem:[#allocation2 + $0x6c] sm:$0xf] %v15307_v32 }
  0x4a   :  { %1185 = vst [vmem:[#allocation2 + $0x70] sm:$0xf] %v15307_v32  ;;  %1186 = vst [vmem:[#allocation2 + $0x74] sm:$0x1] %v15307_v32 }
  0x4b   :  { %1187 = vst [vmem:[#allocation2 + $0x78] sm:$0xf] %v15307_v32  ;;  %1188 = vst [vmem:[#allocation2 + $0x7c] sm:$0xf] %v15307_v32 }
  0x4c   :  { %9135 = vmatpush3.bf16.msra.mxu0 %v9458_v6  ;;  %1189 = vst [vmem:[#allocation2 + $0x80] sm:$0x1] %v15307_v32  ;;  %1190 = vst [vmem:[#allocation2 + $0x84] sm:$0xf] %v15307_v32 }
  0x4d   :  { %9136 = vmatprep.subr.bf16.mxu0 %v9459_v7  ;;  %1191 = vst [vmem:[#allocation2 + $0x88] sm:$0xf] %v15307_v32  ;;  %1192 = vst [vmem:[#allocation2 + $0x8c] sm:$0x1] %v15307_v32 }
  0x4e   :  { %1193 = vst [vmem:[#allocation2 + $0x90] sm:$0xf] %v15307_v32  ;;  %1194 = vst [vmem:[#allocation2 + $0x94] sm:$0xf] %v15307_v32 }
  0x4f   :  { %1195 = vst [vmem:[#allocation2 + $0x98] sm:$0x1] %v15307_v32  ;;  %1196 = vst [vmem:[#allocation2 + $0x9c] sm:$0xf] %v15307_v32 }
  0x50   :  { %9137 = vmatpush3.bf16.msra.mxu0 %v9459_v7  ;;  %1197 = vst [vmem:[#allocation2 + $0xa0] sm:$0xf] %v15307_v32  ;;  %1198 = vst [vmem:[#allocation2 + $0xa4] sm:$0x1] %v15307_v32 }
  0x51   :  { %9138 = vmatprep.subr.bf16.mxu0 %v9460_v8  ;;  %1199 = vst [vmem:[#allocation2 + $0xa8] sm:$0xf] %v15307_v32  ;;  %1200 = vst [vmem:[#allocation2 + $0xac] sm:$0xf] %v15307_v32 }
  0x52   :  { %1201 = vst [vmem:[#allocation2 + $0xb0] sm:$0x1] %v15307_v32  ;;  %1202 = vst [vmem:[#allocation2 + $0xb4] sm:$0xf] %v15307_v32 }
  0x53   :  { %1203 = vst [vmem:[#allocation2 + $0xb8] sm:$0xf] %v15307_v32  ;;  %1204 = vst [vmem:[#allocation2 + $0xbc] sm:$0x1] %v15307_v32 }
  0x54   :  { %9139 = vmatpush3.bf16.msra.mxu0 %v9460_v8  ;;  %1205 = vst [vmem:[#allocation2 + $0xc0] sm:$0xf] %v15307_v32  ;;  %1206 = vst [vmem:[#allocation2 + $0xc4] sm:$0xf] %v15307_v32 }
  0x55   :  { %1207 = vst [vmem:[#allocation2 + $0xc8] sm:$0x1] %v15307_v32  ;;  %1208 = vst [vmem:[#allocation2 + $0xcc] sm:$0xf] %v15307_v32 }
  0x56   :  { %1209 = vst [vmem:[#allocation2 + $0xd0] sm:$0xf] %v15307_v32  ;;  %1210 = vst [vmem:[#allocation2 + $0xd4] sm:$0x1] %v15307_v32 }
  0x57   :  { %9141 = vmatmul.mubr.bf16.vlgmr.msra.gmra.mrb[0].mxu0 %v9462_v9  ;;  %1211 = vst [vmem:[#allocation2 + $0xd8] sm:$0xf] %v15307_v32  ;;  %1212 = vst [vmem:[#allocation2 + $0xdc] sm:$0xf] %v15307_v32 }
  0x58   :  { %9144 = vmatprep.mubr.bf16.mxu0 %v9463_v10  ;;  %1213 = vst [vmem:[#allocation2 + $0xe0] sm:$0x1] %v15307_v32  ;;  %1214 = vst [vmem:[#allocation2 + $0xe4] sm:$0xf] %v15307_v32 }
  0x59   :  { %1215 = vst [vmem:[#allocation2 + $0xe8] sm:$0xf] %v15307_v32  ;;  %1216 = vst [vmem:[#allocation2 + $0xec] sm:$0x1] %v15307_v32 }
  0x5a   :  { %1217 = vst [vmem:[#allocation2 + $0xf0] sm:$0xf] %v15307_v32  ;;  %1218 = vst [vmem:[#allocation2 + $0xf4] sm:$0xf] %v15307_v32 }
  0x5b   :  { %1219 = vst [vmem:[#allocation2 + $0xf8] sm:$0x1] %v15307_v32  ;;  %1220 = vst [vmem:[#allocation2 + $0xfc] sm:$0xf] %v15307_v32 }
  0x5c   :  { %1221 = vst [vmem:[#allocation2 + $0x100] sm:$0xf] %v15307_v32  ;;  %1222 = vst [vmem:[#allocation2 + $0x104] sm:$0x1] %v15307_v32 }
  0x5d   :  { %1223 = vst [vmem:[#allocation2 + $0x108] sm:$0xf] %v15307_v32  ;;  %1224 = vst [vmem:[#allocation2 + $0x10c] sm:$0xf] %v15307_v32 }
  0x5e   :  { %1225 = vst [vmem:[#allocation2 + $0x110] sm:$0x1] %v15307_v32  ;;  %1226 = vst [vmem:[#allocation2 + $0x114] sm:$0xf] %v15307_v32 }
  0x5f   :  { %9145 = vmatmul.mubr.bf16.gmra.mrb[4].mxu0 %v9464_v11  ;;  %1227 = vst [vmem:[#allocation2 + $0x118] sm:$0xf] %v15307_v32  ;;  %1228 = vst [vmem:[#allocation2 + $0x11c] sm:$0x1] %v15307_v32 }
  0x60   :  { %9148 = vmatprep.mubr.bf16.mxu0 %v9465_v12  ;;  %1229 = vst [vmem:[#allocation2 + $0x120] sm:$0xf] %v15307_v32  ;;  %1230 = vst [vmem:[#allocation2 + $0x124] sm:$0xf] %v15307_v32 }
  0x61   :  { %1231 = vst [vmem:[#allocation2 + $0x128] sm:$0x1] %v15307_v32  ;;  %1232 = vst [vmem:[#allocation2 + $0x12c] sm:$0xf] %v15307_v32 }
  0x62   :  { %1233 = vst [vmem:[#allocation2 + $0x130] sm:$0xf] %v15307_v32  ;;  %1234 = vst [vmem:[#allocation2 + $0x134] sm:$0x1] %v15307_v32 }
  0x63   :  { %1235 = vst [vmem:[#allocation2 + $0x138] sm:$0xf] %v15307_v32  ;;  %1236 = vst [vmem:[#allocation2 + $0x13c] sm:$0xf] %v15307_v32 }
  0x64   :  { %1237 = vst [vmem:[#allocation2 + $0x140] sm:$0x1] %v15307_v32  ;;  %1238 = vst [vmem:[#allocation2 + $0x144] sm:$0xf] %v15307_v32 }
  0x65   :  { %1239 = vst [vmem:[#allocation2 + $0x148] sm:$0xf] %v15307_v32  ;;  %1240 = vst [vmem:[#allocation2 + $0x14c] sm:$0x1] %v15307_v32 }
  0x66   :  { %1241 = vst [vmem:[#allocation2 + $0x150] sm:$0xf] %v15307_v32  ;;  %1242 = vst [vmem:[#allocation2 + $0x154] sm:$0xf] %v15307_v32 }
  0x67   :  { %9149 = vmatmul.mubr.bf16.gmra.mrb[8].mxu0 %v9466_v13  ;;  %1243 = vst [vmem:[#allocation2 + $0x158] sm:$0x1] %v15307_v32  ;;  %1244 = vst [vmem:[#allocation2 + $0x15c] sm:$0xf] %v15307_v32 }
  0x68   :  { %9152 = vmatprep.mubr.bf16.mxu0 %v9467_v14  ;;  %1245 = vst [vmem:[#allocation2 + $0x160] sm:$0xf] %v15307_v32  ;;  %1246 = vst [vmem:[#allocation2 + $0x164] sm:$0x1] %v15307_v32 }
  0x69   :  { %1247 = vst [vmem:[#allocation2 + $0x168] sm:$0xf] %v15307_v32  ;;  %1248 = vst [vmem:[#allocation2 + $0x16c] sm:$0xf] %v15307_v32 }
  0x6a   :  { %1249 = vst [vmem:[#allocation2 + $0x170] sm:$0x1] %v15307_v32  ;;  %1250 = vst [vmem:[#allocation2 + $0x174] sm:$0xf] %v15307_v32 }
  0x6b   :  { %1251 = vst [vmem:[#allocation2 + $0x178] sm:$0xf] %v15307_v32  ;;  %1252 = vst [vmem:[#allocation2 + $0x17c] sm:$0x1] %v15307_v32 }
  0x6c   :  { %1253 = vst [vmem:[#allocation2 + $0x180] sm:$0xf] %v15307_v32  ;;  %1254 = vst [vmem:[#allocation2 + $0x184] sm:$0xf] %v15307_v32 }
  0x6d   :  { %1255 = vst [vmem:[#allocation2 + $0x188] sm:$0x1] %v15307_v32  ;;  %1256 = vst [vmem:[#allocation2 + $0x18c] sm:$0xf] %v15307_v32 }
  0x6e   :  { %1257 = vst [vmem:[#allocation2 + $0x190] sm:$0xf] %v15307_v32  ;;  %1258 = vst [vmem:[#allocation2 + $0x194] sm:$0x1] %v15307_v32 }
  0x6f   :  { %9153 = vmatmul.mubr.bf16.gmra.mrb[12].mxu0 %v9468_v15  ;;  %1259 = vst [vmem:[#allocation2 + $0x198] sm:$0xf] %v15307_v32  ;;  %1260 = vst [vmem:[#allocation2 + $0x19c] sm:$0xf] %v15307_v32 }
  0x70   :  { %9156 = vmatprep.mubr.bf16.mxu0 %v9469_v16  ;;  %1261 = vst [vmem:[#allocation2 + $0x1a0] sm:$0x1] %v15307_v32  ;;  %1262 = vst [vmem:[#allocation2 + $0x1a4] sm:$0xf] %v15307_v32 }
  0x71   :  { %1263 = vst [vmem:[#allocation2 + $0x1a8] sm:$0xf] %v15307_v32  ;;  %1264 = vst [vmem:[#allocation2 + $0x1ac] sm:$0x1] %v15307_v32 }
  0x72   :  { %vm10690_vm3 = vmor %vm1457_vm0, %vm1458_vm1 }
  0x73   :  { %vm10706_vm4 = vmand %vm2108_vm2, %vm1457_vm0 }
  0x74   :  { %vm11792_vm7 = vmand %vm2101_vm5, %vm2102_vm6 }
  0x77   :  { %9157 = vmatmul.mubr.bf16.gmra.mrb[16].mxu0 %v9470_v17 }
  0x78   :  { %9160 = vmatprep.mubr.bf16.mxu0 %v9471_v18 }
  0x7f   :  { %9161 = vmatmul.mubr.bf16.gmra.mrb[20].mxu0 %v9472_v19 }
  0x80   :  { %9164 = vmatprep.mubr.bf16.mxu0 %v9473_v20 }
  0x87   :  { %9165 = vmatmul.mubr.bf16.gmra.mrb[24].mxu0 %v9474_v21 }
  0x88   :  { %9168 = vmatprep.mubr.bf16.mxu0 %v9475_v22 }
  0x8f   :  { %9169 = vmatmul.mubr.bf16.gmra.mrb[28].mxu0 %v9476_v23 }
  0x90   :  { %9172 = vmatprep.mubr.bf16.mxu0 %v9477_v24 }
  0x97   :  { %9173 = vmatmul.mubr.bf16.gmra.mrb[32].mxu0 %v9478_v25 }
  0x98   :  { %9176 = vmatprep.mubr.bf16.mxu0 %v9479_v26 }
  0x9f   :  { %9177 = vmatmul.mubr.bf16.gmra.mrb[36].mxu0 %v9480_v27 }
  0xa0   :  { %9180 = vmatprep.mubr.bf16.mxu0 %v9481_v28 }
  0xa7   :  { %9181 = vmatmul.mubr.bf16.gmra.mrb[40].mxu0 %v9482_v29 }
  0xa8   :  { %9184 = vmatprep.mubr.bf16.mxu0 %v9483_v30 }
  0xaf   :  { %9185 = vmatmul.mubr.bf16.gmra.mrb[44].mxu0 %v10086_v31 }
  0xb0   :  { %9188 = vmatprep.mubr.bf16.mxu0 %v9485_v33 }
  0xb7   :  { %9189 = vmatmul.mubr.bf16.gmra.mrb[48].mxu0 %v9486_v34 }
  0xb8   :  { %9192 = vmatprep.mubr.bf16.mxu0 %v9487_v35 }
  0xbf   :  { %9193 = vmatmul.mubr.bf16.gmra.mrb[52].mxu0 %v9488_v36 }
  0xc0   :  { %9196 = vmatprep.mubr.bf16.mxu0 %v9489_v37 }
  0xc7   :  { %9197 = vmatmul.mubr.bf16.gmra.mrb[56].mxu0 %v9490_v38 }
  0xc8   :  { %9200 = vmatprep.mubr.bf16.mxu0 %v9491_v39 }
  0xcf   :  { %9201 = vmatmul.mubr.bf16.gmra.mrb[60].mxu0 %v9492_v40 }
 0x12a   :  { %v10198_v41 = vpop.f32.mrb[0].mxu0 }
 0x12b   :  { %15488 = vst [vmem:[#allocation13_spill] sm:$0xff] %v10198_v41  ;;  %v10200_v42 = vpop.f32.mrb[1].mxu0 }
 0x12c   :  { %v10202_v43 = vpop.f32.mrb[2].mxu0 }
 0x12d   :  { %15489 = vst [vmem:[#allocation14_spill] sm:$0xff] %v10202_v43  ;;  %v10204_v44 = vpop.f32.mrb[3].mxu0 }
 0x12e   :  { %15490 = vst [vmem:[#allocation15_spill] sm:$0xff] %v10204_v44  ;;  %v678_v45 = vadd.f32 %v10204_v44, %v10200_v42 }
 0x130   :  { %v679_v46 = vadd.f32 %v10198_v41, %v678_v45 }
 0x132   :  { %v10209_v47 = vpop.f32.mrb[4].mxu0  ;;  %v680_v48 = vadd.f32 %v10202_v43, %v679_v46 }
 0x133   :  { %v10212_v49 = vpop.f32.mrb[5].mxu0 }
 0x134   :  { %15491 = vst [vmem:[#allocation16_spill] sm:$0xff] %v10212_v49  ;;  %v681_v50 = vadd.f32 %v680_v48, %v10212_v49  ;;  %v10215_v51 = vpop.f32.mrb[6].mxu0 }
 0x135   :  { %v10217_v52 = vpop.f32.mrb[7].mxu0 }
 0x136   :  { %v682_v53 = vadd.f32 %v681_v50, %v10217_v52 }
 0x138   :  { %v683_v54 = vadd.f32 %v10209_v47, %v682_v53 }
 0x13a   :  { %v10221_v55 = vpop.f32.mrb[8].mxu0  ;;  %v684_v56 = vadd.f32 %v10215_v51, %v683_v54 }
 0x13b   :  { %v10224_v57 = vpop.f32.mrb[9].mxu0 }
 0x13c   :  { %v685_v58 = vadd.f32 %v684_v56, %v10224_v57  ;;  %v10227_v59 = vpop.f32.mrb[10].mxu0 }
 0x13d   :  { %v10229_v60 = vpop.f32.mrb[11].mxu0 }
 0x13e   :  { %v686_v61 = vadd.f32 %v685_v58, %v10229_v60 }
 0x140   :  { %v687_v62 = vadd.f32 %v10221_v55, %v686_v61 }
 0x142   :  { %v10233_v63 = vpop.f32.mrb[12].mxu0  ;;  %v688_v0 = vadd.f32 %v10227_v59, %v687_v62 }
 0x143   :  { %v10236_v1 = vpop.f32.mrb[13].mxu0 }
 0x144   :  { %v689_v2 = vadd.f32 %v688_v0, %v10236_v1  ;;  %v10239_v3 = vpop.f32.mrb[14].mxu0 }
 0x145   :  { %v10241_v4 = vpop.f32.mrb[15].mxu0 }
 0x146   :  { %v690_v5 = vadd.f32 %v689_v2, %v10241_v4 }
 0x148   :  { %v691_v6 = vadd.f32 %v10233_v63, %v690_v5 }
 0x14a   :  { %v10245_v7 = vpop.f32.mrb[16].mxu0  ;;  %v692_v8 = vadd.f32 %v10239_v3, %v691_v6 }
 0x14b   :  { %v10248_v9 = vpop.f32.mrb[17].mxu0 }
 0x14c   :  { %v693_v10 = vadd.f32 %v692_v8, %v10248_v9  ;;  %v10251_v11 = vpop.f32.mrb[18].mxu0 }
 0x14d   :  { %v10253_v12 = vpop.f32.mrb[19].mxu0 }
 0x14e   :  { %v694_v13 = vadd.f32 %v693_v10, %v10253_v12 }
 0x150   :  { %v695_v14 = vadd.f32 %v10245_v7, %v694_v13 }
 0x152   :  { %v10257_v15 = vpop.f32.mrb[20].mxu0  ;;  %v696_v16 = vadd.f32 %v10251_v11, %v695_v14 }
 0x153   :  { %v10260_v17 = vpop.f32.mrb[21].mxu0 }
 0x154   :  { %v697_v18 = vadd.f32 %v696_v16, %v10260_v17  ;;  %v10263_v19 = vpop.f32.mrb[22].mxu0 }
 0x155   :  { %v10265_v20 = vpop.f32.mrb[23].mxu0 }
 0x156   :  { %v698_v21 = vadd.f32 %v697_v18, %v10265_v20 }
 0x158   :  { %v699_v22 = vadd.f32 %v10257_v15, %v698_v21 }
 0x15a   :  { %v10269_v23 = vpop.f32.mrb[24].mxu0  ;;  %v700_v24 = vadd.f32 %v10263_v19, %v699_v22 }
 0x15b   :  { %v10272_v25 = vpop.f32.mrb[25].mxu0 }
 0x15c   :  { %v701_v26 = vadd.f32 %v700_v24, %v10272_v25  ;;  %v10275_v27 = vpop.f32.mrb[26].mxu0 }
 0x15d   :  { %v10277_v28 = vpop.f32.mrb[27].mxu0 }
 0x15e   :  { %v702_v29 = vadd.f32 %v701_v26, %v10277_v28 }
 0x160   :  { %v703_v30 = vadd.f32 %v10269_v23, %v702_v29 }
 0x162   :  { %v10281_v31 = vpop.f32.mrb[28].mxu0  ;;  %v704_v33 = vadd.f32 %v10275_v27, %v703_v30 }
 0x163   :  { %v10284_v34 = vpop.f32.mrb[29].mxu0 }
 0x164   :  { %v705_v35 = vadd.f32 %v704_v33, %v10284_v34  ;;  %v10287_v36 = vpop.f32.mrb[30].mxu0 }
 0x165   :  { %v10289_v37 = vpop.f32.mrb[31].mxu0 }
 0x166   :  { %v706_v38 = vadd.f32 %v705_v35, %v10289_v37 }
 0x168   :  { %v707_v39 = vadd.f32 %v10281_v31, %v706_v38 }
 0x16a   :  { %v10293_v40 = vpop.f32.mrb[32].mxu0  ;;  %v708_v45 = vadd.f32 %v10287_v36, %v707_v39 }
 0x16b   :  { %v10296_v46 = vpop.f32.mrb[33].mxu0 }
 0x16c   :  { %v709_v48 = vadd.f32 %v708_v45, %v10296_v46  ;;  %v10299_v50 = vpop.f32.mrb[34].mxu0 }
 0x16d   :  { %v10301_v53 = vpop.f32.mrb[35].mxu0 }
 0x16e   :  { %v710_v54 = vadd.f32 %v709_v48, %v10301_v53 }
 0x170   :  { %v711_v56 = vadd.f32 %v10293_v40, %v710_v54 }
 0x172   :  { %v10305_v58 = vpop.f32.mrb[36].mxu0  ;;  %v712_v61 = vadd.f32 %v10299_v50, %v711_v56 }
 0x173   :  { %v10308_v62 = vpop.f32.mrb[37].mxu0 }
 0x174   :  { %v713_v0 = vadd.f32 %v712_v61, %v10308_v62  ;;  %v10311_v2 = vpop.f32.mrb[38].mxu0 }
 0x175   :  { %v10313_v5 = vpop.f32.mrb[39].mxu0 }
 0x176   :  { %v714_v6 = vadd.f32 %v713_v0, %v10313_v5 }
 0x178   :  { %v715_v8 = vadd.f32 %v10305_v58, %v714_v6 }
 0x17a   :  { %v10317_v10 = vpop.f32.mrb[40].mxu0  ;;  %v716_v13 = vadd.f32 %v10311_v2, %v715_v8 }
 0x17b   :  { %15492 = vst [vmem:[#allocation17_spill] sm:$0xff] %v10317_v10  ;;  %v10320_v14 = vpop.f32.mrb[41].mxu0 }
 0x17c   :  { %v717_v16 = vadd.f32 %v716_v13, %v10320_v14  ;;  %v10323_v18 = vpop.f32.mrb[42].mxu0 }
 0x17d   :  { %15493 = vst [vmem:[#allocation18_spill] sm:$0xff] %v10323_v18  ;;  %v10325_v21 = vpop.f32.mrb[43].mxu0 }
 0x17e   :  { %15494 = vst [vmem:[#allocation19_spill] sm:$0xff] %v10325_v21  ;;  %v718_v22 = vadd.f32 %v717_v16, %v10325_v21 }
 0x180   :  { %v719_v24 = vadd.f32 %v10317_v10, %v718_v22 }
 0x182   :  { %v10329_v26 = vpop.f32.mrb[44].mxu0  ;;  %v720_v29 = vadd.f32 %v10323_v18, %v719_v24 }
 0x183   :  { %15495 = vst [vmem:[#allocation20_spill] sm:$0xff] %v10329_v26  ;;  %v10332_v30 = vpop.f32.mrb[45].mxu0 }
 0x184   :  { %15496 = vst [vmem:[#allocation21_spill] sm:$0xff] %v10332_v30  ;;  %v721_v33 = vadd.f32 %v720_v29, %v10332_v30  ;;  %v10335_v35 = vpop.f32.mrb[46].mxu0 }
 0x185   :  { %15497 = vst [vmem:[#allocation22_spill] sm:$0xff] %v10335_v35  ;;  %v10337_v38 = vpop.f32.mrb[47].mxu0 }
 0x186   :  { %15498 = vst [vmem:[#allocation23_spill] sm:$0xff] %v10337_v38  ;;  %v722_v39 = vadd.f32 %v721_v33, %v10337_v38 }
 0x188   :  { %v723_v45 = vadd.f32 %v10329_v26, %v722_v39 }
 0x18a   :  { %v10341_v48 = vpop.f32.mrb[48].mxu0  ;;  %v724_v54 = vadd.f32 %v10335_v35, %v723_v45 }
 0x18b   :  { %15499 = vst [vmem:[#allocation24_spill] sm:$0xff] %v10341_v48  ;;  %v10344_v56 = vpop.f32.mrb[49].mxu0 }
 0x18c   :  { %15500 = vst [vmem:[#allocation25_spill] sm:$0xff] %v10344_v56  ;;  %v725_v61 = vadd.f32 %v724_v54, %v10344_v56  ;;  %v10347_v0 = vpop.f32.mrb[50].mxu0 }
 0x18d   :  { %15501 = vst [vmem:[#allocation26_spill] sm:$0xff] %v10347_v0  ;;  %v10349_v6 = vpop.f32.mrb[51].mxu0 }
 0x18e   :  { %15502 = vst [vmem:[#allocation27_spill] sm:$0xff] %v10349_v6  ;;  %v726_v8 = vadd.f32 %v725_v61, %v10349_v6 }
 0x190   :  { %v727_v13 = vadd.f32 %v10341_v48, %v726_v8 }
 0x192   :  { %v10353_v16 = vpop.f32.mrb[52].mxu0  ;;  %v728_v22 = vadd.f32 %v10347_v0, %v727_v13 }
 0x193   :  { %15503 = vst [vmem:[#allocation28_spill] sm:$0xff] %v10353_v16  ;;  %v10356_v24 = vpop.f32.mrb[53].mxu0 }
 0x194   :  { %15504 = vst [vmem:[#allocation29_spill] sm:$0xff] %v10356_v24  ;;  %v729_v29 = vadd.f32 %v728_v22, %v10356_v24  ;;  %v10359_v33 = vpop.f32.mrb[54].mxu0 }
 0x195   :  { %15505 = vst [vmem:[#allocation30_spill] sm:$0xff] %v10359_v33  ;;  %v10361_v39 = vpop.f32.mrb[55].mxu0 }
 0x196   :  { %15506 = vst [vmem:[#allocation31_spill] sm:$0xff] %v10361_v39  ;;  %v730_v45 = vadd.f32 %v729_v29, %v10361_v39 }
 0x198   :  { %v731_v54 = vadd.f32 %v10353_v16, %v730_v45 }
 0x19a   :  { %v10365_v32 = vpop.f32.mrb[56].mxu0  ;;  %v732_v61 = vadd.f32 %v10359_v33, %v731_v54 }
 0x19b   :  { %15507 = vst [vmem:[#allocation32_spill] sm:$0xff] %v10365_v32  ;;  %v10368_v8 = vpop.f32.mrb[57].mxu0 }
 0x19c   :  { %15508 = vst [vmem:[#allocation33_spill] sm:$0xff] %v10368_v8  ;;  %v733_v13 = vadd.f32 %v732_v61, %v10368_v8  ;;  %v10371_v0 = vpop.f32.mrb[58].mxu0 }
 0x19d   :  { %15509 = vst [vmem:[#allocation34_spill] sm:$0xff] %v10371_v0  ;;  %v10373_v48 = vpop.f32.mrb[59].mxu0 }
 0x19e   :  { %15510 = vst [vmem:[#allocation35_spill] sm:$0xff] %v10373_v48  ;;  %v734_v22 = vadd.f32 %v733_v13, %v10373_v48 }
 0x1a0   :  { %v735_v24 = vadd.f32 %v10365_v32, %v734_v22 }
 0x1a2   :  { %v10377_v6 = vpop.f32.mrb[60].mxu0  ;;  %v736_v29 = vadd.f32 %v10371_v0, %v735_v24 }
 0x1a3   :  { %15511 = vst [vmem:[#allocation36_spill] sm:$0xff] %v10377_v6  ;;  %v10380_v45 = vpop.f32.mrb[61].mxu0 }
 0x1a4   :  { %15512 = vst [vmem:[#allocation37_spill] sm:$0xff] %v10380_v45  ;;  %v737_v54 = vadd.f32 %v736_v29, %v10380_v45  ;;  %v10383_v33 = vpop.f32.mrb[62].mxu0 }
 0x1a5   :  { %v10385_v16 = vpop.f32.mrb[63].mxu0 }
 0x1a6   :  { %v738_v61 = vadd.f32 %v737_v54, %v10385_v16 }
 0x1a8   :  { %v739_v8 = vadd.f32 %v10377_v6, %v738_v61 }
 0x1aa   :  { %v740_v13 = vadd.f32 %v10383_v33, %v739_v8 }
 0x1ac   :  { %v741_v48 = vrot.slane %v740_v13, 4 }
 0x1ae   :  { %v742_v22 = vadd.f32 %v741_v48, %v740_v13 }
 0x1b0   :  { %v743_v32 = vrot.slane %v742_v22, 2 }
 0x1b2   :  { %v744_v39 = vadd.f32 %v743_v32, %v742_v22 }
 0x1b4   :  { %v745_v56 = vrot.slane %v744_v39, 1 }
 0x1b6   :  { %v746_v24 = vadd.f32 %v745_v56, %v744_v39 }
 0x1b8   :  { %v10390_v0 = vmul.f32 0.001953125, %v746_v24 }
 0x1ba   :  { %v748_v29 = vsub.f32 %v10200_v42, %v10390_v0  ;;  %v749_v45 = vsub.f32 %v10204_v44, %v10390_v0  ;;  %v750_v54 = vsub.f32 %v10198_v41, %v10390_v0  ;;  %v751_v48 = vsub.f32 %v10202_v43, %v10390_v0 }
 0x1bb   :  { %v752_v32 = vsub.f32 %v10212_v49, %v10390_v0  ;;  %v753_v8 = vsub.f32 %v10217_v52, %v10390_v0  ;;  %v754_v24 = vsub.f32 %v10209_v47, %v10390_v0  ;;  %v756_v49 = vsub.f32 %v10224_v57, %v10390_v0 }
 0x1bc   :  { %v812_v61 = vmul.f32 %v748_v29, %v748_v29  ;;  %v813_v6 = vmul.f32 %v749_v45, %v749_v45  ;;  %v814_v56 = vmul.f32 %v750_v54, %v750_v54  ;;  %v815_v13 = vmul.f32 %v751_v48, %v751_v48 }
 0x1bd   :  { %v816_v44 = vmul.f32 %v752_v32, %v752_v32  ;;  %v755_v45 = vsub.f32 %v10215_v51, %v10390_v0  ;;  %v817_v29 = vmul.f32 %v753_v8, %v753_v8  ;;  %v818_v54 = vmul.f32 %v754_v24, %v754_v24 }
 0x1be   :  { %v876_v39 = vadd.f32 %v813_v6, %v812_v61  ;;  %v757_v61 = vsub.f32 %v10229_v60, %v10390_v0  ;;  %v820_v32 = vmul.f32 %v756_v49, %v756_v49 }
 0x1bf   :  { %v819_v48 = vmul.f32 %v755_v45, %v755_v45 }
 0x1c0   :  { %v877_v22 = vadd.f32 %v876_v39, %v814_v56  ;;  %v758_v39 = vsub.f32 %v10221_v55, %v10390_v0  ;;  %v821_v8 = vmul.f32 %v757_v61, %v757_v61 }
 0x1c2   :  { %v878_v41 = vadd.f32 %v877_v22, %v815_v13  ;;  %v759_v22 = vsub.f32 %v10227_v59, %v10390_v0  ;;  %v822_v24 = vmul.f32 %v758_v39, %v758_v39 }
 0x1c4   :  { %v879_v43 = vadd.f32 %v878_v41, %v816_v44  ;;  %v760_v44 = vsub.f32 %v10236_v1, %v10390_v0  ;;  %v823_v45 = vmul.f32 %v759_v22, %v759_v22 }
 0x1c6   :  { %v880_v6 = vadd.f32 %v879_v43, %v817_v29  ;;  %v761_v29 = vsub.f32 %v10241_v4, %v10390_v0  ;;  %v824_v49 = vmul.f32 %v760_v44, %v760_v44 }
 0x1c8   :  { %v881_v56 = vadd.f32 %v880_v6, %v818_v54  ;;  %v762_v6 = vsub.f32 %v10233_v63, %v10390_v0  ;;  %v825_v61 = vmul.f32 %v761_v29, %v761_v29 }
 0x1ca   :  { %v882_v13 = vadd.f32 %v881_v56, %v819_v48  ;;  %v763_v56 = vsub.f32 %v10239_v3, %v10390_v0  ;;  %v826_v39 = vmul.f32 %v762_v6, %v762_v6 }
 0x1cc   :  { %v883_v41 = vadd.f32 %v882_v13, %v820_v32  ;;  %v764_v13 = vsub.f32 %v10248_v9, %v10390_v0  ;;  %v827_v22 = vmul.f32 %v763_v56, %v763_v56 }
 0x1ce   :  { %v884_v43 = vadd.f32 %v883_v41, %v821_v8  ;;  %v765_v41 = vsub.f32 %v10253_v12, %v10390_v0  ;;  %v828_v44 = vmul.f32 %v764_v13, %v764_v13 }
 0x1d0   :  { %v885_v54 = vadd.f32 %v884_v43, %v822_v24  ;;  %v766_v43 = vsub.f32 %v10245_v7, %v10390_v0  ;;  %v829_v29 = vmul.f32 %v765_v41, %v765_v41 }
 0x1d2   :  { %v886_v48 = vadd.f32 %v885_v54, %v823_v45  ;;  %v767_v54 = vsub.f32 %v10251_v11, %v10390_v0  ;;  %v830_v6 = vmul.f32 %v766_v43, %v766_v43 }
 0x1d4   :  { %v887_v32 = vadd.f32 %v886_v48, %v824_v49  ;;  %v768_v48 = vsub.f32 %v10260_v17, %v10390_v0  ;;  %v831_v56 = vmul.f32 %v767_v54, %v767_v54 }
 0x1d6   :  { %v888_v8 = vadd.f32 %v887_v32, %v825_v61  ;;  %v769_v32 = vsub.f32 %v10265_v20, %v10390_v0  ;;  %v832_v13 = vmul.f32 %v768_v48, %v768_v48 }
 0x1d8   :  { %v889_v24 = vadd.f32 %v888_v8, %v826_v39  ;;  %v770_v8 = vsub.f32 %v10257_v15, %v10390_v0  ;;  %v833_v41 = vmul.f32 %v769_v32, %v769_v32 }
 0x1da   :  { %v890_v45 = vadd.f32 %v889_v24, %v827_v22  ;;  %v771_v24 = vsub.f32 %v10263_v19, %v10390_v0  ;;  %v834_v43 = vmul.f32 %v770_v8, %v770_v8 }
 0x1dc   :  { %v891_v49 = vadd.f32 %v890_v45, %v828_v44  ;;  %v772_v45 = vsub.f32 %v10272_v25, %v10390_v0  ;;  %v835_v54 = vmul.f32 %v771_v24, %v771_v24 }
 0x1de   :  { %v892_v61 = vadd.f32 %v891_v49, %v829_v29  ;;  %v773_v49 = vsub.f32 %v10277_v28, %v10390_v0  ;;  %v836_v48 = vmul.f32 %v772_v45, %v772_v45 }
 0x1e0   :  { %v893_v39 = vadd.f32 %v892_v61, %v830_v6  ;;  %v774_v61 = vsub.f32 %v10269_v23, %v10390_v0  ;;  %v837_v32 = vmul.f32 %v773_v49, %v773_v49 }
 0x1e2   :  { %v894_v22 = vadd.f32 %v893_v39, %v831_v56  ;;  %v775_v39 = vsub.f32 %v10275_v27, %v10390_v0  ;;  %v838_v8 = vmul.f32 %v774_v61, %v774_v61 }
 0x1e4   :  { %v895_v44 = vadd.f32 %v894_v22, %v832_v13  ;;  %v776_v22 = vsub.f32 %v10284_v34, %v10390_v0  ;;  %v839_v24 = vmul.f32 %v775_v39, %v775_v39 }
 0x1e6   :  { %v896_v29 = vadd.f32 %v895_v44, %v833_v41  ;;  %v777_v44 = vsub.f32 %v10289_v37, %v10390_v0  ;;  %v840_v45 = vmul.f32 %v776_v22, %v776_v22 }
 0x1e8   :  { %v897_v6 = vadd.f32 %v896_v29, %v834_v43  ;;  %v778_v29 = vsub.f32 %v10281_v31, %v10390_v0  ;;  %v841_v49 = vmul.f32 %v777_v44, %v777_v44 }
 0x1ea   :  { %v898_v56 = vadd.f32 %v897_v6, %v835_v54  ;;  %v779_v6 = vsub.f32 %v10287_v36, %v10390_v0  ;;  %v842_v61 = vmul.f32 %v778_v29, %v778_v29 }
 0x1ec   :  { %v899_v13 = vadd.f32 %v898_v56, %v836_v48  ;;  %v780_v56 = vsub.f32 %v10296_v46, %v10390_v0  ;;  %v843_v39 = vmul.f32 %v779_v6, %v779_v6 }
 0x1ee   :  { %v900_v41 = vadd.f32 %v899_v13, %v837_v32  ;;  %v781_v13 = vsub.f32 %v10301_v53, %v10390_v0  ;;  %v844_v22 = vmul.f32 %v780_v56, %v780_v56 }
 0x1f0   :  { %v901_v43 = vadd.f32 %v900_v41, %v838_v8  ;;  %v782_v41 = vsub.f32 %v10293_v40, %v10390_v0  ;;  %v845_v44 = vmul.f32 %v781_v13, %v781_v13 }
 0x1f2   :  { %v902_v54 = vadd.f32 %v901_v43, %v839_v24  ;;  %v783_v43 = vsub.f32 %v10299_v50, %v10390_v0  ;;  %v846_v29 = vmul.f32 %v782_v41, %v782_v41 }
 0x1f4   :  { %v903_v48 = vadd.f32 %v902_v54, %v840_v45  ;;  %v784_v54 = vsub.f32 %v10308_v62, %v10390_v0  ;;  %v847_v6 = vmul.f32 %v783_v43, %v783_v43 }
 0x1f6   :  { %v904_v32 = vadd.f32 %v903_v48, %v841_v49  ;;  %v785_v48 = vsub.f32 %v10313_v5, %v10390_v0  ;;  %v848_v56 = vmul.f32 %v784_v54, %v784_v54 }
 0x1f8   :  { %v905_v8 = vadd.f32 %v904_v32, %v842_v61  ;;  %v786_v32 = vsub.f32 %v10305_v58, %v10390_v0  ;;  %v849_v13 = vmul.f32 %v785_v48, %v785_v48 }
 0x1fa   :  { %v906_v24 = vadd.f32 %v905_v8, %v843_v39  ;;  %v787_v8 = vsub.f32 %v10311_v2, %v10390_v0  ;;  %v850_v41 = vmul.f32 %v786_v32, %v786_v32 }
 0x1fc   :  { %v907_v45 = vadd.f32 %v906_v24, %v844_v22  ;;  %v788_v24 = vsub.f32 %v10320_v14, %v10390_v0  ;;  %v851_v43 = vmul.f32 %v787_v8, %v787_v8 }
 0x1fe   :  { %v908_v49 = vadd.f32 %v907_v45, %v845_v44  ;;  %v789_v45 = vsub.f32 %v10325_v21, %v10390_v0  ;;  %v852_v54 = vmul.f32 %v788_v24, %v788_v24 }
 0x200   :  { %v909_v61 = vadd.f32 %v908_v49, %v846_v29  ;;  %v790_v49 = vsub.f32 %v10317_v10, %v10390_v0  ;;  %v853_v48 = vmul.f32 %v789_v45, %v789_v45 }
 0x202   :  { %v910_v39 = vadd.f32 %v909_v61, %v847_v6  ;;  %v791_v61 = vsub.f32 %v10323_v18, %v10390_v0  ;;  %v854_v32 = vmul.f32 %v790_v49, %v790_v49 }
 0x204   :  { %v911_v22 = vadd.f32 %v910_v39, %v848_v56  ;;  %v792_v39 = vsub.f32 %v10332_v30, %v10390_v0  ;;  %v855_v8 = vmul.f32 %v791_v61, %v791_v61 }
 0x206   :  { %v912_v44 = vadd.f32 %v911_v22, %v849_v13  ;;  %v793_v22 = vsub.f32 %v10337_v38, %v10390_v0  ;;  %v856_v24 = vmul.f32 %v792_v39, %v792_v39 }
 0x208   :  { %v913_v29 = vadd.f32 %v912_v44, %v850_v41  ;;  %v794_v44 = vsub.f32 %v10329_v26, %v10390_v0  ;;  %v857_v45 = vmul.f32 %v793_v22, %v793_v22 }
 0x20a   :  { %v914_v6 = vadd.f32 %v913_v29, %v851_v43  ;;  %v795_v29 = vsub.f32 %v10335_v35, %v10390_v0  ;;  %v858_v49 = vmul.f32 %v794_v44, %v794_v44 }
 0x20c   :  { %v915_v56 = vadd.f32 %v914_v6, %v852_v54  ;;  %v15513_v6 = vld [vmem:[#allocation25_spill] sm:$0xff]  ;;  %v859_v61 = vmul.f32 %v795_v29, %v795_v29 }
 0x20d   :  { %v796_v30 = vsub.f32 %v15513_v6, %v10390_v0 }
 0x20e   :  { %v916_v13 = vadd.f32 %v915_v56, %v853_v48  ;;  %v15514_v56 = vld [vmem:[#allocation27_spill] sm:$0xff] }
 0x20f   :  { %v797_v38 = vsub.f32 %v15514_v56, %v10390_v0  ;;  %v860_v39 = vmul.f32 %v796_v30, %v796_v30 }
 0x210   :  { %v917_v41 = vadd.f32 %v916_v13, %v854_v32  ;;  %v15515_v13 = vld [vmem:[#allocation24_spill] sm:$0xff] }
 0x211   :  { %v798_v26 = vsub.f32 %v15515_v13, %v10390_v0  ;;  %v861_v22 = vmul.f32 %v797_v38, %v797_v38 }
 0x212   :  { %v918_v43 = vadd.f32 %v917_v41, %v855_v8  ;;  %v15516_v41 = vld [vmem:[#allocation26_spill] sm:$0xff] }
 0x213   :  { %v799_v35 = vsub.f32 %v15516_v41, %v10390_v0  ;;  %v862_v44 = vmul.f32 %v798_v26, %v798_v26 }
 0x214   :  { %v919_v54 = vadd.f32 %v918_v43, %v856_v24  ;;  %v15517_v43 = vld [vmem:[#allocation29_spill] sm:$0xff] }
 0x215   :  { %v800_v6 = vsub.f32 %v15517_v43, %v10390_v0  ;;  %v863_v29 = vmul.f32 %v799_v35, %v799_v35 }
 0x216   :  { %v920_v48 = vadd.f32 %v919_v54, %v857_v45  ;;  %v15518_v54 = vld [vmem:[#allocation31_spill] sm:$0xff] }
 0x217   :  { %v801_v56 = vsub.f32 %v15518_v54, %v10390_v0  ;;  %v864_v30 = vmul.f32 %v800_v6, %v800_v6 }
 0x218   :  { %v921_v32 = vadd.f32 %v920_v48, %v858_v49  ;;  %v15519_v48 = vld [vmem:[#allocation28_spill] sm:$0xff] }
 0x219   :  { %v802_v13 = vsub.f32 %v15519_v48, %v10390_v0  ;;  %v865_v38 = vmul.f32 %v801_v56, %v801_v56 }
 0x21a   :  { %v922_v8 = vadd.f32 %v921_v32, %v859_v61  ;;  %v15520_v32 = vld [vmem:[#allocation30_spill] sm:$0xff] }
 0x21b   :  { %v803_v41 = vsub.f32 %v15520_v32, %v10390_v0  ;;  %v866_v26 = vmul.f32 %v802_v13, %v802_v13 }
 0x21c   :  { %v923_v24 = vadd.f32 %v922_v8, %v860_v39  ;;  %v15521_v8 = vld [vmem:[#allocation33_spill] sm:$0xff] }
 0x21d   :  { %v804_v43 = vsub.f32 %v15521_v8, %v10390_v0  ;;  %v867_v35 = vmul.f32 %v803_v41, %v803_v41 }
 0x21e   :  { %v924_v45 = vadd.f32 %v923_v24, %v861_v22  ;;  %v15522_v24 = vld [vmem:[#allocation35_spill] sm:$0xff] }
 0x21f   :  { %v805_v54 = vsub.f32 %v15522_v24, %v10390_v0  ;;  %v868_v6 = vmul.f32 %v804_v43, %v804_v43 }
 0x220   :  { %v925_v49 = vadd.f32 %v924_v45, %v862_v44  ;;  %v15523_v45 = vld [vmem:[#allocation32_spill] sm:$0xff] }
 0x221   :  { %v806_v48 = vsub.f32 %v15523_v45, %v10390_v0  ;;  %v869_v56 = vmul.f32 %v805_v54, %v805_v54 }
 0x222   :  { %v926_v61 = vadd.f32 %v925_v49, %v863_v29  ;;  %v15524_v49 = vld [vmem:[#allocation34_spill] sm:$0xff] }
 0x223   :  { %v807_v32 = vsub.f32 %v15524_v49, %v10390_v0  ;;  %v870_v13 = vmul.f32 %v806_v48, %v806_v48 }
 0x224   :  { %v927_v39 = vadd.f32 %v926_v61, %v864_v30  ;;  %v15525_v61 = vld [vmem:[#allocation37_spill] sm:$0xff] }
 0x225   :  { %v808_v8 = vsub.f32 %v15525_v61, %v10390_v0  ;;  %v871_v41 = vmul.f32 %v807_v32, %v807_v32 }
 0x226   :  { %v928_v22 = vadd.f32 %v927_v39, %v865_v38  ;;  %v809_v39 = vsub.f32 %v10385_v16, %v10390_v0 }
 0x227   :  { %v872_v43 = vmul.f32 %v808_v8, %v808_v8  ;;  %v954_v8 = vlaneseq }
 0x228   :  { %v929_v44 = vadd.f32 %v928_v22, %v866_v26  ;;  %v15526_v22 = vld [vmem:[#allocation36_spill] sm:$0xff]  ;;  %v873_v54 = vmul.f32 %v809_v39, %v809_v39  ;;  %v946_v39 = vld [vmem:[%s15301_s2] sm:$0x1] }
 0x229   :  { %v810_v45 = vsub.f32 %v15526_v22, %v10390_v0 }
 0x22a   :  { %v930_v29 = vadd.f32 %v929_v44, %v867_v35  ;;  %v811_v44 = vsub.f32 %v10383_v33, %v10390_v0 }
 0x22c   :  { %v931_v30 = vadd.f32 %v930_v29, %v868_v6  ;;  %v874_v29 = vmul.f32 %v810_v45, %v810_v45  ;;  %v875_v24 = vmul.f32 %v811_v44, %v811_v44 }
 0x22e   :  { %v932_v38 = vadd.f32 %v931_v30, %v869_v56 }
 0x230   :  { %v933_v26 = vadd.f32 %v932_v38, %v870_v13 }
 0x232   :  { %v934_v35 = vadd.f32 %v933_v26, %v871_v41  ;;  %v955_v41 = vshrl.u32 %v954_v8, 7  ;;  %v9493_v26 = vld [vmem:[#allocation8 + $0xc0] sm:$0xff]  }
 0x233   :  { %4685 = vmatpush1.bf16.msra.mxu1 %v9493_v26 }
 0x234   :  { %v935_v6 = vadd.f32 %v934_v35, %v872_v43  ;;  %v10523_v45 = vsub.s32 0, %v955_v41  ;;  %v9494_v43 = vld [vmem:[#allocation8 + $0xc8] sm:$0xff]   ;;  %v9495_v41 = vld [vmem:[#allocation8 + $0xd0] sm:$0xff]  }
 0x236   :  { %v936_v49 = vadd.f32 %v935_v6, %v873_v54  ;;  %15527 = vst [vmem:[#allocation37_spill] sm:$0xff] %v10523_v45 }
 0x238   :  { %v937_v48 = vadd.f32 %v936_v49, %v874_v29  ;;  %v15529_v29 = vld [vmem:[#allocation15_spill] sm:$0xff] }
 0x23a   :  { %v938_v56 = vadd.f32 %v937_v48, %v875_v24  ;;  %v15530_v48 = vld [vmem:[#allocation13_spill] sm:$0xff] }
 0x23c   :  { %v939_v30 = vrot.slane %v938_v56, 4 }
 0x23e   :  { %v940_v18 = vadd.f32 %v939_v30, %v938_v56 }
 0x240   :  { %v941_v10 = vrot.slane %v940_v18, 2 }
 0x242   :  { %v942_v32 = vadd.f32 %v941_v10, %v940_v18  ;;  %v950_v10 = vld [vmem:[%s15302_s3] sm:$0x1]  ;;  %v15528_v18 = vmov 0  }
 0x243   :  { %4686 = vmatprep.subr.bf16.mxu1 %v15528_v18 }
 0x244   :  { %v943_v13 = vrot.slane %v942_v32, 1  ;;  %4687 = vmatpush1.bf16.msra.mxu1 %v9494_v43 }
 0x245   :  { %4688 = vmatprep.subr.bf16.mxu1 %v15528_v18 }
 0x246   :  { %v944_v38 = vadd.f32 %v943_v13, %v942_v32 }
 0x248   :  { %v945_v21 = vmul.f32 0.001953125, %v944_v38  ;;  %4689 = vmatpush1.bf16.msra.mxu1 %v9495_v41  ;;  %v2320_v41 = vld [vmem:[#allocation2 + $0x194] sm:$0x1] }
 0x249   :  { %4690 = vmatprep.subr.bf16.mxu1 %v15528_v18 }
 0x24a   :  { %v947_v22 = vadd.f32 1e-05, %v945_v21 }
 0x24c   :  { %9853 = vrsqrt.f32 %v947_v22 }
 0x256   :  { %v9854_v49 = vpop.eup %9853 }
 0x257   :  { %v949_v24 = vmul.f32 %v9854_v49, %v946_v39 }
 0x259   :  { %v951_v21 = vmul.f32 %v949_v24, %v10390_v0  ;;  %v10531_v22 = vrot.slane %v949_v24, %v10523_v45 }
 0x25b   :  { %v952_v35 = vsub.f32 %v950_v10, %v951_v21  ;;  %v1019_v44 = vmul.f32 %v10531_v22, %v15525_v61  ;;  %v1020_v54 = vmul.f32 %v10531_v22, %v10385_v16  ;;  %v10539_v6 = vmul.f32 %v10531_v22, %v10200_v42  ;;  %v15531_v61 = vld [vmem:[#allocation14_spill] sm:$0xff]  ;;  %v15532_v16 = vld [vmem:[#allocation16_spill] sm:$0xff] }
 0x25c   :  { %v10543_v0 = vmul.f32 %v10531_v22, %v15529_v29  ;;  %v10547_v56 = vmul.f32 %v15530_v48, %v10531_v22  ;;  %v10551_v30 = vmul.f32 %v15531_v61, %v10531_v22  ;;  %v10555_v32 = vmul.f32 %v10531_v22, %v15532_v16  ;;  %v9496_v21 = vld [vmem:[#allocation8 + $0xd8] sm:$0xff]  }
 0x25d   :  { %v10559_v42 = vrot.slane %v952_v35, %v10523_v45  ;;  %v10563_v13 = vmul.f32 %v10531_v22, %v10217_v52  ;;  %v10567_v38 = vmul.f32 %v10209_v47, %v10531_v22  ;;  %v10571_v8 = vmul.f32 %v10215_v51, %v10531_v22  ;;  %4691 = vmatpush1.bf16.msra.mxu1 %v9496_v21 }
 0x25e   :  { %v10575_v39 = vmul.f32 %v10531_v22, %v10224_v57  ;;  %v10579_v26 = vmul.f32 %v10531_v22, %v10229_v60  ;;  %v10583_v52 = vmul.f32 %v10221_v55, %v10531_v22  ;;  %v10587_v47 = vmul.f32 %v10227_v59, %v10531_v22  ;;  %4692 = vmatprep.subr.bf16.mxu1 %v15528_v18 }
 0x25f   :  { %v1089_v51 = vadd.f32 %v10559_v42, %v1019_v44  ;;  %v1090_v49 = vadd.f32 %v10559_v42, %v1020_v54  ;;  %v10593_v57 = vmul.f32 %v10531_v22, %v10236_v1  ;;  %v10597_v60 = vmul.f32 %v10531_v22, %v10241_v4 }
 0x260   :  { %v10601_v55 = vmul.f32 %v10233_v63, %v10531_v22  ;;  %v10605_v59 = vmul.f32 %v10239_v3, %v10531_v22  ;;  %v10609_v24 = vmul.f32 %v10531_v22, %v10248_v9  ;;  %v10613_v1 = vmul.f32 %v10531_v22, %v10253_v12 }
 0x261   :  { %v1153_v4 = vmax.f32 %v1089_v51, 0.0  ;;  %v1154_v10 = vmax.f32 %v1090_v49, 0.0  ;;  %v10618_v63 = vmul.f32 %v10245_v7, %v10531_v22  ;;  %v10622_v3 = vmul.f32 %v10251_v11, %v10531_v22 }
 0x262   :  { %v10626_v9 = vmul.f32 %v10531_v22, %v10260_v17  ;;  %v10630_v12 = vmul.f32 %v10531_v22, %v10265_v20  ;;  %v10634_v43 = vmul.f32 %v10257_v15, %v10531_v22  ;;  %v10638_v7 = vmul.f32 %v10263_v19, %v10531_v22 }
 0x263   :  { %v10640_v35 = vpack.c.bf16 %v1153_v4, %v1153_v4  ;;  %v8961_v11 = vpack.c.bf16 %v1154_v10, %v1154_v10  ;;  %v10644_v44 = vmul.f32 %v10531_v22, %v10272_v25  ;;  %v10648_v17 = vmul.f32 %v10531_v22, %v10277_v28 }
 0x264   :  { %v10652_v15 = vmul.f32 %v10269_v23, %v10531_v22  ;;  %v10656_v19 = vmul.f32 %v10275_v27, %v10531_v22  ;;  %v10660_v20 = vmul.f32 %v10531_v22, %v10284_v34  ;;  %v10664_v25 = vmul.f32 %v10531_v22, %v10289_v37  ;;  %v9497_v27 = vld [vmem:[#allocation8 + $0xe0] sm:$0xff]  }
 0x265   :  { %15533 = vst [vmem:[#allocation15_spill] sm:$0xff] %v10640_v35  ;;  %v1971_v28 = vshrl.u32 %v10640_v35, 16  ;;  %v1979_v54 = vshrl.u32 %v8961_v11, 16  ;;  %v1982_v29 = vshll.u32 %v8961_v11, 16  ;;  %v10670_v23 = vmul.f32 %v10281_v31, %v10531_v22  ;;  %4693 = vmatpush1.bf16.msra.mxu1 %v9497_v27 }
 0x266   :  { %v10674_v48 = vmul.f32 %v10287_v36, %v10531_v22  ;;  %v10678_v34 = vmul.f32 %v10531_v22, %v10296_v46  ;;  %v10682_v37 = vmul.f32 %v10531_v22, %v10301_v53  ;;  %v10686_v61 = vmul.f32 %v10293_v40, %v10531_v22  ;;  %4694 = vmatprep.subr.bf16.mxu1 %v15528_v18 }
 0x267   :  { %v15534_v31 = vmov 0  ;;  %v10694_v36 = vrot.slane %v1971_v28, 7  ;;  %v1981_v16 = vrot.slane %v1979_v54, 7  ;;  %v10698_v46 = vmul.f32 %v10299_v50, %v10531_v22  ;;  %v15542_v28 = vld [vmem:[#allocation17_spill] sm:$0xff] }
 0x268   :  { %v15535_v31 = vsel %vm10690_vm3, 4294967295, %v15534_v31  ;;  %v10702_v53 = vmul.f32 %v10531_v22, %v10308_v62  ;;  %v15538_v40 = vmov 0  ;;  %v10712_v51 = vmul.f32 %v10531_v22, %v10313_v5  ;;  %v15541_v5 = vld [vmem:[#allocation19_spill] sm:$0xff] }
 0x269   :  { %15536 = vst [vmem:[#allocation13_spill] sm:$0xff] %v15535_v31  ;;  %15537 = vst [vmem:[#allocation14_spill] sm:$0xff] %v10694_v36  ;;  %v15539_v40 = vsel %vm10706_vm4, 4294967295, %v15538_v40  ;;  %v10716_v50 = vmul.f32 %v10305_v58, %v10531_v22  ;;  %v10720_v62 = vmul.f32 %v10311_v2, %v10531_v22  ;;  %v10724_v49 = vmul.f32 %v10531_v22, %v10320_v14  ;;  %v9498_v58 = vld [vmem:[#allocation8 + $0xe8] sm:$0xff]   ;;  %v15546_v14 = vld [vmem:[#allocation21_spill] sm:$0xff] }
 0x26a   :  { %15540 = vst [vmem:[#allocation16_spill] sm:$0xff] %v15539_v40  ;;  %v1977_v4 = vrot.slane %v10694_v36, 4  ;;  %v1984_v10 = vor.u32 %v1982_v29, %v1981_v16  ;;  %v1986_v21 = vrot.slane %v1981_v16, 4  ;;  %v10730_v11 = vmul.f32 %v10531_v22, %v15541_v5  ;;  %v15544_v2 = vld [vmem:[#allocation18_spill] sm:$0xff]  ;;  %v15547_v36 = vld [vmem:[#allocation23_spill] sm:$0xff]  ;;  %4695 = vmatpush1.bf16.msra.mxu1 %v9498_v58  ;;  %v15557_v58 = vld [vmem:[#allocation29_spill] sm:$0xff] }
 0x26b   :  { %v10734_v54 = vmul.f32 %v15542_v28, %v10531_v22  ;;  %v10738_v27 = vmul.f32 %v15544_v2, %v10531_v22  ;;  %v10742_v45 = vmul.f32 %v10531_v22, %v15546_v14  ;;  %v10746_v29 = vmul.f32 %v10531_v22, %v15547_v36  ;;  %v15548_v28 = vld [vmem:[#allocation20_spill] sm:$0xff]  ;;  %v15549_v2 = vld [vmem:[#allocation22_spill] sm:$0xff]  ;;  %v15550_v14 = vld [vmem:[#allocation25_spill] sm:$0xff]  ;;  %4696 = vmatprep.subr.bf16.mxu1 %v15528_v18 }
 0x26c   :  { %v1985_v16 = vsel %vm10690_vm3, %v1977_v4, %v1984_v10  ;;  %v2321_v5 = vsel %vm10706_vm4, %v1986_v21, %v2320_v41  ;;  %v10762_v36 = vmul.f32 %v10531_v22, %v15550_v14  ;;  %v15551_v31 = vld [vmem:[#allocation27_spill] sm:$0xff]  ;;  %v15553_v41 = vld [vmem:[#allocation24_spill] sm:$0xff]  ;;  %v15555_v21 = vld [vmem:[#allocation26_spill] sm:$0xff] }
 0x26d   :  { %15543 = vst [vmem:[#allocation19_spill] sm:$0xff] %v10734_v54  ;;  %15545 = vst [vmem:[#allocation17_spill] sm:$0xff] %v10738_v27  ;;  %v10754_v54 = vmul.f32 %v15548_v28, %v10531_v22  ;;  %v10758_v27 = vmul.f32 %v15549_v2, %v10531_v22  ;;  %v10766_v4 = vmul.f32 %v10531_v22, %v15551_v31  ;;  %v15560_v31 = vld [vmem:[#allocation28_spill] sm:$0xff] }
 0x26e   :  { %2319 = vst [vmem:[#allocation2 + $0x190] sm:$0xf] %v1985_v16  ;;  %2322 = vst [vmem:[#allocation2 + $0x194] sm:$0x1] %v2321_v5  ;;  %v10770_v10 = vmul.f32 %v15553_v41, %v10531_v22  ;;  %v10774_v28 = vmul.f32 %v15555_v21, %v10531_v22  ;;  %v10779_v16 = vmul.f32 %v10531_v22, %v15557_v58  ;;  %v15558_v5 = vld [vmem:[#allocation31_spill] sm:$0xff]  ;;  %v15562_v41 = vld [vmem:[#allocation30_spill] sm:$0xff] }
 0x26f   :  { %15552 = vst [vmem:[#allocation18_spill] sm:$0xff] %v10766_v4  ;;  %v10783_v2 = vmul.f32 %v10531_v22, %v15558_v5  ;;  %v10787_v14 = vmul.f32 %v15560_v31, %v10531_v22  ;;  %v10791_v40 = vmul.f32 %v15562_v41, %v10531_v22  ;;  %v9499_v21 = vld [vmem:[#allocation8 + $0xf0] sm:$0xff]   ;;  %v15567_v5 = vld [vmem:[#allocation32_spill] sm:$0xff]  ;;  %v15568_v31 = vld [vmem:[#allocation34_spill] sm:$0xff] }
 0x270   :  { %15554 = vst [vmem:[#allocation21_spill] sm:$0xff] %v10770_v10  ;;  %15556 = vst [vmem:[#allocation23_spill] sm:$0xff] %v10774_v28  ;;  %v15564_v28 = vld [vmem:[#allocation33_spill] sm:$0xff]  ;;  %v15566_v4 = vld [vmem:[#allocation35_spill] sm:$0xff]  ;;  %4697 = vmatpush1.bf16.msra.mxu1 %v9499_v21  ;;  %v10857_v21 = vadd.f32 %v10559_v42, %v10579_v26  ;;  %v10877_v26 = vadd.f32 %v10559_v42, %v10601_v55  ;;  %v10897_v55 = vadd.f32 %v10559_v42, %v10622_v3 }
 0x271   :  { %15559 = vst [vmem:[#allocation20_spill] sm:$0xff] %v10783_v2  ;;  %15561 = vst [vmem:[#allocation22_spill] sm:$0xff] %v10787_v14  ;;  %v10795_v10 = vmul.f32 %v10531_v22, %v15564_v28  ;;  %v10799_v58 = vmul.f32 %v10531_v22, %v15566_v4  ;;  %v10803_v2 = vmul.f32 %v15567_v5, %v10531_v22  ;;  %v15569_v41 = vld [vmem:[#allocation36_spill] sm:$0xff]  ;;  %4698 = vmatprep.subr.bf16.mxu1 %v15528_v18 }
 0x272   :  { %15563 = vst [vmem:[#allocation25_spill] sm:$0xff] %v10791_v40  ;;  %v10807_v14 = vmul.f32 %v15568_v31, %v10531_v22  ;;  %v10811_v40 = vmul.f32 %v15569_v41, %v10531_v22  ;;  %v10815_v28 = vmul.f32 %v10383_v33, %v10531_v22  ;;  %v10820_v4 = vadd.f32 %v10559_v42, %v10539_v6  ;;  %v9501_v22 = vld [vmem:[#allocation8 + $0x140] sm:$0xff]  }
 0x273   :  { %15565 = vst [vmem:[#allocation27_spill] sm:$0xff] %v10795_v10  ;;  %v10824_v5 = vadd.f32 %v10559_v42, %v10543_v0  ;;  %v10828_v31 = vadd.f32 %v10559_v42, %v10547_v56  ;;  %v10832_v41 = vadd.f32 %v10559_v42, %v10551_v30  ;;  %v10836_v33 = vadd.f32 %v10559_v42, %v10555_v32  ;;  %v9500_v32 = vld [vmem:[#allocation8 + $0xf8] sm:$0xff]  }
 0x274   :  { %v10841_v6 = vadd.f32 %v10559_v42, %v10563_v13  ;;  %v10845_v0 = vadd.f32 %v10559_v42, %v10567_v38  ;;  %v10849_v56 = vadd.f32 %v10559_v42, %v10571_v8  ;;  %v10853_v30 = vadd.f32 %v10559_v42, %v10575_v39  ;;  %9204 = vmatprep.subr.bf16.mxu0 %v9501_v22 }
 0x275   :  { %v10861_v13 = vadd.f32 %v10559_v42, %v10583_v52  ;;  %v10865_v38 = vadd.f32 %v10559_v42, %v10587_v47  ;;  %v10869_v8 = vadd.f32 %v10559_v42, %v10593_v57  ;;  %v10873_v39 = vadd.f32 %v10559_v42, %v10597_v60  ;;  %4699 = vmatpush1.bf16.msra.mxu1 %v9500_v32 }
 0x276   :  { %v10881_v52 = vadd.f32 %v10559_v42, %v10605_v59  ;;  %v10885_v47 = vadd.f32 %v10559_v42, %v10609_v24  ;;  %v10889_v57 = vadd.f32 %v10559_v42, %v10613_v1  ;;  %v10893_v60 = vadd.f32 %v10559_v42, %v10618_v63  ;;  %9205 = vmatpush3.bf16.msra.mxu0 %v9501_v22  ;;  %v9503_v24 = vld [vmem:[#allocation8 + $0x148] sm:$0xff]  }
 0x277   :  { %v10901_v59 = vadd.f32 %v10559_v42, %v10626_v9  ;;  %v10905_v32 = vadd.f32 %v10559_v42, %v10630_v12  ;;  %v10909_v1 = vadd.f32 %v10559_v42, %v10634_v43  ;;  %v10913_v63 = vadd.f32 %v10559_v42, %v10638_v7  ;;  %4700 = vmatprep.subr.bf16.mxu1 %v15528_v18  ;;  %v9502_v9 = vld [vmem:[#allocation8 + $0x100] sm:$0xff]  }
 0x278   :  { %v10917_v3 = vadd.f32 %v10559_v42, %v10644_v44  ;;  %v10922_v22 = vadd.f32 %v10559_v42, %v10648_v17  ;;  %v10926_v12 = vadd.f32 %v10559_v42, %v10652_v15  ;;  %v10930_v43 = vadd.f32 %v10559_v42, %v10656_v19  ;;  %9206 = vmatprep.subr.bf16.mxu0 %v9503_v24 }
 0x279   :  { %15570 = vst [vmem:[#allocation24_spill] sm:$0xff] %v10909_v1  ;;  %v10934_v7 = vadd.f32 %v10559_v42, %v10660_v20  ;;  %v10938_v44 = vadd.f32 %v10559_v42, %v10664_v25  ;;  %v10942_v17 = vadd.f32 %v10559_v42, %v10670_v23  ;;  %v10946_v15 = vadd.f32 %v10559_v42, %v10674_v48 }
 0x27a   :  { %15571 = vst [vmem:[#allocation26_spill] sm:$0xff] %v10926_v12  ;;  %v10950_v19 = vadd.f32 %v10559_v42, %v10678_v34  ;;  %4701 = vmatpush1.bf16.msra.mxu1 %v9502_v9  ;;  %v10954_v20 = vadd.f32 %v10559_v42, %v10682_v37  ;;  %v10958_v25 = vadd.f32 %v10559_v42, %v10686_v61  ;;  %v9505_v34 = vld [vmem:[#allocation8 + $0x150] sm:$0xff]  }
 0x27b   :  { %v10962_v23 = vadd.f32 %v10559_v42, %v10698_v46  ;;  %v10966_v48 = vadd.f32 %v10559_v42, %v10702_v53  ;;  %9207 = vmatpush3.bf16.msra.mxu0 %v9503_v24  ;;  %v10970_v9 = vadd.f32 %v10559_v42, %v10712_v51  ;;  %v10974_v37 = vadd.f32 %v10559_v42, %v10716_v50  ;;  %v9504_v53 = vld [vmem:[#allocation8 + $0x108] sm:$0xff]   ;;  %v15578_v51 = vld [vmem:[#allocation19_spill] sm:$0xff]  ;;  %v15580_v50 = vld [vmem:[#allocation17_spill] sm:$0xff] }
 0x27c   :  { %v10978_v61 = vadd.f32 %v10559_v42, %v10720_v62  ;;  %v10982_v46 = vadd.f32 %v10559_v42, %v10724_v49  ;;  %4702 = vmatprep.subr.bf16.mxu1 %v15528_v18  ;;  %v10987_v24 = vadd.f32 %v10559_v42, %v10730_v11  ;;  %v10991_v10 = vadd.f32 %v10559_v42, %v15578_v51 }
 0x27d   :  { %15572 = vst [vmem:[#allocation29_spill] sm:$0xff] %v10966_v48  ;;  %15573 = vst [vmem:[#allocation31_spill] sm:$0xff] %v10970_v9  ;;  %v10995_v35 = vadd.f32 %v10559_v42, %v15580_v50  ;;  %v10999_v62 = vadd.f32 %v10559_v42, %v10742_v45  ;;  %9208 = vmatprep.subr.bf16.mxu0 %v9505_v34  ;;  %v11003_v49 = vadd.f32 %v10559_v42, %v10746_v29  ;;  %v15585_v45 = vld [vmem:[#allocation18_spill] sm:$0xff] }
 0x27e   :  { %15574 = vst [vmem:[#allocation28_spill] sm:$0xff] %v10974_v37  ;;  %15575 = vst [vmem:[#allocation30_spill] sm:$0xff] %v10978_v61  ;;  %v11007_v11 = vadd.f32 %v10559_v42, %v10754_v54  ;;  %v11011_v51 = vadd.f32 %v10559_v42, %v10758_v27  ;;  %v11015_v50 = vadd.f32 %v10559_v42, %v10762_v36  ;;  %4703 = vmatpush1.bf16.msra.mxu1 %v9504_v53  ;;  %v9507_v36 = vld [vmem:[#allocation8 + $0x158] sm:$0xff]  }
 0x27f   :  { %15576 = vst [vmem:[#allocation33_spill] sm:$0xff] %v10982_v46  ;;  %15577 = vst [vmem:[#allocation35_spill] sm:$0xff] %v10987_v24  ;;  %v11031_v27 = vadd.f32 %v10559_v42, %v10779_v16  ;;  %9209 = vmatpush3.bf16.msra.mxu0 %v9505_v34  ;;  %4704 = vmatprep.subr.bf16.mxu1 %v15528_v18  ;;  %v9506_v16 = vld [vmem:[#allocation8 + $0x110] sm:$0xff]   ;;  %v11052_v34 = vadd.f32 %v10559_v42, %v10799_v58  ;;  %v15608_v9 = vmax.f32 %v10820_v4, 0.0 }
 0x280   :  { %15579 = vst [vmem:[#allocation32_spill] sm:$0xff] %v10991_v10  ;;  %15581 = vst [vmem:[#allocation34_spill] sm:$0xff] %v10995_v35  ;;  %v15587_v35 = vld [vmem:[#allocation21_spill] sm:$0xff]  ;;  %9210 = vmatprep.subr.bf16.mxu0 %v9507_v36  ;;  %v15611_v24 = vmax.f32 %v10832_v41, 0.0  ;;  %v15612_v4 = vmax.f32 %v10836_v33, 0.0  ;;  %v15615_v41 = vmax.f32 %v10849_v56, 0.0 }
 0x281   :  { %15582 = vst [vmem:[#allocation36_spill] sm:$0xff] %v10999_v62  ;;  %15583 = vst [vmem:[#allocation19_spill] sm:$0xff] %v11003_v49  ;;  %v11019_v62 = vadd.f32 %v10559_v42, %v15585_v45  ;;  %v11023_v29 = vadd.f32 %v10559_v42, %v15587_v35  ;;  %v15589_v49 = vld [vmem:[#allocation23_spill] sm:$0xff]  ;;  %v15592_v45 = vld [vmem:[#allocation22_spill] sm:$0xff]  ;;  %v15616_v33 = vmax.f32 %v10853_v30, 0.0  ;;  %v15619_v56 = vmax.f32 %v10865_v38, 0.0 }
 0x282   :  { %15584 = vst [vmem:[#allocation17_spill] sm:$0xff] %v11015_v50  ;;  %v11027_v54 = vadd.f32 %v10559_v42, %v15589_v49  ;;  %v15591_v50 = vld [vmem:[#allocation20_spill] sm:$0xff]  ;;  %v15593_v35 = vld [vmem:[#allocation25_spill] sm:$0xff]  ;;  %v15594_v49 = vld [vmem:[#allocation27_spill] sm:$0xff]  ;;  %4705 = vmatpush1.bf16.msra.mxu1 %v9506_v16  ;;  %v15620_v30 = vmax.f32 %v10869_v8, 0.0  ;;  %v15623_v38 = vmax.f32 %v10881_v52, 0.0 }
 0x283   :  { %15586 = vst [vmem:[#allocation18_spill] sm:$0xff] %v11019_v62  ;;  %15588 = vst [vmem:[#allocation21_spill] sm:$0xff] %v11023_v29  ;;  %v11035_v53 = vadd.f32 %v10559_v42, %v15591_v50  ;;  %v11039_v62 = vadd.f32 %v10559_v42, %v15592_v45  ;;  %v11043_v29 = vadd.f32 %v10559_v42, %v15593_v35  ;;  %9211 = vmatpush3.bf16.msra.mxu0 %v9507_v36  ;;  %v9510_v36 = vld [vmem:[#allocation8 + $0x120] sm:$0xff]   ;;  %v9513_v16 = vld [vmem:[#allocation8 + $0x170] sm:$0xff]  }
 0x284   :  { %15590 = vst [vmem:[#allocation23_spill] sm:$0xff] %v11027_v54  ;;  %v11047_v54 = vadd.f32 %v10559_v42, %v15594_v49  ;;  %15595 = vst [vmem:[#allocation20_spill] sm:$0xff] %v11052_v34  ;;  %v11056_v50 = vadd.f32 %v10559_v42, %v10803_v2  ;;  %v11060_v45 = vadd.f32 %v10559_v42, %v10807_v14  ;;  %4706 = vmatprep.subr.bf16.mxu1 %v15528_v18  ;;  %v9508_v2 = vld [vmem:[#allocation8 + $0x118] sm:$0xff]  }
 0x285   :  { %v11064_v35 = vadd.f32 %v10559_v42, %v10811_v40  ;;  %v11068_v49 = vadd.f32 %v10559_v42, %v10815_v28  ;;  %v9509_v42 = vld [vmem:[#allocation8 + $0x160] sm:$0xff]   ;;  %v9511_v40 = vld [vmem:[#allocation8 + $0x168] sm:$0xff]   ;;  %v9515_v34 = vld [vmem:[#allocation8 + $0x178] sm:$0xff]   ;;  %v15624_v8 = vmax.f32 %v10885_v47, 0.0  ;;  %v15627_v52 = vmax.f32 %v10897_v55, 0.0 }
 0x286   :  { %15596 = vst [vmem:[#allocation22_spill] sm:$0xff] %v11056_v50  ;;  %15597 = vst [vmem:[#allocation25_spill] sm:$0xff] %v11060_v45  ;;  %9212 = vmatprep.subr.bf16.mxu0 %v9509_v42  ;;  %4707 = vmatpush1.bf16.msra.mxu1 %v9508_v2  ;;  %v9512_v2 = vld [vmem:[#allocation8 + $0x128] sm:$0xff]   ;;  %v15607_v46 = vmov %v11060_v45  ;;  %v15609_v45 = vmax.f32 %v10824_v5, 0.0  ;;  %v9519_v5 = vld [vmem:[#allocation8 + $0x138] sm:$0xff]   ;;  %v15628_v47 = vmax.f32 %v10901_v59, 0.0 }
 0x287   :  { %9213 = vmatpush3.bf16.msra.mxu0 %v9509_v42  ;;  %4708 = vmatprep.subr.bf16.mxu1 %v15528_v18  ;;  %v15598_v12 = vld [vmem:[#allocation34_spill] sm:$0xff]  ;;  %v11154_v42 = vpack.c.bf16 %v15611_v24, %v15611_v24  ;;  %v11174_v24 = vpack.c.bf16 %v15615_v41, %v15615_v41  ;;  %v11194_v41 = vpack.c.bf16 %v15619_v56, %v15619_v56  ;;  %v15632_v55 = vmax.f32 %v10913_v63, 0.0 }
 0x288   :  { %9214 = vmatprep.subr.bf16.mxu0 %v9511_v40  ;;  %v15599_v50 = vld [vmem:[#allocation36_spill] sm:$0xff]  ;;  %v15600_v14 = vld [vmem:[#allocation19_spill] sm:$0xff]  ;;  %v11144_v1 = vpack.c.bf16 %v15609_v45, %v15609_v45  ;;  %v15613_v45 = vmax.f32 %v10841_v6, 0.0  ;;  %v9525_v6 = vld [vmem:[#allocation8 + $0x80] sm:$0xff]   ;;  %v11220_v56 = vpack.c.bf16 %v15624_v8, %v15624_v8  ;;  %v15633_v59 = vmax.f32 %v10917_v3, 0.0 }
 0x289   :  { %v15601_v37 = vld [vmem:[#allocation17_spill] sm:$0xff]  ;;  %v15637_v63 = vmax.f32 %v10930_v43, 0.0  ;;  %v15638_v3 = vmax.f32 %v10934_v7, 0.0  ;;  %v15641_v43 = vmax.f32 %v10946_v15, 0.0  ;;  %v15642_v7 = vmax.f32 %v10950_v19, 0.0 }
 0x28a   :  { %4709 = vmatpush1.bf16.msra.mxu1 %v9510_v36  ;;  %v15602_v61 = vld [vmem:[#allocation18_spill] sm:$0xff]  ;;  %v9514_v36 = vld [vmem:[#allocation8 + $0x130] sm:$0xff]   ;;  %v11164_v48 = vpack.c.bf16 %v15613_v45, %v15613_v45  ;;  %v15647_v15 = vmax.f32 %v10962_v23, 0.0 }
 0x28b   :  { %9215 = vmatpush3.bf16.msra.mxu0 %v9511_v40  ;;  %4710 = vmatprep.subr.bf16.mxu1 %v15528_v18  ;;  %v15604_v10 = vld [vmem:[#allocation23_spill] sm:$0xff]  ;;  %v15605_v28 = vld [vmem:[#allocation20_spill] sm:$0xff]  ;;  %v15610_v40 = vmax.f32 %v10828_v31, 0.0  ;;  %v15614_v31 = vmax.f32 %v10845_v0, 0.0  ;;  %v15618_v0 = vmax.f32 %v10861_v13, 0.0  ;;  %v15622_v13 = vmax.f32 %v10877_v26, 0.0 }
 0x28c   :  { %9216 = vmatprep.subr.bf16.mxu0 %v9513_v16  ;;  %v15626_v26 = vmax.f32 %v10893_v60, 0.0  ;;  %v15630_v60 = vld [vmem:[#allocation24_spill] sm:$0xff] }
 0x28d   :  { %v15606_v58 = vld [vmem:[#allocation22_spill] sm:$0xff] }
 0x28e   :  { %4711 = vmatpush1.bf16.msra.mxu1 %v9512_v2  ;;  %v11149_v2 = vpack.c.bf16 %v15610_v40, %v15610_v40  ;;  %v11169_v40 = vpack.c.bf16 %v15614_v31, %v15614_v31  ;;  %v11189_v31 = vpack.c.bf16 %v15618_v0, %v15618_v0  ;;  %v11215_v0 = vpack.c.bf16 %v15623_v38, %v15623_v38 }
 0x28f   :  { %9217 = vmatpush3.bf16.msra.mxu0 %v9513_v16  ;;  %4712 = vmatprep.subr.bf16.mxu1 %v15528_v18  ;;  %v11139_v16 = vpack.c.bf16 %v15608_v9, %v15608_v9  ;;  %v11159_v9 = vpack.c.bf16 %v15612_v4, %v15612_v4  ;;  %v15617_v4 = vmax.f32 %v10857_v21, 0.0  ;;  %v15621_v21 = vmax.f32 %v10873_v39, 0.0 }
 0x290   :  { %9218 = vmatprep.subr.bf16.mxu0 %v9515_v34  ;;  %v15625_v39 = vmax.f32 %v10889_v57, 0.0  ;;  %v11241_v38 = vpack.c.bf16 %v15628_v47, %v15628_v47  ;;  %v15629_v57 = vmax.f32 %v10905_v32, 0.0  ;;  %v11261_v47 = vpack.c.bf16 %v15633_v59, %v15633_v59 }
 0x291   :  { %v11184_v45 = vpack.c.bf16 %v15617_v4, %v15617_v4  ;;  %v11210_v4 = vpack.c.bf16 %v15622_v13, %v15622_v13  ;;  %v11236_v13 = vpack.c.bf16 %v15627_v52, %v15627_v52  ;;  %v11256_v52 = vpack.c.bf16 %v15632_v55, %v15632_v55 }
 0x292   :  { %4713 = vmatpush1.bf16.msra.mxu1 %v9514_v36  ;;  %v11179_v36 = vpack.c.bf16 %v15616_v33, %v15616_v33  ;;  %v11205_v33 = vpack.c.bf16 %v15621_v21, %v15621_v21  ;;  %v11231_v21 = vpack.c.bf16 %v15626_v26, %v15626_v26  ;;  %v11246_v8 = vpack.c.bf16 %v15629_v57, %v15629_v57  ;;  %v15635_v57 = vld [vmem:[#allocation26_spill] sm:$0xff] }
 0x293   :  { %9219 = vmatpush3.bf16.msra.mxu0 %v9515_v34  ;;  %v11199_v34 = vpack.c.bf16 %v15620_v30, %v15620_v30  ;;  %4714 = vmatprep.subr.bf16.mxu1 %v15528_v18  ;;  %v11226_v30 = vpack.c.bf16 %v15625_v39, %v15625_v39  ;;  %v15631_v39 = vmax.f32 %v15630_v60, 0.0  ;;  %v15634_v32 = vmax.f32 %v10922_v22, 0.0 }
 0x294   :  { %5406 = vmatprep.subr.bf16.mxu0 %v15528_v18  ;;  %v15636_v60 = vmax.f32 %v15635_v57, 0.0  ;;  %v11276_v55 = vpack.c.bf16 %v15637_v63, %v15637_v63  ;;  %v11281_v59 = vpack.c.bf16 %v15638_v3, %v15638_v3  ;;  %v15639_v22 = vmax.f32 %v10938_v44, 0.0  ;;  %v15652_v18 = vld [vmem:[#allocation31_spill] sm:$0xff] }
 0x295   :  { %v11251_v26 = vpack.c.bf16 %v15631_v39, %v15631_v39  ;;  %v11301_v63 = vpack.c.bf16 %v15642_v7, %v15642_v7  ;;  %v15643_v44 = vmax.f32 %v10954_v20, 0.0  ;;  %v15653_v20 = vmax.f32 %v15652_v18, 0.0 }
 0x296   :  { %4715 = vmatpush1.bf16.msra.mxu1 %v9519_v5  ;;  %v11266_v5 = vpack.c.bf16 %v15634_v32, %v15634_v32  ;;  %v11271_v39 = vpack.c.bf16 %v15636_v60, %v15636_v60  ;;  %v15640_v32 = vmax.f32 %v10942_v17, 0.0  ;;  %v11296_v60 = vpack.c.bf16 %v15641_v43, %v15641_v43  ;;  %v15649_v43 = vld [vmem:[#allocation29_spill] sm:$0xff] }
 0x297   :  { %9284 = vmatprep.subr.bf16.mxu1 %v9525_v6  ;;  %v11286_v6 = vpack.c.bf16 %v15639_v22, %v15639_v22  ;;  %v11306_v3 = vpack.c.bf16 %v15643_v44, %v15643_v44  ;;  %v15645_v17 = vmax.f32 %v10958_v25, 0.0  ;;  %v15650_v19 = vmax.f32 %v15649_v43, 0.0 }
 0x298   :  { %v11291_v57 = vpack.c.bf16 %v15640_v32, %v15640_v32  ;;  %v11316_v32 = vpack.c.bf16 %v15647_v15, %v15647_v15  ;;  %v11326_v44 = vpack.c.bf16 %v15653_v20, %v15653_v20 }
 0x299   :  { %15644 = vst [vmem:[#allocation27_spill] sm:$0xff] %v11306_v3  ;;  %v11311_v22 = vpack.c.bf16 %v15645_v17, %v15645_v17  ;;  %v11321_v7 = vpack.c.bf16 %v15650_v19, %v15650_v19  ;;  %v15655_v3 = vld [vmem:[#allocation28_spill] sm:$0xff] }
 0x29a   :  { %15648 = vst [vmem:[#allocation36_spill] sm:$0xff] %v11316_v32  ;;  %15654 = vst [vmem:[#allocation17_spill] sm:$0xff] %v11326_v44  ;;  %v15656_v25 = vmax.f32 %v15655_v3, 0.0  ;;  %v15659_v32 = vld [vmem:[#allocation33_spill] sm:$0xff]  ;;  %v15663_v44 = vld [vmem:[#allocation32_spill] sm:$0xff] }
 0x29b   :  { %15646 = vst [vmem:[#allocation34_spill] sm:$0xff] %v11311_v22  ;;  %15651 = vst [vmem:[#allocation19_spill] sm:$0xff] %v11321_v7  ;;  %v15657_v22 = vld [vmem:[#allocation30_spill] sm:$0xff]  ;;  %v15660_v43 = vmax.f32 %v15659_v32, 0.0  ;;  %v15661_v7 = vld [vmem:[#allocation35_spill] sm:$0xff]  ;;  %v15664_v3 = vmax.f32 %v15663_v44, 0.0 }
 0x29c   :  { %v11331_v17 = vpack.c.bf16 %v15656_v25, %v15656_v25  ;;  %v15658_v23 = vmax.f32 %v15657_v22, 0.0  ;;  %v15662_v18 = vmax.f32 %v15661_v7, 0.0  ;;  %v15665_v22 = vmax.f32 %v15598_v12, 0.0 }
 0x29d   :  { %v11341_v19 = vpack.c.bf16 %v15660_v43, %v15660_v43  ;;  %v11351_v25 = vpack.c.bf16 %v15664_v3, %v15664_v3  ;;  %v15666_v32 = vmax.f32 %v15599_v50, 0.0  ;;  %v15667_v7 = vmax.f32 %v15600_v14, 0.0 }
 0x29e   :  { %v11336_v15 = vpack.c.bf16 %v15658_v23, %v15658_v23  ;;  %v11346_v20 = vpack.c.bf16 %v15662_v18, %v15662_v18  ;;  %v11356_v23 = vpack.c.bf16 %v15665_v22, %v15665_v22  ;;  %v15669_v44 = vmax.f32 %v11007_v11, 0.0 }
 0x29f   :  { %v11361_v43 = vpack.c.bf16 %v15666_v32, %v15666_v32  ;;  %v11366_v18 = vpack.c.bf16 %v15667_v7, %v15667_v7  ;;  %v15670_v12 = vmax.f32 %v11011_v51, 0.0  ;;  %v15671_v50 = vmax.f32 %v15601_v37, 0.0 }
 0x2a0   :  { %v11371_v3 = vpack.c.bf16 %v15669_v44, %v15669_v44  ;;  %v15672_v14 = vmax.f32 %v15602_v61, 0.0  ;;  %v15675_v51 = vmax.f32 %v15604_v10, 0.0  ;;  %v15676_v37 = vmax.f32 %v11031_v27, 0.0 }
 0x2a1   :  { %15668 = vst [vmem:[#allocation18_spill] sm:$0xff] %v11366_v18  ;;  %v11376_v22 = vpack.c.bf16 %v15670_v12, %v15670_v12  ;;  %v11381_v32 = vpack.c.bf16 %v15671_v50, %v15671_v50  ;;  %v15673_v18 = vld [vmem:[#allocation21_spill] sm:$0xff]  ;;  %v15678_v61 = vmax.f32 %v11035_v53, 0.0  ;;  %v15682_v10 = vmax.f32 %v11043_v29, 0.0 }
 0x2a2   :  { %v11386_v7 = vpack.c.bf16 %v15672_v14, %v15672_v14  ;;  %v15674_v11 = vmax.f32 %v15673_v18, 0.0  ;;  %v11396_v12 = vpack.c.bf16 %v15675_v51, %v15675_v51  ;;  %v11401_v50 = vpack.c.bf16 %v15676_v37, %v15676_v37 }
 0x2a3   :  { %v11406_v14 = vpack.c.bf16 %v15678_v61, %v15678_v61  ;;  %v15680_v18 = vmax.f32 %v11039_v62, 0.0  ;;  %v11416_v51 = vpack.c.bf16 %v15682_v10, %v15682_v10  ;;  %v15684_v27 = vmax.f32 %v11047_v54, 0.0 }
 0x2a4   :  { %v11391_v44 = vpack.c.bf16 %v15674_v11, %v15674_v11  ;;  %15677 = vst [vmem:[#allocation23_spill] sm:$0xff] %v11401_v50  ;;  %v15686_v53 = vmax.f32 %v15605_v28, 0.0  ;;  %v15688_v62 = vmax.f32 %v15606_v58, 0.0  ;;  %v15690_v29 = vmax.f32 %v15607_v46, 0.0 }
 0x2a5   :  { %15679 = vst [vmem:[#allocation20_spill] sm:$0xff] %v11406_v14  ;;  %v11411_v11 = vpack.c.bf16 %v15680_v18, %v15680_v18  ;;  %15683 = vst [vmem:[#allocation25_spill] sm:$0xff] %v11416_v51  ;;  %v11421_v37 = vpack.c.bf16 %v15684_v27, %v15684_v27  ;;  %v15692_v54 = vmax.f32 %v11064_v35, 0.0  ;;  %v15694_v28 = vmax.f32 %v11068_v49, 0.0 }
 0x2a6   :  { %v11426_v61 = vpack.c.bf16 %v15686_v53, %v15686_v53  ;;  %v11431_v18 = vpack.c.bf16 %v15688_v62, %v15688_v62  ;;  %v11436_v10 = vpack.c.bf16 %v15690_v29, %v15690_v29  ;;  %v1461_v58 = vshrl.u32 %v11139_v16, 16 }
 0x2a7   :  { %15681 = vst [vmem:[#allocation22_spill] sm:$0xff] %v11411_v11  ;;  %15685 = vst [vmem:[#allocation24_spill] sm:$0xff] %v11421_v37  ;;  %v11441_v27 = vpack.c.bf16 %v15692_v54, %v15692_v54  ;;  %v11446_v53 = vpack.c.bf16 %v15694_v28, %v15694_v28  ;;  %v1464_v62 = vshll.u32 %v11139_v16, 16  ;;  %v1472_v46 = vshll.u32 %v11144_v1, 16 }
 0x2a8   :  { %15687 = vst [vmem:[#allocation26_spill] sm:$0xff] %v11426_v61  ;;  %15689 = vst [vmem:[#allocation29_spill] sm:$0xff] %v11431_v18  ;;  %v1469_v18 = vshrl.u32 %v11144_v1, 16  ;;  %v1478_v29 = vshrl.u32 %v11149_v2, 16  ;;  %v1481_v35 = vshll.u32 %v11149_v2, 16  ;;  %v1486_v54 = vshrl.u32 %v11154_v42, 16 }
 0x2a9   :  { %15691 = vst [vmem:[#allocation31_spill] sm:$0xff] %v11436_v10  ;;  %15693 = vst [vmem:[#allocation28_spill] sm:$0xff] %v11441_v27  ;;  %v1463_v27 = vrot.slane %v1461_v58, 7  ;;  %v1489_v49 = vshll.u32 %v11154_v42, 16  ;;  %v1495_v28 = vshrl.u32 %v11159_v9, 16  ;;  %v1498_v16 = vshll.u32 %v11159_v9, 16 }
 0x2aa   :  { %15695 = vst [vmem:[#allocation30_spill] sm:$0xff] %v11446_v53  ;;  %v11455_v10 = vrot.slane %v1469_v18, 7  ;;  %v1480_v53 = vrot.slane %v1478_v29, 7  ;;  %v11459_v61 = vrot.slane %v1486_v54, 7  ;;  %v1503_v1 = vshrl.u32 %v11164_v48, 16 }
 0x2ab   :  { %v11463_v37 = vor.u32 %v1464_v62, %v1463_v27  ;;  %v1467_v51 = vrot.slane %v1463_v27, 4  ;;  %v1497_v9 = vrot.slane %v1495_v28, 7  ;;  %v1506_v62 = vshll.u32 %v11164_v48, 16 }
 0x2ac   :  { %v1474_v2 = vor.u32 %v1472_v46, %v11455_v10  ;;  %v11467_v18 = vor.u32 %v1481_v35, %v1480_v53  ;;  %v1484_v11 = vrot.slane %v1480_v53, 4  ;;  %v1491_v42 = vor.u32 %v1489_v49, %v11459_v61 }
 0x2ad   :  { %v11473_v50 = vrot.slane %v1503_v1, 7  ;;  %v1512_v46 = vshrl.u32 %v11169_v40, 16  ;;  %v1515_v35 = vshll.u32 %v11169_v40, 16  ;;  %v1520_v53 = vshrl.u32 %v11174_v24, 16 }
 0x2ae   :  { %v1475_v14 = vsel %vm10690_vm3, %v1467_v51, %v1474_v2  ;;  %v1492_v27 = vsel %vm10690_vm3, %v1484_v11, %v1491_v42  ;;  %v11481_v49 = vor.u32 %v1498_v16, %v1497_v9  ;;  %v1501_v29 = vrot.slane %v1497_v9, 4 }
 0x2af   :  { %2107 = vst [vmem:[#allocation2 + $0x10] sm:$0xf] %v1475_v14  ;;  %v1508_v51 = vor.u32 %v1506_v62, %v11473_v50  ;;  %2116 = vst [vmem:[#allocation2 + $0x1c] sm:$0xf] %v1492_v27  ;;  %v1514_v1 = vrot.slane %v1512_v46, 7  ;;  %v11485_v48 = vrot.slane %v1520_v53, 7 }
 0x2b0   :  { %v1523_v11 = vshll.u32 %v11174_v24, 16  ;;  %v1529_v2 = vshrl.u32 %v11179_v36, 16  ;;  %v1532_v14 = vshll.u32 %v11179_v36, 16  ;;  %v1537_v16 = vshrl.u32 %v11184_v45, 16 }
 0x2b1   :  { %v1509_v40 = vsel %vm10690_vm3, %v1501_v29, %v1508_v51  ;;  %v1540_v42 = vshll.u32 %v11184_v45, 16  ;;  %v11494_v9 = vor.u32 %v1515_v35, %v1514_v1  ;;  %v1518_v62 = vrot.slane %v1514_v1, 4 }
 0x2b2   :  { %v1525_v27 = vor.u32 %v1523_v11, %v11485_v48  ;;  %2123 = vst [vmem:[#allocation2 + $0x28] sm:$0xf] %v1509_v40  ;;  %v1531_v24 = vrot.slane %v1529_v2, 7  ;;  %v11498_v53 = vrot.slane %v1537_v16, 7  ;;  %v1546_v28 = vshrl.u32 %v11189_v31, 16 }
 0x2b3   :  { %v1549_v29 = vshll.u32 %v11189_v31, 16  ;;  %v1554_v45 = vshrl.u32 %v11194_v41, 16  ;;  %v1557_v35 = vshll.u32 %v11194_v41, 16  ;;  %v1563_v51 = vshrl.u32 %v11199_v34, 16 }
 0x2b4   :  { %v1526_v36 = vsel %vm10690_vm3, %v1518_v62, %v1525_v27  ;;  %v11507_v1 = vor.u32 %v1532_v14, %v1531_v24  ;;  %v1535_v11 = vrot.slane %v1531_v24, 4  ;;  %v1542_v2 = vor.u32 %v1540_v42, %v11498_v53 }
 0x2b5   :  { %2130 = vst [vmem:[#allocation2 + $0x34] sm:$0xf] %v1526_v36  ;;  %v1548_v16 = vrot.slane %v1546_v28, 7  ;;  %v11511_v46 = vrot.slane %v1554_v45, 7  ;;  %v1565_v31 = vrot.slane %v1563_v51, 7  ;;  %v1566_v62 = vshll.u32 %v11199_v34, 16 }
 0x2b6   :  { %v1543_v27 = vsel %vm10690_vm3, %v1535_v11, %v1542_v2  ;;  %v1571_v41 = vshrl.u32 %v11205_v33, 16  ;;  %v1574_v14 = vshll.u32 %v11205_v33, 16  ;;  %v1580_v24 = vshrl.u32 %v11210_v4, 16 }
 0x2b7   :  { %v11519_v58 = vor.u32 %v1549_v29, %v1548_v16  ;;  %v1552_v42 = vrot.slane %v1548_v16, 4  ;;  %v1559_v36 = vor.u32 %v1557_v35, %v11511_v46  ;;  %2137 = vst [vmem:[#allocation2 + $0x40] sm:$0xf] %v1543_v27  ;;  %v11523_v45 = vor.u32 %v1566_v62, %v1565_v31 }
 0x2b8   :  { %v1569_v34 = vrot.slane %v1565_v31, 4  ;;  %v11525_v51 = vrot.slane %v1571_v41, 7  ;;  %v1582_v11 = vrot.slane %v1580_v24, 7  ;;  %v1583_v33 = vshll.u32 %v11210_v4, 16 }
 0x2b9   :  { %v1560_v2 = vsel %vm10690_vm3, %v1552_v42, %v1559_v36  ;;  %v1588_v29 = vshrl.u32 %v11215_v0, 16  ;;  %v1591_v16 = vshll.u32 %v11215_v0, 16  ;;  %v1597_v62 = vshrl.u32 %v11220_v56, 16 }
 0x2ba   :  { %v1576_v35 = vor.u32 %v1574_v14, %v11525_v51  ;;  %v1586_v27 = vrot.slane %v1582_v11, 4  ;;  %2144 = vst [vmem:[#allocation2 + $0x4c] sm:$0xf] %v1560_v2  ;;  %v11535_v31 = vor.u32 %v1583_v33, %v1582_v11  ;;  %v1600_v24 = vshll.u32 %v11220_v56, 16 }
 0x2bb   :  { %v11537_v41 = vrot.slane %v1588_v29, 7  ;;  %v1605_v4 = vshrl.u32 %v11226_v30, 16  ;;  %v1599_v0 = vrot.slane %v1597_v62, 7  ;;  %v1608_v14 = vshll.u32 %v11226_v30, 16 }
 0x2bc   :  { %v1577_v42 = vsel %vm10690_vm3, %v1569_v34, %v1576_v35  ;;  %v1614_v36 = vshrl.u32 %v11231_v21, 16  ;;  %v1617_v33 = vshll.u32 %v11231_v21, 16  ;;  %v1622_v34 = vshrl.u32 %v11236_v13, 16 }
 0x2bd   :  { %v1593_v28 = vor.u32 %v1591_v16, %v11537_v41  ;;  %v11547_v11 = vrot.slane %v1605_v4, 7  ;;  %2151 = vst [vmem:[#allocation2 + $0x58] sm:$0xf] %v1577_v42  ;;  %v11550_v56 = vor.u32 %v1600_v24, %v1599_v0  ;;  %v1603_v29 = vrot.slane %v1599_v0, 4 }
 0x2be   :  { %v1616_v40 = vrot.slane %v1614_v36, 7  ;;  %v1625_v62 = vshll.u32 %v11236_v13, 16  ;;  %v11560_v21 = vrot.slane %v1622_v34, 7  ;;  %v1631_v24 = vshrl.u32 %v11241_v38, 16 }
 0x2bf   :  { %v1594_v30 = vsel %vm10690_vm3, %v1586_v27, %v1593_v28  ;;  %v1610_v35 = vor.u32 %v1608_v14, %v11547_v11  ;;  %v1634_v0 = vshll.u32 %v11241_v38, 16  ;;  %v1639_v28 = vshrl.u32 %v11246_v8, 16 }
 0x2c0   :  { %v11558_v4 = vor.u32 %v1617_v33, %v1616_v40  ;;  %v1620_v2 = vrot.slane %v1616_v40, 4  ;;  %2158 = vst [vmem:[#allocation2 + $0x64] sm:$0xf] %v1594_v30  ;;  %v1642_v27 = vshll.u32 %v11246_v8, 16  ;;  %v1627_v14 = vor.u32 %v1625_v62, %v11560_v21 }
 0x2c1   :  { %v1611_v42 = vsel %vm10690_vm3, %v1603_v29, %v1610_v35  ;;  %v1633_v36 = vrot.slane %v1631_v24, 7  ;;  %v1648_v40 = vshrl.u32 %v11251_v26, 16  ;;  %v11571_v33 = vrot.slane %v1639_v28, 7 }
 0x2c2   :  { %2165 = vst [vmem:[#allocation2 + $0x70] sm:$0xf] %v1611_v42  ;;  %v1651_v34 = vshll.u32 %v11251_v26, 16  ;;  %v1656_v29 = vshrl.u32 %v11256_v52, 16  ;;  %v1659_v38 = vshll.u32 %v11256_v52, 16  ;;  %v1628_v30 = vsel %vm10690_vm3, %v1620_v2, %v1627_v14 }
 0x2c3   :  { %v11578_v8 = vor.u32 %v1634_v0, %v1633_v36  ;;  %v1637_v35 = vrot.slane %v1633_v36, 4  ;;  %v1650_v62 = vrot.slane %v1648_v40, 7  ;;  %v1644_v24 = vor.u32 %v1642_v27, %v11571_v33  ;;  %2172 = vst [vmem:[#allocation2 + $0x7c] sm:$0xf] %v1628_v30 }
 0x2c4   :  { %v11582_v42 = vrot.slane %v1656_v29, 7  ;;  %v1665_v28 = vshrl.u32 %v11261_v47, 16  ;;  %v1668_v52 = vshll.u32 %v11261_v47, 16  ;;  %v1673_v2 = vshrl.u32 %v11266_v5, 16 }
 0x2c5   :  { %v11585_v26 = vor.u32 %v1651_v34, %v1650_v62  ;;  %v1654_v16 = vrot.slane %v1650_v62, 4  ;;  %v1645_v0 = vsel %vm10690_vm3, %v1637_v35, %v1644_v24  ;;  %v1676_v29 = vshll.u32 %v11266_v5, 16 }
 0x2c6   :  { %v1661_v14 = vor.u32 %v1659_v38, %v11582_v42  ;;  %v1667_v36 = vrot.slane %v1665_v28, 7  ;;  %v11593_v40 = vrot.slane %v1673_v2, 7  ;;  %v1682_v34 = vshrl.u32 %v11271_v39, 16  ;;  %2179 = vst [vmem:[#allocation2 + $0x88] sm:$0xf] %v1645_v0 }
 0x2c7   :  { %v1685_v30 = vshll.u32 %v11271_v39, 16  ;;  %v1690_v38 = vshrl.u32 %v11276_v55, 16  ;;  %v1693_v5 = vshll.u32 %v11276_v55, 16  ;;  %v1699_v39 = vshrl.u32 %v11281_v59, 16  ;;  %v15700_v55 = vld [vmem:[#allocation27_spill] sm:$0xff] }
 0x2c8   :  { %v1662_v47 = vsel %vm10690_vm3, %v1654_v16, %v1661_v14  ;;  %v11600_v62 = vor.u32 %v1668_v52, %v1667_v36  ;;  %v1671_v35 = vrot.slane %v1667_v36, 4  ;;  %v1678_v24 = vor.u32 %v1676_v29, %v11593_v40 }
 0x2c9   :  { %v1684_v2 = vrot.slane %v1682_v34, 7  ;;  %2186 = vst [vmem:[#allocation2 + $0x94] sm:$0xf] %v1662_v47  ;;  %v11606_v27 = vrot.slane %v1690_v38, 7  ;;  %v1702_v0 = vshll.u32 %v11281_v59, 16  ;;  %v1707_v16 = vshrl.u32 %v11286_v6, 16 }
 0x2ca   :  { %v1679_v52 = vsel %vm10690_vm3, %v1671_v35, %v1678_v24  ;;  %v1710_v29 = vshll.u32 %v11286_v6, 16  ;;  %v1701_v47 = vrot.slane %v1699_v39, 7  ;;  %v1716_v59 = vshrl.u32 %v11291_v57, 16 }
 0x2cb   :  { %v11613_v14 = vor.u32 %v1685_v30, %v1684_v2  ;;  %v1688_v36 = vrot.slane %v1684_v2, 4  ;;  %v1695_v34 = vor.u32 %v1693_v5, %v11606_v27  ;;  %v11618_v38 = vrot.slane %v1707_v16, 7  ;;  %2193 = vst [vmem:[#allocation2 + $0xa0] sm:$0xf] %v1679_v52 }
 0x2cc   :  { %v1719_v28 = vshll.u32 %v11291_v57, 16  ;;  %v1724_v13 = vshrl.u32 %v11296_v60, 16  ;;  %v1727_v30 = vshll.u32 %v11296_v60, 16  ;;  %v11626_v6 = vor.u32 %v1702_v0, %v1701_v47 }
 0x2cd   :  { %15697 = vst [vmem:[#allocation33_spill] sm:$0xff] %v11618_v38  ;;  %v1696_v35 = vsel %vm10690_vm3, %v1688_v36, %v1695_v34  ;;  %v1705_v24 = vrot.slane %v1701_v47, 4  ;;  %v1712_v2 = vor.u32 %v1710_v29, %v11618_v38  ;;  %v1718_v39 = vrot.slane %v1716_v59, 7 }
 0x2ce   :  { %15698 = vst [vmem:[#allocation35_spill] sm:$0xff] %v11626_v6  ;;  %v11630_v16 = vrot.slane %v1724_v13, 7  ;;  %v1733_v52 = vshrl.u32 %v11301_v63, 16  ;;  %2200 = vst [vmem:[#allocation2 + $0xac] sm:$0xf] %v1696_v35  ;;  %v1736_v60 = vshll.u32 %v11301_v63, 16 }
 0x2cf   :  { %v1713_v57 = vsel %vm10690_vm3, %v1705_v24, %v1712_v2  ;;  %v1741_v36 = vshrl.u32 %v15700_v55, 16  ;;  %v1744_v0 = vshll.u32 %v15700_v55, 16  ;;  %v11638_v34 = vor.u32 %v1719_v28, %v1718_v39  ;;  %v15702_v35 = vld [vmem:[#allocation34_spill] sm:$0xff]  ;;  %v15703_v2 = vld [vmem:[#allocation36_spill] sm:$0xff] }
 0x2d0   :  { %15699 = vst [vmem:[#allocation32_spill] sm:$0xff] %v11630_v16  ;;  %v1722_v29 = vrot.slane %v1718_v39, 4  ;;  %v1729_v47 = vor.u32 %v1727_v30, %v11630_v16  ;;  %2207 = vst [vmem:[#allocation2 + $0xb8] sm:$0xf] %v1713_v57  ;;  %v1735_v59 = vrot.slane %v1733_v52, 7  ;;  %v1750_v38 = vshrl.u32 %v15702_v35, 16 }
 0x2d1   :  { %15701 = vst [vmem:[#allocation21_spill] sm:$0xff] %v11638_v34  ;;  %v11642_v5 = vrot.slane %v1741_v36, 7  ;;  %v1753_v24 = vshll.u32 %v15702_v35, 16  ;;  %v1758_v55 = vshrl.u32 %v15703_v2, 16  ;;  %v1761_v28 = vshll.u32 %v15703_v2, 16  ;;  %v15704_v39 = vld [vmem:[#allocation19_spill] sm:$0xff] }
 0x2d2   :  { %v1730_v63 = vsel %vm10690_vm3, %v1722_v29, %v1729_v47  ;;  %v1767_v34 = vshrl.u32 %v15704_v39, 16  ;;  %v11651_v30 = vor.u32 %v1736_v60, %v1735_v59  ;;  %v1739_v13 = vrot.slane %v1735_v59, 4  ;;  %v15707_v2 = vld [vmem:[#allocation17_spill] sm:$0xff] }
 0x2d3   :  { %v1746_v52 = vor.u32 %v1744_v0, %v11642_v5  ;;  %2214 = vst [vmem:[#allocation2 + $0xc4] sm:$0xf] %v1730_v63  ;;  %v1752_v36 = vrot.slane %v1750_v38, 7  ;;  %v11655_v16 = vrot.slane %v1758_v55, 7  ;;  %v1770_v29 = vshll.u32 %v15704_v39, 16 }
 0x2d4   :  { %15705 = vst [vmem:[#allocation13_spill] sm:$0xff] %v11651_v30  ;;  %v1769_v35 = vrot.slane %v1767_v34, 7  ;;  %v1775_v6 = vshrl.u32 %v15707_v2, 16  ;;  %v1778_v60 = vshll.u32 %v15707_v2, 16  ;;  %v1784_v59 = vshrl.u32 %v11331_v17, 16 }
 0x2d5   :  { %15706 = vst [vmem:[#allocation27_spill] sm:$0xff] %v11655_v16  ;;  %v1747_v47 = vsel %vm10690_vm3, %v1739_v13, %v1746_v52  ;;  %v11663_v30 = vor.u32 %v1753_v24, %v1752_v36  ;;  %v1756_v0 = vrot.slane %v1752_v36, 4  ;;  %v1763_v63 = vor.u32 %v1761_v28, %v11655_v16 }
 0x2d6   :  { %2221 = vst [vmem:[#allocation2 + $0xe8] sm:$0xf] %v1747_v47  ;;  %v11667_v34 = vor.u32 %v1770_v29, %v1769_v35  ;;  %v1773_v55 = vrot.slane %v1769_v35, 4  ;;  %v11669_v39 = vrot.slane %v1775_v6, 7  ;;  %v1786_v13 = vrot.slane %v1784_v59, 7 }
 0x2d7   :  { %v1764_v52 = vsel %vm10690_vm3, %v1756_v0, %v1763_v63  ;;  %v1787_v2 = vshll.u32 %v11331_v17, 16  ;;  %v1792_v24 = vshrl.u32 %v11336_v15, 16  ;;  %v1795_v36 = vshll.u32 %v11336_v15, 16 }
 0x2d8   :  { %15708 = vst [vmem:[#allocation34_spill] sm:$0xff] %v11667_v34  ;;  %15709 = vst [vmem:[#allocation36_spill] sm:$0xff] %v11669_v39  ;;  %v1780_v28 = vor.u32 %v1778_v60, %v11669_v39  ;;  %v1790_v47 = vrot.slane %v1786_v13, 4  ;;  %v1801_v29 = vshrl.u32 %v11341_v19, 16  ;;  %v1804_v59 = vshll.u32 %v11341_v19, 16 }
 0x2d9   :  { %2228 = vst [vmem:[#allocation2 + $0xf4] sm:$0xf] %v1764_v52  ;;  %v11679_v6 = vor.u32 %v1787_v2, %v1786_v13  ;;  %v11681_v35 = vrot.slane %v1792_v24, 7  ;;  %v1809_v17 = vshrl.u32 %v11346_v20, 16  ;;  %v1812_v60 = vshll.u32 %v11346_v20, 16 }
 0x2da   :  { %v1781_v0 = vsel %vm10690_vm3, %v1773_v55, %v1780_v28  ;;  %v1803_v15 = vrot.slane %v1801_v29, 7  ;;  %v1818_v63 = vshrl.u32 %v11351_v25, 16  ;;  %v1821_v2 = vshll.u32 %v11351_v25, 16  ;;  %v2152_v39 = vld [vmem:[#allocation2 + $0x5c] sm:$0x1] }
 0x2db   :  { %15710 = vst [vmem:[#allocation19_spill] sm:$0xff] %v11679_v6  ;;  %15711 = vst [vmem:[#allocation17_spill] sm:$0xff] %v11681_v35  ;;  %v1797_v38 = vor.u32 %v1795_v36, %v11681_v35  ;;  %v11691_v13 = vrot.slane %v1809_v17, 7  ;;  %v1826_v55 = vshrl.u32 %v11356_v23, 16  ;;  %v1829_v29 = vshll.u32 %v11356_v23, 16 }
 0x2dc   :  { %2235 = vst [vmem:[#allocation2 + $0x100] sm:$0xf] %v1781_v0  ;;  %v11694_v19 = vor.u32 %v1804_v59, %v1803_v15  ;;  %v1807_v24 = vrot.slane %v1803_v15, 4  ;;  %v1820_v57 = vrot.slane %v1818_v63, 7  ;;  %v1835_v59 = vshrl.u32 %v11361_v43, 16 }
 0x2dd   :  { %15712 = vst [vmem:[#allocation38_spill] sm:$0xff] %v11691_v13  ;;  %v1798_v20 = vsel %vm10690_vm3, %v1790_v47, %v1797_v38  ;;  %v1814_v28 = vor.u32 %v1812_v60, %v11691_v13  ;;  %v11704_v25 = vrot.slane %v1826_v55, 7  ;;  %v1838_v15 = vshll.u32 %v11361_v43, 16  ;;  %v15716_v38 = vld [vmem:[#allocation18_spill] sm:$0xff] }
 0x2de   :  { %15713 = vst [vmem:[#allocation39_spill] sm:$0xff] %v11694_v19  ;;  %v11702_v17 = vor.u32 %v1821_v2, %v1820_v57  ;;  %v1824_v52 = vrot.slane %v1820_v57, 4  ;;  %2242 = vst [vmem:[#allocation2 + $0x10c] sm:$0xf] %v1798_v20  ;;  %v1843_v47 = vshrl.u32 %v15716_v38, 16  ;;  %v1846_v60 = vshll.u32 %v15716_v38, 16 }
 0x2df   :  { %15715 = vst [vmem:[#allocation41_spill] sm:$0xff] %v11704_v25  ;;  %v1815_v0 = vsel %vm10690_vm3, %v1807_v24, %v1814_v28  ;;  %v1831_v63 = vor.u32 %v1829_v29, %v11704_v25  ;;  %v1837_v2 = vrot.slane %v1835_v59, 7  ;;  %v1852_v57 = vshrl.u32 %v11371_v3, 16  ;;  %v2134_v19 = vld [vmem:[#allocation2 + $0x3c] sm:$0xf] }
 0x2e0   :  { %15714 = vst [vmem:[#allocation40_spill] sm:$0xff] %v11702_v17  ;;  %2249 = vst [vmem:[#allocation2 + $0x118] sm:$0xf] %v1815_v0  ;;  %v11715_v55 = vrot.slane %v1843_v47, 7  ;;  %v1855_v20 = vshll.u32 %v11371_v3, 16  ;;  %v1860_v24 = vshrl.u32 %v11376_v22, 16 }
 0x2e1   :  { %v1863_v43 = vshll.u32 %v11376_v22, 16  ;;  %v1832_v28 = vsel %vm10690_vm3, %v1824_v52, %v1831_v63  ;;  %v11722_v38 = vor.u32 %v1838_v15, %v1837_v2  ;;  %v1841_v29 = vrot.slane %v1837_v2, 4 }
 0x2e2   :  { %15717 = vst [vmem:[#allocation18_spill] sm:$0xff] %v11715_v55  ;;  %v1854_v36 = vrot.slane %v1852_v57, 7  ;;  %v1848_v59 = vor.u32 %v1846_v60, %v11715_v55  ;;  %v11726_v0 = vrot.slane %v1860_v24, 7  ;;  %v1869_v47 = vshrl.u32 %v11381_v32, 16  ;;  %2256 = vst [vmem:[#allocation2 + $0x124] sm:$0xf] %v1832_v28 }
 0x2e3   :  { %15718 = vst [vmem:[#allocation42_spill] sm:$0xff] %v11722_v38  ;;  %v1872_v22 = vshll.u32 %v11381_v32, 16  ;;  %v1877_v52 = vshrl.u32 %v11386_v7, 16  ;;  %v1880_v24 = vshll.u32 %v11386_v7, 16  ;;  %v15749_v16 = vrot.slane %v11455_v10, 4 }
 0x2e4   :  { %15719 = vst [vmem:[#allocation43_spill] sm:$0xff] %v11726_v0  ;;  %v11729_v3 = vor.u32 %v1855_v20, %v1854_v36  ;;  %v1858_v25 = vrot.slane %v1854_v36, 4  ;;  %v1849_v15 = vsel %vm10690_vm3, %v1841_v29, %v1848_v59  ;;  %v1865_v63 = vor.u32 %v1863_v43, %v11726_v0  ;;  %v15729_v0 = vld [vmem:[#allocation25_spill] sm:$0xff] }
 0x2e5   :  { %v1871_v2 = vrot.slane %v1869_v47, 7  ;;  %v11737_v57 = vrot.slane %v1877_v52, 7  ;;  %v1886_v20 = vshrl.u32 %v11391_v44, 16  ;;  %v1889_v36 = vshll.u32 %v11391_v44, 16  ;;  %2263 = vst [vmem:[#allocation2 + $0x130] sm:$0xf] %v1849_v15 }
 0x2e6   :  { %15720 = vst [vmem:[#allocation44_spill] sm:$0xff] %v11729_v3  ;;  %v1866_v32 = vsel %vm10690_vm3, %v1858_v25, %v1865_v63  ;;  %v1894_v29 = vshrl.u32 %v11396_v12, 16  ;;  %v1897_v52 = vshll.u32 %v11396_v12, 16  ;;  %v15724_v15 = vld [vmem:[#allocation23_spill] sm:$0xff]  ;;  %v15725_v25 = vld [vmem:[#allocation20_spill] sm:$0xff]  ;;  %v1928_v3 = vshrl.u32 %v15729_v0, 16 }
 0x2e7   :  { %15721 = vst [vmem:[#allocation45_spill] sm:$0xff] %v11737_v57  ;;  %v11744_v28 = vor.u32 %v1872_v22, %v1871_v2  ;;  %v1875_v43 = vrot.slane %v1871_v2, 4  ;;  %v1882_v59 = vor.u32 %v1880_v24, %v11737_v57  ;;  %v1888_v7 = vrot.slane %v1886_v20, 7  ;;  %2270 = vst [vmem:[#allocation2 + $0x13c] sm:$0xf] %v1866_v32  ;;  %v15728_v57 = vld [vmem:[#allocation22_spill] sm:$0xff] }
 0x2e8   :  { %v11750_v44 = vrot.slane %v1894_v29, 7  ;;  %v1903_v60 = vshrl.u32 %v15724_v15, 16  ;;  %v1906_v23 = vshll.u32 %v15724_v15, 16  ;;  %v1911_v22 = vshrl.u32 %v15725_v25, 16 }
 0x2e9   :  { %15722 = vst [vmem:[#allocation46_spill] sm:$0xff] %v11744_v28  ;;  %v1883_v63 = vsel %vm10690_vm3, %v1875_v43, %v1882_v59  ;;  %v11757_v2 = vor.u32 %v1889_v36, %v1888_v7  ;;  %v1892_v24 = vrot.slane %v1888_v7, 4  ;;  %v1914_v47 = vshll.u32 %v15725_v25, 16 }
 0x2ea   :  { %15723 = vst [vmem:[#allocation47_spill] sm:$0xff] %v11750_v44  ;;  %v1899_v20 = vor.u32 %v1897_v52, %v11750_v44  ;;  %v1905_v32 = vrot.slane %v1903_v60, 7  ;;  %v11762_v29 = vrot.slane %v1911_v22, 7  ;;  %2277 = vst [vmem:[#allocation2 + $0x148] sm:$0xf] %v1883_v63  ;;  %v1920_v15 = vshrl.u32 %v15728_v57, 16 }
 0x2eb   :  { %15726 = vst [vmem:[#allocation23_spill] sm:$0xff] %v11757_v2  ;;  %v1923_v28 = vshll.u32 %v15728_v57, 16  ;;  %v1931_v36 = vshll.u32 %v15729_v0, 16  ;;  %v11774_v22 = vrot.slane %v1928_v3, 7  ;;  %v15732_v63 = vld [vmem:[#allocation24_spill] sm:$0xff]  ;;  %v15733_v44 = vld [vmem:[#allocation26_spill] sm:$0xff] }
 0x2ec   :  { %15727 = vst [vmem:[#allocation20_spill] sm:$0xff] %v11762_v29  ;;  %v1900_v43 = vsel %vm10690_vm3, %v1892_v24, %v1899_v20  ;;  %v11770_v59 = vor.u32 %v1906_v23, %v1905_v32  ;;  %v1909_v7 = vrot.slane %v1905_v32, 4  ;;  %v1916_v52 = vor.u32 %v1914_v47, %v11762_v29 }
 0x2ed   :  { %v1922_v25 = vrot.slane %v1920_v15, 7  ;;  %15731 = vst [vmem:[#allocation25_spill] sm:$0xff] %v11774_v22  ;;  %v1937_v12 = vshrl.u32 %v15732_v63, 16  ;;  %2284 = vst [vmem:[#allocation2 + $0x154] sm:$0xf] %v1900_v43  ;;  %v1940_v0 = vshll.u32 %v15732_v63, 16  ;;  %v1933_v32 = vor.u32 %v1931_v36, %v11774_v22 }
 0x2ee   :  { %15730 = vst [vmem:[#allocation22_spill] sm:$0xff] %v11770_v59  ;;  %v1917_v57 = vsel %vm10690_vm3, %v1909_v7, %v1916_v52  ;;  %v1945_v24 = vshrl.u32 %v15733_v44, 16  ;;  %v1948_v23 = vshll.u32 %v15733_v44, 16  ;;  %v15736_v43 = vld [vmem:[#allocation29_spill] sm:$0xff]  ;;  %v2104_v44 = vld [vmem:[#allocation2 + $0xc] sm:$0xf] }
 0x2ef   :  { %v11782_v20 = vor.u32 %v1923_v28, %v1922_v25  ;;  %v1926_v47 = vrot.slane %v1922_v25, 4  ;;  %2291 = vst [vmem:[#allocation2 + $0x160] sm:$0xf] %v1917_v57  ;;  %v1939_v15 = vrot.slane %v1937_v12, 7  ;;  %v1954_v29 = vshrl.u32 %v15736_v43, 16  ;;  %v15739_v25 = vld [vmem:[#allocation31_spill] sm:$0xff] }
 0x2f0   :  { %v11786_v60 = vrot.slane %v1945_v24, 7  ;;  %v1957_v7 = vshll.u32 %v15736_v43, 16  ;;  %v2113_v28 = vld [vmem:[#allocation2 + $0x18] sm:$0xf]  ;;  %v1962_v63 = vshrl.u32 %v15739_v25, 16  ;;  %v1965_v12 = vshll.u32 %v15739_v25, 16 }
 0x2f1   :  { %15734 = vst [vmem:[#allocation24_spill] sm:$0xff] %v11782_v20  ;;  %v1934_v36 = vsel %vm10690_vm3, %v1926_v47, %v1933_v32  ;;  %v15740_v57 = vld [vmem:[#allocation14_spill] sm:$0xff]  ;;  %v15741_v24 = vld [vmem:[#allocation15_spill] sm:$0xff]  ;;  %v2110_v20 = vld [vmem:[#allocation2 + $0x14] sm:$0x1]  ;;  %v11805_v59 = vor.u32 %v1940_v0, %v1939_v15  ;;  %v1943_v2 = vrot.slane %v1939_v15, 4 }
 0x2f2   :  { %15735 = vst [vmem:[#allocation26_spill] sm:$0xff] %v11786_v60  ;;  %v15742_v3 = vshll.u32 %v15741_v24, 16  ;;  %v2117_v43 = vld [vmem:[#allocation2 + $0x20] sm:$0x1]  ;;  %v1950_v55 = vor.u32 %v1948_v23, %v11786_v60  ;;  %2298 = vst [vmem:[#allocation2 + $0x16c] sm:$0xf] %v1934_v36 }
 0x2f3   :  { %15744 = vst [vmem:[#allocation31_spill] sm:$0xff] %v11805_v59  ;;  %v2120_v47 = vld [vmem:[#allocation2 + $0x24] sm:$0xf]  ;;  %v1956_v32 = vrot.slane %v1954_v29, 7  ;;  %v11809_v17 = vrot.slane %v1962_v63, 7  ;;  %v15746_v25 = vld [vmem:[#allocation28_spill] sm:$0xff]  ;;  %v2105_v29 = vsel %vm11792_vm7, %v11463_v37, %v2104_v44 }
 0x2f4   :  { %v11803_v22 = vor.u32 %v15742_v3, %v15740_v57  ;;  %v1988_v13 = vshrl.u32 %v15746_v25, 16  ;;  %v1991_v24 = vshll.u32 %v15746_v25, 16  ;;  %v2127_v3 = vld [vmem:[#allocation2 + $0x30] sm:$0xf]  ;;  %v2131_v57 = vld [vmem:[#allocation2 + $0x38] sm:$0x1]  ;;  %v1951_v0 = vsel %vm10690_vm3, %v1943_v2, %v1950_v55 }
 0x2f5   :  { %15745 = vst [vmem:[#allocation14_spill] sm:$0xff] %v11809_v17  ;;  %v15747_v15 = vld [vmem:[#allocation30_spill] sm:$0xff]  ;;  %v11820_v36 = vld [vmem:[#allocation2 + $0x48] sm:$0xf]  ;;  %v2145_v63 = vld [vmem:[#allocation2 + $0x50] sm:$0x1]  ;;  %v11824_v59 = vor.u32 %v1957_v7, %v1956_v32  ;;  %v1967_v6 = vor.u32 %v1965_v12, %v11809_v17  ;;  %v2114_v12 = vsel %vm11792_vm7, %v11467_v18, %v2113_v28  ;;  %v2121_v18 = vsel %vm11792_vm7, %v11481_v49, %v2120_v47 }
 0x2f6   :  { %15743 = vst [vmem:[#allocation29_spill] sm:$0xff] %v11803_v22  ;;  %v2124_v22 = vld [vmem:[#allocation2 + $0x2c] sm:$0x1]  ;;  %v1996_v23 = vshrl.u32 %v15747_v15, 16  ;;  %v1999_v38 = vshll.u32 %v15747_v15, 16  ;;  %v1960_v35 = vrot.slane %v1956_v32, 4  ;;  %v2111_v32 = vsel %vm10706_vm4, %v15749_v16, %v2110_v20 }
 0x2f7   :  { %v2138_v60 = vld [vmem:[#allocation2 + $0x44] sm:$0x1]  ;;  %v11822_v25 = vld [vmem:[#allocation2 + $0x54] sm:$0xf]  ;;  %15748 = vst [vmem:[#allocation15_spill] sm:$0xff] %v11824_v59  ;;  %v1990_v44 = vrot.slane %v1988_v13, 7 }
 0x2f8   :  { %2106 = vst [vmem:[#allocation2 + $0xc] sm:$0xf] %v2105_v29  ;;  %2305 = vst [vmem:[#allocation2 + $0x178] sm:$0xf] %v1951_v0  ;;  %v11828_v2 = vld [vmem:[#allocation2 + $0x60] sm:$0xf]  ;;  %v1968_v13 = vsel %vm10690_vm3, %v1960_v35, %v1967_v6  ;;  %v2149_v54 = vsel %vm11792_vm7, %v11523_v45, %v11822_v25 }
 0x2f9   :  { %v2159_v15 = vld [vmem:[#allocation2 + $0x68] sm:$0x1]  ;;  %v11830_v37 = vld [vmem:[#allocation2 + $0x6c] sm:$0xf]  ;;  %v11832_v34 = vrot.slane %v1996_v23, 7  ;;  %v15751_v10 = vrot.slane %v11459_v61, 4  ;;  %v11868_v61 = vor.u32 %v1991_v24, %v1990_v44  ;;  %v2128_v24 = vsel %vm11792_vm7, %v11494_v9, %v2127_v3 }
 0x2fa   :  { %v11841_v29 = vld [vmem:[#allocation2 + $0x78] sm:$0xf]  ;;  %v11843_v0 = vld [vmem:[#allocation2 + $0x80] sm:$0x1]  ;;  %v2166_v55 = vld [vmem:[#allocation2 + $0x74] sm:$0x1]  ;;  %v2156_v45 = vsel %vm11792_vm7, %v11535_v31, %v11828_v2  ;;  %v2163_v25 = vsel %vm11792_vm7, %v11550_v56, %v11830_v37 }
 0x2fb   :  { %v11845_v17 = vld [vmem:[#allocation2 + $0x84] sm:$0xf]  ;;  %2112 = vst [vmem:[#allocation2 + $0x14] sm:$0x1] %v2111_v32  ;;  %2115 = vst [vmem:[#allocation2 + $0x18] sm:$0xf] %v2114_v12  ;;  %v2118_v16 = vsel %vm10706_vm4, %v15751_v10, %v2117_v43  ;;  %v2001_v32 = vor.u32 %v1999_v38, %v11832_v34  ;;  %v2170_v56 = vsel %vm11792_vm7, %v11558_v4, %v11841_v29 }
 0x2fc   :  { %v15752_v20 = vrot.slane %v11473_v50, 4  ;;  %v11860_v23 = vld [vmem:[#allocation2 + $0x90] sm:$0xf]  ;;  %v11862_v59 = vld [vmem:[#allocation2 + $0x98] sm:$0x1]  ;;  %v1994_v43 = vrot.slane %v1990_v44, 4  ;;  %v2177_v37 = vsel %vm11792_vm7, %v11578_v8, %v11845_v17 }
 0x2fd   :  { %v11864_v6 = vld [vmem:[#allocation2 + $0x8c] sm:$0x1]  ;;  %v11866_v35 = vld [vmem:[#allocation2 + $0x9c] sm:$0xf]  ;;  %v2003_v49 = vrot.slane %v11832_v34, 4  ;;  %v15753_v38 = vrot.slane %v11485_v48, 4  ;;  %v2184_v8 = vsel %vm11792_vm7, %v11585_v26, %v11860_v23 }
 0x2fe   :  { %v2125_v28 = vsel %vm10706_vm4, %v15752_v20, %v2124_v22  ;;  %2119 = vst [vmem:[#allocation2 + $0x20] sm:$0x1] %v2118_v16  ;;  %2122 = vst [vmem:[#allocation2 + $0x24] sm:$0xf] %v2121_v18  ;;  %v11872_v50 = vld [vmem:[#allocation2 + $0xa8] sm:$0xf]  ;;  %v2002_v48 = vsel %vm10690_vm3, %v1994_v43, %v2001_v32 }
 0x2ff   :  { %2126 = vst [vmem:[#allocation2 + $0x2c] sm:$0x1] %v2125_v28  ;;  %2312 = vst [vmem:[#allocation2 + $0x184] sm:$0xf] %v1968_v13  ;;  %v11874_v22 = vld [vmem:[#allocation2 + $0xb0] sm:$0x1]  ;;  %v2132_v44 = vsel %vm10706_vm4, %v15753_v38, %v2131_v57  ;;  %v2135_v13 = vsel %vm11792_vm7, %v11507_v1, %v2134_v19 }
 0x300   :  { %v11876_v47 = vld [vmem:[#allocation2 + $0xa4] sm:$0x1]  ;;  %v11878_v12 = vld [vmem:[#allocation2 + $0xb4] sm:$0xf]  ;;  %v15754_v10 = vrot.slane %v11498_v53, 4  ;;  %v2142_v53 = vsel %vm11792_vm7, %v11519_v58, %v11820_v36  ;;  %v15755_v1 = vrot.slane %v11511_v46, 4 }
 0x301   :  { %v11894_v18 = vld [vmem:[#allocation2 + $0xc0] sm:$0xf]  ;;  %v11896_v20 = vld [vmem:[#allocation2 + $0xc8] sm:$0x1]  ;;  %v11898_v28 = vld [vmem:[#allocation2 + $0xbc] sm:$0x1] }
 0x302   :  { %v2139_v16 = vsel %vm10706_vm4, %v15754_v10, %v2138_v60  ;;  %v11900_v9 = vld [vmem:[#allocation2 + $0xe4] sm:$0xf]  ;;  %2129 = vst [vmem:[#allocation2 + $0x30] sm:$0xf] %v2128_v24  ;;  %2133 = vst [vmem:[#allocation2 + $0x38] sm:$0x1] %v2132_v44  ;;  %v2146_v19 = vsel %vm10706_vm4, %v15755_v1, %v2145_v63 }
 0x303   :  { %2136 = vst [vmem:[#allocation2 + $0x3c] sm:$0xf] %v2135_v13  ;;  %2140 = vst [vmem:[#allocation2 + $0x44] sm:$0x1] %v2139_v16  ;;  %v11916_v60 = vld [vmem:[#allocation2 + $0xf0] sm:$0xf] }
 0x304   :  { %v11918_v3 = vld [vmem:[#allocation2 + $0xf8] sm:$0x1]  ;;  %v11920_v57 = vld [vmem:[#allocation2 + $0xec] sm:$0x1]  ;;  %v11922_v43 = vld [vmem:[#allocation2 + $0xfc] sm:$0xf] }
 0x305   :  { %2143 = vst [vmem:[#allocation2 + $0x48] sm:$0xf] %v2142_v53  ;;  %2147 = vst [vmem:[#allocation2 + $0x50] sm:$0x1] %v2146_v19  ;;  %v15756_v58 = vrot.slane %v11525_v51, 4  ;;  %v15757_v36 = vrot.slane %v11537_v41, 4 }
 0x306   :  { %2150 = vst [vmem:[#allocation2 + $0x54] sm:$0xf] %v2149_v54  ;;  %2326 = vst [vmem:[#allocation2 + $0x19c] sm:$0xf] %v2002_v48  ;;  %v11940_v51 = vld [vmem:[#allocation2 + $0x108] sm:$0xf] }
 0x307   :  { %v2153_v46 = vsel %vm10706_vm4, %v15756_v58, %v2152_v39  ;;  %v2160_v63 = vsel %vm10706_vm4, %v15757_v36, %v2159_v15  ;;  %v11942_v32 = vld [vmem:[#allocation2 + $0x110] sm:$0x1]  ;;  %v11944_v39 = vld [vmem:[#allocation2 + $0x104] sm:$0x1]  ;;  %v11946_v24 = vld [vmem:[#allocation2 + $0x114] sm:$0xf] }
 0x308   :  { %2154 = vst [vmem:[#allocation2 + $0x5c] sm:$0x1] %v2153_v46  ;;  %2157 = vst [vmem:[#allocation2 + $0x60] sm:$0xf] %v2156_v45  ;;  %v15758_v31 = vrot.slane %v11547_v11, 4  ;;  %v15759_v2 = vrot.slane %v11560_v21, 4 }
 0x309   :  { %2161 = vst [vmem:[#allocation2 + $0x68] sm:$0x1] %v2160_v63  ;;  %2164 = vst [vmem:[#allocation2 + $0x6c] sm:$0xf] %v2163_v25  ;;  %v11965_v11 = vld [vmem:[#allocation2 + $0x120] sm:$0xf] }
 0x30a   :  { %v2167_v41 = vsel %vm10706_vm4, %v15758_v31, %v2166_v55  ;;  %v2174_v15 = vsel %vm10706_vm4, %v15759_v2, %v11843_v0  ;;  %v11967_v38 = vld [vmem:[#allocation2 + $0x128] sm:$0x1]  ;;  %v11969_v55 = vld [vmem:[#allocation2 + $0x11c] sm:$0x1]  ;;  %v11971_v44 = vld [vmem:[#allocation2 + $0x12c] sm:$0xf]  ;;  %v2191_v0 = vsel %vm11792_vm7, %v11600_v62, %v11866_v35  ;;  %v2198_v62 = vsel %vm11792_vm7, %v11613_v14, %v11872_v50 }
 0x30b   :  { %2168 = vst [vmem:[#allocation2 + $0x74] sm:$0x1] %v2167_v41  ;;  %2171 = vst [vmem:[#allocation2 + $0x78] sm:$0xf] %v2170_v56  ;;  %v15760_v4 = vrot.slane %v11571_v33, 4  ;;  %v15761_v17 = vrot.slane %v11582_v42, 4 }
 0x30c   :  { %2175 = vst [vmem:[#allocation2 + $0x80] sm:$0x1] %v2174_v15  ;;  %2178 = vst [vmem:[#allocation2 + $0x84] sm:$0xf] %v2177_v37  ;;  %v11991_v33 = vld [vmem:[#allocation2 + $0x138] sm:$0xf] }
 0x30d   :  { %v2181_v21 = vsel %vm10706_vm4, %v15760_v4, %v11864_v6  ;;  %v2188_v29 = vsel %vm10706_vm4, %v15761_v17, %v11862_v59  ;;  %v11993_v13 = vld [vmem:[#allocation2 + $0x140] sm:$0x1]  ;;  %v2264_v6 = vld [vmem:[#allocation2 + $0x134] sm:$0x1]  ;;  %v11995_v10 = vld [vmem:[#allocation2 + $0x144] sm:$0xf] }
 0x30e   :  { %2182 = vst [vmem:[#allocation2 + $0x8c] sm:$0x1] %v2181_v21  ;;  %2185 = vst [vmem:[#allocation2 + $0x90] sm:$0xf] %v2184_v8  ;;  %v15762_v42 = vrot.slane %v11593_v40, 4  ;;  %v15763_v59 = vrot.slane %v11606_v27, 4 }
 0x30f   :  { %2189 = vst [vmem:[#allocation2 + $0x98] sm:$0x1] %v2188_v29  ;;  %2192 = vst [vmem:[#allocation2 + $0x9c] sm:$0xf] %v2191_v0  ;;  %v15764_v35 = vld [vmem:[#allocation35_spill] sm:$0xff]  ;;  %v15765_v27 = vld [vmem:[#allocation33_spill] sm:$0xff] }
 0x310   :  { %v2195_v26 = vsel %vm10706_vm4, %v15762_v42, %v11876_v47  ;;  %v2202_v23 = vsel %vm10706_vm4, %v15763_v59, %v11874_v22  ;;  %v2205_v16 = vsel %vm11792_vm7, %v15764_v35, %v11878_v12  ;;  %v12015_v40 = vld [vmem:[#allocation2 + $0x150] sm:$0xf]  ;;  %v12017_v48 = vld [vmem:[#allocation2 + $0x158] sm:$0x1]  ;;  %v2278_v47 = vld [vmem:[#allocation2 + $0x14c] sm:$0x1] }
 0x311   :  { %v12019_v53 = vld [vmem:[#allocation2 + $0x15c] sm:$0xf]  ;;  %2196 = vst [vmem:[#allocation2 + $0xa4] sm:$0x1] %v2195_v26  ;;  %2199 = vst [vmem:[#allocation2 + $0xa8] sm:$0xf] %v2198_v62 }
 0x312   :  { %2203 = vst [vmem:[#allocation2 + $0xb0] sm:$0x1] %v2202_v23  ;;  %2206 = vst [vmem:[#allocation2 + $0xb4] sm:$0xf] %v2205_v16  ;;  %v15766_v14 = vrot.slane %v15765_v27, 4  ;;  %v15767_v22 = vld [vmem:[#allocation21_spill] sm:$0xff] }
 0x313   :  { %v2212_v12 = vsel %vm11792_vm7, %v15767_v22, %v11894_v18  ;;  %v15768_v1 = vld [vmem:[#allocation32_spill] sm:$0xff]  ;;  %v15770_v58 = vld [vmem:[#allocation13_spill] sm:$0xff]  ;;  %v15771_v18 = vrot.slane %v11642_v5, 4  ;;  %v15772_v25 = vld [vmem:[#allocation27_spill] sm:$0xff] }
 0x314   :  { %v2209_v50 = vsel %vm10706_vm4, %v15766_v14, %v11898_v28  ;;  %v15769_v19 = vrot.slane %v15768_v1, 4  ;;  %v2219_v46 = vsel %vm11792_vm7, %v15770_v58, %v11900_v9  ;;  %v12039_v45 = vld [vmem:[#allocation2 + $0x168] sm:$0xf]  ;;  %v2299_v36 = vld [vmem:[#allocation2 + $0x170] sm:$0x1]  ;;  %v2226_v9 = vsel %vm11792_vm7, %v11663_v30, %v11916_v60  ;;  %v15774_v56 = vld [vmem:[#allocation34_spill] sm:$0xff] }
 0x315   :  { %v2292_v28 = vld [vmem:[#allocation2 + $0x164] sm:$0x1]  ;;  %v12041_v63 = vld [vmem:[#allocation2 + $0x174] sm:$0xf]  ;;  %2210 = vst [vmem:[#allocation2 + $0xbc] sm:$0x1] %v2209_v50  ;;  %v2233_v2 = vsel %vm11792_vm7, %v15774_v56, %v11922_v43 }
 0x316   :  { %v2216_v54 = vsel %vm10706_vm4, %v15769_v19, %v11896_v20  ;;  %2213 = vst [vmem:[#allocation2 + $0xc0] sm:$0xf] %v2212_v12  ;;  %2220 = vst [vmem:[#allocation2 + $0xe4] sm:$0xf] %v2219_v46  ;;  %v2223_v20 = vsel %vm10706_vm4, %v15771_v18, %v11920_v57  ;;  %v15773_v31 = vrot.slane %v15772_v25, 4  ;;  %v15775_v30 = vld [vmem:[#allocation36_spill] sm:$0xff] }
 0x317   :  { %2217 = vst [vmem:[#allocation2 + $0xc8] sm:$0x1] %v2216_v54  ;;  %v12061_v5 = vld [vmem:[#allocation2 + $0x180] sm:$0xf]  ;;  %v2313_v15 = vld [vmem:[#allocation2 + $0x188] sm:$0x1] }
 0x318   :  { %v2230_v41 = vsel %vm10706_vm4, %v15773_v31, %v11918_v3  ;;  %v2306_v57 = vld [vmem:[#allocation2 + $0x17c] sm:$0x1]  ;;  %v12063_v37 = vld [vmem:[#allocation2 + $0x18c] sm:$0xf]  ;;  %2224 = vst [vmem:[#allocation2 + $0xec] sm:$0x1] %v2223_v20 }
 0x319   :  { %2227 = vst [vmem:[#allocation2 + $0xf0] sm:$0xf] %v2226_v9  ;;  %2231 = vst [vmem:[#allocation2 + $0xf8] sm:$0x1] %v2230_v41  ;;  %v15776_v60 = vrot.slane %v15775_v30, 4  ;;  %v15777_v4 = vld [vmem:[#allocation19_spill] sm:$0xff] }
 0x31a   :  { %2234 = vst [vmem:[#allocation2 + $0xfc] sm:$0xf] %v2233_v2  ;;  %v2240_v43 = vsel %vm11792_vm7, %v15777_v4, %v11940_v51  ;;  %v15778_v21 = vld [vmem:[#allocation17_spill] sm:$0xff]  ;;  %v15780_v29 = vld [vmem:[#allocation39_spill] sm:$0xff]  ;;  %v2323_v42 = vld [vmem:[#allocation2 + $0x198] sm:$0xf] }
 0x31b   :  { %v2237_v3 = vsel %vm10706_vm4, %v15776_v60, %v11944_v39  ;;  %v15779_v8 = vrot.slane %v15778_v21, 4  ;;  %v2247_v0 = vsel %vm11792_vm7, %v15780_v29, %v11946_v24  ;;  %v2327_v26 = vld [vmem:[#allocation2 + $0x1a0] sm:$0x1]  ;;  %2241 = vst [vmem:[#allocation2 + $0x108] sm:$0xf] %v2240_v43  ;;  %v15781_v39 = vld [vmem:[#allocation38_spill] sm:$0xff] }
 0x31c   :  { %2238 = vst [vmem:[#allocation2 + $0x104] sm:$0x1] %v2237_v3  ;;  %2248 = vst [vmem:[#allocation2 + $0x114] sm:$0xf] %v2247_v0  ;;  %v15782_v51 = vrot.slane %v15781_v39, 4  ;;  %v15783_v59 = vld [vmem:[#allocation40_spill] sm:$0xff] }
 0x31d   :  { %v2244_v17 = vsel %vm10706_vm4, %v15779_v8, %v11942_v32  ;;  %v2254_v32 = vsel %vm11792_vm7, %v15783_v59, %v11965_v11  ;;  %v15784_v23 = vld [vmem:[#allocation41_spill] sm:$0xff]  ;;  %v15786_v16 = vld [vmem:[#allocation42_spill] sm:$0xff]  ;;  %v15789_v22 = vld [vmem:[#allocation44_spill] sm:$0xff] }
 0x31e   :  { %2245 = vst [vmem:[#allocation2 + $0x110] sm:$0x1] %v2244_v17  ;;  %v2251_v62 = vsel %vm10706_vm4, %v15782_v51, %v11969_v55  ;;  %v15785_v24 = vrot.slane %v15784_v23, 4  ;;  %v2261_v27 = vsel %vm11792_vm7, %v15786_v16, %v11971_v44  ;;  %v3437_v14 = vld [vmem:[#allocation2 + $0x10] sm:$0xf]  ;;  %v15787_v55 = vld [vmem:[#allocation18_spill] sm:$0xff] }
 0x31f   :  { %2252 = vst [vmem:[#allocation2 + $0x11c] sm:$0x1] %v2251_v62  ;;  %2255 = vst [vmem:[#allocation2 + $0x120] sm:$0xf] %v2254_v32  ;;  %v15788_v50 = vrot.slane %v15787_v55, 4  ;;  %v15790_v12 = vld [vmem:[#allocation43_spill] sm:$0xff] }
 0x320   :  { %v2258_v35 = vsel %vm10706_vm4, %v15785_v24, %v11967_v38  ;;  %2262 = vst [vmem:[#allocation2 + $0x12c] sm:$0xf] %v2261_v27  ;;  %v2268_v38 = vsel %vm11792_vm7, %v15789_v22, %v11991_v33  ;;  %v15791_v1 = vrot.slane %v15790_v12, 4  ;;  %v15792_v19 = vld [vmem:[#allocation46_spill] sm:$0xff]  ;;  %v3436_v58 = vld [vmem:[#allocation2 + $0xc] sm:$0xf] }
 0x321   :  { %2259 = vst [vmem:[#allocation2 + $0x128] sm:$0x1] %v2258_v35  ;;  %v2265_v11 = vsel %vm10706_vm4, %v15788_v50, %v2264_v6  ;;  %v2275_v54 = vsel %vm11792_vm7, %v15792_v19, %v11995_v10  ;;  %v12118_v46 = vld [vmem:[#allocation2 + $0x14] ss:$0 sps:$4 sm:$0x11]   ;;  %v15796_v10 = vld [vmem:[#allocation47_spill] sm:$0xff] }
 0x322   :  { %v2272_v44 = vsel %vm10706_vm4, %v15791_v1, %v11993_v13  ;;  %v3439_v6 = vld [vmem:[#allocation2 + $0x1c] sm:$0xf]  ;;  %2266 = vst [vmem:[#allocation2 + $0x134] sm:$0x1] %v2265_v11  ;;  %2269 = vst [vmem:[#allocation2 + $0x138] sm:$0xf] %v2268_v38 }
 0x323   :  { %2273 = vst [vmem:[#allocation2 + $0x140] sm:$0x1] %v2272_v44  ;;  %2276 = vst [vmem:[#allocation2 + $0x144] sm:$0xf] %v2275_v54  ;;  %v15793_v33 = vld [vmem:[#allocation45_spill] sm:$0xff]  ;;  %v15795_v13 = vld [vmem:[#allocation23_spill] sm:$0xff] }
 0x324   :  { %v15794_v18 = vrot.slane %v15793_v33, 4  ;;  %v2282_v9 = vsel %vm11792_vm7, %v15795_v13, %v12015_v40  ;;  %v15797_v25 = vrot.slane %v15796_v10, 4  ;;  %v15798_v41 = vld [vmem:[#allocation22_spill] sm:$0xff]  ;;  %v12137_v2 = vld [vmem:[#allocation2 + $0x20] ss:$0 sps:$4 sm:$0x11]  }
 0x325   :  { %v2289_v56 = vsel %vm11792_vm7, %v15798_v41, %v12019_v53  ;;  %v3441_v30 = vld [vmem:[#allocation2 + $0x28] sm:$0xf]  ;;  %2283 = vst [vmem:[#allocation2 + $0x150] sm:$0xf] %v2282_v9  ;;  %v15802_v4 = vld [vmem:[#allocation25_spill] sm:$0xff]  ;;  %v15804_v21 = vld [vmem:[#allocation31_spill] sm:$0xff] }
 0x326   :  { %v2279_v20 = vsel %vm10706_vm4, %v15794_v18, %v2278_v47  ;;  %v2286_v31 = vsel %vm10706_vm4, %v15797_v25, %v12017_v48  ;;  %2290 = vst [vmem:[#allocation2 + $0x15c] sm:$0xf] %v2289_v56  ;;  %v15799_v47 = vld [vmem:[#allocation20_spill] sm:$0xff]  ;;  %v15803_v43 = vrot.slane %v15802_v4, 4  ;;  %v2303_v8 = vsel %vm11792_vm7, %v15804_v21, %v12041_v63  ;;  %v3533_v29 = vld [vmem:[#allocation2 + $0x18] sm:$0xe] }
 0x327   :  { %2280 = vst [vmem:[#allocation2 + $0x14c] sm:$0x1] %v2279_v20  ;;  %2287 = vst [vmem:[#allocation2 + $0x158] sm:$0x1] %v2286_v31  ;;  %v15800_v40 = vrot.slane %v15799_v47, 4  ;;  %v15801_v3 = vld [vmem:[#allocation24_spill] sm:$0xff]  ;;  %v8701_v16 = vcombine.low %v3533_v29, %v3439_v6 }
 0x328   :  { %v2296_v48 = vsel %vm11792_vm7, %v15801_v3, %v12039_v45  ;;  %v2300_v53 = vsel %vm10706_vm4, %v15803_v43, %v2299_v36  ;;  %v3532_v17 = vld [vmem:[#allocation2 + $0xc] sm:$0xe]  ;;  %v3534_v0 = vld [vmem:[#allocation2 + $0x24] sm:$0xe]  ;;  %2304 = vst [vmem:[#allocation2 + $0x174] sm:$0xf] %v2303_v8 }
 0x329   :  { %v2293_v60 = vsel %vm10706_vm4, %v15800_v40, %v2292_v28  ;;  %2297 = vst [vmem:[#allocation2 + $0x168] sm:$0xf] %v2296_v48  ;;  %2301 = vst [vmem:[#allocation2 + $0x170] sm:$0x1] %v2300_v53  ;;  %v15805_v28 = vld [vmem:[#allocation26_spill] sm:$0xff]  ;;  %v15807_v51 = vld [vmem:[#allocation15_spill] sm:$0xff]  ;;  %v8700_v35 = vcombine.low %v3532_v17, %v3437_v14  ;;  %v8702_v11 = vcombine.low %v3534_v0, %v3441_v30 }
 0x32a   :  { %2294 = vst [vmem:[#allocation2 + $0x164] sm:$0x1] %v2293_v60  ;;  %v15806_v39 = vrot.slane %v15805_v28, 4  ;;  %v2310_v36 = vsel %vm11792_vm7, %v15807_v51, %v12061_v5  ;;  %v15808_v62 = vld [vmem:[#allocation14_spill] sm:$0xff]  ;;  %v15810_v32 = vld [vmem:[#allocation29_spill] sm:$0xff]  ;;  %v2324_v5 = vsel %vm11792_vm7, %v11868_v61, %v2323_v42  ;;  %v4368_v27 = vrot.slane %v12137_v2, 1 }
 0x32b   :  { %v15809_v59 = vrot.slane %v15808_v62, 4  ;;  %v2317_v23 = vsel %vm11792_vm7, %v15810_v32, %v12063_v37  ;;  %v12171_v24 = vld [vmem:[#allocation2 + $0x2c] ss:$0 sps:$4 sm:$0x11]   ;;  %2311 = vst [vmem:[#allocation2 + $0x180] sm:$0xf] %v2310_v36 }
 0x32c   :  { %v2307_v45 = vsel %vm10706_vm4, %v15806_v39, %v2306_v57  ;;  %2318 = vst [vmem:[#allocation2 + $0x18c] sm:$0xf] %v2317_v23  ;;  %v8636_v57 = vcombine.low %v3436_v58, %v3437_v14  ;;  %2325 = vst [vmem:[#allocation2 + $0x198] sm:$0xf] %v2324_v5  ;;  %v4365_v37 = vrot.slane %v12118_v46, 1  ;;  %v4364_v42 = vrot.slane %v8700_v35, 1 }
 0x32d   :  { %v2314_v63 = vsel %vm10706_vm4, %v15809_v59, %v2313_v15  ;;  %2308 = vst [vmem:[#allocation2 + $0x17c] sm:$0x1] %v2307_v45  ;;  %v2328_v15 = vsel %vm10706_vm4, %v2003_v49, %v2327_v26  ;;  %v3440_v55 = vld [vmem:[#allocation2 + $0x24] sm:$0xf]  ;;  %v3438_v50 = vld [vmem:[#allocation2 + $0x18] sm:$0xf] }
 0x32e   :  { %2315 = vst [vmem:[#allocation2 + $0x188] sm:$0x1] %v2314_v63  ;;  %2329 = vst [vmem:[#allocation2 + $0x1a0] sm:$0x1] %v2328_v15  ;;  %v3443_v52 = vld [vmem:[#allocation2 + $0x34] sm:$0xf]  ;;  %v12183_v26 = vcombine.low %v3440_v55, %v3441_v30  ;;  %v12186_v38 = vcombine.low %v3438_v50, %v3439_v6  ;;  %v4366_v44 = vsel %vm3259_vm8, %v4364_v42, %v4365_v37 }
 0x32f   :  { %v3535_v61 = vld [vmem:[#allocation2 + $0x30] sm:$0xe]  ;;  %v4367_v34 = vrot.slane %v8701_v16, 1  ;;  %v4371_v7 = vrot.slane %v12171_v24, 1  ;;  %v3855_v49 = vshll.u32 %v8636_v57, 16  ;;  %v4370_v22 = vrot.slane %v8702_v11, 1  ;;  %9220 = vmatprep.mubr.bf16.mxu0 %v4366_v44 }
 0x330   :  { %v3860_v14 = vshll.u32 %v12118_v46, 16  ;;  %v12188_v12 = vld [vmem:[#allocation2 + $0x38] ss:$0 sps:$4 sm:$0x11]   ;;  %v9576_v1 = vld [vmem:[#allocation8] sm:$0xff]   ;;  %v3853_v54 = vshrl.u32 %v8636_v57, 16  ;;  %v8703_v10 = vcombine.low %v3535_v61, %v3443_v52 }
 0x331   :  { %v4369_v19 = vsel %vm3259_vm8, %v4367_v34, %v4368_v27  ;;  %v3857_v58 = vrot.slane %v3855_v49, 1  ;;  %v12192_v33 = vld [vmem:[#allocation2 + $0x40] sm:$0xf]  ;;  %v3536_v18 = vld [vmem:[#allocation2 + $0x3c] sm:$0xe]  ;;  %v3867_v20 = vshll.u32 %v12186_v38, 16  ;;  %v4372_v6 = vsel %vm3259_vm8, %v4370_v22, %v4371_v7 }
 0x332   :  { %v3872_v46 = vshll.u32 %v12137_v2, 16  ;;  %9221 = vmatmul.mubr.bf16.vlgmr.msra.gmra.mrb[64].mxu0 %v4369_v19  ;;  %v3862_v9 = vrot.slane %v3860_v14, 1  ;;  %v12197_v25 = vld [vmem:[#allocation2 + $0x44] ss:$0 sps:$4 sm:$0x11]   ;;  %v3865_v31 = vshrl.u32 %v12186_v38, 16  ;;  %v8704_v30 = vcombine.low %v3536_v18, %v12192_v33 }
 0x333   :  { %v3858_v13 = vor.u32 %v3857_v58, %v3853_v54  ;;  %9224 = vmatprep.mubr.bf16.mxu0 %v4372_v6  ;;  %v3869_v41 = vrot.slane %v3867_v20, 1  ;;  %v3442_v56 = vld [vmem:[#allocation2 + $0x30] sm:$0xf]  ;;  %5407 = vmatpush1.bf16.msra.mxu0 %v9576_v1  ;;  %v9578_v47 = vld [vmem:[#allocation8 + $0x8] sm:$0xff]   ;;  %v3879_v2 = vshll.u32 %v12183_v26, 16  ;;  %v15811_v3 = vmov 0  }
 0x334   :  { %v9551_v60 = vld [vmem:[#allocation8 + $0x88] sm:$0xff]   ;;  %5408 = vmatprep.subr.bf16.mxu0 %v15811_v3  ;;  %v3874_v4 = vrot.slane %v3872_v46, 1  ;;  %v4373_v43 = vrot.slane %v8703_v10, 1  ;;  %v4374_v53 = vrot.slane %v12188_v12, 1  ;;  %v12205_v21 = vld [vmem:[#allocation2 + $0x4c] sm:$0xf]  ;;  %v12207_v8 = vcombine.low %v3442_v56, %v3443_v52 }
 0x335   :  { %v3863_v40 = vsel %vm2746_vm9, %v3858_v13, %v3862_v9  ;;  %v3870_v48 = vor.u32 %v3869_v41, %v3865_v31  ;;  %v4376_v17 = vrot.slane %v8704_v30, 1  ;;  %v4377_v29 = vrot.slane %v12197_v25, 1  ;;  %v3537_v28 = vld [vmem:[#allocation2 + $0x48] sm:$0xe]  ;;  %v9857_v39 = vld [vmem:[#allocation8 + $0x80] sm:$0xff]   ;;  %v9577_v63 = vld [vmem:[#allocation8 + $0x90] sm:$0xff]  }
 0x336   :  { %4716 = vmatprep.mubr.bf16.mxu1 %v3863_v40  ;;  %v3881_v0 = vrot.slane %v3879_v2, 1  ;;  %v12211_v51 = vld [vmem:[#allocation2 + $0x58] sm:$0xf]  ;;  %v3538_v36 = vld [vmem:[#allocation2 + $0x54] sm:$0xe]  ;;  %v3877_v62 = vshrl.u32 %v12183_v26, 16  ;;  %v4375_v23 = vsel %vm3259_vm8, %v4373_v43, %v4374_v53 }
 0x337   :  { %4717 = vmatmul.mubr.bf16.vlgmr.msra.gmra.mrb[0].mxu1 %v8636_v57  ;;  %v3875_v45 = vsel %vm2746_vm9, %v3870_v48, %v3874_v4  ;;  %5409 = vmatpush1.bf16.msra.mxu0 %v9578_v47  ;;  %v3884_v59 = vshll.u32 %v12171_v24, 16  ;;  %v9585_v32 = vld [vmem:[#allocation8 + $0x10] sm:$0xff]   ;;  %v3444_v5 = vld [vmem:[#allocation2 + $0x3c] sm:$0xf]  ;;  %v8705_v57 = vcombine.low %v3537_v28, %v12205_v21  ;;  %v4378_v35 = vsel %vm3259_vm8, %v4376_v17, %v4377_v29  ;;  %v9586_v50 = vld [vmem:[#allocation8 + $0x18] sm:$0xff]  }
 0x338   :  { %9285 = vmatpush3.bf16.msra.mxu1 %v9857_v39  ;;  %4724 = vmatprep.mubr.bf16.mxu1 %v3875_v45  ;;  %v12216_v15 = vld [vmem:[#allocation2 + $0x50] ss:$0 sps:$4 sm:$0x11]   ;;  %v3882_v37 = vor.u32 %v3881_v0, %v3877_v62  ;;  %v12221_v16 = vld [vmem:[#allocation2 + $0x5c] ss:$0 sps:$4 sm:$0x11]   ;;  %v8706_v24 = vcombine.low %v3538_v36, %v12211_v51  ;;  %v12226_v52 = vcombine.low %v3444_v5, %v12192_v33 }
 0x339   :  { %9286 = vmatprep.subr.bf16.mxu1 %v9551_v60  ;;  %5410 = vmatprep.subr.bf16.mxu0 %v15811_v3  ;;  %v3891_v27 = vshll.u32 %v12207_v8, 16  ;;  %v3886_v55 = vrot.slane %v3884_v59, 1  ;;  %v9610_v11 = vld [vmem:[#allocation8 + $0x98] sm:$0xff]   ;;  %v4379_v61 = vrot.slane %v8705_v57, 1  ;;  %v4380_v42 = vrot.slane %v12216_v15, 1  ;;  %v9593_v33 = vld [vmem:[#allocation8 + $0x20] sm:$0xff]  }
 0x33a   :  { %9225 = vmatmul.mubr.bf16.gmra.mrb[68].mxu0 %v4375_v23  ;;  %v12229_v34 = vld [vmem:[#allocation2 + $0x64] sm:$0xf]  ;;  %v4382_v49 = vrot.slane %v8706_v24, 1  ;;  %v4383_v22 = vrot.slane %v12221_v16, 1  ;;  %v3539_v1 = vld [vmem:[#allocation2 + $0x60] sm:$0xe] }
 0x33b   :  { %9228 = vmatprep.mubr.bf16.mxu0 %v4378_v35  ;;  %5411 = vmatpush1.bf16.msra.mxu0 %v9585_v32  ;;  %v3887_v7 = vsel %vm2746_vm9, %v3882_v37, %v3886_v55  ;;  %v3893_v14 = vrot.slane %v3891_v27, 1  ;;  %v12235_v44 = vld [vmem:[#allocation2 + $0x70] sm:$0xf]  ;;  %v3540_v19 = vld [vmem:[#allocation2 + $0x6c] sm:$0xe]  ;;  %v3889_v54 = vshrl.u32 %v12207_v8, 16  ;;  %v4381_v20 = vsel %vm3259_vm8, %v4379_v61, %v4380_v42 }
 0x33c   :  { %9287 = vmatpush3.bf16.msra.mxu1 %v9551_v60  ;;  %5412 = vmatprep.subr.bf16.mxu0 %v15811_v3  ;;  %v3896_v58 = vshll.u32 %v12188_v12, 16  ;;  %v3446_v18 = vld [vmem:[#allocation2 + $0x48] sm:$0xf]  ;;  %v8707_v6 = vcombine.low %v3539_v1, %v12229_v34  ;;  %v4384_v13 = vsel %vm3259_vm8, %v4382_v49, %v4383_v22  ;;  %v12245_v10 = vld [vmem:[#allocation2 + $0x74] ss:$0 sps:$4 sm:$0x11]   ;;  %v8708_v12 = vcombine.low %v3540_v19, %v12235_v44 }
 0x33d   :  { %9288 = vmatprep.subr.bf16.mxu1 %v9577_v63  ;;  %v12240_v46 = vld [vmem:[#allocation2 + $0x68] ss:$0 sps:$4 sm:$0x11]   ;;  %v3894_v9 = vor.u32 %v3893_v14, %v3889_v54  ;;  %v3903_v31 = vshll.u32 %v12226_v52, 16  ;;  %v9594_v56 = vld [vmem:[#allocation8 + $0x28] sm:$0xff]   ;;  %v12250_v30 = vcombine.low %v3446_v18, %v12205_v21  ;;  %v4389_v4 = vrot.slane %v12245_v10, 1 }
 0x33e   :  { %v3898_v41 = vrot.slane %v3896_v58, 1  ;;  %v4385_v47 = vrot.slane %v8707_v6, 1  ;;  %v4386_v40 = vrot.slane %v12240_v46, 1  ;;  %v12253_v2 = vld [vmem:[#allocation2 + $0x7c] sm:$0xf]  ;;  %v4388_v48 = vrot.slane %v8708_v12, 1 }
 0x33f   :  { %4725 = vmatmul.mubr.bf16.gmra.mrb[4].mxu1 %v12186_v38  ;;  %5413 = vmatpush1.bf16.msra.mxu0 %v9586_v50  ;;  %v9637_v38 = vld [vmem:[#allocation8 + $0xa0] sm:$0xff]   ;;  %v3905_v43 = vrot.slane %v3903_v31, 1  ;;  %v3541_v53 = vld [vmem:[#allocation2 + $0x78] sm:$0xe]  ;;  %v12259_v17 = vld [vmem:[#allocation2 + $0x88] sm:$0xf] }
 0x340   :  { %4732 = vmatprep.mubr.bf16.mxu1 %v3887_v7  ;;  %9289 = vmatpush3.bf16.msra.mxu1 %v9577_v63  ;;  %v3899_v60 = vsel %vm2746_vm9, %v3894_v9, %v3898_v41  ;;  %v3542_v21 = vld [vmem:[#allocation2 + $0x84] sm:$0xe]  ;;  %v3901_v29 = vshrl.u32 %v12226_v52, 16  ;;  %v3908_v0 = vshll.u32 %v12197_v25, 16  ;;  %v3448_v39 = vld [vmem:[#allocation2 + $0x54] sm:$0xf]  ;;  %v8709_v36 = vcombine.low %v3541_v53, %v12253_v2 }
 0x341   :  { %9290 = vmatprep.subr.bf16.mxu1 %v9610_v11  ;;  %5414 = vmatprep.subr.bf16.mxu0 %v15811_v3  ;;  %v9601_v28 = vld [vmem:[#allocation8 + $0x30] sm:$0xff]   ;;  %v4390_v62 = vsel %vm3259_vm8, %v4388_v48, %v4389_v4  ;;  %v12269_v63 = vld [vmem:[#allocation2 + $0x8c] ss:$0 sps:$4 sm:$0x11]   ;;  %v8710_v32 = vcombine.low %v3542_v21, %v12259_v17  ;;  %v3915_v25 = vshll.u32 %v12250_v30, 16  ;;  %v12274_v57 = vcombine.low %v3448_v39, %v12211_v51  ;;  %v9609_v22 = vld [vmem:[#allocation8 + $0x40] sm:$0xff]  }
 0x342   :  { %9229 = vmatmul.mubr.bf16.gmra.mrb[72].mxu0 %v4381_v20  ;;  %v12264_v45 = vld [vmem:[#allocation2 + $0x80] ss:$0 sps:$4 sm:$0x11]   ;;  %v3906_v59 = vor.u32 %v3905_v43, %v3901_v29  ;;  %v3910_v23 = vrot.slane %v3908_v0, 1  ;;  %v9602_v5 = vld [vmem:[#allocation8 + $0x38] sm:$0xff]   ;;  %v4391_v35 = vrot.slane %v8709_v36, 1 }
 0x343   :  { %9232 = vmatprep.mubr.bf16.mxu0 %v4384_v13  ;;  %5415 = vmatpush1.bf16.msra.mxu0 %v9593_v33  ;;  %v4392_v37 = vrot.slane %v12264_v45, 1  ;;  %v12277_v24 = vld [vmem:[#allocation2 + $0x94] sm:$0xf]  ;;  %v4394_v55 = vrot.slane %v8710_v32, 1  ;;  %v4395_v50 = vrot.slane %v12269_v63, 1  ;;  %v3913_v7 = vshrl.u32 %v12250_v30, 16 }
 0x344   :  { %9291 = vmatpush3.bf16.msra.mxu1 %v9610_v11  ;;  %5416 = vmatprep.subr.bf16.mxu0 %v15811_v3  ;;  %v3911_v27 = vsel %vm2746_vm9, %v3906_v59, %v3910_v23  ;;  %v3917_v11 = vrot.slane %v3915_v25, 1  ;;  %v3543_v61 = vld [vmem:[#allocation2 + $0x90] sm:$0xe]  ;;  %v12283_v42 = vld [vmem:[#allocation2 + $0xa0] sm:$0xf]  ;;  %v3920_v49 = vshll.u32 %v12216_v15, 16 }
 0x345   :  { %9292 = vmatprep.subr.bf16.mxu1 %v9637_v38  ;;  %v3544_v51 = vld [vmem:[#allocation2 + $0x9c] sm:$0xe]  ;;  %v4393_v14 = vsel %vm3259_vm8, %v4391_v35, %v4392_v37  ;;  %v8711_v1 = vcombine.low %v3543_v61, %v12277_v24  ;;  %v3450_v19 = vld [vmem:[#allocation2 + $0x60] sm:$0xf]  ;;  %v4396_v54 = vsel %vm3259_vm8, %v4394_v55, %v4395_v50  ;;  %v3927_v15 = vshll.u32 %v12274_v57, 16  ;;  %v9619_v59 = vld [vmem:[#allocation8 + $0x58] sm:$0xff]  }
 0x346   :  { %v3918_v58 = vor.u32 %v3917_v11, %v3913_v7  ;;  %v12293_v33 = vld [vmem:[#allocation2 + $0xa4] ss:$0 sps:$4 sm:$0x11]   ;;  %v9646_v18 = vld [vmem:[#allocation8 + $0xa8] sm:$0xff]   ;;  %v3922_v20 = vrot.slane %v3920_v49, 1  ;;  %v12298_v13 = vcombine.low %v3450_v19, %v12229_v34  ;;  %v3925_v4 = vshrl.u32 %v12274_v57, 16 }
 0x347   :  { %4733 = vmatmul.mubr.bf16.gmra.mrb[8].mxu1 %v12183_v26  ;;  %5417 = vmatpush1.bf16.msra.mxu0 %v9594_v56  ;;  %v4387_v26 = vsel %vm3259_vm8, %v4385_v47, %v4386_v40  ;;  %v9611_v6 = vld [vmem:[#allocation8 + $0x48] sm:$0xff]   ;;  %v4397_v9 = vrot.slane %v8711_v1, 1  ;;  %v12301_v31 = vld [vmem:[#allocation2 + $0xac] sm:$0xf]  ;;  %v4401_v47 = vrot.slane %v12293_v33, 1  ;;  %v3929_v40 = vrot.slane %v3927_v15, 1 }
 0x348   :  { %4740 = vmatprep.mubr.bf16.mxu1 %v3899_v60  ;;  %9293 = vmatpush3.bf16.msra.mxu1 %v9637_v38  ;;  %v8712_v38 = vcombine.low %v3544_v51, %v12283_v42  ;;  %v3923_v41 = vsel %vm2746_vm9, %v3918_v58, %v3922_v20  ;;  %v3545_v60 = vld [vmem:[#allocation2 + $0xa8] sm:$0xe]  ;;  %v12307_v34 = vld [vmem:[#allocation2 + $0xb8] sm:$0xf]  ;;  %v3546_v48 = vld [vmem:[#allocation2 + $0xb4] sm:$0xe] }
 0x349   :  { %5418 = vmatprep.subr.bf16.mxu0 %v15811_v3  ;;  %9294 = vmatprep.subr.bf16.mxu1 %v9646_v18  ;;  %v3932_v43 = vshll.u32 %v12221_v16, 16  ;;  %v9618_v53 = vld [vmem:[#allocation8 + $0x50] sm:$0xff]   ;;  %v12312_v21 = vld [vmem:[#allocation2 + $0xb0] ss:$0 sps:$4 sm:$0x11]   ;;  %v8713_v29 = vcombine.low %v3545_v60, %v12301_v31  ;;  %v3930_v39 = vor.u32 %v3929_v40, %v3925_v4  ;;  %v8714_v36 = vcombine.low %v3546_v48, %v12307_v34  ;;  %v9627_v20 = vld [vmem:[#allocation8 + $0x68] sm:$0xff]  }
 0x34a   :  { %9233 = vmatmul.mubr.bf16.gmra.mrb[76].mxu0 %v4387_v26  ;;  %v4400_v56 = vrot.slane %v8712_v38, 1  ;;  %v3452_v0 = vld [vmem:[#allocation2 + $0x6c] sm:$0xf]  ;;  %v12317_v26 = vld [vmem:[#allocation2 + $0xbc] ss:$0 sps:$4 sm:$0x11]  }
 0x34b   :  { %9236 = vmatprep.mubr.bf16.mxu0 %v4390_v62  ;;  %5419 = vmatpush1.bf16.msra.mxu0 %v9601_v28  ;;  %v3939_v16 = vshll.u32 %v12298_v13, 16  ;;  %v3934_v62 = vrot.slane %v3932_v43, 1  ;;  %v12322_v32 = vcombine.low %v3452_v0, %v12235_v44  ;;  %v4403_v25 = vrot.slane %v8713_v29, 1  ;;  %v3547_v50 = vld [vmem:[#allocation2 + $0xc0] sm:$0xe]  ;;  %v9626_v49 = vld [vmem:[#allocation8 + $0x60] sm:$0xff]  }
 0x34c   :  { %5420 = vmatprep.subr.bf16.mxu0 %v15811_v3  ;;  %9295 = vmatpush3.bf16.msra.mxu1 %v9646_v18  ;;  %v4402_v28 = vsel %vm3259_vm8, %v4400_v56, %v4401_v47  ;;  %v4404_v23 = vrot.slane %v12312_v21, 1  ;;  %v4406_v37 = vrot.slane %v8714_v36, 1  ;;  %v3469_v11 = vld [vmem:[#allocation2 + $0xe8] sm:$0xf]  ;;  %v3548_v44 = vld [vmem:[#allocation2 + $0xe4] sm:$0xe] }
 0x34d   :  { %v3935_v35 = vsel %vm2746_vm9, %v3930_v39, %v3934_v62  ;;  %v3941_v55 = vrot.slane %v3939_v16, 1  ;;  %v3937_v61 = vshrl.u32 %v12298_v13, 16  ;;  %v3944_v51 = vshll.u32 %v12240_v46, 16  ;;  %v12333_v7 = vld [vmem:[#allocation2 + $0xc8] ss:$0 sps:$4 sm:$0x11]  }
 0x34e   :  { %v3454_v1 = vld [vmem:[#allocation2 + $0x78] sm:$0xf]  ;;  %v8716_v58 = vcombine.low %v3548_v44, %v3469_v11  ;;  %v3951_v46 = vshll.u32 %v12322_v32, 16  ;;  %v12342_v15 = vld [vmem:[#allocation2 + $0xf4] sm:$0xf]  ;;  %v3949_v0 = vshrl.u32 %v12322_v32, 16 }
 0x34f   :  { %4741 = vmatmul.mubr.bf16.gmra.mrb[12].mxu1 %v12207_v8  ;;  %5421 = vmatpush1.bf16.msra.mxu0 %v9602_v5  ;;  %v12288_v8 = vld [vmem:[#allocation2 + $0x98] ss:$0 sps:$4 sm:$0x11]   ;;  %v12325_v5 = vld [vmem:[#allocation2 + $0xc4] sm:$0xf]  ;;  %v3946_v38 = vrot.slane %v3944_v51, 1 }
 0x350   :  { %4748 = vmatprep.mubr.bf16.mxu1 %v3911_v27  ;;  %5422 = vmatprep.subr.bf16.mxu0 %v15811_v3  ;;  %v4398_v12 = vrot.slane %v12288_v8, 1  ;;  %v4407_v27 = vrot.slane %v12317_v26, 1  ;;  %v12344_v18 = vld [vmem:[#allocation2 + $0x100] sm:$0xf]  ;;  %v3549_v56 = vld [vmem:[#allocation2 + $0xf0] sm:$0xe] }
 0x351   :  { %v4412_v40 = vrot.slane %v8716_v58, 1  ;;  %v3953_v60 = vrot.slane %v3951_v46, 1  ;;  %v3550_v48 = vld [vmem:[#allocation2 + $0xfc] sm:$0xe]  ;;  %v3456_v4 = vld [vmem:[#allocation2 + $0x84] sm:$0xf]  ;;  %v8717_v39 = vcombine.low %v3549_v56, %v12342_v15 }
 0x352   :  { %9237 = vmatmul.mubr.bf16.gmra.mrb[80].mxu0 %v4393_v14  ;;  %v12337_v14 = vld [vmem:[#allocation2 + $0xec] ss:$0 sps:$4 sm:$0x11]   ;;  %v4408_v19 = vsel %vm3259_vm8, %v4406_v37, %v4407_v27  ;;  %v3458_v43 = vld [vmem:[#allocation2 + $0x90] sm:$0xf]  ;;  %v8718_v16 = vcombine.low %v3550_v48, %v12344_v18  ;;  %v12371_v51 = vcombine.low %v3456_v4, %v12259_v17 }
 0x353   :  { %9240 = vmatprep.mubr.bf16.mxu0 %v4396_v54  ;;  %5423 = vmatpush1.bf16.msra.mxu0 %v9609_v22  ;;  %v8715_v22 = vcombine.low %v3547_v50, %v12325_v5  ;;  %v3942_v54 = vor.u32 %v3941_v55, %v3937_v61  ;;  %v3460_v29 = vld [vmem:[#allocation2 + $0x9c] sm:$0xf]  ;;  %v12360_v36 = vld [vmem:[#allocation2 + $0x104] ss:$0 sps:$4 sm:$0x11]   ;;  %v9632_v61 = vld [vmem:[#allocation8 + $0x78] sm:$0xff]  }
 0x354   :  { %5424 = vmatprep.subr.bf16.mxu0 %v15811_v3  ;;  %v12368_v37 = vld [vmem:[#allocation2 + $0x118] sm:$0xf]  ;;  %v3464_v27 = vld [vmem:[#allocation2 + $0xb4] sm:$0xf]  ;;  %v3470_v50 = vld [vmem:[#allocation2 + $0xf0] sm:$0xf] }
 0x355   :  { %v3947_v47 = vsel %vm2746_vm9, %v3942_v54, %v3946_v38  ;;  %v3551_v44 = vld [vmem:[#allocation2 + $0x108] sm:$0xe]  ;;  %v4418_v54 = vrot.slane %v8718_v16, 1  ;;  %v4419_v58 = vrot.slane %v12360_v36, 1  ;;  %v4052_v56 = vshll.u32 %v12337_v14, 16 }
 0x357   :  { %4749 = vmatmul.mubr.bf16.gmra.mrb[16].mxu1 %v12226_v52  ;;  %5425 = vmatpush1.bf16.msra.mxu0 %v9611_v6  ;;  %v4399_v52 = vsel %vm3259_vm8, %v4397_v9, %v4398_v12  ;;  %v12347_v6 = vcombine.low %v3454_v1, %v12253_v2  ;;  %v4409_v9 = vrot.slane %v8715_v22, 1  ;;  %v4410_v12 = vrot.slane %v12333_v7, 1  ;;  %v3468_v2 = vld [vmem:[#allocation2 + $0xe4] sm:$0xf]  ;;  %v3552_v1 = vld [vmem:[#allocation2 + $0x114] sm:$0xe] }
 0x358   :  { %4756 = vmatprep.mubr.bf16.mxu1 %v3923_v41  ;;  %5426 = vmatprep.subr.bf16.mxu0 %v15811_v3  ;;  %v4413_v41 = vrot.slane %v12337_v14, 1  ;;  %v12380_v22 = vld [vmem:[#allocation2 + $0x110] ss:$0 sps:$4 sm:$0x11]   ;;  %v4420_v4 = vsel %vm3259_vm8, %v4418_v54, %v4419_v58 }
 0x359   :  { %v3963_v62 = vshll.u32 %v12347_v6, 16  ;;  %v4422_v14 = vrot.slane %v12380_v22, 1  ;;  %v12429_v58 = vld [vmem:[#allocation2 + $0x134] ss:$0 sps:$4 sm:$0x11]  }
 0x35a   :  { %9241 = vmatmul.mubr.bf16.gmra.mrb[84].mxu0 %v4399_v52  ;;  %v9631_v52 = vld [vmem:[#allocation8 + $0x70] sm:$0xff]  }
 0x35b   :  { %9244 = vmatprep.mubr.bf16.mxu0 %v4402_v28  ;;  %5427 = vmatpush1.bf16.msra.mxu0 %v9618_v53  ;;  %v3956_v53 = vshll.u32 %v12245_v10, 16  ;;  %v12356_v28 = vld [vmem:[#allocation2 + $0xf8] ss:$0 sps:$4 sm:$0x11]   ;;  %v3462_v10 = vld [vmem:[#allocation2 + $0xa8] sm:$0xf] }
 0x35c   :  { %5428 = vmatprep.subr.bf16.mxu0 %v15811_v3  ;;  %v3965_v46 = vrot.slane %v3963_v62, 1  ;;  %v12385_v17 = vcombine.low %v3462_v10, %v12301_v31  ;;  %v12397_v31 = vcombine.low %v3464_v27, %v12307_v34  ;;  %v12406_v34 = vld [vmem:[#allocation2 + $0x128] ss:$0 sps:$4 sm:$0x11]   ;;  %v3553_v10 = vld [vmem:[#allocation2 + $0x120] sm:$0xe] }
 0x35d   :  { %v3958_v55 = vrot.slane %v3956_v53, 1  ;;  %v3479_v53 = vld [vmem:[#allocation2 + $0x124] sm:$0xf]  ;;  %v4428_v54 = vrot.slane %v12406_v34, 1 }
 0x35f   :  { %4757 = vmatmul.mubr.bf16.gmra.mrb[20].mxu1 %v12250_v30  ;;  %5429 = vmatpush1.bf16.msra.mxu0 %v9619_v59  ;;  %v4405_v30 = vsel %vm3259_vm8, %v4403_v25, %v4404_v23  ;;  %v12365_v59 = vcombine.low %v3468_v2, %v3469_v11  ;;  %v4414_v25 = vsel %vm3259_vm8, %v4412_v40, %v4413_v41  ;;  %v3472_v40 = vld [vmem:[#allocation2 + $0xfc] sm:$0xf]  ;;  %v3474_v2 = vld [vmem:[#allocation2 + $0x108] sm:$0xf] }
 0x360   :  { %4764 = vmatprep.mubr.bf16.mxu1 %v3935_v35  ;;  %5430 = vmatprep.subr.bf16.mxu0 %v15811_v3  ;;  %v3954_v23 = vor.u32 %v3953_v60, %v3949_v0  ;;  %v3475_v35 = vld [vmem:[#allocation2 + $0x10c] sm:$0xf]  ;;  %v12377_v11 = vcombine.low %v3460_v29, %v12283_v42  ;;  %v8720_v41 = vcombine.low %v3552_v1, %v12368_v37  ;;  %v4054_v0 = vrot.slane %v4052_v56, 1 }
 0x361   :  { %v8719_v42 = vcombine.low %v3551_v44, %v3475_v35  ;;  %v4047_v38 = vshll.u32 %v12365_v59, 16  ;;  %v4045_v60 = vshrl.u32 %v12365_v59, 16  ;;  %v12416_v27 = vcombine.low %v3474_v2, %v3475_v35 }
 0x362   :  { %9245 = vmatmul.mubr.bf16.gmra.mrb[88].mxu0 %v4405_v30  ;;  %v4416_v30 = vrot.slane %v12356_v28, 1  ;;  %v4424_v16 = vrot.slane %v8720_v41, 1 }
 0x363   :  { %9248 = vmatprep.mubr.bf16.mxu0 %v4408_v19  ;;  %5431 = vmatpush1.bf16.msra.mxu0 %v9626_v49  ;;  %v12374_v49 = vcombine.low %v3458_v43, %v12277_v24  ;;  %v4415_v19 = vrot.slane %v8717_v39, 1  ;;  %v3959_v24 = vsel %vm2746_vm9, %v3954_v23, %v3958_v55  ;;  %v4049_v48 = vrot.slane %v4047_v38, 1 }
 0x364   :  { %5432 = vmatprep.subr.bf16.mxu0 %v15811_v3  ;;  %v3980_v55 = vshll.u32 %v12269_v63, 16  ;;  %v8721_v63 = vcombine.low %v3553_v10, %v3479_v53 }
 0x365   :  { %v4050_v29 = vor.u32 %v4049_v48, %v4045_v60  ;;  %v3987_v56 = vshll.u32 %v12374_v49, 16 }
 0x366   :  { %v4427_v2 = vrot.slane %v8721_v63, 1 }
 0x367   :  { %4765 = vmatmul.mubr.bf16.gmra.mrb[24].mxu1 %v12274_v57  ;;  %5433 = vmatpush1.bf16.msra.mxu0 %v9627_v20  ;;  %v4411_v57 = vsel %vm3259_vm8, %v4409_v9, %v4410_v12  ;;  %v3961_v20 = vshrl.u32 %v12347_v6, 16  ;;  %v3968_v9 = vshll.u32 %v12264_v45, 16  ;;  %v12392_v12 = vld [vmem:[#allocation2 + $0x11c] ss:$0 sps:$4 sm:$0x11]   ;;  %v4417_v45 = vsel %vm3259_vm8, %v4415_v19, %v4416_v30 }
 0x368   :  { %4772 = vmatprep.mubr.bf16.mxu1 %v3947_v47  ;;  %5434 = vmatprep.subr.bf16.mxu0 %v15811_v3  ;;  %v12400_v47 = vcombine.low %v3470_v50, %v12342_v15  ;;  %v3975_v15 = vshll.u32 %v12371_v51, 16  ;;  %v4425_v62 = vrot.slane %v12392_v12, 1  ;;  %v3481_v50 = vld [vmem:[#allocation2 + $0x130] sm:$0xf]  ;;  %v12420_v44 = vsel %vm2746_vm9, %v4050_v29, %v4054_v0  ;;  %v3554_v30 = vld [vmem:[#allocation2 + $0x12c] sm:$0xe] }
 0x369   :  { %v3966_v43 = vor.u32 %v3965_v46, %v3961_v20  ;;  %v3970_v39 = vrot.slane %v3968_v9, 1  ;;  %v4064_v19 = vshll.u32 %v12356_v28, 16  ;;  %v3476_v46 = vld [vmem:[#allocation2 + $0x114] sm:$0xf]  ;;  %v3480_v9 = vld [vmem:[#allocation2 + $0x12c] sm:$0xf]  ;;  %v8722_v41 = vcombine.low %v3554_v30, %v3481_v50 }
 0x36a   :  { %9249 = vmatmul.mubr.bf16.gmra.mrb[92].mxu0 %v4411_v57  ;;  %v12410_v57 = vcombine.low %v3472_v40, %v12344_v18  ;;  %v4059_v1 = vshll.u32 %v12400_v47, 16  ;;  %v3977_v35 = vrot.slane %v3975_v15, 1  ;;  %v4057_v38 = vshrl.u32 %v12400_v47, 16  ;;  %v3483_v40 = vld [vmem:[#allocation2 + $0x13c] sm:$0xf] }
 0x36b   :  { %9252 = vmatprep.mubr.bf16.mxu0 %v4414_v25  ;;  %5435 = vmatpush1.bf16.msra.mxu0 %v9631_v52  ;;  %v4421_v52 = vrot.slane %v8719_v42, 1  ;;  %v9655_v25 = vld [vmem:[#allocation8 + $0xb0] sm:$0xff]   ;;  %v3971_v18 = vsel %vm2746_vm9, %v3966_v43, %v3970_v39  ;;  %v4066_v48 = vrot.slane %v4064_v19, 1  ;;  %v3485_v15 = vld [vmem:[#allocation2 + $0x148] sm:$0xf]  ;;  %v3992_v29 = vshll.u32 %v12288_v8, 16 }
 0x36c   :  { %5436 = vmatprep.subr.bf16.mxu0 %v15811_v3  ;;  %9296 = vmatprep.subr.bf16.mxu1 %v9655_v25  ;;  %v3478_v42 = vld [vmem:[#allocation2 + $0x120] sm:$0xf]  ;;  %v4061_v20 = vrot.slane %v4059_v1, 1  ;;  %v4071_v28 = vshll.u32 %v12410_v57, 16  ;;  %v3555_v0 = vld [vmem:[#allocation2 + $0x138] sm:$0xe]  ;;  %v12444_v10 = vcombine.low %v3476_v46, %v12368_v37 }
 0x36d   :  { %9297 = vmatpush3.bf16.msra.mxu1 %v9655_v25  ;;  %v12448_v25 = vcombine.low %v3480_v9, %v3481_v50  ;;  %v3989_v30 = vrot.slane %v3987_v56, 1  ;;  %v4083_v1 = vshll.u32 %v12416_v27, 16  ;;  %v4088_v19 = vshll.u32 %v12380_v22, 16  ;;  %v3482_v50 = vld [vmem:[#allocation2 + $0x138] sm:$0xf] }
 0x36e   :  { %v4062_v60 = vor.u32 %v4061_v20, %v4057_v38  ;;  %v3994_v63 = vrot.slane %v3992_v29, 1  ;;  %v12461_v46 = vld [vmem:[#allocation2 + $0x14c] ss:$0 sps:$4 sm:$0x11]   ;;  %v4095_v20 = vshll.u32 %v12444_v10, 16  ;;  %v3999_v9 = vshll.u32 %v12377_v11, 16 }
 0x36f   :  { %4773 = vmatmul.mubr.bf16.gmra.mrb[28].mxu1 %v12298_v13  ;;  %v3466_v13 = vld [vmem:[#allocation2 + $0xc0] sm:$0xf]  ;;  %5437 = vmatpush1.bf16.msra.mxu0 %v9632_v61  ;;  %v3973_v61 = vshrl.u32 %v12371_v51, 16  ;;  %v4085_v38 = vrot.slane %v4083_v1, 1  ;;  %v3486_v29 = vld [vmem:[#allocation2 + $0x150] sm:$0xf] }
 0x370   :  { %4780 = vmatprep.mubr.bf16.mxu1 %v3959_v24  ;;  %v12414_v23 = vcombine.low %v3466_v13, %v12325_v5  ;;  %v4423_v5 = vsel %vm3259_vm8, %v4421_v52, %v4422_v14  ;;  %v4426_v24 = vsel %vm3259_vm8, %v4424_v16, %v4425_v62  ;;  %v4069_v13 = vshrl.u32 %v12410_v57, 16 }
 0x371   :  { %v3978_v43 = vor.u32 %v3977_v35, %v3973_v61  ;;  %v4431_v14 = vrot.slane %v12429_v58, 1  ;;  %v3985_v52 = vshrl.u32 %v12374_v49, 16  ;;  %v12441_v39 = vsel %vm2746_vm9, %v4062_v60, %v4066_v48  ;;  %v3556_v61 = vld [vmem:[#allocation2 + $0x144] sm:$0xe] }
 0x372   :  { %9253 = vmatmul.mubr.bf16.gmra.mrb[96].mxu0 %v4417_v45  ;;  %v4073_v45 = vrot.slane %v4071_v28, 1  ;;  %v3997_v35 = vshrl.u32 %v12377_v11, 16  ;;  %v4004_v48 = vshll.u32 %v12293_v33, 16 }
 0x373   :  { %9256 = vmatprep.mubr.bf16.mxu0 %v4420_v4  ;;  %v4076_v4 = vshll.u32 %v12360_v36, 16  ;;  %v12446_v36 = vcombine.low %v3478_v42, %v3479_v53  ;;  %v4429_v53 = vsel %vm3259_vm8, %v4427_v2, %v4428_v54  ;;  %v4081_v42 = vshrl.u32 %v12416_v27, 16 }
 0x374   :  { %v4074_v16 = vor.u32 %v4073_v45, %v4069_v13  ;;  %v4100_v54 = vshll.u32 %v12392_v12, 16  ;;  %v3990_v28 = vor.u32 %v3989_v30, %v3985_v52  ;;  %v4090_v13 = vrot.slane %v4088_v19, 1  ;;  %v3557_v45 = vld [vmem:[#allocation2 + $0x150] sm:$0xe] }
 0x375   :  { %v4078_v62 = vrot.slane %v4076_v4, 1  ;;  %v4086_v56 = vor.u32 %v4085_v38, %v4081_v42  ;;  %v12470_v4 = vld [vmem:[#allocation2 + $0x160] sm:$0xf]  ;;  %v4097_v2 = vrot.slane %v4095_v20, 1  ;;  %v4437_v52 = vrot.slane %v12461_v46, 1 }
 0x376   :  { %v4107_v33 = vshll.u32 %v12446_v36, 16  ;;  %v3995_v30 = vsel %vm2746_vm9, %v3990_v28, %v3994_v63  ;;  %v12484_v19 = vld [vmem:[#allocation2 + $0x158] ss:$0 sps:$4 sm:$0x11]   ;;  %v4011_v38 = vshll.u32 %v12385_v17, 16  ;;  %v4119_v20 = vshll.u32 %v12448_v25, 16 }
 0x377   :  { %4781 = vmatmul.mubr.bf16.gmra.mrb[32].mxu1 %v12322_v32  ;;  %v3982_v32 = vrot.slane %v3980_v55, 1  ;;  %v4430_v55 = vrot.slane %v8722_v41, 1  ;;  %v12453_v8 = vsel %vm2746_vm9, %v4074_v16, %v4078_v62  ;;  %v3487_v41 = vld [vmem:[#allocation2 + $0x154] sm:$0xf]  ;;  %v3558_v16 = vld [vmem:[#allocation2 + $0x15c] sm:$0xe] }
 0x378   :  { %4788 = vmatprep.mubr.bf16.mxu1 %v3971_v18  ;;  %v12450_v18 = vld [vmem:[#allocation2 + $0x140] ss:$0 sps:$4 sm:$0x11]   ;;  %v12492_v42 = vcombine.low %v3486_v29, %v3487_v41  ;;  %v8726_v63 = vcombine.low %v3558_v16, %v12470_v4 }
 0x379   :  { %v3983_v37 = vsel %vm2746_vm9, %v3978_v43, %v3982_v32  ;;  %v4432_v22 = vsel %vm3259_vm8, %v4430_v55, %v4431_v14  ;;  %v3484_v32 = vld [vmem:[#allocation2 + $0x144] sm:$0xf]  ;;  %v4093_v43 = vshrl.u32 %v12444_v10, 16  ;;  %v12473_v14 = vcombine.low %v3482_v50, %v3483_v40 }
 0x37a   :  { %9257 = vmatmul.mubr.bf16.gmra.mrb[100].mxu0 %v4423_v5  ;;  %v8723_v5 = vcombine.low %v3555_v0, %v3483_v40  ;;  %v12477_v0 = vsel %vm2746_vm9, %v4086_v56, %v4090_v13  ;;  %v4102_v55 = vrot.slane %v4100_v54, 1  ;;  %v12482_v1 = vcombine.low %v3484_v32, %v3485_v15  ;;  %v3488_v56 = vld [vmem:[#allocation2 + $0x15c] sm:$0xf] }
 0x37b   :  { %9260 = vmatprep.mubr.bf16.mxu0 %v4426_v24  ;;  %v8724_v24 = vcombine.low %v3556_v61, %v3485_v15  ;;  %v4098_v62 = vor.u32 %v4097_v2, %v4093_v43  ;;  %v4112_v61 = vshll.u32 %v12406_v34, 16  ;;  %v4001_v40 = vrot.slane %v3999_v9, 1  ;;  %v12494_v15 = vld [vmem:[#allocation2 + $0x164] ss:$0 sps:$4 sm:$0x11]  }
 0x37c   :  { %v4433_v60 = vrot.slane %v8723_v5, 1  ;;  %v4105_v5 = vshrl.u32 %v12446_v36, 16  ;;  %v4124_v54 = vshll.u32 %v12429_v58, 16  ;;  %v4016_v13 = vshll.u32 %v12312_v21, 16  ;;  %v3559_v2 = vld [vmem:[#allocation2 + $0x168] sm:$0xe] }
 0x37d   :  { %v4436_v12 = vrot.slane %v8724_v24, 1  ;;  %v12488_v50 = vsel %vm2746_vm9, %v4098_v62, %v4102_v55  ;;  %v4109_v24 = vrot.slane %v4107_v33, 1  ;;  %v4002_v32 = vor.u32 %v4001_v40, %v3997_v35  ;;  %v12514_v55 = vld [vmem:[#allocation2 + $0x170] ss:$0 sps:$4 sm:$0x11]  }
 0x37e   :  { %v4442_v58 = vrot.slane %v8726_v63, 1  ;;  %v4443_v43 = vrot.slane %v12494_v15, 1  ;;  %v4009_v35 = vshrl.u32 %v12385_v17, 16  ;;  %v4126_v16 = vrot.slane %v4124_v54, 1  ;;  %v3560_v63 = vld [vmem:[#allocation2 + $0x174] sm:$0xe] }
 0x37f   :  { %4789 = vmatmul.mubr.bf16.gmra.mrb[36].mxu1 %v12347_v6  ;;  %v4434_v6 = vrot.slane %v12450_v18, 1  ;;  %v4438_v28 = vsel %vm3259_vm8, %v4436_v12, %v4437_v52  ;;  %v4131_v12 = vshll.u32 %v12473_v14, 16  ;;  %v4013_v52 = vrot.slane %v4011_v38, 1  ;;  %v2332_v38 = vld [vmem:[#allocation2 + $0xc] sm:$0xf] }
 0x380   :  { %4796 = vmatprep.mubr.bf16.mxu1 %v3983_v37  ;;  %v8725_v37 = vcombine.low %v3557_v45, %v3487_v41  ;;  %v12502_v41 = vld [vmem:[#allocation2 + $0x16c] sm:$0xf]  ;;  %v4121_v45 = vrot.slane %v4119_v20, 1  ;;  %v4136_v21 = vshll.u32 %v12450_v18, 16  ;;  %v4021_v33 = vshrl.u32 %v12397_v31, 16 }
 0x381   :  { %v4435_v34 = vsel %vm3259_vm8, %v4433_v60, %v4434_v6  ;;  %v4440_v6 = vrot.slane %v12484_v19, 1  ;;  %v4018_v40 = vrot.slane %v4016_v13, 1  ;;  %v12525_v18 = vcombine.low %v3488_v56, %v12470_v4  ;;  %v3492_v13 = vld [vmem:[#allocation2 + $0x174] sm:$0xf] }
 0x382   :  { %9261 = vmatmul.mubr.bf16.gmra.mrb[104].mxu0 %v4429_v53  ;;  %v4006_v53 = vrot.slane %v4004_v48, 1  ;;  %v4439_v9 = vrot.slane %v8725_v37, 1  ;;  %v4117_v48 = vshrl.u32 %v12448_v25, 16  ;;  %v8727_v37 = vcombine.low %v3559_v2, %v12502_v41 }
 0x383   :  { %9264 = vmatprep.mubr.bf16.mxu0 %v4432_v22  ;;  %v4110_v22 = vor.u32 %v4109_v24, %v4105_v5  ;;  %v3493_v5 = vld [vmem:[#allocation2 + $0x178] sm:$0xf]  ;;  %v4023_v24 = vshll.u32 %v12397_v31, 16  ;;  %v4138_v20 = vrot.slane %v4136_v21, 1  ;;  %v4446_v4 = vrot.slane %v12514_v55, 1 }
 0x384   :  { %v4122_v29 = vor.u32 %v4121_v45, %v4117_v48  ;;  %v4007_v62 = vsel %vm2746_vm9, %v4002_v32, %v4006_v53  ;;  %v3490_v53 = vld [vmem:[#allocation2 + $0x168] sm:$0xf]  ;;  %v4441_v54 = vsel %vm3259_vm8, %v4439_v9, %v4440_v6  ;;  %v4014_v32 = vor.u32 %v4013_v52, %v4009_v35  ;;  %v12530_v48 = vld [vmem:[#allocation2 + $0x17c] ss:$0 sps:$4 sm:$0x11]  }
 0x385   :  { %v4148_v45 = vshll.u32 %v12461_v46, 16  ;;  %v4141_v2 = vshrl.u32 %v12482_v1, 16  ;;  %v4025_v9 = vrot.slane %v4023_v24, 1  ;;  %v4028_v6 = vshll.u32 %v12317_v26, 16  ;;  %v3561_v35 = vld [vmem:[#allocation2 + $0x180] sm:$0xe] }
 0x386   :  { %v3497_v46 = vld [vmem:[#allocation2 + $0x190] sm:$0xf]  ;;  %v12547_v24 = vcombine.low %v3492_v13, %v3493_v5  ;;  %v3562_v26 = vld [vmem:[#allocation2 + $0x18c] sm:$0xe] }
 0x387   :  { %4797 = vmatmul.mubr.bf16.gmra.mrb[40].mxu1 %v12371_v51  ;;  %v4114_v51 = vrot.slane %v4112_v61, 1  ;;  %v4129_v61 = vshrl.u32 %v12473_v14, 16  ;;  %v4150_v21 = vrot.slane %v4148_v45, 1  ;;  %v9664_v45 = vld [vmem:[#allocation8 + $0xb8] sm:$0xff]  }
 0x388   :  { %4804 = vmatprep.mubr.bf16.mxu1 %v3995_v30  ;;  %v4133_v30 = vrot.slane %v4131_v12, 1  ;;  %9298 = vmatprep.subr.bf16.mxu1 %v9664_v45 }
 0x389   :  { %v12506_v60 = vsel %vm2746_vm9, %v4110_v22, %v4114_v51  ;;  %v2333_v22 = vld [vmem:[#allocation2 + $0x10] sm:$0xf]  ;;  %9299 = vmatpush3.bf16.msra.mxu1 %v9664_v45 }
 0x38a   :  { %9265 = vmatmul.mubr.bf16.gmra.mrb[108].mxu0 %v4435_v34  ;;  %v12522_v34 = vsel %vm2746_vm9, %v4122_v29, %v4126_v16  ;;  %v4134_v51 = vor.u32 %v4133_v30, %v4129_v61  ;;  %v4445_v29 = vrot.slane %v8727_v37, 1  ;;  %v8728_v16 = vcombine.low %v3560_v63, %v3493_v5  ;;  %v2330_v63 = vld [vmem:[#allocation2] sm:$0xf]  ;;  %7233 = vmatprep.subr.bf16.mxu1 %v15811_v3 }
 0x38b   :  { %9268 = vmatprep.mubr.bf16.mxu0 %v4438_v28  ;;  %v4444_v28 = vsel %vm3259_vm8, %v4442_v58, %v4443_v43  ;;  %v12539_v58 = vld [vmem:[#allocation2 + $0x194] ss:$0 sps:$4 sm:$0x11]   ;;  %v3495_v43 = vld [vmem:[#allocation2 + $0x184] sm:$0xf]  ;;  %v4160_v61 = vshll.u32 %v12484_v19, 16  ;;  %v4019_v30 = vsel %vm2746_vm9, %v4014_v32, %v4018_v40  ;;  %v12545_v37 = vcombine.low %v3490_v53, %v12502_v41 }
 0x38c   :  { %v12535_v56 = vsel %vm2746_vm9, %v4134_v51, %v4138_v20  ;;  %v12549_v51 = vcombine.low %v2332_v38, %v2333_v22  ;;  %v4449_v20 = vrot.slane %v12530_v48, 1  ;;  %v4447_v41 = vsel %vm3259_vm8, %v4445_v29, %v4446_v4  ;;  %v3494_v53 = vld [vmem:[#allocation2 + $0x180] sm:$0xf]  ;;  %v3496_v32 = vld [vmem:[#allocation2 + $0x18c] sm:$0xf] }
 0x38d   :  { %v4448_v40 = vrot.slane %v8728_v16, 1  ;;  %v4026_v5 = vor.u32 %v4025_v9, %v4021_v33  ;;  %v4455_v38 = vrot.slane %v12539_v58, 1  ;;  %v4162_v13 = vrot.slane %v4160_v61, 1  ;;  %v12563_v4 = vld [vmem:[#allocation2 + $0x188] ss:$0 sps:$4 sm:$0x11]  }
 0x38e   :  { %v4035_v33 = vshll.u32 %v12414_v23, 16  ;;  %v4165_v16 = vshrl.u32 %v12525_v18, 16  ;;  %v12576_v61 = vld [vmem:[#allocation2 + $0x8] ss:$0 sps:$4 sm:$0x11]  }
 0x38f   :  { %4805 = vmatmul.mubr.bf16.gmra.mrb[44].mxu1 %v12374_v49  ;;  %v4143_v49 = vshll.u32 %v12482_v1, 16  ;;  %15814 = vst [vmem:[#allocation16_spill] sm:$0xff] %v12576_v61  ;;  %v12700_v3 = vld [vmem:[#allocation2 + $0x80] ss:$0 sps:$4 sm:$0x11]  }
 0x390   :  { %4812 = vmatprep.mubr.bf16.mxu1 %v4007_v62  ;;  %v4155_v62 = vshll.u32 %v12492_v42, 16 }
 0x391   :  { %v4145_v12 = vrot.slane %v4143_v49, 1  ;;  %v2331_v49 = vld [vmem:[#allocation2 + $0x4] sm:$0xf] }
 0x392   :  { %9269 = vmatmul.mubr.bf16.gmra.mrb[112].mxu0 %v4441_v54  ;;  %v4157_v19 = vrot.slane %v4155_v62, 1  ;;  %v8730_v62 = vcombine.low %v3562_v26, %v3497_v46  ;;  %v4033_v26 = vshrl.u32 %v12414_v23, 16 }
 0x393   :  { %9272 = vmatprep.mubr.bf16.mxu0 %v4444_v28  ;;  %v4146_v52 = vor.u32 %v4145_v12, %v4141_v2  ;;  %v4153_v28 = vshrl.u32 %v12492_v42, 16  ;;  %v4167_v2 = vshll.u32 %v12525_v18, 16  ;;  %v4172_v12 = vshll.u32 %v12494_v15, 16 }
 0x394   :  { %v4450_v15 = vsel %vm3259_vm8, %v4448_v40, %v4449_v20  ;;  %v4177_v20 = vshrl.u32 %v12545_v37, 16  ;;  %v4037_v40 = vrot.slane %v4035_v33, 1  ;;  %v2755_v33 = vshll.u32 %v12576_v61, 16 }
 0x395   :  { %v12553_v54 = vsel %vm2746_vm9, %v4146_v52, %v4150_v21  ;;  %v4158_v22 = vor.u32 %v4157_v19, %v4153_v28  ;;  %v4030_v52 = vrot.slane %v4028_v6, 1  ;;  %v8729_v21 = vcombine.low %v3561_v35, %v3495_v43 }
 0x396   :  { %v4169_v9 = vrot.slane %v4167_v2, 1  ;;  %v12572_v6 = vcombine.low %v3494_v53, %v3495_v43  ;;  %v12574_v35 = vcombine.low %v3496_v32, %v3497_v46  ;;  %v4184_v28 = vshll.u32 %v12514_v55, 16 }
 0x397   :  { %4813 = vmatmul.mubr.bf16.gmra.mrb[48].mxu1 %v12377_v11  ;;  %v12561_v11 = vcombine.low %v2330_v63, %v2331_v49  ;;  %v12567_v29 = vsel %vm2746_vm9, %v4158_v22, %v4162_v13  ;;  %v4174_v49 = vrot.slane %v4172_v12, 1  ;;  %v4451_v19 = vrot.slane %v8729_v21, 1  ;;  %v3499_v22 = vld [vmem:[#allocation2 + $0x19c] sm:$0xf]  ;;  %v3563_v13 = vld [vmem:[#allocation2 + $0x198] sm:$0xe] }
 0x398   :  { %4820 = vmatprep.mubr.bf16.mxu1 %v4019_v30  ;;  %15812 = vst [vmem:[#allocation28_spill] sm:$0xff] %v12572_v6  ;;  %15813 = vst [vmem:[#allocation30_spill] sm:$0xff] %v12574_v35  ;;  %v4179_v30 = vshll.u32 %v12545_v37, 16  ;;  %v4170_v63 = vor.u32 %v4169_v9, %v4165_v16  ;;  %v4452_v46 = vrot.slane %v12563_v4, 1  ;;  %v4031_v32 = vsel %vm2746_vm9, %v4026_v5, %v4030_v52  ;;  %v3498_v16 = vld [vmem:[#allocation2 + $0x198] sm:$0xf] }
 0x399   :  { %v2750_v45 = vshll.u32 %v12561_v11, 16  ;;  %v4186_v2 = vrot.slane %v4184_v28, 1  ;;  %v4191_v12 = vshll.u32 %v12547_v24, 16  ;;  %v4040_v21 = vshll.u32 %v12333_v7, 16 }
 0x39a   :  { %9273 = vmatmul.mubr.bf16.gmra.mrb[116].mxu0 %v4447_v41  ;;  %v4181_v43 = vrot.slane %v4179_v30, 1  ;;  %v4454_v41 = vrot.slane %v8730_v62, 1  ;;  %v12585_v53 = vsel %vm2746_vm9, %v4170_v63, %v4174_v49  ;;  %v2748_v62 = vshrl.u32 %v12561_v11, 16  ;;  %v9629_v7 = vld [vmem:[#allocation2 + $0x1a0] ss:$0 sps:$4 sm:$0x11]  }
 0x39b   :  { %9276 = vmatprep.mubr.bf16.mxu0 %v4450_v15  ;;  %v4196_v9 = vshll.u32 %v12530_v48, 16  ;;  %v2752_v15 = vrot.slane %v2750_v45, 1  ;;  %v4189_v5 = vshrl.u32 %v12547_v24, 16  ;;  %v4193_v52 = vrot.slane %v4191_v12, 1 }
 0x39c   :  { %v4182_v55 = vor.u32 %v4181_v43, %v4177_v20  ;;  %v4453_v30 = vsel %vm3259_vm8, %v4451_v19, %v4452_v46  ;;  %v4456_v63 = vsel %vm3259_vm8, %v4454_v41, %v4455_v38  ;;  %v4038_v49 = vor.u32 %v4037_v40, %v4033_v26 }
 0x39d   :  { %v8731_v28 = vcombine.low %v3563_v13, %v3499_v22  ;;  %v4194_v20 = vor.u32 %v4193_v52, %v4189_v5  ;;  %v4198_v43 = vrot.slane %v4196_v9, 1  ;;  %v4208_v48 = vshll.u32 %v12563_v4, 16 }
 0x39e   :  { %v4042_v45 = vrot.slane %v4040_v21, 1  ;;  %v2753_v12 = vor.u32 %v2752_v15, %v2748_v62  ;;  %v4201_v38 = vshrl.u32 %v12572_v6, 16  ;;  %v4458_v40 = vrot.slane %v9629_v7, 1  ;;  %v2334_v62 = vld [vmem:[#allocation2 + $0x18] sm:$0xf] }
 0x39f   :  { %4821 = vmatmul.mubr.bf16.gmra.mrb[52].mxu1 %v12385_v17  ;;  %v12595_v17 = vsel %vm2746_vm9, %v4182_v55, %v4186_v2  ;;  %v12602_v55 = vcombine.low %v3498_v16, %v3499_v22  ;;  %v2757_v2 = vrot.slane %v2755_v33, 1  ;;  %v12605_v19 = vsel %vm2746_vm9, %v4194_v20, %v4198_v43  ;;  %v2335_v33 = vld [vmem:[#allocation2 + $0x1c] sm:$0xf]  ;;  %v12614_v15 = vld [vmem:[#allocation2 + $0x14] ss:$0 sps:$4 sm:$0x11]  }
 0x3a0   :  { %4828 = vmatprep.mubr.bf16.mxu1 %v4031_v32  ;;  %v4203_v32 = vshll.u32 %v12572_v6, 16  ;;  %v4043_v46 = vsel %vm2746_vm9, %v4038_v49, %v4042_v45  ;;  %v4457_v41 = vrot.slane %v8731_v28, 1  ;;  %v2762_v13 = vshll.u32 %v12549_v51, 16  ;;  %15816 = vst [vmem:[#allocation33_spill] sm:$0xff] %v12614_v15 }
 0x3a1   :  { %15815 = vst [vmem:[#allocation35_spill] sm:$0xff] %v12602_v55  ;;  %v4210_v21 = vrot.slane %v4208_v48, 1  ;;  %v4215_v22 = vshll.u32 %v12574_v35, 16  ;;  %v4220_v16 = vshll.u32 %v12539_v58, 16  ;;  %v2758_v9 = vsel %vm2746_vm9, %v2753_v12, %v2757_v2  ;;  %v2428_v2 = vld [vmem:[#allocation2 + $0x18] sm:$0xe] }
 0x3a2   :  { %9277 = vmatmul.mubr.bf16.gmra.mrb[120].mxu0 %v4453_v30  ;;  %v4205_v26 = vrot.slane %v4203_v32, 1  ;;  %v4213_v52 = vshrl.u32 %v12574_v35, 16  ;;  %v4227_v49 = vshll.u32 %v12602_v55, 16  ;;  %v12622_v58 = vcombine.low %v2334_v62, %v2335_v33  ;;  %v9639_v28 = vld [vmem:[#allocation2 + $0x20] ss:$0 sps:$4 sm:$0x11]  }
 0x3a3   :  { %9280 = vmatprep.mubr.bf16.mxu0 %v4456_v63  ;;  %v4217_v30 = vrot.slane %v4215_v22, 1  ;;  %v2764_v63 = vrot.slane %v2762_v13, 1  ;;  %v4222_v43 = vrot.slane %v4220_v16, 1  ;;  %v4232_v32 = vshll.u32 %v9629_v7, 16  ;;  %v2336_v22 = vld [vmem:[#allocation2 + $0x24] sm:$0xf] }
 0x3a4   :  { %v4206_v4 = vor.u32 %v4205_v26, %v4201_v38  ;;  %v4225_v48 = vshrl.u32 %v12602_v55, 16  ;;  %v4229_v45 = vrot.slane %v4227_v49, 1  ;;  %v2760_v12 = vshrl.u32 %v12549_v51, 16  ;;  %v2337_v26 = vld [vmem:[#allocation2 + $0x28] sm:$0xf] }
 0x3a5   :  { %v4218_v20 = vor.u32 %v4217_v30, %v4213_v52  ;;  %v2767_v38 = vshll.u32 %v12614_v15, 16  ;;  %v4234_v13 = vrot.slane %v4232_v32, 1  ;;  %v8606_v16 = vcombine.low %v2428_v2, %v2335_v33  ;;  %v12633_v52 = vld [vmem:[#allocation2 + $0x2c] ss:$0 sps:$4 sm:$0x11]  }
 0x3a6   :  { %v12617_v5 = vsel %vm2746_vm9, %v4206_v4, %v4210_v21  ;;  %v2429_v4 = vld [vmem:[#allocation2 + $0x24] sm:$0xe]  ;;  %v2765_v7 = vor.u32 %v2764_v63, %v2760_v12  ;;  %v2774_v21 = vshll.u32 %v12622_v58, 16  ;;  %v3267_v62 = vrot.slane %v9639_v28, 1 }
 0x3a7   :  { %4829 = vmatmul.mubr.bf16.gmra.mrb[56].mxu1 %v12397_v31  ;;  %v4459_v31 = vsel %vm3259_vm8, %v4457_v41, %v4458_v40  ;;  %v12628_v41 = vsel %vm2746_vm9, %v4218_v20, %v4222_v43  ;;  %v4230_v40 = vor.u32 %v4229_v45, %v4225_v48  ;;  %v12638_v49 = vld [vmem:[#allocation2 + $0x38] ss:$0 sps:$4 sm:$0x11]   ;;  %v9669_v20 = vld [vmem:[#allocation8 + $0x200] sm:$0xff]   ;;  %v3266_v43 = vrot.slane %v8606_v16, 1 }
 0x3a8   :  { %4836 = vmatprep.mubr.bf16.mxu1 %v4043_v46  ;;  %v2339_v46 = vld [vmem:[#allocation2 + $0x34] sm:$0xf]  ;;  %15817 = vst [vmem:[#allocation21_spill] sm:$0xff] %v12628_v41  ;;  %v12640_v63 = vcombine.low %v2336_v22, %v2337_v26  ;;  %v2776_v48 = vrot.slane %v2774_v21, 1  ;;  %v12645_v45 = vld [vmem:[#allocation2 + $0x40] sm:$0xf]  ;;  %9364 = vmatprep.subr.bf16.mxu0 %v9669_v20 }
 0x3a9   :  { %v12636_v30 = vsel %vm2746_vm9, %v4230_v40, %v4234_v13  ;;  %v12648_v2 = vsel %vm3259_vm8, %v3266_v43, %v3267_v62  ;;  %v2779_v12 = vshll.u32 %v9639_v28, 16  ;;  %v3270_v40 = vrot.slane %v12633_v52, 1  ;;  %v12653_v13 = vld [vmem:[#allocation2 + $0x44] ss:$0 sps:$4 sm:$0x11]  }
 0x3aa   :  { %9281 = vmatmul.mubr.bf16.gmra.mrb[124].mxu0 %v4459_v31  ;;  %15818 = vst [vmem:[#allocation32_spill] sm:$0xff] %v12636_v30  ;;  %v2769_v31 = vrot.slane %v2767_v38, 1  ;;  %15819 = vst [vmem:[#allocation13_spill] sm:$0xff] %v12648_v2  ;;  %v12650_v38 = vld [vmem:[#allocation2 + $0x4c] sm:$0xf]  ;;  %v2786_v21 = vshll.u32 %v12640_v63, 16 }
 0x3ab   :  { %5438 = vmatprep.mubr.bf16.mxu0 %v2758_v9  ;;  %v2430_v9 = vld [vmem:[#allocation2 + $0x30] sm:$0xe]  ;;  %v12657_v22 = vld [vmem:[#allocation2 + $0x50] ss:$0 sps:$4 sm:$0x11]  }
 0x3ac   :  { %v8608_v32 = vcombine.low %v2430_v9, %v2339_v46  ;;  %v2770_v33 = vsel %vm2746_vm9, %v2765_v7, %v2769_v31  ;;  %v2431_v7 = vld [vmem:[#allocation2 + $0x3c] sm:$0xe]  ;;  %v2432_v28 = vld [vmem:[#allocation2 + $0x48] sm:$0xe]  ;;  %v2338_v9 = vld [vmem:[#allocation2 + $0x30] sm:$0xf] }
 0x3ad   :  { %v12667_v43 = vld [vmem:[#allocation2 + $0x58] sm:$0xf]  ;;  %v12731_v35 = vld [vmem:[#allocation2 + $0xa4] ss:$0 sps:$4 sm:$0x11]  }
 0x3ae   :  { %v12717_v55 = vld [vmem:[#allocation2 + $0x98] ss:$0 sps:$4 sm:$0x11]  }
 0x3af   :  { %4837 = vmatmul.mubr.bf16.gmra.mrb[60].mxu1 %v12414_v23  ;;  %v8607_v23 = vcombine.low %v2429_v4, %v2337_v26  ;;  %v3273_v4 = vrot.slane %v12638_v49, 1 }
 0x3b0   :  { %4844 = vmatprep.mubr.bf16.mxu1 %v12420_v44  ;;  %v2772_v44 = vshrl.u32 %v12622_v58, 16 }
 0x3b1   :  { %v3269_v26 = vrot.slane %v8607_v23, 1  ;;  %v8609_v23 = vcombine.low %v2431_v7, %v12645_v45  ;;  %v12683_v7 = vld [vmem:[#allocation2 + $0x70] sm:$0xf] }
 0x3b2   :  { %5439 = vmatmul.mubr.bf16.vlgmr.msra.gmra.mrb[128].mxu0 %v12561_v11  ;;  %v3272_v11 = vrot.slane %v8608_v32, 1  ;;  %v2777_v62 = vor.u32 %v2776_v48, %v2772_v44  ;;  %v12670_v32 = vld [vmem:[#allocation2 + $0x5c] ss:$0 sps:$4 sm:$0x11]   ;;  %v12674_v44 = vcombine.low %v2338_v9, %v2339_v46  ;;  %v12676_v48 = vld [vmem:[#allocation2 + $0x64] sm:$0xf] }
 0x3b3   :  { %5446 = vmatprep.mubr.bf16.mxu0 %v2770_v33  ;;  %9365 = vmatpush3.bf16.msra.mxu0 %v9669_v20  ;;  %v12660_v16 = vsel %vm3259_vm8, %v3269_v26, %v3270_v40  ;;  %v2781_v20 = vrot.slane %v2779_v12, 1  ;;  %v3276_v33 = vrot.slane %v12653_v13, 1  ;;  %v8610_v26 = vcombine.low %v2432_v28, %v12650_v38  ;;  %v2433_v40 = vld [vmem:[#allocation2 + $0x54] sm:$0xe] }
 0x3b4   :  { %15820 = vst [vmem:[#allocation27_spill] sm:$0xff] %v12660_v16  ;;  %v12664_v31 = vsel %vm3259_vm8, %v3272_v11, %v3273_v4  ;;  %v3275_v11 = vrot.slane %v8609_v23, 1  ;;  %v12681_v4 = vld [vmem:[#allocation2 + $0x68] ss:$0 sps:$4 sm:$0x11]   ;;  %v2784_v9 = vshrl.u32 %v12640_v63, 16 }
 0x3b5   :  { %15821 = vst [vmem:[#allocation34_spill] sm:$0xff] %v12664_v31  ;;  %v2782_v12 = vsel %vm2746_vm9, %v2777_v62, %v2781_v20  ;;  %v3278_v31 = vrot.slane %v8610_v26, 1  ;;  %v2434_v16 = vld [vmem:[#allocation2 + $0x60] sm:$0xe]  ;;  %v12693_v23 = vld [vmem:[#allocation2 + $0x7c] sm:$0xf] }
 0x3b6   :  { %v12685_v28 = vld [vmem:[#allocation2 + $0x74] ss:$0 sps:$4 sm:$0x11]   ;;  %v12688_v46 = vsel %vm3259_vm8, %v3275_v11, %v3276_v33  ;;  %v3282_v20 = vrot.slane %v12670_v32, 1  ;;  %v2435_v26 = vld [vmem:[#allocation2 + $0x6c] sm:$0xe]  ;;  %v8612_v11 = vcombine.low %v2434_v16, %v12676_v48 }
 0x3b7   :  { %4845 = vmatmul.mubr.bf16.gmra.mrb[64].mxu1 %v12365_v59  ;;  %v2788_v59 = vrot.slane %v2786_v21, 1  ;;  %15822 = vst [vmem:[#allocation36_spill] sm:$0xff] %v12688_v46  ;;  %v8611_v21 = vcombine.low %v2433_v40, %v12667_v43  ;;  %v12704_v46 = vld [vmem:[#allocation2 + $0x88] sm:$0xf]  ;;  %v3288_v16 = vrot.slane %v12685_v28, 1 }
 0x3b8   :  { %4852 = vmatprep.mubr.bf16.mxu1 %v12441_v39  ;;  %v3279_v39 = vrot.slane %v12657_v22, 1  ;;  %v3284_v15 = vrot.slane %v8612_v11, 1  ;;  %v12729_v11 = vld [vmem:[#allocation2 + $0xa0] sm:$0xf] }
 0x3b9   :  { %v3281_v33 = vrot.slane %v8611_v21, 1  ;;  %v2789_v40 = vor.u32 %v2788_v59, %v2784_v9  ;;  %v8613_v21 = vcombine.low %v2435_v26, %v12683_v7  ;;  %v12715_v59 = vld [vmem:[#allocation2 + $0x94] sm:$0xf]  ;;  %v2437_v9 = vld [vmem:[#allocation2 + $0x84] sm:$0xe] }
 0x3ba   :  { %5447 = vmatmul.mubr.bf16.gmra.mrb[132].mxu0 %v12549_v51  ;;  %v2791_v51 = vshll.u32 %v12633_v52, 16  ;;  %v12696_v62 = vsel %vm3259_vm8, %v3278_v31, %v3279_v39  ;;  %v12706_v52 = vld [vmem:[#allocation2 + $0x8c] ss:$0 sps:$4 sm:$0x11]   ;;  %v3285_v31 = vrot.slane %v12681_v4, 1 }
 0x3bb   :  { %5454 = vmatprep.mubr.bf16.mxu0 %v2782_v12  ;;  %15823 = vst [vmem:[#allocation19_spill] sm:$0xff] %v12696_v62  ;;  %v2798_v12 = vshll.u32 %v12674_v44, 16  ;;  %v2436_v39 = vld [vmem:[#allocation2 + $0x78] sm:$0xe]  ;;  %v2340_v62 = vld [vmem:[#allocation2 + $0x3c] sm:$0xf]  ;;  %v12711_v2 = vsel %vm3259_vm8, %v3281_v33, %v3282_v20 }
 0x3bc   :  { %15824 = vst [vmem:[#allocation17_spill] sm:$0xff] %v12711_v2  ;;  %v12720_v61 = vsel %vm3259_vm8, %v3284_v15, %v3285_v31  ;;  %v3287_v30 = vrot.slane %v8613_v21, 1  ;;  %v3291_v20 = vrot.slane %v12700_v3, 1  ;;  %v2438_v2 = vld [vmem:[#allocation2 + $0x90] sm:$0xe] }
 0x3bd   :  { %15825 = vst [vmem:[#allocation39_spill] sm:$0xff] %v12720_v61  ;;  %v2800_v33 = vrot.slane %v2798_v12, 1  ;;  %v2803_v12 = vshll.u32 %v12638_v49, 16  ;;  %v12742_v21 = vld [vmem:[#allocation2 + $0xb0] ss:$0 sps:$4 sm:$0x11]  }
 0x3be   :  { %v12734_v15 = vsel %vm3259_vm8, %v3287_v30, %v3288_v16  ;;  %v8616_v30 = vcombine.low %v2438_v2, %v12715_v59  ;;  %v3297_v16 = vrot.slane %v12717_v55, 1  ;;  %v2440_v49 = vld [vmem:[#allocation2 + $0xa8] sm:$0xe]  ;;  %v3300_v2 = vrot.slane %v12731_v35, 1 }
 0x3bf   :  { %4853 = vmatmul.mubr.bf16.gmra.mrb[68].mxu1 %v12400_v47  ;;  %v2793_v47 = vrot.slane %v2791_v51, 1  ;;  %v12727_v51 = vcombine.low %v2340_v62, %v12645_v45  ;;  %15826 = vst [vmem:[#allocation38_spill] sm:$0xff] %v12734_v15  ;;  %v12740_v45 = vld [vmem:[#allocation2 + $0xac] sm:$0xf]  ;;  %v2439_v62 = vld [vmem:[#allocation2 + $0x9c] sm:$0xe] }
 0x3c0   :  { %4860 = vmatprep.mubr.bf16.mxu1 %v12453_v8  ;;  %v8614_v8 = vcombine.low %v2436_v39, %v12693_v23  ;;  %v8615_v39 = vcombine.low %v2437_v9, %v12704_v46  ;;  %v12751_v15 = vld [vmem:[#allocation2 + $0xbc] ss:$0 sps:$4 sm:$0x11]   ;;  %v2342_v61 = vld [vmem:[#allocation2 + $0x48] sm:$0xf]  ;;  %v8618_v6 = vcombine.low %v2440_v49, %v12740_v45 }
 0x3c1   :  { %v2794_v26 = vsel %vm2746_vm9, %v2789_v40, %v2793_v47  ;;  %v2796_v40 = vshrl.u32 %v12674_v44, 16 }
 0x3c2   :  { %5455 = vmatmul.mubr.bf16.gmra.mrb[136].mxu0 %v12622_v58  ;;  %v3290_v31 = vrot.slane %v8614_v8, 1  ;;  %v3294_v58 = vrot.slane %v12706_v52, 1  ;;  %v2810_v8 = vshll.u32 %v12727_v51, 16 }
 0x3c3   :  { %5462 = vmatprep.mubr.bf16.mxu0 %v2794_v26  ;;  %v3293_v26 = vrot.slane %v8615_v39, 1  ;;  %v2801_v9 = vor.u32 %v2800_v33, %v2796_v40  ;;  %v2805_v39 = vrot.slane %v2803_v12, 1  ;;  %v12771_v12 = vld [vmem:[#allocation2 + $0xe8] sm:$0xf] }
 0x3c4   :  { %v12745_v47 = vsel %vm3259_vm8, %v3290_v31, %v3291_v20  ;;  %v3296_v20 = vrot.slane %v8616_v30, 1  ;;  %v8617_v31 = vcombine.low %v2439_v62, %v12729_v11  ;;  %v8546_v62 = vcombine.low %v2342_v61, %v12650_v38  ;;  %v12769_v30 = vld [vmem:[#allocation2 + $0xec] ss:$0 sps:$4 sm:$0x11]  }
 0x3c5   :  { %15827 = vst [vmem:[#allocation40_spill] sm:$0xff] %v12745_v47  ;;  %v12755_v41 = vsel %vm3259_vm8, %v3293_v26, %v3294_v58  ;;  %v12759_v47 = vld [vmem:[#allocation2 + $0xb8] sm:$0xf]  ;;  %v2806_v58 = vsel %vm2746_vm9, %v2801_v9, %v2805_v39  ;;  %v2812_v26 = vrot.slane %v2810_v8, 1  ;;  %v2815_v9 = vshll.u32 %v12653_v13, 16 }
 0x3c6   :  { %v12762_v33 = vsel %vm3259_vm8, %v3296_v20, %v3297_v16  ;;  %v3299_v40 = vrot.slane %v8617_v31, 1  ;;  %v3302_v20 = vrot.slane %v8618_v6, 1  ;;  %v3306_v31 = vrot.slane %v12751_v15, 1  ;;  %v9693_v13 = vld [vmem:[#allocation8 + $0x208] sm:$0xff]  }
 0x3c7   :  { %4861 = vmatmul.mubr.bf16.gmra.mrb[72].mxu1 %v12410_v57  ;;  %v2441_v57 = vld [vmem:[#allocation2 + $0xb4] sm:$0xe]  ;;  %15828 = vst [vmem:[#allocation41_spill] sm:$0xff] %v12762_v33  ;;  %v2443_v33 = vld [vmem:[#allocation2 + $0xe4] sm:$0xe]  ;;  %v2822_v39 = vshll.u32 %v8546_v62, 16  ;;  %9366 = vmatprep.subr.bf16.mxu0 %v9693_v13 }
 0x3c8   :  { %4868 = vmatprep.mubr.bf16.mxu1 %v12477_v0  ;;  %v3303_v0 = vrot.slane %v12742_v21, 1  ;;  %v12774_v16 = vsel %vm3259_vm8, %v3299_v40, %v3300_v2  ;;  %v8619_v49 = vcombine.low %v2441_v57, %v12759_v47  ;;  %v8621_v2 = vcombine.low %v2443_v33, %v12771_v12  ;;  %v2344_v57 = vld [vmem:[#allocation2 + $0x54] sm:$0xf]  ;;  %9367 = vmatpush3.bf16.msra.mxu0 %v9693_v13 }
 0x3c9   :  { %15829 = vst [vmem:[#allocation42_spill] sm:$0xff] %v12774_v16  ;;  %v3312_v6 = vrot.slane %v12769_v30, 1 }
 0x3ca   :  { %5463 = vmatmul.mubr.bf16.gmra.mrb[140].mxu0 %v12640_v63  ;;  %v2808_v63 = vshrl.u32 %v12727_v51, 16  ;;  %v12781_v61 = vsel %vm3259_vm8, %v3302_v20, %v3303_v0  ;;  %v3305_v38 = vrot.slane %v8619_v49, 1  ;;  %v3311_v16 = vrot.slane %v8621_v2, 1 }
 0x3cb   :  { %5470 = vmatprep.mubr.bf16.mxu0 %v2806_v58  ;;  %v2817_v58 = vrot.slane %v2815_v9, 1  ;;  %v2827_v20 = vshll.u32 %v12657_v22, 16 }
 0x3cc   :  { %v2813_v8 = vor.u32 %v2812_v26, %v2808_v63  ;;  %v12788_v40 = vsel %vm3259_vm8, %v3305_v38, %v3306_v31  ;;  %v8547_v26 = vcombine.low %v2344_v57, %v12667_v43  ;;  %v12794_v33 = vsel %vm3259_vm8, %v3311_v16, %v3312_v6 }
 0x3cd   :  { %15830 = vst [vmem:[#allocation18_spill] sm:$0xff] %v12788_v40  ;;  %15831 = vst [vmem:[#allocation44_spill] sm:$0xff] %v12794_v33  ;;  %v2829_v63 = vrot.slane %v2827_v20, 1  ;;  %v2851_v57 = vshll.u32 %v12681_v4, 16  ;;  %v9713_v20 = vld [vmem:[#allocation8 + $0x210] sm:$0xff]  }
 0x3ce   :  { %v2818_v0 = vsel %vm2746_vm9, %v2813_v8, %v2817_v58  ;;  %v2834_v31 = vshll.u32 %v8547_v26, 16  ;;  %v2832_v38 = vshrl.u32 %v8547_v26, 16  ;;  %v2839_v8 = vshll.u32 %v12670_v32, 16  ;;  %v2350_v58 = vld [vmem:[#allocation2 + $0x78] sm:$0xf]  ;;  %9368 = vmatprep.subr.bf16.mxu0 %v9713_v20 }
 0x3cf   :  { %4869 = vmatmul.mubr.bf16.gmra.mrb[76].mxu1 %v12416_v27  ;;  %v2824_v27 = vrot.slane %v2822_v39, 1  ;;  %9369 = vmatpush3.bf16.msra.mxu0 %v9713_v20  ;;  %v6038_v33 = vld [vmem:[#allocation2 + $0x16c] sm:$0xf] }
 0x3d0   :  { %4876 = vmatprep.mubr.bf16.mxu1 %v12488_v50  ;;  %v2820_v50 = vshrl.u32 %v8546_v62, 16  ;;  %v2836_v9 = vrot.slane %v2834_v31, 1  ;;  %v2841_v39 = vrot.slane %v2839_v8, 1  ;;  %v2356_v8 = vld [vmem:[#allocation2 + $0x9c] sm:$0xf] }
 0x3d2   :  { %5471 = vmatmul.mubr.bf16.gmra.mrb[144].mxu0 %v12674_v44  ;;  %v2825_v49 = vor.u32 %v2824_v27, %v2820_v50  ;;  %v2346_v44 = vld [vmem:[#allocation2 + $0x60] sm:$0xf]  ;;  %v2863_v27 = vshll.u32 %v12685_v28, 16  ;;  %v2352_v50 = vld [vmem:[#allocation2 + $0x84] sm:$0xf]  ;;  %v2875_v28 = vshll.u32 %v12700_v3, 16 }
 0x3d3   :  { %5478 = vmatprep.mubr.bf16.mxu0 %v2818_v0  ;;  %v8548_v16 = vcombine.low %v2346_v44, %v12676_v48  ;;  %v8550_v0 = vcombine.low %v2350_v58, %v12693_v23  ;;  %v8551_v31 = vcombine.low %v2352_v50, %v12704_v46  ;;  %v2360_v50 = vld [vmem:[#allocation2 + $0xb4] sm:$0xf] }
 0x3d4   :  { %v2830_v43 = vsel %vm2746_vm9, %v2825_v49, %v2829_v63  ;;  %v2877_v63 = vrot.slane %v2875_v28, 1 }
 0x3d5   :  { %v2846_v22 = vshll.u32 %v8548_v16, 16  ;;  %v2844_v48 = vshrl.u32 %v8548_v16, 16  ;;  %v2868_v23 = vshrl.u32 %v8550_v0, 16  ;;  %v2882_v44 = vshll.u32 %v8551_v31, 16 }
 0x3d7   :  { %4877 = vmatmul.mubr.bf16.gmra.mrb[80].mxu1 %v12444_v10  ;;  %v2837_v10 = vor.u32 %v2836_v9, %v2832_v38  ;;  %v2848_v2 = vrot.slane %v2846_v22, 1  ;;  %v2884_v9 = vrot.slane %v2882_v44, 1  ;;  %v2887_v38 = vshll.u32 %v12706_v52, 16 }
 0x3d8   :  { %4884 = vmatprep.mubr.bf16.mxu1 %v12506_v60  ;;  %v2348_v60 = vld [vmem:[#allocation2 + $0x6c] sm:$0xf] }
 0x3d9   :  { %v8549_v6 = vcombine.low %v2348_v60, %v12683_v7  ;;  %v2849_v32 = vor.u32 %v2848_v2, %v2844_v48  ;;  %v12827_v60 = vcombine.low %v2356_v8, %v12729_v11 }
 0x3da   :  { %5479 = vmatmul.mubr.bf16.gmra.mrb[148].mxu0 %v12727_v51  ;;  %v2842_v51 = vsel %vm2746_vm9, %v2837_v10, %v2841_v39  ;;  %v2899_v39 = vshll.u32 %v12717_v55, 16 }
 0x3db   :  { %5486 = vmatprep.mubr.bf16.mxu0 %v2830_v43  ;;  %v2856_v7 = vshrl.u32 %v8549_v6, 16 }
 0x3df   :  { %4885 = vmatmul.mubr.bf16.gmra.mrb[84].mxu1 %v12446_v36  ;;  %v2858_v36 = vshll.u32 %v8549_v6, 16 }
 0x3e0   :  { %4892 = vmatprep.mubr.bf16.mxu1 %v12522_v34  ;;  %v2853_v34 = vrot.slane %v2851_v57, 1  ;;  %v2901_v57 = vrot.slane %v2899_v39, 1 }
 0x3e1   :  { %v2860_v13 = vrot.slane %v2858_v36, 1 }
 0x3e2   :  { %5487 = vmatmul.mubr.bf16.gmra.mrb[152].mxu0 %v8546_v62  ;;  %v2854_v62 = vsel %vm2746_vm9, %v2849_v32, %v2853_v34 }
 0x3e3   :  { %5494 = vmatprep.mubr.bf16.mxu0 %v2842_v51  ;;  %v2861_v4 = vor.u32 %v2860_v13, %v2856_v7  ;;  %v2911_v13 = vshll.u32 %v12731_v35, 16 }
 0x3e5   :  { %v2913_v20 = vrot.slane %v2911_v13, 1 }
 0x3e7   :  { %4893 = vmatmul.mubr.bf16.gmra.mrb[88].mxu1 %v12448_v25  ;;  %v2870_v25 = vshll.u32 %v8550_v0, 16 }
 0x3e8   :  { %4900 = vmatprep.mubr.bf16.mxu1 %v12535_v56  ;;  %v2865_v56 = vrot.slane %v2863_v27, 1 }
 0x3e9   :  { %v2872_v49 = vrot.slane %v2870_v25, 1 }
 0x3ea   :  { %5495 = vmatmul.mubr.bf16.gmra.mrb[156].mxu0 %v8547_v26  ;;  %v2866_v26 = vsel %vm2746_vm9, %v2861_v4, %v2865_v56 }
 0x3eb   :  { %5502 = vmatprep.mubr.bf16.mxu0 %v2854_v62 }
 0x3ef   :  { %4901 = vmatmul.mubr.bf16.gmra.mrb[92].mxu1 %v12473_v14  ;;  %v2873_v14 = vor.u32 %v2872_v49, %v2868_v23 }
 0x3f0   :  { %4908 = vmatprep.mubr.bf16.mxu1 %v12553_v54  ;;  %v2354_v54 = vld [vmem:[#allocation2 + $0x90] sm:$0xf] }
 0x3f1   :  { %v2878_v43 = vsel %vm2746_vm9, %v2873_v14, %v2877_v63  ;;  %v8552_v46 = vcombine.low %v2354_v54, %v12715_v59  ;;  %v2923_v54 = vshll.u32 %v12742_v21, 16  ;;  %v2362_v63 = vld [vmem:[#allocation2 + $0xd8] sm:$0xf] }
 0x3f2   :  { %5503 = vmatmul.mubr.bf16.gmra.mrb[160].mxu0 %v8548_v16  ;;  %v2880_v16 = vshrl.u32 %v8551_v31, 16 }
 0x3f3   :  { %5510 = vmatprep.mubr.bf16.mxu0 %v2866_v26  ;;  %v2892_v59 = vshrl.u32 %v8552_v46, 16  ;;  %v9735_v26 = vld [vmem:[#allocation8 + $0x218] sm:$0xff]   ;;  %v2925_v21 = vrot.slane %v2923_v54, 1  ;;  %v9858_v54 = vld [vmem:[#allocation2 + $0x4] sm:$0xf] }
 0x3f4   :  { %v2885_v3 = vor.u32 %v2884_v9, %v2880_v16  ;;  %9370 = vmatprep.subr.bf16.mxu0 %v9735_v26 }
 0x3f5   :  { %9371 = vmatpush3.bf16.msra.mxu0 %v9735_v26  ;;  %v2368_v26 = vld [vmem:[#allocation2 + $0xfc] sm:$0xf] }
 0x3f7   :  { %4909 = vmatmul.mubr.bf16.gmra.mrb[96].mxu1 %v12482_v1  ;;  %v2894_v1 = vshll.u32 %v8552_v46, 16 }
 0x3f8   :  { %4916 = vmatprep.mubr.bf16.mxu1 %v12567_v29  ;;  %v2889_v29 = vrot.slane %v2887_v38, 1 }
 0x3f9   :  { %v2896_v22 = vrot.slane %v2894_v1, 1 }
 0x3fa   :  { %5511 = vmatmul.mubr.bf16.gmra.mrb[164].mxu0 %v8549_v6  ;;  %v2890_v10 = vsel %vm2746_vm9, %v2885_v3, %v2889_v29  ;;  %v2358_v6 = vld [vmem:[#allocation2 + $0xa8] sm:$0xf] }
 0x3fb   :  { %5518 = vmatprep.mubr.bf16.mxu0 %v2878_v43  ;;  %v2897_v51 = vor.u32 %v2896_v22, %v2892_v59  ;;  %v12835_v55 = vcombine.low %v2358_v6, %v12740_v45 }
 0x3fd   :  { %v2902_v36 = vsel %vm2746_vm9, %v2897_v51, %v2901_v57  ;;  %v2918_v45 = vshll.u32 %v12835_v55, 16  ;;  %v2916_v44 = vshrl.u32 %v12835_v55, 16  ;;  %v12882_v51 = vld [vmem:[#allocation2 + $0xe0] ss:$0 sps:$4 sm:$0x11]  }
 0x3ff   :  { %4917 = vmatmul.mubr.bf16.gmra.mrb[100].mxu1 %v12492_v42  ;;  %v2920_v23 = vrot.slane %v2918_v45, 1  ;;  %v2366_v45 = vld [vmem:[#allocation2 + $0xf0] sm:$0xf] }
 0x400   :  { %4924 = vmatprep.mubr.bf16.mxu1 %v12585_v53  ;;  %v2906_v53 = vshll.u32 %v12827_v60, 16 }
 0x401   :  { %v2921_v16 = vor.u32 %v2920_v23, %v2916_v44  ;;  %v12909_v23 = vld [vmem:[#allocation2 + $0x100] sm:$0xf] }
 0x402   :  { %5519 = vmatmul.mubr.bf16.gmra.mrb[168].mxu0 %v8550_v0  ;;  %v2908_v58 = vrot.slane %v2906_v53, 1  ;;  %15842 = vst [vmem:[#allocation25_spill] sm:$0xff] %v12909_v23 }
 0x403   :  { %5526 = vmatprep.mubr.bf16.mxu0 %v2890_v10 }
 0x405   :  { %v9222_v52 = vpop.f32.mrb[64].mxu0 }
 0x406   :  { %v5007_v42 = vpop.f32.mrb[65].mxu0 }
 0x407   :  { %4925 = vmatmul.mubr.bf16.gmra.mrb[104].mxu1 %v12525_v18  ;;  %v9223_v2 = vpop.f32.mrb[66].mxu0 }
 0x408   :  { %4932 = vmatprep.mubr.bf16.mxu1 %v12595_v17  ;;  %v5010_v48 = vpop.f32.mrb[67].mxu0  ;;  %v2904_v17 = vshrl.u32 %v12827_v60, 16 }
 0x40a   :  { %v4718_v32 = vpop.f32.mrb[0].mxu1  ;;  %5527 = vmatmul.mubr.bf16.gmra.mrb[172].mxu0 %v8551_v31  ;;  %v2909_v4 = vor.u32 %v2908_v58, %v2904_v17  ;;  %v2947_v17 = vshll.u32 %v12882_v51, 16 }
 0x40b   :  { %v4720_v11 = vpop.f32.mrb[1].mxu1  ;;  %v12837_v18 = vadd.f32 %v5007_v42, %v4718_v32  ;;  %5534 = vmatprep.mubr.bf16.mxu0 %v2902_v36  ;;  %v2364_v32 = vld [vmem:[#allocation2 + $0xe4] sm:$0xf] }
 0x40c   :  { %v4721_v34 = vpop.f32.mrb[2].mxu1  ;;  %v2914_v31 = vsel %vm2746_vm9, %v2909_v4, %v2913_v20  ;;  %v15839_v11 = vld [vmem:[#allocation21_spill] sm:$0xff]  ;;  %v2426_v4 = vld [vmem:[#allocation2] sm:$0xe]  ;;  %v2949_v44 = vrot.slane %v2947_v17, 1 }
 0x40d   :  { %15832 = vst [vmem:[#allocation43_spill] sm:$0xff] %v12837_v18  ;;  %v4723_v62 = vpop.f32.mrb[3].mxu1  ;;  %v12841_v0 = vadd.f32 %v5010_v48, %v4721_v34  ;;  %v12843_v7 = vpop.f32.mrb[68].mxu0 }
 0x40e   :  { %v5023_v27 = vpop.f32.mrb[69].mxu0 }
 0x40f   :  { %15833 = vst [vmem:[#allocation46_spill] sm:$0xff] %v12841_v0  ;;  %4933 = vmatmul.mubr.bf16.gmra.mrb[108].mxu1 %v12545_v37  ;;  %v12848_v25 = vpop.f32.mrb[70].mxu0  ;;  %v12852_v37 = vcombine.low %v2360_v50, %v12759_v47  ;;  %v12902_v50 = vld [vmem:[#allocation2 + $0xf4] sm:$0xf] }
 0x410   :  { %4940 = vmatprep.mubr.bf16.mxu1 %v12605_v19  ;;  %v5026_v56 = vpop.f32.mrb[71].mxu0  ;;  %15840 = vst [vmem:[#allocation20_spill] sm:$0xff] %v12902_v50  ;;  %v9676_v0 = vld [vmem:[#allocation8 + $0x180] sm:$0xff]  }
 0x411   :  { %v2930_v38 = vshll.u32 %v12852_v37, 16  ;;  %v2928_v42 = vshrl.u32 %v12852_v37, 16 }
 0x412   :  { %v4726_v49 = vpop.f32.mrb[4].mxu1  ;;  %5535 = vmatmul.mubr.bf16.gmra.mrb[176].mxu0 %v8552_v46  ;;  %v12862_v46 = vld [vmem:[#allocation2 + $0xdc] sm:$0xf] }
 0x413   :  { %v4728_v35 = vpop.f32.mrb[5].mxu1  ;;  %v12854_v28 = vadd.f32 %v9222_v52, %v4726_v49  ;;  %5542 = vmatprep.mubr.bf16.mxu0 %v2914_v31  ;;  %v12874_v8 = vcombine.low %v2362_v63, %v12862_v46  ;;  %v2932_v22 = vrot.slane %v2930_v38, 1  ;;  %v8604_v63 = vcombine.low %v2426_v4, %v9858_v54 }
 0x414   :  { %v4729_v14 = vpop.f32.mrb[6].mxu1  ;;  %v9746_v35 = vld [vmem:[#allocation8 + $0x220] sm:$0xff]  }
 0x415   :  { %15834 = vst [vmem:[#allocation45_spill] sm:$0xff] %v12854_v28  ;;  %v4731_v19 = vpop.f32.mrb[7].mxu1  ;;  %v12858_v43 = vadd.f32 %v9223_v2, %v4729_v14  ;;  %v12860_v9 = vpop.f32.mrb[72].mxu0  ;;  %v2942_v53 = vshll.u32 %v12874_v8, 16  ;;  %v2933_v57 = vor.u32 %v2932_v22, %v2928_v42  ;;  %v2940_v34 = vshrl.u32 %v12874_v8, 16  ;;  %9372 = vmatprep.subr.bf16.mxu0 %v9746_v35 }
 0x416   :  { %v12865_v47 = vpop.f32.mrb[73].mxu0  ;;  %9373 = vmatpush3.bf16.msra.mxu0 %v9746_v35  ;;  %v2427_v22 = vld [vmem:[#allocation2 + $0xc] sm:$0xe]  ;;  %v12928_v42 = vld [vmem:[#allocation2 + $0xf8] ss:$0 sps:$4 sm:$0x11]  }
 0x417   :  { %15835 = vst [vmem:[#allocation23_spill] sm:$0xff] %v12858_v43  ;;  %4941 = vmatmul.mubr.bf16.gmra.mrb[112].mxu1 %v12547_v24  ;;  %v12869_v3 = vpop.f32.mrb[74].mxu0  ;;  %v2926_v24 = vsel %vm2746_vm9, %v2921_v16, %v2925_v21  ;;  %v2944_v62 = vrot.slane %v2942_v53, 1  ;;  %v12911_v16 = vld [vmem:[#allocation2 + $0x10c] sm:$0xf]  ;;  %15847 = vst [vmem:[#allocation15_spill] sm:$0xff] %v12928_v42  ;;  %v12931_v53 = vcombine.low %v2368_v26, %v12909_v23 }
 0x418   :  { %4948 = vmatprep.mubr.bf16.mxu1 %v12617_v5  ;;  %v12871_v1 = vpop.f32.mrb[75].mxu0  ;;  %v2935_v5 = vshll.u32 %v12751_v15, 16  ;;  %15843 = vst [vmem:[#allocation31_spill] sm:$0xff] %v12911_v16  ;;  %v12945_v26 = vld [vmem:[#allocation2 + $0x110] ss:$0 sps:$4 sm:$0x11]  }
 0x419   :  { %v2945_v19 = vor.u32 %v2944_v62, %v2940_v34  ;;  %v12940_v62 = vld [vmem:[#allocation2 + $0x104] ss:$0 sps:$4 sm:$0x11]   ;;  %15850 = vst [vmem:[#allocation29_spill] sm:$0xff] %v12945_v26 }
 0x41a   :  { %v4734_v29 = vpop.f32.mrb[8].mxu1  ;;  %5543 = vmatmul.mubr.bf16.gmra.mrb[180].mxu0 %v12827_v60  ;;  %v15838_v60 = vld [vmem:[#allocation28_spill] sm:$0xff]  ;;  %v2937_v58 = vrot.slane %v2935_v5, 1  ;;  %v9751_v5 = vld [vmem:[#allocation8 + $0x228] sm:$0xff]   ;;  %15849 = vst [vmem:[#allocation14_spill] sm:$0xff] %v12940_v62 }
 0x41b   :  { %v4736_v10 = vpop.f32.mrb[9].mxu1  ;;  %v12878_v59 = vadd.f32 %v5023_v27, %v4734_v29  ;;  %5550 = vmatprep.mubr.bf16.mxu0 %v2926_v24  ;;  %v12900_v27 = vcombine.low %v2364_v32, %v12771_v12  ;;  %v2370_v12 = vld [vmem:[#allocation2 + $0x108] sm:$0xf]  ;;  %v2373_v29 = vld [vmem:[#allocation2 + $0x118] sm:$0xf]  ;;  %v2950_v32 = vsel %vm2746_vm9, %v2945_v19, %v2949_v44  ;;  %9374 = vmatprep.subr.bf16.mxu0 %v9751_v5  ;;  %v9753_v44 = vld [vmem:[#allocation8 + $0x230] sm:$0xff]  }
 0x41c   :  { %v4737_v39 = vpop.f32.mrb[10].mxu1  ;;  %v2938_v20 = vsel %vm2746_vm9, %v2933_v57, %v2937_v58  ;;  %v15845_v10 = vld [vmem:[#allocation30_spill] sm:$0xff]  ;;  %v15848_v58 = vld [vmem:[#allocation16_spill] sm:$0xff]  ;;  %9375 = vmatpush3.bf16.msra.mxu0 %v9751_v5 }
 0x41d   :  { %15836 = vst [vmem:[#allocation47_spill] sm:$0xff] %v12878_v59  ;;  %v4739_v52 = vpop.f32.mrb[11].mxu1  ;;  %v12885_v2 = vadd.f32 %v5026_v56, %v4737_v39  ;;  %v12887_v6 = vpop.f32.mrb[76].mxu0  ;;  %v2954_v21 = vshll.u32 %v12900_v27, 16  ;;  %v12923_v39 = vcombine.low %v2366_v45, %v12902_v50  ;;  %v3261_v34 = vrot.slane %v15848_v58, 1  ;;  %9376 = vmatprep.subr.bf16.mxu0 %v9753_v44 }
 0x41e   :  { %v12890_v48 = vpop.f32.mrb[77].mxu0  ;;  %v15846_v52 = vld [vmem:[#allocation32_spill] sm:$0xff]  ;;  %v2959_v45 = vshll.u32 %v12769_v30, 16  ;;  %v2952_v30 = vshrl.u32 %v12900_v27, 16 }
 0x41f   :  { %15837 = vst [vmem:[#allocation22_spill] sm:$0xff] %v12885_v2  ;;  %4949 = vmatmul.mubr.bf16.gmra.mrb[116].mxu1 %v15838_v60  ;;  %v12893_v15 = vpop.f32.mrb[78].mxu0  ;;  %v12934_v60 = vcombine.low %v2370_v12, %v12911_v16  ;;  %v2956_v4 = vrot.slane %v2954_v21, 1  ;;  %v12949_v12 = vld [vmem:[#allocation2 + $0x11c] ss:$0 sps:$4 sm:$0x11]  }
 0x420   :  { %4956 = vmatprep.mubr.bf16.mxu1 %v15839_v11  ;;  %v12895_v36 = vpop.f32.mrb[79].mxu0  ;;  %v3260_v11 = vrot.slane %v8604_v63, 1  ;;  %15851 = vst [vmem:[#allocation28_spill] sm:$0xff] %v12949_v12  ;;  %v2978_v63 = vshll.u32 %v12931_v53, 16  ;;  %9377 = vmatpush3.bf16.msra.mxu0 %v9753_v44 }
 0x421   :  { %v12979_v44 = vld [vmem:[#allocation2 + $0x128] ss:$0 sps:$4 sm:$0x11]  }
 0x422   :  { %v4742_v13 = vpop.f32.mrb[12].mxu1  ;;  %5551 = vmatmul.mubr.bf16.gmra.mrb[184].mxu0 %v12835_v55  ;;  %v2372_v55 = vld [vmem:[#allocation2 + $0x114] sm:$0xf] }
 0x423   :  { %v4744_v56 = vpop.f32.mrb[13].mxu1  ;;  %v12907_v49 = vadd.f32 %v12843_v7, %v4742_v13  ;;  %5558 = vmatprep.mubr.bf16.mxu0 %v2938_v20  ;;  %v12942_v17 = vcombine.low %v2372_v55, %v2373_v29  ;;  %v2990_v55 = vshll.u32 %v12934_v60, 16  ;;  %v2971_v29 = vshll.u32 %v12928_v42, 16 }
 0x424   :  { %v4745_v31 = vpop.f32.mrb[14].mxu1  ;;  %v9859_v56 = vld [vmem:[#allocation2 + $0x10] sm:$0xf] }
 0x425   :  { %15841 = vst [vmem:[#allocation24_spill] sm:$0xff] %v12907_v49  ;;  %v4747_v14 = vpop.f32.mrb[15].mxu1  ;;  %v12914_v38 = vadd.f32 %v12848_v25, %v4745_v31  ;;  %v12916_v7 = vpop.f32.mrb[80].mxu0  ;;  %v8605_v20 = vcombine.low %v2427_v22, %v9859_v56  ;;  %v2966_v31 = vshll.u32 %v12923_v39, 16  ;;  %v12960_v22 = vld [vmem:[#allocation2 + $0x124] sm:$0xf] }
 0x426   :  { %v12920_v24 = vpop.f32.mrb[81].mxu0  ;;  %v2374_v14 = vld [vmem:[#allocation2 + $0x120] sm:$0xf]  ;;  %15853 = vst [vmem:[#allocation30_spill] sm:$0xff] %v12960_v22 }
 0x427   :  { %15844 = vst [vmem:[#allocation26_spill] sm:$0xff] %v12914_v38  ;;  %4957 = vmatmul.mubr.bf16.gmra.mrb[120].mxu1 %v15845_v10  ;;  %v12926_v25 = vpop.f32.mrb[82].mxu0  ;;  %v3002_v10 = vshll.u32 %v12942_v17, 16  ;;  %v3263_v58 = vrot.slane %v8605_v20, 1  ;;  %v12977_v20 = vcombine.low %v2374_v14, %v12960_v22  ;;  %v3007_v38 = vshll.u32 %v12949_v12, 16 }
 0x428   :  { %4964 = vmatprep.mubr.bf16.mxu1 %v15846_v52  ;;  %v12936_v57 = vpop.f32.mrb[83].mxu0  ;;  %v2957_v52 = vor.u32 %v2956_v4, %v2952_v30  ;;  %v2992_v4 = vrot.slane %v2990_v55, 1  ;;  %v2988_v55 = vshrl.u32 %v12934_v60, 16  ;;  %v6018_v14 = vld [vmem:[#allocation2 + $0xf4] sm:$0xf] }
 0x429   :  { %v2376_v12 = vld [vmem:[#allocation2 + $0x12c] sm:$0xf]  ;;  %v12993_v22 = vld [vmem:[#allocation2 + $0x130] sm:$0xf] }
 0x42a   :  { %v4750_v13 = vpop.f32.mrb[16].mxu1  ;;  %5559 = vmatmul.mubr.bf16.gmra.mrb[188].mxu0 %v12852_v37  ;;  %v3262_v37 = vsel %vm3259_vm8, %v3260_v11, %v3261_v34  ;;  %v15856_v11 = vld [vmem:[#allocation33_spill] sm:$0xff] }
 0x42b   :  { %v4752_v35 = vpop.f32.mrb[17].mxu1  ;;  %v12952_v19 = vadd.f32 %v12865_v47, %v4750_v13  ;;  %5566 = vmatprep.mubr.bf16.mxu0 %v2950_v32  ;;  %v2961_v32 = vrot.slane %v2959_v45, 1  ;;  %v15855_v13 = vld [vmem:[#allocation35_spill] sm:$0xff]  ;;  %v3264_v34 = vrot.slane %v15856_v11, 1  ;;  %v2995_v45 = vshll.u32 %v12945_v26, 16 }
 0x42c   :  { %v4753_v54 = vpop.f32.mrb[18].mxu1  ;;  %v2964_v35 = vshrl.u32 %v12923_v39, 16  ;;  %v3004_v11 = vrot.slane %v3002_v10, 1  ;;  %15858 = vst [vmem:[#allocation35_spill] sm:$0xff] %v12993_v22 }
 0x42d   :  { %15852 = vst [vmem:[#allocation21_spill] sm:$0xff] %v12952_v19  ;;  %v4755_v21 = vpop.f32.mrb[19].mxu1  ;;  %v12963_v47 = vadd.f32 %v12871_v1, %v4753_v54  ;;  %v12965_v5 = vpop.f32.mrb[84].mxu0  ;;  %v2983_v19 = vshll.u32 %v12940_v62, 16  ;;  %v9759_v1 = vld [vmem:[#allocation8 + $0x238] sm:$0xff]   ;;  %v15863_v62 = vld [vmem:[#allocation13_spill] sm:$0xff] }
 0x42e   :  { %v12968_v56 = vpop.f32.mrb[85].mxu0  ;;  %v2968_v21 = vrot.slane %v2966_v31, 1  ;;  %v2976_v31 = vshrl.u32 %v12931_v53, 16  ;;  %9378 = vmatprep.subr.bf16.mxu0 %v9759_v1 }
 0x42f   :  { %15854 = vst [vmem:[#allocation32_spill] sm:$0xff] %v12963_v47  ;;  %4965 = vmatmul.mubr.bf16.gmra.mrb[124].mxu1 %v15855_v13  ;;  %v12973_v54 = vpop.f32.mrb[86].mxu0  ;;  %v2980_v47 = vrot.slane %v2978_v63, 1  ;;  %v2973_v13 = vrot.slane %v2971_v29, 1  ;;  %v2962_v63 = vsel %vm2746_vm9, %v2957_v52, %v2961_v32  ;;  %9379 = vmatpush3.bf16.msra.mxu0 %v9759_v1  ;;  %v2985_v43 = vrot.slane %v2983_v19, 1 }
 0x430   :  { %9300 = vmatprep.mubr.bf16.mxu1 %v3262_v37  ;;  %v12981_v30 = vpop.f32.mrb[87].mxu0  ;;  %v6017_v37 = vld [vmem:[#allocation2 + $0xf0] sm:$0xf]  ;;  %v2969_v59 = vor.u32 %v2968_v21, %v2964_v35  ;;  %v3000_v29 = vshrl.u32 %v12942_v17, 16  ;;  %v2993_v52 = vor.u32 %v2992_v4, %v2988_v55  ;;  %v2997_v32 = vrot.slane %v2995_v45, 1 }
 0x431   :  { %v2981_v18 = vor.u32 %v2980_v47, %v2976_v31  ;;  %v3014_v1 = vshll.u32 %v12977_v20, 16  ;;  %v3009_v35 = vrot.slane %v3007_v38, 1  ;;  %v12998_v21 = vcombine.low %v6017_v37, %v6018_v14  ;;  %v6021_v47 = vld [vmem:[#allocation2 + $0x108] sm:$0xf]  ;;  %v6022_v4 = vld [vmem:[#allocation2 + $0x10c] sm:$0xf] }
 0x432   :  { %v4758_v49 = vpop.f32.mrb[20].mxu1  ;;  %5567 = vmatmul.mubr.bf16.gmra.mrb[192].mxu0 %v12874_v8  ;;  %v3005_v8 = vor.u32 %v3004_v11, %v3000_v29  ;;  %v6025_v45 = vld [vmem:[#allocation2 + $0x120] sm:$0xf]  ;;  %v6026_v31 = vld [vmem:[#allocation2 + $0x124] sm:$0xf]  ;;  %v3265_v55 = vsel %vm3259_vm8, %v3263_v58, %v3264_v34  ;;  %v2974_v58 = vsel %vm2746_vm9, %v2969_v59, %v2973_v13  ;;  %v15864_v37 = vmov 0  }
 0x433   :  { %v4760_v2 = vpop.f32.mrb[21].mxu1  ;;  %v12990_v10 = vadd.f32 %v12860_v9, %v4758_v49  ;;  %5574 = vmatprep.mubr.bf16.mxu0 %v2962_v63  ;;  %15860 = vst [vmem:[#allocation48_spill] sm:$0xff] %v12998_v21  ;;  %v13000_v9 = vld [vmem:[#allocation2 + $0xf8] ss:$0 sps:$4 sm:$0x11]   ;;  %v13016_v34 = vsel %vm2746_vm9, %v2981_v18, %v2985_v43  ;;  %v13018_v38 = vrot.slane %v3014_v1, 1  ;;  %v13024_v23 = vsel %vm2746_vm9, %v2993_v52, %v2997_v32 }
 0x434   :  { %v4761_v28 = vpop.f32.mrb[22].mxu1  ;;  %v13002_v49 = vld [vmem:[#allocation2 + $0x104] ss:$0 sps:$4 sm:$0x11]   ;;  %v6029_v11 = vld [vmem:[#allocation2 + $0x138] sm:$0xf]  ;;  %v13035_v42 = vcombine.low %v6025_v45, %v6026_v31 }
 0x435   :  { %15857 = vst [vmem:[#allocation16_spill] sm:$0xff] %v12990_v10  ;;  %v4763_v2 = vpop.f32.mrb[23].mxu1  ;;  %v12996_v19 = vadd.f32 %v12869_v3, %v4761_v28  ;;  %v13004_v63 = vpop.f32.mrb[88].mxu0  ;;  %v6030_v28 = vld [vmem:[#allocation2 + $0x13c] sm:$0xf]  ;;  %v6596_v43 = vshll.u32 %v12998_v21, 16 }
 0x436   :  { %15861 = vst [vmem:[#allocation49_spill] sm:$0xff] %v13004_v63  ;;  %v9681_v2 = vld [vmem:[#allocation8 + $0x188] sm:$0xff]   ;;  %v13008_v3 = vpop.f32.mrb[89].mxu0  ;;  %v6020_v14 = vld [vmem:[#allocation2 + $0x100] sm:$0xf]  ;;  %15866 = vst [vmem:[#allocation51_spill] sm:$0xff] %v13035_v42  ;;  %v13037_v40 = vcombine.low %v6029_v11, %v6030_v28 }
 0x437   :  { %15859 = vst [vmem:[#allocation33_spill] sm:$0xff] %v12996_v19  ;;  %9301 = vmatmul.mubr.bf16.vlgmr.msra.gmra.mrb[128].mxu1 %v3265_v55  ;;  %v6033_v29 = vld [vmem:[#allocation2 + $0x150] sm:$0xf]  ;;  %v6034_v19 = vld [vmem:[#allocation2 + $0x154] sm:$0xf]  ;;  %v13011_v26 = vpop.f32.mrb[90].mxu0 }
 0x438   :  { %v6037_v10 = vld [vmem:[#allocation2 + $0x168] sm:$0xf]  ;;  %7234 = vmatpush1.bf16.msra.mxu1 %v9676_v0  ;;  %15862 = vst [vmem:[#allocation50_spill] sm:$0xff] %v13011_v26  ;;  %9304 = vmatprep.mubr.bf16.mxu1 %v15863_v62  ;;  %v6041_v55 = vld [vmem:[#allocation2 + $0x180] sm:$0xf]  ;;  %v13020_v16 = vpop.f32.mrb[91].mxu0  ;;  %v13027_v0 = vsel %vm2746_vm9, %v3005_v8, %v3009_v35  ;;  %v13030_v62 = vcombine.low %v2376_v12, %v12993_v22 }
 0x439   :  { %7235 = vmatprep.subr.bf16.mxu1 %v15864_v37  ;;  %v9807_v59 = vld [vmem:[#allocation2 + $0x110] ss:$0 sps:$4 sm:$0x11]   ;;  %v6042_v18 = vld [vmem:[#allocation2 + $0x184] sm:$0xf]  ;;  %v13033_v26 = vcombine.low %v6021_v47, %v6022_v4  ;;  %15867 = vst [vmem:[#allocation52_spill] sm:$0xff] %v13037_v40  ;;  %v13048_v11 = vcombine.low %v6033_v29, %v6034_v19  ;;  %v13050_v28 = vcombine.low %v6037_v10, %v6038_v33 }
 0x43a   :  { %v4766_v13 = vpop.f32.mrb[24].mxu1  ;;  %v9686_v1 = vld [vmem:[#allocation8 + $0x190] sm:$0xff]   ;;  %v6024_v63 = vld [vmem:[#allocation2 + $0x118] sm:$0xf]  ;;  %v6046_v32 = vld [vmem:[#allocation2 + $0x19c] sm:$0xf]  ;;  %5575 = vmatmul.mubr.bf16.gmra.mrb[196].mxu0 %v12900_v27 }
 0x43b   :  { %15865 = vst [vmem:[#allocation13_spill] sm:$0xff] %v13033_v26  ;;  %v6045_v52 = vld [vmem:[#allocation2 + $0x198] sm:$0xf]  ;;  %v6594_v8 = vshrl.u32 %v12998_v21, 16  ;;  %v4768_v35 = vpop.f32.mrb[25].mxu1  ;;  %v13042_v12 = vadd.f32 %v12890_v48, %v4766_v13  ;;  %v6598_v22 = vrot.slane %v6596_v43, 1  ;;  %5582 = vmatprep.mubr.bf16.mxu0 %v2974_v58 }
 0x43c   :  { %v6601_v50 = vshll.u32 %v13000_v9, 16  ;;  %v6019_v47 = vld [vmem:[#allocation2 + $0xfc] sm:$0xf]  ;;  %v6613_v4 = vshll.u32 %v13002_v49, 16  ;;  %v4769_v45 = vpop.f32.mrb[26].mxu1  ;;  %7236 = vmatpush1.bf16.msra.mxu1 %v9681_v2  ;;  %15869 = vst [vmem:[#allocation54_spill] sm:$0xff] %v13048_v11  ;;  %v13058_v49 = vcombine.low %v6041_v55, %v6042_v18  ;;  %v13062_v33 = vcombine.low %v6045_v52, %v6046_v32 }
 0x43d   :  { %15868 = vst [vmem:[#allocation53_spill] sm:$0xff] %v13042_v12  ;;  %v13046_v31 = vld [vmem:[#allocation2 + $0x11c] ss:$0 sps:$4 sm:$0x11]   ;;  %15870 = vst [vmem:[#allocation55_spill] sm:$0xff] %v13050_v28  ;;  %v13052_v35 = vcombine.low %v6019_v47, %v6020_v14  ;;  %v4771_v48 = vpop.f32.mrb[27].mxu1  ;;  %7237 = vmatprep.subr.bf16.mxu1 %v15864_v37  ;;  %v13056_v9 = vadd.f32 %v12895_v36, %v4769_v45  ;;  %v6599_v58 = vor.u32 %v6598_v22, %v6594_v8 }
 0x43e   :  { %v6023_v27 = vld [vmem:[#allocation2 + $0x114] sm:$0xf]  ;;  %v9813_v43 = vld [vmem:[#allocation2 + $0x128] ss:$0 sps:$4 sm:$0x11]   ;;  %15873 = vst [vmem:[#allocation58_spill] sm:$0xff] %v13058_v49 }
 0x43f   :  { %15871 = vst [vmem:[#allocation56_spill] sm:$0xff] %v13052_v35  ;;  %15872 = vst [vmem:[#allocation57_spill] sm:$0xff] %v13056_v9  ;;  %v6603_v2 = vrot.slane %v6601_v50, 1  ;;  %v13060_v13 = vpop.f32.mrb[92].mxu0  ;;  %v6028_v19 = vld [vmem:[#allocation2 + $0x130] sm:$0xf]  ;;  %v13073_v18 = vcombine.low %v6023_v27, %v6024_v63 }
 0x440   :  { %15874 = vst [vmem:[#allocation59_spill] sm:$0xff] %v13060_v13  ;;  %v9815_v29 = vld [vmem:[#allocation2 + $0x134] ss:$0 sps:$4 sm:$0x11]   ;;  %15875 = vst [vmem:[#allocation60_spill] sm:$0xff] %v13062_v33  ;;  %v6606_v10 = vshrl.u32 %v13052_v35, 16  ;;  %7238 = vmatpush1.bf16.msra.mxu1 %v9686_v1 }
 0x441   :  { %v6608_v14 = vshll.u32 %v13052_v35, 16  ;;  %v6615_v47 = vrot.slane %v6613_v4, 1  ;;  %v13066_v48 = vpop.f32.mrb[93].mxu0  ;;  %v15876_v36 = vld [vmem:[#allocation27_spill] sm:$0xff]  ;;  %v13070_v55 = vsel %vm2746_vm9, %v6599_v58, %v6603_v2  ;;  %v6620_v50 = vshll.u32 %v13033_v26, 16  ;;  %15878 = vst [vmem:[#allocation61_spill] sm:$0xff] %v13073_v18  ;;  %7239 = vmatprep.subr.bf16.mxu1 %v15864_v37 }
 0x442   :  { %9305 = vmatmul.mubr.bf16.gmra.mrb[132].mxu1 %v15876_v36  ;;  %15877 = vst [vmem:[#allocation27_spill] sm:$0xff] %v13070_v55  ;;  %v6625_v22 = vshll.u32 %v9807_v59, 16  ;;  %v6027_v8 = vld [vmem:[#allocation2 + $0x12c] sm:$0xf]  ;;  %v13075_v52 = vpop.f32.mrb[94].mxu0  ;;  %v15880_v32 = vld [vmem:[#allocation34_spill] sm:$0xff]  ;;  %5583 = vmatmul.mubr.bf16.gmra.mrb[200].mxu0 %v12923_v39 }
 0x443   :  { %15879 = vst [vmem:[#allocation62_spill] sm:$0xff] %v13075_v52  ;;  %9308 = vmatprep.mubr.bf16.mxu1 %v15880_v32  ;;  %v9691_v45 = vld [vmem:[#allocation8 + $0x198] sm:$0xff]   ;;  %v6610_v4 = vrot.slane %v6608_v14, 1  ;;  %v6618_v35 = vshrl.u32 %v13033_v26, 16  ;;  %v6637_v36 = vshll.u32 %v13046_v31, 16  ;;  %v6644_v58 = vshll.u32 %v13035_v42, 16  ;;  %5590 = vmatprep.mubr.bf16.mxu0 %v13016_v34 }
 0x444   :  { %v13081_v2 = vpop.f32.mrb[95].mxu0  ;;  %v9818_v63 = vld [vmem:[#allocation2 + $0x140] ss:$0 sps:$4 sm:$0x11]   ;;  %v6622_v59 = vrot.slane %v6620_v50, 1  ;;  %v6627_v27 = vrot.slane %v6625_v22, 1  ;;  %7240 = vmatpush1.bf16.msra.mxu1 %v9691_v45 }
 0x445   :  { %15881 = vst [vmem:[#allocation34_spill] sm:$0xff] %v13081_v2  ;;  %v6632_v21 = vshll.u32 %v13073_v18, 16  ;;  %v6642_v32 = vshrl.u32 %v13035_v42, 16  ;;  %v4774_v1 = vpop.f32.mrb[28].mxu1  ;;  %v6032_v55 = vld [vmem:[#allocation2 + $0x148] sm:$0xf]  ;;  %v6611_v14 = vor.u32 %v6610_v4, %v6606_v10  ;;  %v13093_v2 = vcombine.low %v6027_v8, %v6028_v19  ;;  %7241 = vmatprep.subr.bf16.mxu1 %v15864_v37 }
 0x446   :  { %v6630_v26 = vshrl.u32 %v13073_v18, 16  ;;  %v6646_v9 = vrot.slane %v6644_v58, 1  ;;  %v6649_v31 = vshll.u32 %v9813_v43, 16  ;;  %v4776_v12 = vpop.f32.mrb[29].mxu1  ;;  %v13089_v52 = vadd.f32 %v12887_v6, %v4774_v1  ;;  %v9697_v10 = vld [vmem:[#allocation8 + $0x1a0] sm:$0xff]   ;;  %v13106_v45 = vpop.f32.mrb[96].mxu0 }
 0x447   :  { %v13091_v13 = vld [vmem:[#allocation2 + $0x14c] ss:$0 sps:$4 sm:$0x11]   ;;  %v6623_v50 = vor.u32 %v6622_v59, %v6618_v35  ;;  %v6634_v22 = vrot.slane %v6632_v21, 1  ;;  %15882 = vst [vmem:[#allocation63_spill] sm:$0xff] %v13093_v2  ;;  %v4777_v42 = vpop.f32.mrb[30].mxu1  ;;  %v13097_v4 = vsel %vm2746_vm9, %v6611_v14, %v6615_v47 }
 0x448   :  { %15883 = vst [vmem:[#allocation64_spill] sm:$0xff] %v13097_v4  ;;  %v6647_v12 = vor.u32 %v6646_v9, %v6642_v32  ;;  %v6651_v43 = vrot.slane %v6649_v31, 1  ;;  %v6661_v39 = vshll.u32 %v9815_v29, 16  ;;  %v6031_v58 = vld [vmem:[#allocation2 + $0x144] sm:$0xf]  ;;  %v4779_v6 = vpop.f32.mrb[31].mxu1  ;;  %v13101_v35 = vadd.f32 %v12893_v15, %v4777_v42  ;;  %7242 = vmatpush1.bf16.msra.mxu1 %v9697_v10 }
 0x449   :  { %v9824_v21 = vld [vmem:[#allocation2 + $0x158] ss:$0 sps:$4 sm:$0x11]   ;;  %v13104_v19 = vsel %vm2746_vm9, %v6623_v50, %v6627_v27  ;;  %v6635_v34 = vor.u32 %v6634_v22, %v6630_v26  ;;  %v6639_v8 = vrot.slane %v6637_v36, 1  ;;  %v6036_v47 = vld [vmem:[#allocation2 + $0x160] sm:$0xf]  ;;  %v13120_v14 = vcombine.low %v6031_v58, %v6032_v55  ;;  %7243 = vmatprep.subr.bf16.mxu1 %v15864_v37 }
 0x44a   :  { %15884 = vst [vmem:[#allocation65_spill] sm:$0xff] %v13104_v19  ;;  %v9826_v59 = vld [vmem:[#allocation2 + $0x164] ss:$0 sps:$4 sm:$0x11]   ;;  %v13109_v9 = vsel %vm2746_vm9, %v6647_v12, %v6651_v43  ;;  %v6654_v29 = vshrl.u32 %v13093_v2, 16  ;;  %v6656_v32 = vshll.u32 %v13093_v2, 16  ;;  %5591 = vmatmul.mubr.bf16.gmra.mrb[204].mxu0 %v12931_v53 }
 0x44b   :  { %15885 = vst [vmem:[#allocation66_spill] sm:$0xff] %v13109_v9  ;;  %v6663_v1 = vrot.slane %v6661_v39, 1  ;;  %v13113_v15 = vpop.f32.mrb[97].mxu0  ;;  %v15886_v42 = vld [vmem:[#allocation36_spill] sm:$0xff]  ;;  %v13117_v27 = vsel %vm2746_vm9, %v6635_v34, %v6639_v8  ;;  %v6668_v26 = vshll.u32 %v13037_v40, 16  ;;  %v6673_v36 = vshll.u32 %v9818_v63, 16  ;;  %5598 = vmatprep.mubr.bf16.mxu0 %v13024_v23 }
 0x44c   :  { %9309 = vmatmul.mubr.bf16.gmra.mrb[136].mxu1 %v15886_v42  ;;  %15887 = vst [vmem:[#allocation36_spill] sm:$0xff] %v13117_v27  ;;  %15888 = vst [vmem:[#allocation67_spill] sm:$0xff] %v13120_v14  ;;  %v6035_v31 = vld [vmem:[#allocation2 + $0x15c] sm:$0xf]  ;;  %v13122_v50 = vpop.f32.mrb[98].mxu0  ;;  %v15889_v22 = vld [vmem:[#allocation19_spill] sm:$0xff] }
 0x44d   :  { %9312 = vmatprep.mubr.bf16.mxu1 %v15889_v22  ;;  %v9702_v12 = vld [vmem:[#allocation8 + $0x1a8] sm:$0xff]   ;;  %v6658_v43 = vrot.slane %v6656_v32, 1  ;;  %v6666_v39 = vshrl.u32 %v13037_v40, 16  ;;  %v6685_v6 = vshll.u32 %v13091_v13, 16  ;;  %v6692_v34 = vshll.u32 %v13048_v11, 16  ;;  %v13128_v8 = vpop.f32.mrb[99].mxu0 }
 0x44e   :  { %v9829_v55 = vld [vmem:[#allocation2 + $0x170] ss:$0 sps:$4 sm:$0x11]   ;;  %v6670_v63 = vrot.slane %v6668_v26, 1  ;;  %v6675_v58 = vrot.slane %v6673_v36, 1  ;;  %v6680_v42 = vshll.u32 %v13120_v14, 16  ;;  %v13140_v4 = vcombine.low %v6035_v31, %v6036_v47  ;;  %7244 = vmatpush1.bf16.msra.mxu1 %v9702_v12 }
 0x44f   :  { %v6690_v22 = vshrl.u32 %v13048_v11, 16  ;;  %v4782_v10 = vpop.f32.mrb[32].mxu1  ;;  %v6040_v2 = vld [vmem:[#allocation2 + $0x178] sm:$0xf]  ;;  %v6659_v32 = vor.u32 %v6658_v43, %v6654_v29  ;;  %v6678_v40 = vshrl.u32 %v13120_v14, 16  ;;  %v6694_v9 = vrot.slane %v6692_v34, 1  ;;  %7245 = vmatprep.subr.bf16.mxu1 %v15864_v37 }
 0x450   :  { %v6697_v13 = vshll.u32 %v9824_v21, 16  ;;  %v4784_v18 = vpop.f32.mrb[33].mxu1  ;;  %v13136_v27 = vadd.f32 %v12920_v24, %v4782_v10  ;;  %v13138_v19 = vld [vmem:[#allocation2 + $0x17c] ss:$0 sps:$4 sm:$0x11]   ;;  %v6671_v26 = vor.u32 %v6670_v63, %v6666_v39  ;;  %v6682_v36 = vrot.slane %v6680_v42, 1 }
 0x451   :  { %15890 = vst [vmem:[#allocation19_spill] sm:$0xff] %v13140_v4  ;;  %v4785_v11 = vpop.f32.mrb[34].mxu1  ;;  %v9707_v29 = vld [vmem:[#allocation8 + $0x1b0] sm:$0xff]   ;;  %v13144_v43 = vsel %vm2746_vm9, %v6659_v32, %v6663_v1  ;;  %v6695_v18 = vor.u32 %v6694_v9, %v6690_v22  ;;  %v6709_v53 = vshll.u32 %v9826_v59, 16  ;;  %v6039_v34 = vld [vmem:[#allocation2 + $0x174] sm:$0xf] }
 0x452   :  { %15891 = vst [vmem:[#allocation68_spill] sm:$0xff] %v13144_v43  ;;  %v6699_v21 = vrot.slane %v6697_v13, 1  ;;  %v4787_v24 = vpop.f32.mrb[35].mxu1  ;;  %v13148_v39 = vadd.f32 %v12936_v57, %v4785_v11  ;;  %v9835_v47 = vld [vmem:[#allocation2 + $0x188] ss:$0 sps:$4 sm:$0x11]   ;;  %v13151_v31 = vsel %vm2746_vm9, %v6671_v26, %v6675_v58  ;;  %v6683_v23 = vor.u32 %v6682_v36, %v6678_v40  ;;  %7246 = vmatpush1.bf16.msra.mxu1 %v9707_v29 }
 0x453   :  { %15892 = vst [vmem:[#allocation69_spill] sm:$0xff] %v13151_v31  ;;  %v6687_v12 = vrot.slane %v6685_v6, 1  ;;  %v13153_v63 = vpop.f32.mrb[100].mxu0  ;;  %v6044_v1 = vld [vmem:[#allocation2 + $0x190] sm:$0xf]  ;;  %v6702_v59 = vshrl.u32 %v13140_v4, 16  ;;  %v13167_v58 = vcombine.low %v6039_v34, %v6040_v2  ;;  %7247 = vmatprep.subr.bf16.mxu1 %v15864_v37  ;;  %5599 = vmatmul.mubr.bf16.gmra.mrb[208].mxu0 %v12934_v60 }
 0x454   :  { %v13156_v9 = vsel %vm2746_vm9, %v6695_v18, %v6699_v21  ;;  %v6704_v42 = vshll.u32 %v13140_v4, 16  ;;  %v6711_v22 = vrot.slane %v6709_v53, 1  ;;  %v13160_v10 = vpop.f32.mrb[101].mxu0  ;;  %v15894_v57 = vld [vmem:[#allocation17_spill] sm:$0xff]  ;;  %v6716_v40 = vshll.u32 %v13050_v28, 16  ;;  %v15897_v26 = vld [vmem:[#allocation39_spill] sm:$0xff]  ;;  %5606 = vmatprep.mubr.bf16.mxu0 %v13027_v0 }
 0x455   :  { %15893 = vst [vmem:[#allocation70_spill] sm:$0xff] %v13156_v9  ;;  %9313 = vmatmul.mubr.bf16.gmra.mrb[140].mxu1 %v15894_v57  ;;  %v13164_v11 = vsel %vm2746_vm9, %v6683_v23, %v6687_v12  ;;  %v6721_v6 = vshll.u32 %v9829_v55, 16  ;;  %15896 = vst [vmem:[#allocation71_spill] sm:$0xff] %v13167_v58  ;;  %v6043_v32 = vld [vmem:[#allocation2 + $0x18c] sm:$0xf]  ;;  %v13169_v13 = vpop.f32.mrb[102].mxu0 }
 0x456   :  { %15895 = vst [vmem:[#allocation17_spill] sm:$0xff] %v13164_v11  ;;  %9316 = vmatprep.mubr.bf16.mxu1 %v15897_v26  ;;  %v9712_v36 = vld [vmem:[#allocation8 + $0x1b8] sm:$0xff]   ;;  %v13172_v18 = vld [vmem:[#allocation2 + $0x194] ss:$0 sps:$4 sm:$0x11]   ;;  %v6706_v21 = vrot.slane %v6704_v42, 1 }
 0x457   :  { %v6714_v53 = vshrl.u32 %v13050_v28, 16  ;;  %v6733_v24 = vshll.u32 %v13138_v19, 16  ;;  %v6740_v23 = vshll.u32 %v13058_v49, 16  ;;  %v13177_v12 = vpop.f32.mrb[103].mxu0  ;;  %v6718_v2 = vrot.slane %v6716_v40, 1  ;;  %v4790_v57 = vpop.f32.mrb[36].mxu1  ;;  %7248 = vmatpush1.bf16.msra.mxu1 %v9712_v36 }
 0x458   :  { %v6723_v55 = vrot.slane %v6721_v6, 1  ;;  %v6728_v34 = vshll.u32 %v13167_v58, 16  ;;  %v6738_v29 = vshrl.u32 %v13058_v49, 16  ;;  %v6707_v26 = vor.u32 %v6706_v21, %v6702_v59  ;;  %v4792_v9 = vpop.f32.mrb[37].mxu1  ;;  %7249 = vmatprep.subr.bf16.mxu1 %v15864_v37  ;;  %v2378_v36 = vld [vmem:[#allocation2 + $0x138] sm:$0xf] }
 0x459   :  { %v6726_v42 = vshrl.u32 %v13167_v58, 16  ;;  %v6742_v4 = vrot.slane %v6740_v23, 1  ;;  %v6745_v28 = vshll.u32 %v9835_v47, 16  ;;  %v13185_v19 = vadd.f32 %v12916_v7, %v4790_v57  ;;  %v9840_v14 = vld [vmem:[#allocation2 + $0x1a0] ss:$0 sps:$4 sm:$0x11]  }
 0x45a   :  { %v6719_v11 = vor.u32 %v6718_v2, %v6714_v53  ;;  %v6730_v40 = vrot.slane %v6728_v34, 1  ;;  %v13187_v6 = vcombine.low %v6043_v32, %v6044_v1  ;;  %v4793_v31 = vpop.f32.mrb[38].mxu1  ;;  %v15899_v59 = vshrl.u32 %v12977_v20, 16  ;;  %v9718_v47 = vld [vmem:[#allocation8 + $0x1c0] sm:$0xff]   ;;  %v13203_v2 = vpop.f32.mrb[104].mxu0  ;;  %v15905_v57 = vld [vmem:[#allocation40_spill] sm:$0xff] }
 0x45b   :  { %v13194_v9 = vsel %vm2746_vm9, %v6707_v26, %v6711_v22  ;;  %v6743_v60 = vor.u32 %v6742_v4, %v6738_v29  ;;  %v6747_v7 = vrot.slane %v6745_v28, 1  ;;  %v4795_v23 = vpop.f32.mrb[39].mxu1  ;;  %v13198_v1 = vadd.f32 %v12926_v25, %v4793_v31  ;;  %v13211_v34 = vpop.f32.mrb[105].mxu0  ;;  %v15903_v25 = vld [vmem:[#allocation38_spill] sm:$0xff]  ;;  %7250 = vmatpush1.bf16.msra.mxu1 %v9718_v47  ;;  %5607 = vmatmul.mubr.bf16.gmra.mrb[212].mxu0 %v12942_v17 }
 0x45c   :  { %15898 = vst [vmem:[#allocation39_spill] sm:$0xff] %v13187_v6  ;;  %v3017_v21 = vor.u32 %v13018_v38, %v15899_v59  ;;  %15900 = vst [vmem:[#allocation72_spill] sm:$0xff] %v13194_v9  ;;  %v13201_v32 = vsel %vm2746_vm9, %v6719_v11, %v6723_v55  ;;  %v6731_v0 = vor.u32 %v6730_v40, %v6726_v42  ;;  %v6735_v53 = vrot.slane %v6733_v24, 1  ;;  %v13214_v31 = vld [vmem:[#allocation2 + $0x13c] sm:$0xf]  ;;  %v13220_v29 = vpop.f32.mrb[106].mxu0 }
 0x45d   :  { %15901 = vst [vmem:[#allocation73_spill] sm:$0xff] %v13201_v32  ;;  %v3026_v38 = vshll.u32 %v13030_v62, 16  ;;  %v13207_v22 = vsel %vm2746_vm9, %v6743_v60, %v6747_v7  ;;  %v6752_v28 = vshll.u32 %v13187_v6, 16  ;;  %v6757_v4 = vshll.u32 %v13172_v18, 16  ;;  %9317 = vmatmul.mubr.bf16.gmra.mrb[144].mxu1 %v15903_v25  ;;  %v9723_v18 = vld [vmem:[#allocation8 + $0x1c8] sm:$0xff]   ;;  %v13226_v60 = vpop.f32.mrb[107].mxu0  ;;  %7251 = vmatprep.subr.bf16.mxu1 %v15864_v37 }
 0x45e   :  { %15902 = vst [vmem:[#allocation74_spill] sm:$0xff] %v13207_v22  ;;  %v13217_v11 = vsel %vm2746_vm9, %v6731_v0, %v6735_v53  ;;  %v6764_v24 = vshll.u32 %v13062_v33, 16  ;;  %v6769_v55 = vshll.u32 %v9840_v14, 16  ;;  %9320 = vmatprep.mubr.bf16.mxu1 %v15905_v57  ;;  %v15906_v26 = vshll.u32 %v12979_v44, 16  ;;  %v4798_v0 = vpop.f32.mrb[40].mxu1 }
 0x45f   :  { %15904 = vst [vmem:[#allocation38_spill] sm:$0xff] %v13217_v11  ;;  %v6750_v40 = vshrl.u32 %v13187_v6, 16  ;;  %v6754_v59 = vrot.slane %v6752_v28, 1  ;;  %v13228_v7 = vld [vmem:[#allocation2 + $0x134] ss:$0 sps:$4 sm:$0x11]   ;;  %v13235_v28 = vcombine.low %v2378_v36, %v13214_v31  ;;  %v13238_v6 = vadd.f32 %v12968_v56, %v4798_v0  ;;  %7252 = vmatpush1.bf16.msra.mxu1 %v9723_v18 }
 0x460   :  { %v3021_v42 = vrot.slane %v15906_v26, 1  ;;  %v6762_v14 = vshrl.u32 %v13062_v33, 16  ;;  %v6766_v23 = vrot.slane %v6764_v24, 1  ;;  %v3028_v25 = vrot.slane %v3026_v38, 1  ;;  %v4800_v47 = vpop.f32.mrb[41].mxu1  ;;  %v9728_v24 = vld [vmem:[#allocation8 + $0x1d0] sm:$0xff]   ;;  %7253 = vmatprep.subr.bf16.mxu1 %v15864_v37 }
 0x461   :  { %v6755_v57 = vor.u32 %v6754_v59, %v6750_v40  ;;  %v6759_v26 = vrot.slane %v6757_v4, 1  ;;  %15907 = vst [vmem:[#allocation40_spill] sm:$0xff] %v13238_v6  ;;  %v6771_v22 = vrot.slane %v6769_v55, 1  ;;  %v4801_v58 = vpop.f32.mrb[42].mxu1  ;;  %v3024_v4 = vshrl.u32 %v13030_v62, 16  ;;  %v13252_v55 = vpop.f32.mrb[108].mxu0 }
 0x462   :  { %v3022_v53 = vsel %vm2746_vm9, %v3017_v21, %v3021_v42  ;;  %v6767_v49 = vor.u32 %v6766_v23, %v6762_v14  ;;  %v4803_v38 = vpop.f32.mrb[43].mxu1  ;;  %v3031_v17 = vshll.u32 %v13228_v7, 16  ;;  %v13247_v36 = vadd.f32 %v12981_v30, %v4801_v58  ;;  %v13254_v42 = vpop.f32.mrb[109].mxu0  ;;  %v15911_v14 = vld [vmem:[#allocation41_spill] sm:$0xff]  ;;  %v2380_v23 = vld [vmem:[#allocation2 + $0x144] sm:$0xf] }
 0x463   :  { %5614 = vmatprep.mubr.bf16.mxu0 %v3022_v53  ;;  %v13241_v21 = vsel %vm2746_vm9, %v6755_v57, %v6759_v26  ;;  %v3029_v18 = vor.u32 %v3028_v25, %v3024_v4  ;;  %v3038_v40 = vshll.u32 %v13235_v28, 16  ;;  %v13258_v59 = vpop.f32.mrb[110].mxu0  ;;  %v13261_v0 = vld [vmem:[#allocation2 + $0x148] sm:$0xf]  ;;  %7254 = vmatpush1.bf16.msra.mxu1 %v9728_v24  ;;  %v2442_v53 = vld [vmem:[#allocation2 + $0xd8] sm:$0xe] }
 0x464   :  { %15908 = vst [vmem:[#allocation75_spill] sm:$0xff] %v13241_v21  ;;  %15909 = vst [vmem:[#allocation76_spill] sm:$0xff] %v13247_v36  ;;  %v13250_v56 = vsel %vm2746_vm9, %v6767_v49, %v6771_v22  ;;  %v9733_v30 = vld [vmem:[#allocation8 + $0x1d8] sm:$0xff]   ;;  %v13263_v49 = vpop.f32.mrb[111].mxu0  ;;  %v3033_v58 = vrot.slane %v3031_v17, 1  ;;  %7255 = vmatprep.subr.bf16.mxu1 %v15864_v37  ;;  %5615 = vmatmul.mubr.bf16.gmra.mrb[216].mxu0 %v12977_v20  ;;  %v13271_v47 = vcombine.low %v2380_v23, %v13261_v0  ;;  %v9739_v4 = vld [vmem:[#allocation8 + $0x1e0] sm:$0xff]  }
 0x465   :  { %15910 = vst [vmem:[#allocation77_spill] sm:$0xff] %v13250_v56  ;;  %9321 = vmatmul.mubr.bf16.gmra.mrb[148].mxu1 %v12755_v41  ;;  %v13265_v22 = vld [vmem:[#allocation2 + $0x140] ss:$0 sps:$4 sm:$0x11]   ;;  %v4806_v41 = vpop.f32.mrb[44].mxu1  ;;  %v3040_v26 = vrot.slane %v3038_v40, 1  ;;  %v8620_v20 = vcombine.low %v2442_v53, %v12862_v46 }
 0x466   :  { %9324 = vmatprep.mubr.bf16.mxu1 %v15911_v14  ;;  %v4808_v25 = vpop.f32.mrb[45].mxu1  ;;  %v3034_v57 = vsel %vm2746_vm9, %v3029_v18, %v3033_v58  ;;  %v13274_v24 = vadd.f32 %v12965_v5, %v4806_v41  ;;  %v3036_v14 = vshrl.u32 %v13235_v28, 16  ;;  %v13283_v40 = vpop.f32.mrb[112].mxu0  ;;  %v15914_v23 = vld [vmem:[#allocation42_spill] sm:$0xff]  ;;  %v3050_v41 = vshll.u32 %v13271_v47, 16  ;;  %v15951_v6 = vld [vmem:[#allocation43_spill] sm:$0xff] }
 0x467   :  { %v4809_v38 = vpop.f32.mrb[46].mxu1  ;;  %5622 = vmatprep.mubr.bf16.mxu0 %v3034_v57  ;;  %7256 = vmatpush1.bf16.msra.mxu1 %v9733_v30  ;;  %v3043_v25 = vshll.u32 %v13265_v22, 16  ;;  %v13285_v5 = vpop.f32.mrb[113].mxu0  ;;  %v13288_v58 = vld [vmem:[#allocation2 + $0x14c] ss:$0 sps:$4 sm:$0x11]  }
 0x468   :  { %15912 = vst [vmem:[#allocation41_spill] sm:$0xff] %v13274_v24  ;;  %v4811_v17 = vpop.f32.mrb[47].mxu1  ;;  %7257 = vmatprep.subr.bf16.mxu1 %v15864_v37  ;;  %v13281_v18 = vadd.f32 %v12973_v54, %v4809_v38  ;;  %v3041_v30 = vor.u32 %v3040_v26, %v3036_v14  ;;  %v13291_v57 = vpop.f32.mrb[114].mxu0  ;;  %v2382_v46 = vld [vmem:[#allocation2 + $0x150] sm:$0xf]  ;;  %v9744_v54 = vld [vmem:[#allocation8 + $0x1e8] sm:$0xff]  }
 0x469   :  { %15915 = vst [vmem:[#allocation42_spill] sm:$0xff] %v13291_v57  ;;  %v13294_v53 = vld [vmem:[#allocation2 + $0x154] sm:$0xf]  ;;  %v13296_v38 = vpop.f32.mrb[115].mxu0  ;;  %v3045_v17 = vrot.slane %v3043_v25, 1  ;;  %v3308_v33 = vrot.slane %v8620_v20, 1 }
 0x46a   :  { %15913 = vst [vmem:[#allocation78_spill] sm:$0xff] %v13281_v18  ;;  %v4814_v26 = vpop.f32.mrb[48].mxu1  ;;  %v2444_v21 = vld [vmem:[#allocation2 + $0xf0] sm:$0xe]  ;;  %v13303_v11 = vcombine.low %v2382_v46, %v13294_v53  ;;  %v3048_v32 = vshrl.u32 %v13271_v47, 16 }
 0x46b   :  { %7258 = vmatpush1.bf16.msra.mxu1 %v9739_v4  ;;  %v4816_v14 = vpop.f32.mrb[49].mxu1  ;;  %v3046_v56 = vsel %vm2746_vm9, %v3041_v30, %v3045_v17  ;;  %v13306_v4 = vadd.f32 %v13008_v3, %v4814_v26  ;;  %v15919_v3 = vld [vmem:[#allocation20_spill] sm:$0xff]  ;;  %v13328_v43 = vld [vmem:[#allocation2 + $0x158] ss:$0 sps:$4 sm:$0x11]  }
 0x46c   :  { %7259 = vmatprep.subr.bf16.mxu1 %v15864_v37  ;;  %5623 = vmatmul.mubr.bf16.gmra.mrb[220].mxu0 %v13030_v62  ;;  %v4817_v25 = vpop.f32.mrb[50].mxu1  ;;  %v3055_v14 = vshll.u32 %v13288_v58, 16  ;;  %v8622_v46 = vcombine.low %v2444_v21, %v15919_v3  ;;  %v3062_v26 = vshll.u32 %v13303_v11, 16 }
 0x46d   :  { %9325 = vmatmul.mubr.bf16.gmra.mrb[152].mxu1 %v15914_v23  ;;  %v3309_v23 = vrot.slane %v12882_v51, 1  ;;  %15916 = vst [vmem:[#allocation79_spill] sm:$0xff] %v13306_v4  ;;  %5630 = vmatprep.mubr.bf16.mxu0 %v3046_v56  ;;  %v9750_v51 = vld [vmem:[#allocation8 + $0x1f0] sm:$0xff]   ;;  %v4819_v20 = vpop.f32.mrb[51].mxu1  ;;  %v13313_v30 = vadd.f32 %v13020_v16, %v4817_v25  ;;  %v15921_v56 = vld [vmem:[#allocation18_spill] sm:$0xff]  ;;  %v9758_v16 = vld [vmem:[#allocation8 + $0x1f8] sm:$0xff]  }
 0x46e   :  { %9328 = vmatprep.mubr.bf16.mxu1 %v12781_v61  ;;  %v3052_v61 = vrot.slane %v3050_v41, 1  ;;  %v13315_v41 = vpop.f32.mrb[116].mxu0  ;;  %v3057_v9 = vrot.slane %v3055_v14, 1  ;;  %v3314_v3 = vrot.slane %v8622_v46, 1  ;;  %v2445_v4 = vld [vmem:[#allocation2 + $0xfc] sm:$0xe] }
 0x46f   :  { %7260 = vmatpush1.bf16.msra.mxu1 %v9744_v54  ;;  %v3310_v62 = vsel %vm3259_vm8, %v3308_v33, %v3309_v23  ;;  %15917 = vst [vmem:[#allocation80_spill] sm:$0xff] %v13313_v30  ;;  %15918 = vst [vmem:[#allocation81_spill] sm:$0xff] %v13315_v41  ;;  %v13318_v17 = vpop.f32.mrb[117].mxu0  ;;  %v2384_v33 = vld [vmem:[#allocation2 + $0x15c] sm:$0xf]  ;;  %v3064_v30 = vrot.slane %v3062_v26, 1 }
 0x470   :  { %7261 = vmatprep.subr.bf16.mxu1 %v15864_v37  ;;  %15920 = vst [vmem:[#allocation20_spill] sm:$0xff] %v13318_v17  ;;  %v3053_v54 = vor.u32 %v3052_v61, %v3048_v32  ;;  %v13322_v20 = vpop.f32.mrb[118].mxu0  ;;  %v13324_v23 = vld [vmem:[#allocation2 + $0x160] sm:$0xf]  ;;  %v15925_v14 = vld [vmem:[#allocation49_spill] sm:$0xff]  ;;  %v3060_v46 = vshrl.u32 %v13303_v11, 16 }
 0x471   :  { %15922 = vst [vmem:[#allocation18_spill] sm:$0xff] %v13322_v20  ;;  %v13326_v25 = vpop.f32.mrb[119].mxu0  ;;  %v15924_v32 = vld [vmem:[#allocation15_spill] sm:$0xff]  ;;  %v13335_v20 = vcombine.low %v2384_v33, %v13324_v23  ;;  %v15942_v17 = vld [vmem:[#allocation30_spill] sm:$0xff] }
 0x472   :  { %15923 = vst [vmem:[#allocation82_spill] sm:$0xff] %v13326_v25  ;;  %v4822_v21 = vpop.f32.mrb[52].mxu1  ;;  %v3315_v61 = vrot.slane %v15924_v32, 1  ;;  %v3067_v32 = vshll.u32 %v13328_v43, 16  ;;  %v15931_v33 = vld [vmem:[#allocation31_spill] sm:$0xff] }
 0x473   :  { %7262 = vmatpush1.bf16.msra.mxu1 %v9750_v51  ;;  %v2446_v51 = vld [vmem:[#allocation2 + $0x108] sm:$0xe]  ;;  %v13338_v41 = vadd.f32 %v15925_v14, %v4822_v21  ;;  %v3074_v14 = vshll.u32 %v13335_v20, 16 }
 0x474   :  { %7263 = vmatprep.subr.bf16.mxu1 %v15864_v37  ;;  %5631 = vmatmul.mubr.bf16.gmra.mrb[224].mxu0 %v13235_v28  ;;  %v15927_v28 = vld [vmem:[#allocation50_spill] sm:$0xff]  ;;  %v8624_v24 = vcombine.low %v2446_v51, %v15931_v33  ;;  %v15933_v21 = vld [vmem:[#allocation44_spill] sm:$0xff] }
 0x475   :  { %9329 = vmatmul.mubr.bf16.gmra.mrb[156].mxu1 %v15921_v56  ;;  %v4824_v56 = vpop.f32.mrb[53].mxu1  ;;  %15926 = vst [vmem:[#allocation15_spill] sm:$0xff] %v13338_v41 }
 0x476   :  { %9332 = vmatprep.mubr.bf16.mxu1 %v3310_v62  ;;  %v3058_v62 = vsel %vm2746_vm9, %v3053_v54, %v3057_v9  ;;  %v4825_v18 = vpop.f32.mrb[54].mxu1  ;;  %v13345_v9 = vpop.f32.mrb[120].mxu0  ;;  %v15930_v54 = vld [vmem:[#allocation25_spill] sm:$0xff]  ;;  %v3320_v41 = vrot.slane %v8624_v24, 1  ;;  %v3072_v24 = vshrl.u32 %v13335_v20, 16 }
 0x477   :  { %5638 = vmatprep.mubr.bf16.mxu0 %v3058_v62  ;;  %7264 = vmatpush1.bf16.msra.mxu1 %v9758_v16  ;;  %v4827_v37 = vpop.f32.mrb[55].mxu1  ;;  %v13343_v56 = vadd.f32 %v15927_v28, %v4825_v18  ;;  %15929 = vst [vmem:[#allocation50_spill] sm:$0xff] %v13345_v9  ;;  %v8623_v26 = vcombine.low %v2445_v4, %v15930_v54  ;;  %v13349_v25 = vpop.f32.mrb[121].mxu0  ;;  %v2386_v18 = vld [vmem:[#allocation2 + $0x168] sm:$0xf]  ;;  %v3069_v4 = vrot.slane %v3067_v32, 1 }
 0x478   :  { %15932 = vst [vmem:[#allocation25_spill] sm:$0xff] %v13349_v25  ;;  %v3316_v16 = vsel %vm3259_vm8, %v3314_v3, %v3315_v61  ;;  %v3065_v62 = vor.u32 %v3064_v30, %v3060_v46  ;;  %v13354_v37 = vpop.f32.mrb[122].mxu0  ;;  %v13356_v28 = vld [vmem:[#allocation2 + $0x16c] sm:$0xf]  ;;  %v15937_v3 = vld [vmem:[#allocation29_spill] sm:$0xff] }
 0x479   :  { %15928 = vst [vmem:[#allocation49_spill] sm:$0xff] %v13343_v56  ;;  %15934 = vst [vmem:[#allocation31_spill] sm:$0xff] %v13354_v37  ;;  %v13358_v9 = vpop.f32.mrb[123].mxu0  ;;  %v13360_v54 = vld [vmem:[#allocation2 + $0x164] ss:$0 sps:$4 sm:$0x11]  }
 0x47a   :  { %15935 = vst [vmem:[#allocation44_spill] sm:$0xff] %v13358_v9  ;;  %v4830_v51 = vpop.f32.mrb[56].mxu1  ;;  %v3317_v33 = vrot.slane %v8623_v26, 1  ;;  %v15936_v56 = vld [vmem:[#allocation14_spill] sm:$0xff]  ;;  %v3321_v30 = vrot.slane %v15937_v3, 1  ;;  %v3070_v46 = vsel %vm2746_vm9, %v3065_v62, %v3069_v4  ;;  %v13367_v9 = vcombine.low %v2386_v18, %v13356_v28 }
 0x47b   :  { %v4832_v61 = vpop.f32.mrb[57].mxu1  ;;  %v2447_v37 = vld [vmem:[#allocation2 + $0x114] sm:$0xe]  ;;  %v2448_v25 = vld [vmem:[#allocation2 + $0x120] sm:$0xe]  ;;  %v13370_v32 = vadd.f32 %v13066_v48, %v4830_v51  ;;  %v3079_v3 = vshll.u32 %v13360_v54, 16 }
 0x47c   :  { %5639 = vmatmul.mubr.bf16.gmra.mrb[228].mxu0 %v13271_v47  ;;  %v4833_v26 = vpop.f32.mrb[58].mxu1  ;;  %v15939_v61 = vld [vmem:[#allocation34_spill] sm:$0xff]  ;;  %v8626_v36 = vcombine.low %v2448_v25, %v15942_v17  ;;  %v3322_v51 = vsel %vm3259_vm8, %v3320_v41, %v3321_v30  ;;  %v3327_v41 = vrot.slane %v12979_v44, 1 }
 0x47d   :  { %9333 = vmatmul.mubr.bf16.gmra.mrb[160].mxu1 %v15933_v21  ;;  %v3318_v21 = vrot.slane %v15936_v56, 1  ;;  %15938 = vst [vmem:[#allocation14_spill] sm:$0xff] %v13370_v32  ;;  %5646 = vmatprep.mubr.bf16.mxu0 %v3070_v46  ;;  %v4835_v56 = vpop.f32.mrb[59].mxu1  ;;  %v13375_v47 = vadd.f32 %v15939_v61, %v4833_v26  ;;  %v13377_v62 = vpop.f32.mrb[124].mxu0  ;;  %v9860_v4 = vld [vmem:[#allocation2 + $0x118] sm:$0xf] }
 0x47e   :  { %9336 = vmatprep.mubr.bf16.mxu1 %v3316_v16  ;;  %v3076_v16 = vrot.slane %v3074_v14, 1  ;;  %15941 = vst [vmem:[#allocation34_spill] sm:$0xff] %v13377_v62  ;;  %v8625_v18 = vcombine.low %v2447_v37, %v9860_v4  ;;  %v13381_v48 = vpop.f32.mrb[125].mxu0  ;;  %v3086_v56 = vshll.u32 %v13367_v9, 16  ;;  %v2388_v26 = vld [vmem:[#allocation2 + $0x174] sm:$0xf] }
 0x47f   :  { %15940 = vst [vmem:[#allocation29_spill] sm:$0xff] %v13375_v47  ;;  %v3319_v14 = vsel %vm3259_vm8, %v3317_v33, %v3318_v21  ;;  %15943 = vst [vmem:[#allocation30_spill] sm:$0xff] %v13381_v48  ;;  %v13385_v32 = vpop.f32.mrb[126].mxu0  ;;  %v13387_v61 = vld [vmem:[#allocation2 + $0x178] sm:$0xf]  ;;  %v3081_v33 = vrot.slane %v3079_v3, 1 }
 0x480   :  { %v3077_v46 = vor.u32 %v3076_v16, %v3072_v24  ;;  %15944 = vst [vmem:[#allocation83_spill] sm:$0xff] %v13385_v32  ;;  %v13389_v62 = vpop.f32.mrb[127].mxu0  ;;  %v13391_v37 = vld [vmem:[#allocation2 + $0x170] ss:$0 sps:$4 sm:$0x11]   ;;  %v3323_v25 = vrot.slane %v8625_v18, 1 }
 0x481   :  { %15945 = vst [vmem:[#allocation84_spill] sm:$0xff] %v13389_v62  ;;  %v15946_v21 = vld [vmem:[#allocation28_spill] sm:$0xff]  ;;  %v3326_v4 = vrot.slane %v8626_v36, 1  ;;  %v3088_v24 = vrot.slane %v3086_v56, 1  ;;  %v2450_v32 = vld [vmem:[#allocation2 + $0x138] sm:$0xe]  ;;  %v13398_v62 = vcombine.low %v2388_v26, %v13387_v61 }
 0x482   :  { %v4838_v17 = vpop.f32.mrb[60].mxu1  ;;  %v3082_v16 = vsel %vm2746_vm9, %v3077_v46, %v3081_v33  ;;  %v15947_v3 = vld [vmem:[#allocation59_spill] sm:$0xff]  ;;  %v3084_v36 = vshrl.u32 %v13367_v9, 16  ;;  %v3091_v44 = vshll.u32 %v13391_v37, 16  ;;  %v8628_v26 = vcombine.low %v2450_v32, %v13214_v31 }
 0x483   :  { %v4840_v30 = vpop.f32.mrb[61].mxu1  ;;  %v13401_v48 = vadd.f32 %v15947_v3, %v4838_v17  ;;  %v15950_v33 = vld [vmem:[#allocation35_spill] sm:$0xff]  ;;  %v13421_v32 = vld [vmem:[#allocation2 + $0x17c] ss:$0 sps:$4 sm:$0x11]  }
 0x484   :  { %5647 = vmatmul.mubr.bf16.gmra.mrb[232].mxu0 %v13303_v11  ;;  %v4841_v18 = vpop.f32.mrb[62].mxu1  ;;  %v15949_v30 = vld [vmem:[#allocation62_spill] sm:$0xff] }
 0x485   :  { %9337 = vmatmul.mubr.bf16.gmra.mrb[164].mxu1 %v3319_v14  ;;  %v3324_v14 = vrot.slane %v15946_v21, 1  ;;  %15948 = vst [vmem:[#allocation28_spill] sm:$0xff] %v13401_v48  ;;  %5654 = vmatprep.mubr.bf16.mxu0 %v3082_v16  ;;  %v4843_v21 = vpop.f32.mrb[63].mxu1  ;;  %v13406_v11 = vadd.f32 %v15949_v30, %v4841_v18  ;;  %v5440_v46 = vpop.f32.mrb[128].mxu0  ;;  %v3328_v16 = vsel %vm3259_vm8, %v3326_v4, %v3327_v41  ;;  %v3098_v48 = vshll.u32 %v13398_v62, 16 }
 0x486   :  { %9340 = vmatprep.mubr.bf16.mxu1 %v3322_v51  ;;  %v2449_v51 = vld [vmem:[#allocation2 + $0x12c] sm:$0xe]  ;;  %v13412_v17 = vadd.f32 %v5440_v46, %v15951_v6  ;;  %v5442_v3 = vpop.f32.mrb[129].mxu0  ;;  %v3089_v21 = vor.u32 %v3088_v24, %v3084_v36  ;;  %v2390_v18 = vld [vmem:[#allocation2 + $0x180] sm:$0xf]  ;;  %v3332_v4 = vrot.slane %v8628_v26, 1 }
 0x487   :  { %v3325_v56 = vsel %vm3259_vm8, %v3323_v25, %v3324_v14  ;;  %v8627_v47 = vcombine.low %v2449_v51, %v15950_v33  ;;  %v5443_v57 = vpop.f32.mrb[130].mxu0  ;;  %v13416_v30 = vld [vmem:[#allocation2 + $0x184] sm:$0xf]  ;;  %v15952_v25 = vld [vmem:[#allocation46_spill] sm:$0xff]  ;;  %v3093_v51 = vrot.slane %v3091_v44, 1  ;;  %v3333_v41 = vrot.slane %v13265_v22, 1 }
 0x488   :  { %v13419_v14 = vadd.f32 %v5443_v57, %v15952_v25  ;;  %v5445_v31 = vpop.f32.mrb[131].mxu0  ;;  %v3100_v33 = vrot.slane %v3098_v48, 1  ;;  %v2451_v44 = vld [vmem:[#allocation2 + $0x144] sm:$0xe]  ;;  %v2452_v3 = vld [vmem:[#allocation2 + $0x150] sm:$0xe] }
 0x489   :  { %v3329_v46 = vrot.slane %v8627_v47, 1  ;;  %v3094_v57 = vsel %vm2746_vm9, %v3089_v21, %v3093_v51  ;;  %v3103_v26 = vshll.u32 %v13421_v32, 16  ;;  %v8629_v48 = vcombine.low %v2451_v44, %v13261_v0  ;;  %v15953_v51 = vld [vmem:[#allocation45_spill] sm:$0xff]  ;;  %v13451_v44 = vld [vmem:[#allocation2 + $0x188] ss:$0 sps:$4 sm:$0x11]  }
 0x48a   :  { %v4846_v6 = vpop.f32.mrb[64].mxu1  ;;  %v8630_v21 = vcombine.low %v2452_v3, %v13294_v53 }
 0x48b   :  { %v13426_v24 = vadd.f32 %v13113_v15, %v4846_v6  ;;  %v4848_v36 = vpop.f32.mrb[65].mxu1  ;;  %v3096_v15 = vshrl.u32 %v13398_v62, 16  ;;  %v3105_v53 = vrot.slane %v3103_v26, 1  ;;  %v2454_v26 = vld [vmem:[#allocation2 + $0x168] sm:$0xe] }
 0x48c   :  { %5655 = vmatmul.mubr.bf16.gmra.mrb[236].mxu0 %v13335_v20  ;;  %v4849_v47 = vpop.f32.mrb[66].mxu1 }
 0x48d   :  { %9341 = vmatmul.mubr.bf16.gmra.mrb[168].mxu1 %v3325_v56  ;;  %v3330_v56 = vrot.slane %v13228_v7, 1  ;;  %5662 = vmatprep.mubr.bf16.mxu0 %v3094_v57  ;;  %v13434_v7 = vadd.f32 %v13128_v8, %v4849_v47  ;;  %v4851_v22 = vpop.f32.mrb[67].mxu1  ;;  %v5448_v25 = vpop.f32.mrb[132].mxu0  ;;  %v3334_v8 = vsel %vm3259_vm8, %v3332_v4, %v3333_v41  ;;  %v3101_v6 = vor.u32 %v3100_v33, %v3096_v15  ;;  %v2392_v47 = vld [vmem:[#allocation2 + $0x18c] sm:$0xf] }
 0x48e   :  { %9344 = vmatprep.mubr.bf16.mxu1 %v3328_v16  ;;  %v13431_v16 = vcombine.low %v2390_v18, %v13416_v30  ;;  %v13442_v18 = vadd.f32 %v5448_v25, %v15953_v51  ;;  %v5450_v31 = vpop.f32.mrb[133].mxu0  ;;  %v13446_v22 = vld [vmem:[#allocation2 + $0x190] sm:$0xf]  ;;  %v3335_v25 = vrot.slane %v8629_v48, 1  ;;  %v3338_v4 = vrot.slane %v8630_v21, 1 }
 0x48f   :  { %v3331_v20 = vsel %vm3259_vm8, %v3329_v46, %v3330_v56  ;;  %v5451_v57 = vpop.f32.mrb[134].mxu0  ;;  %v15954_v46 = vld [vmem:[#allocation23_spill] sm:$0xff]  ;;  %v3339_v41 = vrot.slane %v13328_v43, 1  ;;  %v3106_v51 = vsel %vm2746_vm9, %v3101_v6, %v3105_v53  ;;  %v3115_v21 = vshll.u32 %v13451_v44, 16 }
 0x490   :  { %v3110_v36 = vshll.u32 %v13431_v16, 16  ;;  %v13449_v56 = vadd.f32 %v5451_v57, %v15954_v46  ;;  %v5453_v0 = vpop.f32.mrb[135].mxu0  ;;  %v13461_v57 = vcombine.low %v2392_v47, %v13446_v22 }
 0x491   :  { %v15955_v0 = vld [vmem:[#allocation47_spill] sm:$0xff] }
 0x492   :  { %v4854_v3 = vpop.f32.mrb[68].mxu1  ;;  %v3112_v31 = vrot.slane %v3110_v36, 1  ;;  %v8632_v36 = vcombine.low %v2454_v26, %v13356_v28  ;;  %v3342_v26 = vrot.slane %v13360_v54, 1 }
 0x493   :  { %v13456_v33 = vadd.f32 %v13106_v45, %v4854_v3  ;;  %v4856_v15 = vpop.f32.mrb[69].mxu1  ;;  %v3108_v45 = vshrl.u32 %v13431_v16, 16 }
 0x494   :  { %5663 = vmatmul.mubr.bf16.gmra.mrb[240].mxu0 %v13367_v9  ;;  %v4857_v48 = vpop.f32.mrb[70].mxu1  ;;  %v3122_v15 = vshll.u32 %v13461_v57, 16 }
 0x495   :  { %9345 = vmatmul.mubr.bf16.gmra.mrb[172].mxu1 %v3331_v20  ;;  %v3336_v20 = vrot.slane %v13288_v58, 1  ;;  %5670 = vmatprep.mubr.bf16.mxu0 %v3106_v51  ;;  %v13464_v58 = vadd.f32 %v13122_v50, %v4857_v48  ;;  %v4859_v43 = vpop.f32.mrb[71].mxu1  ;;  %v5456_v46 = vpop.f32.mrb[136].mxu0  ;;  %v3340_v50 = vsel %vm3259_vm8, %v3338_v4, %v3339_v41  ;;  %v3113_v3 = vor.u32 %v3112_v31, %v3108_v45  ;;  %v15956_v48 = vld [vmem:[#allocation22_spill] sm:$0xff] }
 0x496   :  { %9348 = vmatprep.mubr.bf16.mxu1 %v3334_v8  ;;  %v2453_v8 = vld [vmem:[#allocation2 + $0x15c] sm:$0xe]  ;;  %v13472_v47 = vadd.f32 %v5456_v46, %v15955_v0  ;;  %v5458_v53 = vpop.f32.mrb[137].mxu0  ;;  %v3344_v46 = vrot.slane %v8632_v36, 1  ;;  %v3124_v45 = vrot.slane %v3122_v15, 1 }
 0x497   :  { %v3337_v9 = vsel %vm3259_vm8, %v3335_v25, %v3336_v20  ;;  %v8631_v6 = vcombine.low %v2453_v8, %v13324_v23  ;;  %v5459_v51 = vpop.f32.mrb[138].mxu0  ;;  %v3117_v20 = vrot.slane %v3115_v21, 1  ;;  %v13479_v23 = vld [vmem:[#allocation2 + $0x194] ss:$0 sps:$4 sm:$0x11]  }
 0x498   :  { %v13477_v43 = vadd.f32 %v5459_v51, %v15956_v48  ;;  %v5461_v25 = vpop.f32.mrb[139].mxu0  ;;  %v2455_v0 = vld [vmem:[#allocation2 + $0x174] sm:$0xe]  ;;  %v2456_v21 = vld [vmem:[#allocation2 + $0x180] sm:$0xe]  ;;  %v15958_v48 = vld [vmem:[#allocation24_spill] sm:$0xff] }
 0x499   :  { %v3341_v8 = vrot.slane %v8631_v6, 1  ;;  %v3118_v31 = vsel %vm2746_vm9, %v3113_v3, %v3117_v20  ;;  %v5986_v6 = vld [vmem:[#allocation2 + $0x1c] sm:$0xf]  ;;  %v8633_v15 = vcombine.low %v2455_v0, %v13387_v61  ;;  %v3348_v0 = vrot.slane %v13421_v32, 1 }
 0x49a   :  { %v4862_v28 = vpop.f32.mrb[72].mxu1 }
 0x49b   :  { %v13484_v4 = vadd.f32 %v13160_v10, %v4862_v28  ;;  %v4864_v41 = vpop.f32.mrb[73].mxu1  ;;  %v3127_v10 = vshll.u32 %v13479_v23, 16 }
 0x49c   :  { %5671 = vmatmul.mubr.bf16.gmra.mrb[244].mxu0 %v13398_v62  ;;  %v4865_v53 = vpop.f32.mrb[74].mxu1  ;;  %v3343_v62 = vsel %vm3259_vm8, %v3341_v8, %v3342_v26  ;;  %v6081_v41 = vld [vmem:[#allocation2 + $0x18] sm:$0xe] }
 0x49d   :  { %9349 = vmatmul.mubr.bf16.gmra.mrb[176].mxu1 %v3337_v9  ;;  %v3345_v9 = vrot.slane %v13391_v37, 1  ;;  %5678 = vmatprep.mubr.bf16.mxu0 %v3118_v31  ;;  %v13489_v54 = vadd.f32 %v13177_v12, %v4865_v53  ;;  %v4867_v36 = vpop.f32.mrb[75].mxu1  ;;  %v3120_v37 = vshrl.u32 %v13461_v57, 16  ;;  %v5464_v51 = vpop.f32.mrb[140].mxu0  ;;  %v8634_v12 = vcombine.low %v2456_v21, %v13416_v30 }
 0x49e   :  { %9352 = vmatprep.mubr.bf16.mxu1 %v3340_v50  ;;  %v5985_v50 = vld [vmem:[#allocation2 + $0x18] sm:$0xf]  ;;  %v13497_v25 = vadd.f32 %v5464_v51, %v15958_v48  ;;  %v5466_v20 = vpop.f32.mrb[141].mxu0  ;;  %v3129_v26 = vrot.slane %v3127_v10, 1  ;;  %v3351_v51 = vrot.slane %v13451_v44, 1 }
 0x49f   :  { %15957 = vst [vmem:[#allocation59_spill] sm:$0xff] %v13489_v54  ;;  %v3346_v3 = vsel %vm3259_vm8, %v3344_v46, %v3345_v9  ;;  %v3125_v28 = vor.u32 %v3124_v45, %v3120_v37  ;;  %v13500_v31 = vcombine.low %v5985_v50, %v5986_v6  ;;  %v5467_v53 = vpop.f32.mrb[142].mxu0  ;;  %v15959_v36 = vld [vmem:[#allocation26_spill] sm:$0xff]  ;;  %v9755_v46 = vld [vmem:[#allocation2 + $0x20] ss:$0 sps:$4 sm:$0x11]   ;;  %v8844_v45 = vcombine.low %v6081_v41, %v5986_v6 }
 0x4a0   :  { %v13503_v54 = vadd.f32 %v5467_v53, %v15959_v36  ;;  %v5469_v8 = vpop.f32.mrb[143].mxu0  ;;  %v3347_v9 = vrot.slane %v8633_v15, 1  ;;  %v3350_v37 = vrot.slane %v8634_v12, 1  ;;  %v5988_v15 = vld [vmem:[#allocation2 + $0x28] sm:$0xf]  ;;  %v6914_v41 = vrot.slane %v9755_v46, 1 }
 0x4a1   :  { %v3130_v50 = vsel %vm2746_vm9, %v3125_v28, %v3129_v26  ;;  %v6404_v10 = vshll.u32 %v13500_v31, 16  ;;  %v5987_v48 = vld [vmem:[#allocation2 + $0x24] sm:$0xf]  ;;  %v6913_v20 = vrot.slane %v8844_v45, 1  ;;  %v15960_v28 = vld [vmem:[#allocation21_spill] sm:$0xff] }
 0x4a2   :  { %v4870_v61 = vpop.f32.mrb[76].mxu1  ;;  %v3352_v36 = vsel %vm3259_vm8, %v3350_v37, %v3351_v51  ;;  %v6082_v26 = vld [vmem:[#allocation2 + $0x24] sm:$0xe]  ;;  %v3354_v37 = vrot.slane %v13479_v23, 1 }
 0x4a3   :  { %v13508_v30 = vadd.f32 %v13153_v63, %v4870_v61  ;;  %v4872_v21 = vpop.f32.mrb[77].mxu1  ;;  %v3349_v63 = vsel %vm3259_vm8, %v3347_v9, %v3348_v0  ;;  %v6406_v8 = vrot.slane %v6404_v10, 1  ;;  %v13522_v61 = vcombine.low %v5987_v48, %v5988_v15  ;;  %v15961_v9 = vld [vmem:[#allocation32_spill] sm:$0xff]  ;;  %v13530_v48 = vld [vmem:[#allocation2 + $0x38] ss:$0 sps:$4 sm:$0x11]  }
 0x4a4   :  { %5679 = vmatmul.mubr.bf16.gmra.mrb[248].mxu0 %v13431_v16  ;;  %v5990_v21 = vld [vmem:[#allocation2 + $0x34] sm:$0xf]  ;;  %v8845_v10 = vcombine.low %v6082_v26, %v5988_v15  ;;  %v6084_v26 = vld [vmem:[#allocation2 + $0x3c] sm:$0xe] }
 0x4a5   :  { %9353 = vmatmul.mubr.bf16.gmra.mrb[180].mxu1 %v3343_v62  ;;  %v2457_v62 = vld [vmem:[#allocation2 + $0x18c] sm:$0xe]  ;;  %5686 = vmatprep.mubr.bf16.mxu0 %v3130_v50  ;;  %v5472_v6 = vpop.f32.mrb[144].mxu0  ;;  %v6083_v50 = vld [vmem:[#allocation2 + $0x30] sm:$0xe] }
 0x4a6   :  { %9356 = vmatprep.mubr.bf16.mxu1 %v3346_v3  ;;  %v4873_v3 = vpop.f32.mrb[78].mxu1  ;;  %v8635_v16 = vcombine.low %v2457_v62, %v13446_v22  ;;  %v13519_v12 = vadd.f32 %v5472_v6, %v15960_v28  ;;  %v5474_v53 = vpop.f32.mrb[145].mxu0  ;;  %v6402_v22 = vshrl.u32 %v13500_v31, 16  ;;  %v6409_v62 = vshll.u32 %v9755_v46, 16 }
 0x4a7   :  { %v13514_v32 = vadd.f32 %v13169_v13, %v4873_v3  ;;  %v4875_v44 = vpop.f32.mrb[79].mxu1  ;;  %v5475_v13 = vpop.f32.mrb[146].mxu0  ;;  %v9760_v3 = vld [vmem:[#allocation2 + $0x2c] ss:$0 sps:$4 sm:$0x11]   ;;  %v6915_v6 = vsel %vm3259_vm8, %v6913_v20, %v6914_v41  ;;  %v6416_v46 = vshll.u32 %v13522_v61, 16 }
 0x4a8   :  { %v13525_v0 = vadd.f32 %v5475_v13, %v15961_v9  ;;  %v5477_v45 = vpop.f32.mrb[147].mxu0  ;;  %v3353_v51 = vrot.slane %v8635_v16, 1  ;;  %v6407_v53 = vor.u32 %v6406_v8, %v6402_v22  ;;  %v8846_v13 = vcombine.low %v6083_v50, %v5990_v21  ;;  %v5992_v16 = vld [vmem:[#allocation2 + $0x40] sm:$0xf]  ;;  %v13544_v50 = vld [vmem:[#allocation2 + $0x4c] sm:$0xf] }
 0x4a9   :  { %v6411_v15 = vrot.slane %v6409_v62, 1  ;;  %v6917_v41 = vrot.slane %v9760_v3, 1  ;;  %v6920_v8 = vrot.slane %v13530_v48, 1  ;;  %v15964_v22 = vld [vmem:[#allocation16_spill] sm:$0xff] }
 0x4aa   :  { %v4878_v44 = vpop.f32.mrb[80].mxu1  ;;  %v3355_v45 = vsel %vm3259_vm8, %v3353_v51, %v3354_v37  ;;  %v15965_v51 = vld [vmem:[#allocation33_spill] sm:$0xff] }
 0x4ab   :  { %v4880_v28 = vpop.f32.mrb[81].mxu1  ;;  %v6412_v62 = vsel %vm2746_vm9, %v6407_v53, %v6411_v15 }
 0x4ac   :  { %5687 = vmatmul.mubr.bf16.gmra.mrb[252].mxu0 %v13461_v57  ;;  %v4881_v9 = vpop.f32.mrb[82].mxu1  ;;  %v6919_v28 = vrot.slane %v8846_v13, 1 }
 0x4ad   :  { %9357 = vmatmul.mubr.bf16.gmra.mrb[184].mxu1 %v3349_v63  ;;  %v13533_v63 = vadd.f32 %v13211_v34, %v4878_v44  ;;  %9380 = vmatprep.mubr.bf16.mxu0 %v6915_v6  ;;  %v13538_v20 = vadd.f32 %v13226_v60, %v4881_v9  ;;  %v4883_v23 = vpop.f32.mrb[83].mxu1  ;;  %v5480_v34 = vpop.f32.mrb[148].mxu0  ;;  %v6916_v44 = vrot.slane %v8845_v10, 1  ;;  %v6418_v9 = vrot.slane %v6416_v46, 1 }
 0x4ae   :  { %9360 = vmatprep.mubr.bf16.mxu1 %v3352_v36  ;;  %v5989_v36 = vld [vmem:[#allocation2 + $0x30] sm:$0xf]  ;;  %v13547_v6 = vadd.f32 %v5480_v34, %v15964_v22  ;;  %v5482_v60 = vpop.f32.mrb[149].mxu0  ;;  %v6085_v23 = vld [vmem:[#allocation2 + $0x48] sm:$0xe]  ;;  %v6414_v10 = vshrl.u32 %v13522_v61, 16 }
 0x4af   :  { %15962 = vst [vmem:[#allocation62_spill] sm:$0xff] %v13533_v63  ;;  %15963 = vst [vmem:[#allocation35_spill] sm:$0xff] %v13538_v20  ;;  %v13541_v57 = vcombine.low %v5989_v36, %v5990_v21  ;;  %v5483_v20 = vpop.f32.mrb[150].mxu0  ;;  %v6421_v36 = vshll.u32 %v9760_v3, 16  ;;  %v6918_v22 = vsel %vm3259_vm8, %v6916_v44, %v6917_v41  ;;  %v8848_v53 = vcombine.low %v6085_v23, %v13544_v50 }
 0x4b0   :  { %v13551_v37 = vadd.f32 %v5483_v20, %v15965_v51  ;;  %v5485_v21 = vpop.f32.mrb[151].mxu0  ;;  %v13554_v63 = vld [vmem:[#allocation2 + $0x44] ss:$0 sps:$4 sm:$0x11]   ;;  %v6921_v20 = vsel %vm3259_vm8, %v6919_v28, %v6920_v8  ;;  %v6419_v15 = vor.u32 %v6418_v9, %v6414_v10  ;;  %v5991_v51 = vld [vmem:[#allocation2 + $0x3c] sm:$0xf] }
 0x4b1   :  { %v13557_v60 = vld [vmem:[#allocation2 + $0x50] ss:$0 sps:$4 sm:$0x11]   ;;  %v6428_v3 = vshll.u32 %v13541_v57, 16  ;;  %v6423_v44 = vrot.slane %v6421_v36, 1  ;;  %v13577_v36 = vcombine.low %v5991_v51, %v5992_v16 }
 0x4b2   :  { %v4886_v34 = vpop.f32.mrb[84].mxu1 }
 0x4b3   :  { %v13561_v13 = vadd.f32 %v13203_v2, %v4886_v34  ;;  %v4888_v46 = vpop.f32.mrb[85].mxu1  ;;  %v6923_v2 = vrot.slane %v13554_v63, 1  ;;  %v6925_v34 = vrot.slane %v8848_v53, 1  ;;  %v6424_v9 = vsel %vm2746_vm9, %v6419_v15, %v6423_v44  ;;  %v6087_v53 = vld [vmem:[#allocation2 + $0x60] sm:$0xe] }
 0x4b4   :  { %9381 = vmatmul.mubr.bf16.vlgmr.msra.gmra.mrb[0].mxu0 %v6918_v22  ;;  %v6926_v22 = vrot.slane %v13557_v60, 1  ;;  %v15968_v46 = vld [vmem:[#allocation53_spill] sm:$0xff]  ;;  %v6430_v10 = vrot.slane %v6428_v3, 1  ;;  %v13586_v15 = vld [vmem:[#allocation2 + $0x5c] ss:$0 sps:$4 sm:$0x11]  }
 0x4b5   :  { %9361 = vmatmul.mubr.bf16.gmra.mrb[188].mxu1 %v3355_v45  ;;  %v8847_v45 = vcombine.low %v6084_v26, %v5992_v16  ;;  %15966 = vst [vmem:[#allocation43_spill] sm:$0xff] %v13561_v13  ;;  %9384 = vmatprep.mubr.bf16.mxu0 %v6921_v20  ;;  %v5488_v21 = vpop.f32.mrb[152].mxu0  ;;  %v6086_v20 = vld [vmem:[#allocation2 + $0x54] sm:$0xe]  ;;  %v6440_v13 = vshll.u32 %v13577_v36, 16 }
 0x4b6   :  { %7265 = vmatprep.mubr.bf16.mxu1 %v6412_v62  ;;  %v4889_v62 = vpop.f32.mrb[86].mxu1  ;;  %v13571_v8 = vadd.f32 %v5488_v21, %v15968_v46  ;;  %v5490_v28 = vpop.f32.mrb[153].mxu0  ;;  %v6426_v46 = vshrl.u32 %v13541_v57, 16  ;;  %v6927_v16 = vsel %vm3259_vm8, %v6925_v34, %v6926_v22  ;;  %v13601_v22 = vld [vmem:[#allocation2 + $0x70] sm:$0xf] }
 0x4b7   :  { %v13566_v41 = vadd.f32 %v13220_v29, %v4889_v62  ;;  %v4891_v26 = vpop.f32.mrb[87].mxu1  ;;  %v6922_v23 = vrot.slane %v8847_v45, 1  ;;  %v13575_v29 = vld [vmem:[#allocation2 + $0x58] sm:$0xf]  ;;  %v5491_v45 = vpop.f32.mrb[154].mxu0 }
 0x4b8   :  { %v13579_v62 = vld [vmem:[#allocation2 + $0x64] sm:$0xf]  ;;  %v15969_v26 = vld [vmem:[#allocation57_spill] sm:$0xff]  ;;  %v5493_v21 = vpop.f32.mrb[155].mxu0  ;;  %v8849_v51 = vcombine.low %v6086_v20, %v13575_v29  ;;  %v6088_v20 = vld [vmem:[#allocation2 + $0x6c] sm:$0xe] }
 0x4b9   :  { %15967 = vst [vmem:[#allocation46_spill] sm:$0xff] %v13566_v41  ;;  %v13582_v41 = vadd.f32 %v5491_v45, %v15969_v26  ;;  %v6924_v44 = vsel %vm3259_vm8, %v6922_v23, %v6923_v2  ;;  %v13591_v28 = vld [vmem:[#allocation2 + $0x68] ss:$0 sps:$4 sm:$0x11]   ;;  %v6431_v21 = vor.u32 %v6430_v10, %v6426_v46  ;;  %v6929_v10 = vrot.slane %v13586_v15, 1 }
 0x4ba   :  { %v4894_v3 = vpop.f32.mrb[88].mxu1  ;;  %v5993_v26 = vld [vmem:[#allocation2 + $0x48] sm:$0xf]  ;;  %v13608_v46 = vld [vmem:[#allocation2 + $0x7c] sm:$0xf] }
 0x4bb   :  { %15970 = vst [vmem:[#allocation45_spill] sm:$0xff] %v13582_v41  ;;  %v4896_v45 = vpop.f32.mrb[89].mxu1 }
 0x4bc   :  { %9385 = vmatmul.mubr.bf16.gmra.mrb[4].mxu0 %v6924_v44  ;;  %v4897_v41 = vpop.f32.mrb[90].mxu1  ;;  %v6928_v44 = vrot.slane %v8849_v51, 1  ;;  %v6442_v45 = vrot.slane %v6440_v13, 1 }
 0x4bd   :  { %7266 = vmatmul.mubr.bf16.vlgmr.msra.gmra.mrb[192].mxu1 %v13500_v31  ;;  %v6433_v31 = vshll.u32 %v13530_v48, 16  ;;  %v8850_v48 = vcombine.low %v6087_v53, %v13579_v62  ;;  %9388 = vmatprep.mubr.bf16.mxu0 %v6927_v16  ;;  %v13599_v23 = vadd.f32 %v13263_v49, %v4897_v41  ;;  %v4899_v2 = vpop.f32.mrb[91].mxu1  ;;  %v6932_v53 = vrot.slane %v13591_v28, 1 }
 0x4be   :  { %7273 = vmatprep.mubr.bf16.mxu1 %v6424_v9  ;;  %v13594_v9 = vadd.f32 %v13254_v42, %v4894_v3  ;;  %v13604_v42 = vcombine.low %v5993_v26, %v13544_v50  ;;  %v5496_v3 = vpop.f32.mrb[156].mxu0  ;;  %v6089_v50 = vld [vmem:[#allocation2 + $0x78] sm:$0xe] }
 0x4bf   :  { %15972 = vst [vmem:[#allocation47_spill] sm:$0xff] %v13599_v23  ;;  %v6435_v34 = vrot.slane %v6433_v31, 1  ;;  %v13611_v16 = vadd.f32 %v5496_v3, %v13089_v52  ;;  %v5498_v49 = vpop.f32.mrb[157].mxu0  ;;  %v6931_v31 = vrot.slane %v8850_v48, 1  ;;  %v6438_v23 = vshrl.u32 %v13577_v36, 16 }
 0x4c0   :  { %15971 = vst [vmem:[#allocation23_spill] sm:$0xff] %v13594_v9  ;;  %v5499_v26 = vpop.f32.mrb[158].mxu0  ;;  %v6445_v9 = vshll.u32 %v13554_v63, 16  ;;  %v13620_v52 = vld [vmem:[#allocation2 + $0x74] ss:$0 sps:$4 sm:$0x11]   ;;  %v8852_v13 = vcombine.low %v6089_v50, %v13608_v46 }
 0x4c1   :  { %v6436_v41 = vsel %vm2746_vm9, %v6431_v21, %v6435_v34  ;;  %v13616_v51 = vadd.f32 %v5499_v26, %v13101_v35  ;;  %v5501_v2 = vpop.f32.mrb[159].mxu0  ;;  %v8851_v21 = vcombine.low %v6088_v20, %v13601_v22  ;;  %v13624_v48 = vld [vmem:[#allocation2 + $0x80] ss:$0 sps:$4 sm:$0x11]   ;;  %v6933_v49 = vsel %vm3259_vm8, %v6931_v31, %v6932_v53  ;;  %v6090_v50 = vld [vmem:[#allocation2 + $0x84] sm:$0xe] }
 0x4c2   :  { %v4902_v3 = vpop.f32.mrb[92].mxu1  ;;  %v6452_v63 = vshll.u32 %v13604_v42, 16  ;;  %v5995_v2 = vld [vmem:[#allocation2 + $0x54] sm:$0xf] }
 0x4c3   :  { %15973 = vst [vmem:[#allocation22_spill] sm:$0xff] %v13616_v51  ;;  %v13628_v34 = vadd.f32 %v13252_v55, %v4902_v3  ;;  %v4904_v35 = vpop.f32.mrb[93].mxu1  ;;  %v13635_v51 = vld [vmem:[#allocation2 + $0x88] sm:$0xf]  ;;  %v6934_v3 = vrot.slane %v8851_v21, 1 }
 0x4c4   :  { %v4905_v26 = vpop.f32.mrb[94].mxu1  ;;  %v6937_v35 = vrot.slane %v8852_v13, 1 }
 0x4c5   :  { %7274 = vmatmul.mubr.bf16.gmra.mrb[196].mxu1 %v13522_v61  ;;  %v6930_v61 = vsel %vm3259_vm8, %v6928_v44, %v6929_v10  ;;  %15974 = vst [vmem:[#allocation24_spill] sm:$0xff] %v13628_v34  ;;  %v13633_v44 = vadd.f32 %v13258_v59, %v4905_v26  ;;  %v4907_v20 = vpop.f32.mrb[95].mxu1  ;;  %v6447_v10 = vrot.slane %v6445_v9, 1  ;;  %v5504_v55 = vpop.f32.mrb[160].mxu0  ;;  %v13644_v9 = vld [vmem:[#allocation2 + $0x94] sm:$0xf]  ;;  %v13647_v26 = vcombine.low %v5995_v2, %v13575_v29 }
 0x4c6   :  { %7281 = vmatprep.mubr.bf16.mxu1 %v6436_v41  ;;  %9389 = vmatmul.mubr.bf16.gmra.mrb[8].mxu0 %v6930_v61  ;;  %v6443_v41 = vor.u32 %v6442_v45, %v6438_v23  ;;  %v6935_v61 = vrot.slane %v13620_v52, 1  ;;  %v6938_v23 = vrot.slane %v13624_v48, 1  ;;  %v13640_v53 = vadd.f32 %v5504_v55, %v13136_v27  ;;  %v5506_v31 = vpop.f32.mrb[161].mxu0  ;;  %v5997_v2 = vld [vmem:[#allocation2 + $0x60] sm:$0xf] }
 0x4c7   :  { %9392 = vmatprep.mubr.bf16.mxu0 %v6933_v49  ;;  %15975 = vst [vmem:[#allocation26_spill] sm:$0xff] %v13633_v44  ;;  %v6454_v45 = vrot.slane %v6452_v63, 1  ;;  %v6091_v49 = vld [vmem:[#allocation2 + $0x90] sm:$0xe]  ;;  %v5507_v21 = vpop.f32.mrb[162].mxu0  ;;  %v6450_v27 = vshrl.u32 %v13604_v42, 16 }
 0x4c8   :  { %15976 = vst [vmem:[#allocation21_spill] sm:$0xff] %v13640_v53  ;;  %v6448_v59 = vsel %vm2746_vm9, %v6443_v41, %v6447_v10  ;;  %v13650_v13 = vadd.f32 %v5507_v21, %v13148_v39  ;;  %v5509_v20 = vpop.f32.mrb[163].mxu0  ;;  %v6457_v55 = vshll.u32 %v13557_v60, 16  ;;  %v6936_v63 = vsel %vm3259_vm8, %v6934_v3, %v6935_v61  ;;  %v13658_v31 = vld [vmem:[#allocation2 + $0x98] ss:$0 sps:$4 sm:$0x11]  }
 0x4c9   :  { %v8853_v10 = vcombine.low %v6090_v50, %v13635_v51  ;;  %v8854_v29 = vcombine.low %v6091_v49, %v13644_v9  ;;  %v6939_v21 = vsel %vm3259_vm8, %v6937_v35, %v6938_v23  ;;  %v6455_v60 = vor.u32 %v6454_v45, %v6450_v27  ;;  %v13669_v34 = vld [vmem:[#allocation2 + $0xa0] sm:$0xf]  ;;  %v6092_v49 = vld [vmem:[#allocation2 + $0x9c] sm:$0xe]  ;;  %v13676_v45 = vld [vmem:[#allocation2 + $0xac] sm:$0xf] }
 0x4ca   :  { %15977 = vst [vmem:[#allocation32_spill] sm:$0xff] %v13650_v13  ;;  %v4910_v41 = vpop.f32.mrb[96].mxu1  ;;  %v6464_v20 = vshll.u32 %v13647_v26, 16  ;;  %v6459_v61 = vrot.slane %v6457_v55, 1  ;;  %v6944_v23 = vrot.slane %v13658_v31, 1 }
 0x4cb   :  { %v13662_v39 = vadd.f32 %v13285_v5, %v4910_v41  ;;  %v13672_v5 = vcombine.low %v5997_v2, %v13579_v62  ;;  %v6943_v55 = vrot.slane %v8854_v29, 1  ;;  %v6093_v62 = vld [vmem:[#allocation2 + $0xa8] sm:$0xe]  ;;  %v13692_v29 = vld [vmem:[#allocation2 + $0xb0] ss:$0 sps:$4 sm:$0x11]  }
 0x4cd   :  { %7282 = vmatmul.mubr.bf16.gmra.mrb[200].mxu1 %v13541_v57  ;;  %v13654_v57 = vld [vmem:[#allocation2 + $0x8c] ss:$0 sps:$4 sm:$0x11]   ;;  %15978 = vst [vmem:[#allocation16_spill] sm:$0xff] %v13662_v39  ;;  %v5512_v41 = vpop.f32.mrb[164].mxu0 }
 0x4ce   :  { %7289 = vmatprep.mubr.bf16.mxu1 %v6448_v59  ;;  %v4912_v59 = vpop.f32.mrb[97].mxu1  ;;  %9393 = vmatmul.mubr.bf16.gmra.mrb[12].mxu0 %v6936_v63  ;;  %v6940_v63 = vrot.slane %v8853_v10, 1  ;;  %v6941_v35 = vrot.slane %v13654_v57, 1  ;;  %v13679_v27 = vadd.f32 %v5512_v41, %v13185_v19  ;;  %v13688_v19 = vld [vmem:[#allocation2 + $0xa4] ss:$0 sps:$4 sm:$0x11]  }
 0x4cf   :  { %v4913_v44 = vpop.f32.mrb[98].mxu1  ;;  %9396 = vmatprep.mubr.bf16.mxu0 %v6939_v21  ;;  %v6466_v59 = vrot.slane %v6464_v20, 1  ;;  %v8856_v20 = vcombine.low %v6093_v62, %v13676_v45 }
 0x4d0   :  { %v13667_v3 = vadd.f32 %v13296_v38, %v4913_v44  ;;  %v4915_v50 = vpop.f32.mrb[99].mxu1  ;;  %15980 = vst [vmem:[#allocation53_spill] sm:$0xff] %v13679_v27  ;;  %v5514_v38 = vpop.f32.mrb[165].mxu0  ;;  %v6460_v44 = vsel %vm2746_vm9, %v6455_v60, %v6459_v61  ;;  %v8855_v60 = vcombine.low %v6092_v49, %v13669_v34  ;;  %v15999_v27 = vld [vmem:[#allocation18_spill] sm:$0xff] }
 0x4d1   :  { %v5515_v2 = vpop.f32.mrb[166].mxu0  ;;  %v6462_v50 = vshrl.u32 %v13647_v26, 16  ;;  %v6945_v38 = vsel %vm3259_vm8, %v6943_v55, %v6944_v23 }
 0x4d2   :  { %15979 = vst [vmem:[#allocation33_spill] sm:$0xff] %v13667_v3  ;;  %v13684_v10 = vadd.f32 %v5515_v2, %v13198_v1  ;;  %v5517_v21 = vpop.f32.mrb[167].mxu0  ;;  %v6469_v3 = vshll.u32 %v13586_v15, 16  ;;  %v4918_v41 = vpop.f32.mrb[100].mxu1  ;;  %v6476_v15 = vshll.u32 %v13672_v5, 16  ;;  %v6946_v62 = vrot.slane %v8855_v60, 1 }
 0x4d3   :  { %v13696_v61 = vadd.f32 %v13283_v40, %v4918_v41  ;;  %v4920_v1 = vpop.f32.mrb[101].mxu1  ;;  %v5999_v21 = vld [vmem:[#allocation2 + $0x6c] sm:$0xf]  ;;  %v6947_v40 = vrot.slane %v13688_v19, 1  ;;  %v6949_v41 = vrot.slane %v8856_v20, 1 }
 0x4d4   :  { %15981 = vst [vmem:[#allocation57_spill] sm:$0xff] %v13684_v10  ;;  %v4921_v2 = vpop.f32.mrb[102].mxu1  ;;  %v6471_v39 = vrot.slane %v6469_v3, 1  ;;  %v15985_v1 = vld [vmem:[#allocation40_spill] sm:$0xff]  ;;  %v13713_v3 = vcombine.low %v5999_v21, %v13601_v22  ;;  %v13715_v20 = vld [vmem:[#allocation2 + $0xc4] sm:$0xf] }
 0x4d5   :  { %7290 = vmatmul.mubr.bf16.gmra.mrb[204].mxu1 %v13577_v36  ;;  %v6942_v36 = vsel %vm3259_vm8, %v6940_v63, %v6941_v35  ;;  %15982 = vst [vmem:[#allocation85_spill] sm:$0xff] %v13696_v61  ;;  %v15983_v63 = vld [vmem:[#allocation42_spill] sm:$0xff]  ;;  %v4923_v49 = vpop.f32.mrb[103].mxu1  ;;  %v5520_v13 = vpop.f32.mrb[168].mxu0  ;;  %v15989_v61 = vld [vmem:[#allocation20_spill] sm:$0xff] }
 0x4d6   :  { %7297 = vmatprep.mubr.bf16.mxu1 %v6460_v44  ;;  %9397 = vmatmul.mubr.bf16.gmra.mrb[16].mxu0 %v6942_v36  ;;  %v6467_v44 = vor.u32 %v6466_v59, %v6462_v50  ;;  %v13701_v35 = vadd.f32 %v15983_v63, %v4921_v2  ;;  %v6950_v36 = vrot.slane %v13692_v29, 1  ;;  %v13706_v23 = vadd.f32 %v5520_v13, %v15985_v1  ;;  %v5522_v55 = vpop.f32.mrb[169].mxu0  ;;  %v6094_v2 = vld [vmem:[#allocation2 + $0xb4] sm:$0xe]  ;;  %v6095_v63 = vld [vmem:[#allocation2 + $0xc0] sm:$0xe] }
 0x4d7   :  { %9400 = vmatprep.mubr.bf16.mxu0 %v6945_v38  ;;  %v6478_v50 = vrot.slane %v6476_v15, 1  ;;  %v13710_v38 = vld [vmem:[#allocation2 + $0xb8] sm:$0xf]  ;;  %v5523_v60 = vpop.f32.mrb[170].mxu0  ;;  %v15987_v49 = vld [vmem:[#allocation76_spill] sm:$0xff]  ;;  %v6948_v55 = vsel %vm3259_vm8, %v6946_v62, %v6947_v40 }
 0x4d8   :  { %15984 = vst [vmem:[#allocation42_spill] sm:$0xff] %v13701_v35  ;;  %15986 = vst [vmem:[#allocation40_spill] sm:$0xff] %v13706_v23  ;;  %v6472_v59 = vsel %vm2746_vm9, %v6467_v44, %v6471_v39  ;;  %v13718_v13 = vadd.f32 %v5523_v60, %v15987_v49  ;;  %v5525_v1 = vpop.f32.mrb[171].mxu0  ;;  %v6481_v39 = vshll.u32 %v13591_v28, 16  ;;  %v6951_v22 = vsel %vm3259_vm8, %v6949_v41, %v6950_v36  ;;  %v6001_v35 = vld [vmem:[#allocation2 + $0x78] sm:$0xf] }
 0x4d9   :  { %v13722_v44 = vld [vmem:[#allocation2 + $0xbc] ss:$0 sps:$4 sm:$0x11]   ;;  %v8857_v21 = vcombine.low %v6094_v2, %v13710_v38  ;;  %v8858_v28 = vcombine.low %v6095_v63, %v13715_v20  ;;  %v13737_v2 = vld [vmem:[#allocation2 + $0xd0] sm:$0xf] }
 0x4da   :  { %15988 = vst [vmem:[#allocation76_spill] sm:$0xff] %v13718_v13  ;;  %v4926_v15 = vpop.f32.mrb[104].mxu1  ;;  %v6488_v13 = vshll.u32 %v13713_v3, 16  ;;  %v15991_v62 = vld [vmem:[#allocation82_spill] sm:$0xff]  ;;  %v6483_v36 = vrot.slane %v6481_v39, 1 }
 0x4db   :  { %v13730_v60 = vadd.f32 %v15989_v61, %v4926_v15  ;;  %v4928_v49 = vpop.f32.mrb[105].mxu1  ;;  %v6096_v10 = vld [vmem:[#allocation2 + $0xcc] sm:$0xe]  ;;  %v13740_v61 = vcombine.low %v6001_v35, %v13608_v46  ;;  %v6955_v39 = vrot.slane %v8858_v28, 1  ;;  %v9861_v28 = vld [vmem:[#allocation2 + $0xf4] sm:$0xf] }
 0x4dc   :  { %v4929_v23 = vpop.f32.mrb[106].mxu1  ;;  %v13749_v46 = vld [vmem:[#allocation2 + $0xd4] ss:$0 sps:$4 sm:$0x11]   ;;  %v8859_v35 = vcombine.low %v6096_v10, %v13737_v2 }
 0x4dd   :  { %7298 = vmatmul.mubr.bf16.gmra.mrb[208].mxu1 %v13604_v42  ;;  %v6474_v42 = vshrl.u32 %v13672_v5, 16  ;;  %15990 = vst [vmem:[#allocation20_spill] sm:$0xff] %v13730_v60  ;;  %v13735_v40 = vadd.f32 %v15991_v62, %v4929_v23  ;;  %v4931_v41 = vpop.f32.mrb[107].mxu1  ;;  %v5528_v15 = vpop.f32.mrb[172].mxu0  ;;  %v6490_v62 = vrot.slane %v6488_v13, 1 }
 0x4de   :  { %7305 = vmatprep.mubr.bf16.mxu1 %v6472_v59  ;;  %v13727_v59 = vld [vmem:[#allocation2 + $0xc8] ss:$0 sps:$4 sm:$0x11]   ;;  %9401 = vmatmul.mubr.bf16.gmra.mrb[20].mxu0 %v6948_v55  ;;  %v6952_v55 = vrot.slane %v8857_v21, 1  ;;  %v6097_v41 = vld [vmem:[#allocation2 + $0xf0] sm:$0xe] }
 0x4df   :  { %v6479_v1 = vor.u32 %v6478_v50, %v6474_v42  ;;  %9404 = vmatprep.mubr.bf16.mxu0 %v6951_v22  ;;  %15992 = vst [vmem:[#allocation82_spill] sm:$0xff] %v13735_v40  ;;  %v6953_v50 = vrot.slane %v13722_v44, 1  ;;  %v6956_v63 = vrot.slane %v13727_v59, 1  ;;  %v15993_v42 = vld [vmem:[#allocation41_spill] sm:$0xff]  ;;  %v5530_v22 = vpop.f32.mrb[173].mxu0  ;;  %v15995_v21 = vld [vmem:[#allocation78_spill] sm:$0xff]  ;;  %v8860_v13 = vcombine.low %v6097_v41, %v9861_v28 }
 0x4e0   :  { %v13745_v49 = vadd.f32 %v5528_v15, %v15993_v42  ;;  %v5531_v40 = vpop.f32.mrb[174].mxu0  ;;  %v6486_v15 = vshrl.u32 %v13713_v3, 16  ;;  %v6493_v42 = vshll.u32 %v13620_v52, 16  ;;  %v6959_v52 = vrot.slane %v13749_v46, 1 }
 0x4e1   :  { %v6484_v23 = vsel %vm2746_vm9, %v6479_v1, %v6483_v36  ;;  %v13753_v60 = vadd.f32 %v5531_v40, %v15995_v21  ;;  %v5533_v53 = vpop.f32.mrb[175].mxu0  ;;  %v6954_v1 = vsel %vm3259_vm8, %v6952_v55, %v6953_v50  ;;  %v15997_v36 = vld [vmem:[#allocation81_spill] sm:$0xff]  ;;  %v6957_v10 = vsel %vm3259_vm8, %v6955_v39, %v6956_v63 }
 0x4e2   :  { %15994 = vst [vmem:[#allocation41_spill] sm:$0xff] %v13745_v49  ;;  %v6491_v49 = vor.u32 %v6490_v62, %v6486_v15  ;;  %v6500_v40 = vshll.u32 %v13740_v61, 16  ;;  %v6958_v21 = vrot.slane %v8859_v35, 1  ;;  %v6495_v41 = vrot.slane %v6493_v42, 1  ;;  %v6098_v15 = vld [vmem:[#allocation2 + $0xfc] sm:$0xe] }
 0x4e3   :  { %15996 = vst [vmem:[#allocation78_spill] sm:$0xff] %v13753_v60  ;;  %v6003_v60 = vld [vmem:[#allocation2 + $0x84] sm:$0xf]  ;;  %v6961_v28 = vrot.slane %v8860_v13, 1  ;;  %v16002_v13 = vld [vmem:[#allocation80_spill] sm:$0xff] }
 0x4e4   :  { %v6496_v62 = vsel %vm2746_vm9, %v6491_v49, %v6495_v41  ;;  %v6502_v35 = vrot.slane %v6500_v40, 1  ;;  %v6960_v42 = vsel %vm3259_vm8, %v6958_v21, %v6959_v52  ;;  %v9863_v40 = vld [vmem:[#allocation2 + $0x100] sm:$0xf] }
 0x4e5   :  { %7306 = vmatmul.mubr.bf16.gmra.mrb[212].mxu1 %v13647_v26  ;;  %v4934_v26 = vpop.f32.mrb[108].mxu1  ;;  %v8861_v41 = vcombine.low %v6098_v15, %v9863_v40 }
 0x4e6   :  { %7313 = vmatprep.mubr.bf16.mxu1 %v6484_v23  ;;  %v13759_v22 = vadd.f32 %v15997_v36, %v4934_v26  ;;  %v4936_v23 = vpop.f32.mrb[109].mxu1  ;;  %9405 = vmatmul.mubr.bf16.gmra.mrb[24].mxu0 %v6954_v1  ;;  %v5536_v26 = vpop.f32.mrb[176].mxu0  ;;  %v9862_v36 = vld [vmem:[#allocation2 + $0xf8] ss:$0 sps:$4 sm:$0x11]  }
 0x4e7   :  { %v4937_v53 = vpop.f32.mrb[110].mxu1  ;;  %9408 = vmatprep.mubr.bf16.mxu0 %v6957_v10  ;;  %v6962_v1 = vrot.slane %v9862_v36, 1  ;;  %v16001_v23 = vld [vmem:[#allocation79_spill] sm:$0xff]  ;;  %v5538_v39 = vpop.f32.mrb[177].mxu0  ;;  %v6099_v10 = vld [vmem:[#allocation2 + $0x108] sm:$0xe] }
 0x4e8   :  { %15998 = vst [vmem:[#allocation81_spill] sm:$0xff] %v13759_v22  ;;  %v13765_v55 = vadd.f32 %v15999_v27, %v4937_v53  ;;  %v4939_v50 = vpop.f32.mrb[111].mxu1  ;;  %v13768_v63 = vadd.f32 %v5536_v26, %v16001_v23  ;;  %v13773_v27 = vcombine.low %v6003_v60, %v13635_v51  ;;  %v5539_v53 = vpop.f32.mrb[178].mxu0  ;;  %v6498_v36 = vshrl.u32 %v13740_v61, 16  ;;  %v6005_v23 = vld [vmem:[#allocation2 + $0x90] sm:$0xf] }
 0x4e9   :  { %v13777_v50 = vadd.f32 %v5539_v53, %v16002_v13  ;;  %v5541_v26 = vpop.f32.mrb[179].mxu0  ;;  %v9864_v39 = vld [vmem:[#allocation2 + $0x10c] sm:$0xf]  ;;  %v16004_v51 = vld [vmem:[#allocation25_spill] sm:$0xff]  ;;  %v6963_v21 = vsel %vm3259_vm8, %v6961_v28, %v6962_v1  ;;  %v16008_v1 = vld [vmem:[#allocation15_spill] sm:$0xff] }
 0x4ea   :  { %16000 = vst [vmem:[#allocation18_spill] sm:$0xff] %v13765_v55  ;;  %v4942_v49 = vpop.f32.mrb[112].mxu1  ;;  %v8862_v55 = vcombine.low %v6099_v10, %v9864_v39  ;;  %v6503_v52 = vor.u32 %v6502_v35, %v6498_v36  ;;  %v6512_v53 = vshll.u32 %v13773_v27, 16  ;;  %v16006_v26 = vld [vmem:[#allocation44_spill] sm:$0xff] }
 0x4eb   :  { %16003 = vst [vmem:[#allocation79_spill] sm:$0xff] %v13777_v50  ;;  %v13782_v60 = vadd.f32 %v16004_v51, %v4942_v49  ;;  %v6964_v49 = vrot.slane %v8861_v41, 1  ;;  %v9865_v39 = vld [vmem:[#allocation2 + $0x104] ss:$0 sps:$4 sm:$0x11]  }
 0x4ec   :  { %v6965_v51 = vrot.slane %v9865_v39, 1  ;;  %v6517_v39 = vshll.u32 %v13654_v57, 16  ;;  %v6007_v57 = vld [vmem:[#allocation2 + $0x9c] sm:$0xf] }
 0x4ed   :  { %7314 = vmatmul.mubr.bf16.gmra.mrb[216].mxu1 %v13672_v5  ;;  %v6505_v5 = vshll.u32 %v13624_v48, 16  ;;  %16005 = vst [vmem:[#allocation80_spill] sm:$0xff] %v13782_v60  ;;  %v13787_v48 = vcombine.low %v6005_v23, %v13644_v9  ;;  %v5544_v40 = vpop.f32.mrb[180].mxu0  ;;  %v6514_v23 = vrot.slane %v6512_v53, 1  ;;  %v16012_v60 = vld [vmem:[#allocation31_spill] sm:$0xff] }
 0x4ee   :  { %7321 = vmatprep.mubr.bf16.mxu1 %v6496_v62  ;;  %v4944_v62 = vpop.f32.mrb[113].mxu1  ;;  %9409 = vmatmul.mubr.bf16.gmra.mrb[28].mxu0 %v6960_v42  ;;  %v6967_v42 = vrot.slane %v8862_v55, 1  ;;  %v13793_v35 = vadd.f32 %v5544_v40, %v16008_v1  ;;  %v5546_v36 = vpop.f32.mrb[181].mxu0  ;;  %v6510_v55 = vshrl.u32 %v13773_v27, 16  ;;  %v9867_v1 = vld [vmem:[#allocation2 + $0x118] sm:$0xf] }
 0x4ef   :  { %v4945_v13 = vpop.f32.mrb[114].mxu1  ;;  %9412 = vmatprep.mubr.bf16.mxu0 %v6963_v21  ;;  %v6507_v10 = vrot.slane %v6505_v5, 1  ;;  %v9866_v62 = vld [vmem:[#allocation2 + $0x110] ss:$0 sps:$4 sm:$0x11]   ;;  %v6524_v53 = vshll.u32 %v13787_v48, 16 }
 0x4f0   :  { %v13790_v22 = vadd.f32 %v16006_v26, %v4945_v13  ;;  %v4947_v15 = vpop.f32.mrb[115].mxu1  ;;  %v6968_v28 = vrot.slane %v9866_v62, 1  ;;  %v6100_v21 = vld [vmem:[#allocation2 + $0x114] sm:$0xe]  ;;  %v6101_v13 = vld [vmem:[#allocation2 + $0x120] sm:$0xe]  ;;  %v6966_v62 = vsel %vm3259_vm8, %v6964_v49, %v6965_v51 }
 0x4f1   :  { %v6508_v9 = vsel %vm2746_vm9, %v6503_v52, %v6507_v10  ;;  %v5547_v26 = vpop.f32.mrb[182].mxu0  ;;  %v16009_v5 = vld [vmem:[#allocation49_spill] sm:$0xff]  ;;  %v9868_v36 = vld [vmem:[#allocation2 + $0x124] sm:$0xf]  ;;  %v16011_v10 = vld [vmem:[#allocation50_spill] sm:$0xff]  ;;  %v6519_v51 = vrot.slane %v6517_v39, 1 }
 0x4f2   :  { %16007 = vst [vmem:[#allocation25_spill] sm:$0xff] %v13790_v22  ;;  %v13798_v41 = vadd.f32 %v5547_v26, %v16009_v5  ;;  %v5549_v15 = vpop.f32.mrb[183].mxu0  ;;  %v4950_v40 = vpop.f32.mrb[116].mxu1  ;;  %v8864_v52 = vcombine.low %v6101_v13, %v9868_v36  ;;  %v6969_v26 = vsel %vm3259_vm8, %v6967_v42, %v6968_v28  ;;  %v6515_v5 = vor.u32 %v6514_v23, %v6510_v55  ;;  %v9870_v28 = vld [vmem:[#allocation2 + $0x128] ss:$0 sps:$4 sm:$0x11]  }
 0x4f3   :  { %v13805_v22 = vadd.f32 %v16011_v10, %v4950_v40  ;;  %v6526_v40 = vrot.slane %v6524_v53, 1  ;;  %v16014_v10 = vld [vmem:[#allocation14_spill] sm:$0xff]  ;;  %v6974_v23 = vrot.slane %v9870_v28, 1  ;;  %v13817_v55 = vcombine.low %v6007_v57, %v13669_v34 }
 0x4f4   :  { %16010 = vst [vmem:[#allocation44_spill] sm:$0xff] %v13798_v41  ;;  %v6973_v41 = vrot.slane %v8864_v52, 1  ;;  %v6520_v42 = vsel %vm2746_vm9, %v6515_v5, %v6519_v51  ;;  %v6529_v52 = vshll.u32 %v13658_v31, 16  ;;  %v6103_v53 = vld [vmem:[#allocation2 + $0x138] sm:$0xe] }
 0x4f5   :  { %7322 = vmatmul.mubr.bf16.gmra.mrb[220].mxu1 %v13713_v3  ;;  %v8863_v3 = vcombine.low %v6100_v21, %v9867_v1  ;;  %v5552_v21 = vpop.f32.mrb[184].mxu0  ;;  %v9869_v1 = vld [vmem:[#allocation2 + $0x11c] ss:$0 sps:$4 sm:$0x11]  }
 0x4f6   :  { %7329 = vmatprep.mubr.bf16.mxu1 %v6508_v9  ;;  %v4952_v9 = vpop.f32.mrb[117].mxu1  ;;  %9413 = vmatmul.mubr.bf16.gmra.mrb[32].mxu0 %v6966_v62  ;;  %v6971_v36 = vrot.slane %v9869_v1, 1  ;;  %v5554_v62 = vpop.f32.mrb[185].mxu0  ;;  %v16016_v34 = vld [vmem:[#allocation30_spill] sm:$0xff] }
 0x4f7   :  { %v4953_v15 = vpop.f32.mrb[118].mxu1  ;;  %9416 = vmatprep.mubr.bf16.mxu0 %v6969_v26  ;;  %v6970_v13 = vrot.slane %v8863_v3, 1  ;;  %v13812_v9 = vadd.f32 %v5552_v21, %v16014_v10  ;;  %v5555_v39 = vpop.f32.mrb[186].mxu0  ;;  %v6522_v3 = vshrl.u32 %v13787_v48, 16  ;;  %v16015_v26 = vld [vmem:[#allocation29_spill] sm:$0xff] }
 0x4f8   :  { %v13809_v50 = vadd.f32 %v16012_v60, %v4953_v15  ;;  %v4955_v49 = vpop.f32.mrb[119].mxu1  ;;  %v6102_v60 = vld [vmem:[#allocation2 + $0x12c] sm:$0xe]  ;;  %v13822_v15 = vadd.f32 %v5555_v39, %v16015_v26  ;;  %v9871_v21 = vld [vmem:[#allocation2 + $0x130] sm:$0xf]  ;;  %v6536_v39 = vshll.u32 %v13817_v55, 16 }
 0x4f9   :  { %v5557_v49 = vpop.f32.mrb[187].mxu0  ;;  %v6972_v5 = vsel %vm3259_vm8, %v6970_v13, %v6971_v36  ;;  %v6527_v51 = vor.u32 %v6526_v40, %v6522_v3  ;;  %v8865_v1 = vcombine.low %v6102_v60, %v9871_v21  ;;  %v6009_v10 = vld [vmem:[#allocation2 + $0xa8] sm:$0xf]  ;;  %v9872_v31 = vld [vmem:[#allocation2 + $0x13c] sm:$0xf] }
 0x4fa   :  { %16013 = vst [vmem:[#allocation15_spill] sm:$0xff] %v13809_v50  ;;  %v8866_v28 = vcombine.low %v6103_v53, %v9872_v31  ;;  %v6531_v49 = vrot.slane %v6529_v52, 1  ;;  %v16018_v50 = vld [vmem:[#allocation84_spill] sm:$0xff]  ;;  %v13834_v40 = vcombine.low %v6009_v10, %v13676_v45  ;;  %v6105_v45 = vld [vmem:[#allocation2 + $0x150] sm:$0xe] }
 0x4fc   :  { %v6532_v3 = vsel %vm2746_vm9, %v6527_v51, %v6531_v49  ;;  %v6979_v52 = vrot.slane %v8866_v28, 1 }
 0x4fd   :  { %7330 = vmatmul.mubr.bf16.gmra.mrb[224].mxu1 %v13740_v61  ;;  %v4958_v61 = vpop.f32.mrb[120].mxu1  ;;  %v5560_v60 = vpop.f32.mrb[188].mxu0 }
 0x4fe   :  { %7337 = vmatprep.mubr.bf16.mxu1 %v6520_v42  ;;  %v13826_v57 = vadd.f32 %v16016_v34, %v4958_v61  ;;  %v4960_v62 = vpop.f32.mrb[121].mxu1  ;;  %9417 = vmatmul.mubr.bf16.gmra.mrb[36].mxu0 %v6972_v5  ;;  %v6975_v42 = vsel %vm3259_vm8, %v6973_v41, %v6974_v23  ;;  %v6976_v61 = vrot.slane %v8865_v1, 1  ;;  %v9873_v5 = vld [vmem:[#allocation2 + $0x134] ss:$0 sps:$4 sm:$0x11]   ;;  %v16020_v23 = vld [vmem:[#allocation28_spill] sm:$0xff] }
 0x4ff   :  { %v4961_v26 = vpop.f32.mrb[122].mxu1  ;;  %9420 = vmatprep.mubr.bf16.mxu0 %v6975_v42  ;;  %v6977_v41 = vrot.slane %v9873_v5, 1  ;;  %v13838_v53 = vadd.f32 %v5560_v60, %v16020_v23  ;;  %v5562_v21 = vpop.f32.mrb[189].mxu0  ;;  %v9874_v34 = vld [vmem:[#allocation2 + $0x140] ss:$0 sps:$4 sm:$0x11]  }
 0x500   :  { %16017 = vst [vmem:[#allocation49_spill] sm:$0xff] %v13826_v57  ;;  %v13831_v13 = vadd.f32 %v16018_v50, %v4961_v26  ;;  %v4963_v36 = vpop.f32.mrb[123].mxu1  ;;  %v6980_v50 = vrot.slane %v9874_v34, 1  ;;  %v6538_v62 = vrot.slane %v6536_v39, 1  ;;  %v6104_v42 = vld [vmem:[#allocation2 + $0x144] sm:$0xe] }
 0x501   :  { %v5563_v31 = vpop.f32.mrb[190].mxu0  ;;  %v6534_v1 = vshrl.u32 %v13817_v55, 16  ;;  %v6541_v26 = vshll.u32 %v13688_v19, 16  ;;  %v6978_v36 = vsel %vm3259_vm8, %v6976_v61, %v6977_v41  ;;  %v6548_v60 = vshll.u32 %v13834_v40, 16  ;;  %v16021_v39 = vld [vmem:[#allocation34_spill] sm:$0xff] }
 0x502   :  { %16019 = vst [vmem:[#allocation50_spill] sm:$0xff] %v13831_v13  ;;  %v13842_v10 = vadd.f32 %v5563_v31, %v13406_v11  ;;  %v5565_v51 = vpop.f32.mrb[191].mxu0  ;;  %v4966_v49 = vpop.f32.mrb[124].mxu1  ;;  %v6981_v11 = vsel %vm3259_vm8, %v6979_v52, %v6980_v50  ;;  %v9876_v21 = vld [vmem:[#allocation2 + $0x154] sm:$0xf] }
 0x503   :  { %v13849_v5 = vadd.f32 %v16021_v39, %v4966_v49  ;;  %v6539_v23 = vor.u32 %v6538_v62, %v6534_v1  ;;  %v8868_v34 = vcombine.low %v6105_v45, %v9876_v21  ;;  %v6011_v19 = vld [vmem:[#allocation2 + $0xb4] sm:$0xf]  ;;  %v16022_v51 = vld [vmem:[#allocation83_spill] sm:$0xff]  ;;  %v6543_v41 = vrot.slane %v6541_v26, 1  ;;  %v6106_v1 = vld [vmem:[#allocation2 + $0x15c] sm:$0xe] }
 0x504   :  { %v9877_v57 = vld [vmem:[#allocation2 + $0x14c] ss:$0 sps:$4 sm:$0x11]   ;;  %v9878_v39 = vld [vmem:[#allocation2 + $0x158] ss:$0 sps:$4 sm:$0x11]  }
 0x505   :  { %7338 = vmatmul.mubr.bf16.gmra.mrb[228].mxu1 %v13773_v27  ;;  %v9875_v27 = vld [vmem:[#allocation2 + $0x148] sm:$0xf]  ;;  %v6983_v49 = vrot.slane %v9877_v57, 1  ;;  %v6544_v62 = vsel %vm2746_vm9, %v6539_v23, %v6543_v41  ;;  %v6985_v45 = vrot.slane %v8868_v34, 1  ;;  %v6546_v57 = vshrl.u32 %v13834_v40, 16 }
 0x506   :  { %7345 = vmatprep.mubr.bf16.mxu1 %v6532_v3  ;;  %v8867_v28 = vcombine.low %v6104_v42, %v9875_v27  ;;  %v4968_v3 = vpop.f32.mrb[125].mxu1  ;;  %9421 = vmatmul.mubr.bf16.gmra.mrb[40].mxu0 %v6978_v36  ;;  %v5568_v42 = vpop.f32.mrb[192].mxu0  ;;  %v6550_v36 = vrot.slane %v6548_v60, 1  ;;  %v6107_v60 = vld [vmem:[#allocation2 + $0x168] sm:$0xe] }
 0x507   :  { %v4969_v31 = vpop.f32.mrb[126].mxu1  ;;  %9424 = vmatprep.mubr.bf16.mxu0 %v6981_v11  ;;  %v6986_v3 = vrot.slane %v9878_v39, 1  ;;  %v13856_v52 = vadd.f32 %v5568_v42, %v13426_v24  ;;  %v5570_v50 = vpop.f32.mrb[193].mxu0  ;;  %v13861_v11 = vcombine.low %v6011_v19, %v13710_v38 }
 0x508   :  { %v13853_v13 = vadd.f32 %v16022_v51, %v4969_v31  ;;  %v4971_v61 = vpop.f32.mrb[127].mxu1  ;;  %v6982_v27 = vrot.slane %v8867_v28, 1  ;;  %v5571_v26 = vpop.f32.mrb[194].mxu0  ;;  %v6553_v28 = vshll.u32 %v13692_v29, 16  ;;  %v6013_v31 = vld [vmem:[#allocation2 + $0xc0] sm:$0xf]  ;;  %v6551_v34 = vor.u32 %v6550_v36, %v6546_v57 }
 0x509   :  { %v13866_v24 = vadd.f32 %v5571_v26, %v13434_v7  ;;  %v5573_v21 = vpop.f32.mrb[195].mxu0  ;;  %v9879_v51 = vld [vmem:[#allocation2 + $0x160] sm:$0xf]  ;;  %v6987_v41 = vsel %vm3259_vm8, %v6985_v45, %v6986_v3  ;;  %v9880_v29 = vld [vmem:[#allocation2 + $0x16c] sm:$0xf]  ;;  %v6560_v7 = vshll.u32 %v13861_v11, 16 }
 0x50a   :  { %v6984_v23 = vsel %vm3259_vm8, %v6982_v27, %v6983_v49  ;;  %v8869_v61 = vcombine.low %v6106_v1, %v9879_v51  ;;  %v8870_v42 = vcombine.low %v6107_v60, %v9880_v29  ;;  %v6555_v27 = vrot.slane %v6553_v28, 1  ;;  %v9881_v26 = vld [vmem:[#allocation2 + $0x164] ss:$0 sps:$4 sm:$0x11]  }
 0x50b   :  { %v13878_v49 = vcombine.low %v6013_v31, %v13715_v20  ;;  %v9882_v60 = vld [vmem:[#allocation2 + $0x170] ss:$0 sps:$4 sm:$0x11]   ;;  %v6562_v21 = vrot.slane %v6560_v7, 1  ;;  %v6108_v31 = vld [vmem:[#allocation2 + $0x174] sm:$0xe] }
 0x50c   :  { %v6556_v45 = vsel %vm2746_vm9, %v6551_v34, %v6555_v27  ;;  %v6988_v1 = vrot.slane %v8869_v61, 1  ;;  %v6991_v20 = vrot.slane %v8870_v42, 1  ;;  %v6558_v51 = vshrl.u32 %v13861_v11, 16  ;;  %v6015_v42 = vld [vmem:[#allocation2 + $0xcc] sm:$0xf] }
 0x50d   :  { %7346 = vmatmul.mubr.bf16.gmra.mrb[232].mxu1 %v13787_v48  ;;  %v9302_v48 = vpop.f32.mrb[128].mxu1  ;;  %v5576_v3 = vpop.f32.mrb[196].mxu0  ;;  %v6572_v29 = vshll.u32 %v13878_v49, 16 }
 0x50e   :  { %7353 = vmatprep.mubr.bf16.mxu1 %v6544_v62  ;;  %v13870_v38 = vadd.f32 %v9302_v48, %v13442_v18  ;;  %v5729_v19 = vpop.f32.mrb[129].mxu1  ;;  %9425 = vmatmul.mubr.bf16.gmra.mrb[44].mxu0 %v6984_v23  ;;  %v13888_v57 = vadd.f32 %v5576_v3, %v13456_v33  ;;  %v5578_v28 = vpop.f32.mrb[197].mxu0  ;;  %v6565_v33 = vshll.u32 %v13722_v44, 16  ;;  %v6563_v27 = vor.u32 %v6562_v21, %v6558_v51  ;;  %v6110_v51 = vld [vmem:[#allocation2 + $0x18c] sm:$0xe] }
 0x50f   :  { %v13875_v39 = vadd.f32 %v5729_v19, %v13412_v17  ;;  %v9303_v50 = vpop.f32.mrb[130].mxu1  ;;  %9428 = vmatprep.mubr.bf16.mxu0 %v6987_v41  ;;  %v6989_v17 = vrot.slane %v9881_v26, 1  ;;  %v5579_v48 = vpop.f32.mrb[198].mxu0 }
 0x510   :  { %v13881_v18 = vadd.f32 %v9303_v50, %v13449_v56  ;;  %v5732_v36 = vpop.f32.mrb[131].mxu1  ;;  %v6992_v56 = vrot.slane %v9882_v60, 1  ;;  %v13892_v23 = vadd.f32 %v5579_v48, %v13464_v58  ;;  %v5581_v34 = vpop.f32.mrb[199].mxu0 }
 0x511   :  { %v13884_v62 = vadd.f32 %v5732_v36, %v13419_v14  ;;  %v6109_v14 = vld [vmem:[#allocation2 + $0x180] sm:$0xe]  ;;  %v6990_v19 = vsel %vm3259_vm8, %v6988_v1, %v6989_v17  ;;  %v9884_v36 = vld [vmem:[#allocation2 + $0x184] sm:$0xf]  ;;  %v6567_v17 = vrot.slane %v6565_v33, 1 }
 0x512   :  { %v6993_v58 = vsel %vm3259_vm8, %v6991_v20, %v6992_v56  ;;  %v8872_v3 = vcombine.low %v6109_v14, %v9884_v36  ;;  %v9885_v56 = vld [vmem:[#allocation2 + $0x17c] ss:$0 sps:$4 sm:$0x11]   ;;  %v9886_v34 = vld [vmem:[#allocation2 + $0x188] ss:$0 sps:$4 sm:$0x11]  }
 0x513   :  { %v6995_v21 = vrot.slane %v9885_v56, 1 }
 0x514   :  { %v6997_v14 = vrot.slane %v8872_v3, 1 }
 0x515   :  { %7354 = vmatmul.mubr.bf16.gmra.mrb[236].mxu1 %v13817_v55  ;;  %v9306_v61 = vpop.f32.mrb[132].mxu1  ;;  %v9883_v55 = vld [vmem:[#allocation2 + $0x178] sm:$0xf]  ;;  %v5584_v20 = vpop.f32.mrb[200].mxu0 }
 0x516   :  { %7361 = vmatprep.mubr.bf16.mxu1 %v6556_v45  ;;  %v8871_v41 = vcombine.low %v6108_v31, %v9883_v55  ;;  %v13899_v7 = vadd.f32 %v9306_v61, %v13497_v25  ;;  %v5745_v50 = vpop.f32.mrb[133].mxu1  ;;  %9429 = vmatmul.mubr.bf16.gmra.mrb[48].mxu0 %v6990_v19  ;;  %v13909_v25 = vcombine.low %v6015_v42, %v13737_v2  ;;  %v6574_v31 = vrot.slane %v6572_v29, 1  ;;  %v5586_v48 = vpop.f32.mrb[201].mxu0  ;;  %v6111_v61 = vld [vmem:[#allocation2 + $0x198] sm:$0xe]  ;;  %v16023_v19 = vld [vmem:[#allocation59_spill] sm:$0xff] }
 0x517   :  { %v13903_v44 = vadd.f32 %v5745_v50, %v13472_v47  ;;  %v9307_v45 = vpop.f32.mrb[134].mxu1  ;;  %9432 = vmatprep.mubr.bf16.mxu0 %v6993_v58  ;;  %v13915_v47 = vadd.f32 %v5584_v20, %v13484_v4  ;;  %v6998_v2 = vrot.slane %v9886_v34, 1  ;;  %v5587_v33 = vpop.f32.mrb[202].mxu0  ;;  %v6570_v4 = vshrl.u32 %v13878_v49, 16  ;;  %v9887_v50 = vld [vmem:[#allocation2 + $0x190] sm:$0xf] }
 0x518   :  { %v13906_v1 = vadd.f32 %v9307_v45, %v13503_v54  ;;  %v5748_v26 = vpop.f32.mrb[135].mxu1  ;;  %v6994_v60 = vrot.slane %v8871_v41, 1  ;;  %v6568_v54 = vsel %vm2746_vm9, %v6563_v27, %v6567_v17  ;;  %v13921_v55 = vadd.f32 %v5587_v33, %v16023_v19  ;;  %v5589_v41 = vpop.f32.mrb[203].mxu0  ;;  %v9888_v45 = vld [vmem:[#allocation2 + $0x19c] sm:$0xf] }
 0x519   :  { %v13912_v28 = vadd.f32 %v5748_v26, %v13477_v43  ;;  %v6577_v43 = vshll.u32 %v13727_v59, 16  ;;  %v6584_v29 = vshll.u32 %v13909_v25, 16  ;;  %v8873_v58 = vcombine.low %v6110_v51, %v9887_v50 }
 0x51a   :  { %v6996_v42 = vsel %vm3259_vm8, %v6994_v60, %v6995_v21  ;;  %v6999_v59 = vsel %vm3259_vm8, %v6997_v14, %v6998_v2  ;;  %v6575_v3 = vor.u32 %v6574_v31, %v6570_v4  ;;  %v8874_v26 = vcombine.low %v6111_v61, %v9888_v45  ;;  %v9889_v2 = vld [vmem:[#allocation2 + $0x194] ss:$0 sps:$4 sm:$0x11]   ;;  %v9890_v61 = vld [vmem:[#allocation2 + $0x1a0] ss:$0 sps:$4 sm:$0x11]  }
 0x51b   :  { %v6579_v56 = vrot.slane %v6577_v43, 1  ;;  %v6586_v48 = vrot.slane %v6584_v29, 1  ;;  %v7000_v34 = vrot.slane %v8873_v58, 1  ;;  %v7004_v19 = vrot.slane %v9890_v61, 1 }
 0x51c   :  { %v7003_v43 = vrot.slane %v8874_v26, 1  ;;  %v16025_v26 = vld [vmem:[#allocation45_spill] sm:$0xff] }
 0x51d   :  { %7362 = vmatmul.mubr.bf16.gmra.mrb[240].mxu1 %v13834_v40  ;;  %v5592_v31 = vpop.f32.mrb[204].mxu0 }
 0x51e   :  { %7369 = vmatprep.mubr.bf16.mxu1 %v6568_v54  ;;  %9433 = vmatmul.mubr.bf16.gmra.mrb[52].mxu0 %v6996_v42  ;;  %v6589_v54 = vshll.u32 %v13749_v46, 16  ;;  %v13942_v51 = vadd.f32 %v5592_v31, %v13508_v30  ;;  %v5594_v33 = vpop.f32.mrb[205].mxu0  ;;  %v7005_v50 = vsel %vm3259_vm8, %v7003_v43, %v7004_v19  ;;  %v16028_v43 = vld [vmem:[#allocation53_spill] sm:$0xff] }
 0x51f   :  { %v9310_v40 = vpop.f32.mrb[136].mxu1  ;;  %9436 = vmatprep.mubr.bf16.mxu0 %v6999_v59  ;;  %v5595_v41 = vpop.f32.mrb[206].mxu0  ;;  %v9850_v33 = vld [vmem:[#allocation2 + $0x1ac] ss:$0 sps:$4 sm:$0x11]  }
 0x520   :  { %v13927_v27 = vadd.f32 %v9310_v40, %v13547_v6  ;;  %v5761_v36 = vpop.f32.mrb[137].mxu1  ;;  %v6582_v6 = vshrl.u32 %v13909_v25, 16  ;;  %v5597_v46 = vpop.f32.mrb[207].mxu0  ;;  %v6591_v29 = vrot.slane %v6589_v54, 1 }
 0x521   :  { %v13931_v17 = vadd.f32 %v5761_v36, %v13519_v12  ;;  %v9311_v20 = vpop.f32.mrb[138].mxu1  ;;  %v7001_v12 = vrot.slane %v9889_v2, 1  ;;  %v6112_v2 = vld [vmem:[#allocation2 + $0x1a4] sm:$0xe] }
 0x522   :  { %v13934_v60 = vadd.f32 %v9311_v20, %v13551_v37  ;;  %v5764_v21 = vpop.f32.mrb[139].mxu1  ;;  %v6580_v37 = vsel %vm2746_vm9, %v6575_v3, %v6579_v56  ;;  %v6587_v4 = vor.u32 %v6586_v48, %v6582_v6  ;;  %v16026_v56 = vld [vmem:[#allocation62_spill] sm:$0xff]  ;;  %v16027_v48 = vld [vmem:[#allocation35_spill] sm:$0xff] }
 0x523   :  { %v13939_v14 = vadd.f32 %v5764_v21, %v13525_v0  ;;  %v13947_v0 = vadd.f32 %v5595_v41, %v13514_v32  ;;  %v7002_v30 = vsel %vm3259_vm8, %v7000_v34, %v7001_v12  ;;  %v16024_v32 = vld [vmem:[#allocation22_spill] sm:$0xff]  ;;  %v6048_v34 = vld [vmem:[#allocation2 + $0x1a8] sm:$0xf]  ;;  %v16029_v41 = vld [vmem:[#allocation21_spill] sm:$0xff] }
 0x524   :  { %v6592_v45 = vsel %vm2746_vm9, %v6587_v4, %v6591_v29  ;;  %v7007_v29 = vrot.slane %v9850_v33, 1 }
 0x525   :  { %7370 = vmatmul.mubr.bf16.gmra.mrb[244].mxu1 %v13861_v11 }
 0x526   :  { %7377 = vmatprep.mubr.bf16.mxu1 %v6580_v37  ;;  %9437 = vmatmul.mubr.bf16.gmra.mrb[56].mxu0 %v7002_v30  ;;  %v8875_v37 = vcombine.low %v6112_v2, %v6048_v34  ;;  %v6047_v2 = vld [vmem:[#allocation2 + $0x1a4] sm:$0xf] }
 0x527   :  { %9440 = vmatprep.mubr.bf16.mxu0 %v7005_v50  ;;  %v16031_v50 = vld [vmem:[#allocation32_spill] sm:$0xff] }
 0x528   :  { %v9314_v40 = vpop.f32.mrb[140].mxu1 }
 0x529   :  { %v13951_v42 = vadd.f32 %v9314_v40, %v13611_v16  ;;  %v5777_v11 = vpop.f32.mrb[141].mxu1  ;;  %v5600_v16 = vpop.f32.mrb[208].mxu0  ;;  %v16030_v40 = vld [vmem:[#allocation57_spill] sm:$0xff] }
 0x52a   :  { %v13955_v58 = vadd.f32 %v5777_v11, %v13571_v8  ;;  %v9315_v36 = vpop.f32.mrb[142].mxu1  ;;  %v13965_v21 = vadd.f32 %v5600_v16, %v16026_v56  ;;  %v5602_v6 = vpop.f32.mrb[209].mxu0 }
 0x52b   :  { %v13958_v59 = vadd.f32 %v9315_v36, %v16024_v32  ;;  %v5780_v3 = vpop.f32.mrb[143].mxu1  ;;  %v5603_v8 = vpop.f32.mrb[210].mxu0  ;;  %v16033_v6 = vld [vmem:[#allocation27_spill] sm:$0xff] }
 0x52c   :  { %v13962_v20 = vadd.f32 %v5780_v3, %v16025_v26  ;;  %v13969_v54 = vadd.f32 %v5603_v8, %v16027_v48  ;;  %v5605_v31 = vpop.f32.mrb[211].mxu0  ;;  %v16034_v8 = vld [vmem:[#allocation46_spill] sm:$0xff] }
 0x52d   :  { %7378 = vmatmul.mubr.bf16.gmra.mrb[248].mxu1 %v13878_v49  ;;  %v7006_v49 = vrot.slane %v8875_v37, 1  ;;  %v13992_v37 = vcombine.low %v6047_v2, %v6048_v34  ;;  %v16041_v2 = vld [vmem:[#allocation48_spill] sm:$0xff] }
 0x52e   :  { %7385 = vmatprep.mubr.bf16.mxu1 %v6592_v45  ;;  %v5608_v32 = vpop.f32.mrb[212].mxu0  ;;  %v16032_v45 = vld [vmem:[#allocation43_spill] sm:$0xff] }
 0x52f   :  { %v7008_v3 = vsel %vm3259_vm8, %v7006_v49, %v7007_v29  ;;  %v13985_v26 = vadd.f32 %v5608_v32, %v16032_v45  ;;  %v5610_v16 = vpop.f32.mrb[213].mxu0  ;;  %v16036_v49 = vld [vmem:[#allocation40_spill] sm:$0xff] }
 0x530   :  { %v9318_v12 = vpop.f32.mrb[144].mxu1  ;;  %9441 = vmatmul.mubr.bf16.gmra.mrb[60].mxu0 %v7008_v3  ;;  %v5611_v56 = vpop.f32.mrb[214].mxu0  ;;  %v16039_v45 = vld [vmem:[#allocation76_spill] sm:$0xff] }
 0x531   :  { %v13972_v61 = vadd.f32 %v9318_v12, %v16028_v43  ;;  %v5793_v19 = vpop.f32.mrb[145].mxu1  ;;  %v13990_v48 = vadd.f32 %v5611_v56, %v16034_v8  ;;  %v5613_v31 = vpop.f32.mrb[215].mxu0  ;;  %v6781_v43 = vshll.u32 %v9850_v33, 16 }
 0x532   :  { %v13975_v46 = vadd.f32 %v5793_v19, %v16029_v41  ;;  %v9319_v4 = vpop.f32.mrb[146].mxu1  ;;  %v16035_v19 = vld [vmem:[#allocation41_spill] sm:$0xff] }
 0x533   :  { %v13978_v30 = vadd.f32 %v9319_v4, %v16030_v40  ;;  %v5796_v11 = vpop.f32.mrb[147].mxu1  ;;  %v6774_v40 = vshrl.u32 %v13992_v37, 16  ;;  %v6783_v56 = vrot.slane %v6781_v43, 1 }
 0x534   :  { %v13981_v36 = vadd.f32 %v5796_v11, %v16031_v50  ;;  %v6776_v11 = vshll.u32 %v13992_v37, 16  ;;  %v16037_v50 = vld [vmem:[#allocation78_spill] sm:$0xff] }
 0x535   :  { %7386 = vmatmul.mubr.bf16.gmra.mrb[252].mxu1 %v13909_v25 }
 0x536   :  { %7393 = vmatprep.mubr.bf16.mxu1 %v16033_v6  ;;  %v6778_v16 = vrot.slane %v6776_v11, 1  ;;  %v16040_v6 = vld [vmem:[#allocation23_spill] sm:$0xff] }
 0x537   :  { %v5616_v33 = vpop.f32.mrb[216].mxu0 }
 0x538   :  { %v9322_v12 = vpop.f32.mrb[148].mxu1  ;;  %v14009_v8 = vadd.f32 %v5616_v33, %v16040_v6  ;;  %v5618_v31 = vpop.f32.mrb[217].mxu0  ;;  %v16044_v6 = vld [vmem:[#allocation44_spill] sm:$0xff] }
 0x539   :  { %v13995_v41 = vadd.f32 %v9322_v12, %v16035_v19  ;;  %v5809_v4 = vpop.f32.mrb[149].mxu1  ;;  %v5619_v12 = vpop.f32.mrb[218].mxu0  ;;  %v16042_v19 = vld [vmem:[#allocation64_spill] sm:$0xff] }
 0x53a   :  { %v13998_v29 = vadd.f32 %v5809_v4, %v16036_v49  ;;  %v9323_v25 = vpop.f32.mrb[150].mxu1  ;;  %v6779_v4 = vor.u32 %v6778_v16, %v6774_v40  ;;  %v16043_v49 = vld [vmem:[#allocation47_spill] sm:$0xff] }
 0x53b   :  { %v14003_v32 = vadd.f32 %v9323_v25, %v16037_v50  ;;  %v5812_v3 = vpop.f32.mrb[151].mxu1  ;;  %v14014_v25 = vadd.f32 %v5619_v12, %v16043_v49  ;;  %v5621_v50 = vpop.f32.mrb[219].mxu0  ;;  %v16046_v16 = vld [vmem:[#allocation79_spill] sm:$0xff] }
 0x53c   :  { %v14006_v34 = vadd.f32 %v5812_v3, %v16039_v45  ;;  %v14017_v3 = vsel %vm2746_vm9, %v6779_v4, %v6783_v56  ;;  %v16048_v4 = vld [vmem:[#allocation56_spill] sm:$0xff] }
 0x53d   :  { %16038 = vst [vmem:[#allocation31_spill] sm:$0xff] %v14003_v32  ;;  %7394 = vmatmul.mubr.bf16.gmra.mrb[0].mxu1 %v16041_v2 }
 0x53e   :  { %7401 = vmatprep.mubr.bf16.mxu1 %v16042_v19  ;;  %v16047_v19 = vld [vmem:[#allocation24_spill] sm:$0xff] }
 0x53f   :  { %v5624_v12 = vpop.f32.mrb[220].mxu0 }
 0x540   :  { %v9326_v32 = vpop.f32.mrb[152].mxu1  ;;  %v14032_v49 = vadd.f32 %v5624_v12, %v16047_v19  ;;  %v5626_v56 = vpop.f32.mrb[221].mxu0 }
 0x541   :  { %v14020_v43 = vadd.f32 %v9326_v32, %v13793_v35  ;;  %v5825_v11 = vpop.f32.mrb[153].mxu1  ;;  %v5627_v35 = vpop.f32.mrb[222].mxu0  ;;  %v16049_v32 = vld [vmem:[#allocation65_spill] sm:$0xff] }
 0x542   :  { %v14023_v45 = vadd.f32 %v5825_v11, %v13768_v63  ;;  %v9327_v33 = vpop.f32.mrb[154].mxu1  ;;  %v16050_v63 = vld [vmem:[#allocation26_spill] sm:$0xff]  ;;  %v5629_v11 = vpop.f32.mrb[223].mxu0 }
 0x543   :  { %v14026_v31 = vadd.f32 %v9327_v33, %v16044_v6  ;;  %v5828_v40 = vpop.f32.mrb[155].mxu1  ;;  %v14037_v50 = vadd.f32 %v5627_v35, %v16050_v63  ;;  %v16053_v35 = vld [vmem:[#allocation16_spill] sm:$0xff] }
 0x544   :  { %v14029_v2 = vadd.f32 %v5828_v40, %v16046_v16 }
 0x545   :  { %16045 = vst [vmem:[#allocation14_spill] sm:$0xff] %v14026_v31  ;;  %7402 = vmatmul.mubr.bf16.gmra.mrb[4].mxu1 %v16048_v4  ;;  %v16054_v31 = vld [vmem:[#allocation13_spill] sm:$0xff] }
 0x546   :  { %7409 = vmatprep.mubr.bf16.mxu1 %v16049_v32 }
 0x547   :  { %v5632_v32 = vpop.f32.mrb[224].mxu0 }
 0x548   :  { %v9330_v33 = vpop.f32.mrb[156].mxu1  ;;  %v14052_v63 = vadd.f32 %v5632_v32, %v16053_v35  ;;  %v5634_v11 = vpop.f32.mrb[225].mxu0 }
 0x549   :  { %v14040_v6 = vadd.f32 %v9330_v33, %v13838_v53  ;;  %v5841_v40 = vpop.f32.mrb[157].mxu1  ;;  %v5635_v53 = vpop.f32.mrb[226].mxu0  ;;  %v16055_v33 = vld [vmem:[#allocation36_spill] sm:$0xff] }
 0x54a   :  { %v14043_v16 = vadd.f32 %v5841_v40, %v13812_v9  ;;  %v9331_v12 = vpop.f32.mrb[158].mxu1  ;;  %v16056_v9 = vld [vmem:[#allocation33_spill] sm:$0xff] }
 0x54b   :  { %16051 = vst [vmem:[#allocation29_spill] sm:$0xff] %v14040_v6  ;;  %v14046_v19 = vadd.f32 %v9331_v12, %v13842_v10  ;;  %v5844_v56 = vpop.f32.mrb[159].mxu1  ;;  %v14057_v40 = vadd.f32 %v5635_v53, %v16056_v9  ;;  %v5637_v6 = vpop.f32.mrb[227].mxu0  ;;  %v16059_v53 = vld [vmem:[#allocation85_spill] sm:$0xff] }
 0x54c   :  { %v14049_v4 = vadd.f32 %v5844_v56, %v13822_v15 }
 0x54d   :  { %16052 = vst [vmem:[#allocation30_spill] sm:$0xff] %v14046_v19  ;;  %7410 = vmatmul.mubr.bf16.gmra.mrb[8].mxu1 %v16054_v31  ;;  %v16060_v19 = vld [vmem:[#allocation61_spill] sm:$0xff] }
 0x54e   :  { %7417 = vmatprep.mubr.bf16.mxu1 %v16055_v33 }
 0x54f   :  { %v5640_v33 = vpop.f32.mrb[228].mxu0 }
 0x550   :  { %v9334_v10 = vpop.f32.mrb[160].mxu1  ;;  %v5641_v9 = vadd.f32 %v5640_v33, %v16059_v53  ;;  %v5642_v6 = vpop.f32.mrb[229].mxu0 }
 0x551   :  { %v14060_v12 = vadd.f32 %v9334_v10, %v13888_v57  ;;  %v5857_v15 = vpop.f32.mrb[161].mxu1  ;;  %v5643_v57 = vpop.f32.mrb[230].mxu0  ;;  %v16061_v10 = vld [vmem:[#allocation66_spill] sm:$0xff] }
 0x552   :  { %v14063_v56 = vadd.f32 %v5857_v15, %v13856_v52  ;;  %v9335_v32 = vpop.f32.mrb[162].mxu1  ;;  %v5645_v15 = vpop.f32.mrb[231].mxu0 }
 0x553   :  { %16057 = vst [vmem:[#allocation84_spill] sm:$0xff] %v14060_v12  ;;  %v14066_v35 = vadd.f32 %v9335_v32, %v13892_v23  ;;  %v5860_v31 = vpop.f32.mrb[163].mxu1  ;;  %v16062_v12 = vld [vmem:[#allocation42_spill] sm:$0xff]  ;;  %v16067_v15 = vld [vmem:[#allocation51_spill] sm:$0xff] }
 0x554   :  { %16058 = vst [vmem:[#allocation28_spill] sm:$0xff] %v14063_v56  ;;  %v14069_v11 = vadd.f32 %v5860_v31, %v13866_v24  ;;  %v5644_v52 = vadd.f32 %v5643_v57, %v16062_v12 }
 0x555   :  { %7418 = vmatmul.mubr.bf16.gmra.mrb[12].mxu1 %v16060_v19 }
 0x556   :  { %7425 = vmatprep.mubr.bf16.mxu1 %v16061_v10  ;;  %v16066_v10 = vld [vmem:[#allocation20_spill] sm:$0xff] }
 0x557   :  { %v5648_v6 = vpop.f32.mrb[232].mxu0 }
 0x558   :  { %v9338_v56 = vpop.f32.mrb[164].mxu1  ;;  %v5649_v12 = vadd.f32 %v5648_v6, %v16066_v10  ;;  %v5650_v57 = vpop.f32.mrb[233].mxu0 }
 0x559   :  { %v14076_v23 = vadd.f32 %v9338_v56, %v13942_v51  ;;  %v5873_v32 = vpop.f32.mrb[165].mxu1  ;;  %v5651_v51 = vpop.f32.mrb[234].mxu0  ;;  %v16068_v56 = vld [vmem:[#allocation68_spill] sm:$0xff] }
 0x55a   :  { %v14079_v24 = vadd.f32 %v5873_v32, %v13915_v47  ;;  %v9339_v31 = vpop.f32.mrb[166].mxu1  ;;  %v5653_v32 = vpop.f32.mrb[235].mxu0 }
 0x55b   :  { %16063 = vst [vmem:[#allocation34_spill] sm:$0xff] %v14076_v23  ;;  %v14082_v33 = vadd.f32 %v9339_v31, %v13947_v0  ;;  %v5876_v53 = vpop.f32.mrb[167].mxu1  ;;  %v16069_v23 = vld [vmem:[#allocation82_spill] sm:$0xff]  ;;  %v16075_v32 = vld [vmem:[#allocation63_spill] sm:$0xff] }
 0x55c   :  { %16064 = vst [vmem:[#allocation83_spill] sm:$0xff] %v14079_v24  ;;  %v14085_v19 = vadd.f32 %v5876_v53, %v13921_v55  ;;  %v5652_v47 = vadd.f32 %v5651_v51, %v16069_v23 }
 0x55d   :  { %16065 = vst [vmem:[#allocation59_spill] sm:$0xff] %v14082_v33  ;;  %7426 = vmatmul.mubr.bf16.gmra.mrb[16].mxu1 %v16067_v15 }
 0x55e   :  { %7433 = vmatprep.mubr.bf16.mxu1 %v16068_v56  ;;  %v16074_v56 = vld [vmem:[#allocation81_spill] sm:$0xff] }
 0x55f   :  { %v5656_v15 = vpop.f32.mrb[236].mxu0 }
 0x560   :  { %v9342_v24 = vpop.f32.mrb[168].mxu1  ;;  %v5657_v23 = vadd.f32 %v5656_v15, %v16074_v56  ;;  %v5658_v51 = vpop.f32.mrb[237].mxu0 }
 0x561   :  { %v14092_v0 = vadd.f32 %v9342_v24, %v13985_v26  ;;  %v5889_v31 = vpop.f32.mrb[169].mxu1  ;;  %v5659_v26 = vpop.f32.mrb[238].mxu0  ;;  %v16076_v24 = vld [vmem:[#allocation69_spill] sm:$0xff] }
 0x562   :  { %v14095_v55 = vadd.f32 %v5889_v31, %v13965_v21  ;;  %v9343_v53 = vpop.f32.mrb[170].mxu1  ;;  %v5661_v31 = vpop.f32.mrb[239].mxu0 }
 0x563   :  { %16070 = vst [vmem:[#allocation22_spill] sm:$0xff] %v14092_v0  ;;  %v14098_v6 = vadd.f32 %v9343_v53, %v13990_v48  ;;  %v5892_v10 = vpop.f32.mrb[171].mxu1  ;;  %v16077_v0 = vld [vmem:[#allocation18_spill] sm:$0xff]  ;;  %v16083_v31 = vld [vmem:[#allocation52_spill] sm:$0xff] }
 0x564   :  { %16071 = vst [vmem:[#allocation45_spill] sm:$0xff] %v14095_v55  ;;  %v14101_v57 = vadd.f32 %v5892_v10, %v13969_v54  ;;  %v5660_v21 = vadd.f32 %v5659_v26, %v16077_v0 }
 0x565   :  { %16072 = vst [vmem:[#allocation62_spill] sm:$0xff] %v14098_v6  ;;  %7434 = vmatmul.mubr.bf16.gmra.mrb[20].mxu1 %v16075_v32 }
 0x566   :  { %16073 = vst [vmem:[#allocation35_spill] sm:$0xff] %v14101_v57  ;;  %7441 = vmatprep.mubr.bf16.mxu1 %v16076_v24  ;;  %v16082_v24 = vld [vmem:[#allocation80_spill] sm:$0xff] }
 0x567   :  { %v5664_v32 = vpop.f32.mrb[240].mxu0 }
 0x568   :  { %v9346_v55 = vpop.f32.mrb[172].mxu1  ;;  %v5665_v0 = vadd.f32 %v5664_v32, %v16082_v24  ;;  %v5666_v26 = vpop.f32.mrb[241].mxu0 }
 0x569   :  { %v14108_v48 = vadd.f32 %v9346_v55, %v14032_v49  ;;  %v5905_v53 = vpop.f32.mrb[173].mxu1  ;;  %v5667_v49 = vpop.f32.mrb[242].mxu0  ;;  %v16084_v55 = vld [vmem:[#allocation17_spill] sm:$0xff] }
 0x56a   :  { %v14111_v54 = vadd.f32 %v5905_v53, %v14009_v8  ;;  %v9347_v10 = vpop.f32.mrb[174].mxu1  ;;  %v5669_v53 = vpop.f32.mrb[243].mxu0 }
 0x56b   :  { %16078 = vst [vmem:[#allocation53_spill] sm:$0xff] %v14108_v48  ;;  %v14114_v15 = vadd.f32 %v9347_v10, %v14037_v50  ;;  %v5908_v56 = vpop.f32.mrb[175].mxu1  ;;  %v16085_v48 = vld [vmem:[#allocation25_spill] sm:$0xff] }
 0x56c   :  { %16079 = vst [vmem:[#allocation21_spill] sm:$0xff] %v14111_v54  ;;  %v14117_v51 = vadd.f32 %v5908_v56, %v14014_v25  ;;  %v5668_v8 = vadd.f32 %v5667_v49, %v16085_v48  ;;  %v16090_v48 = vld [vmem:[#allocation67_spill] sm:$0xff] }
 0x56d   :  { %16080 = vst [vmem:[#allocation57_spill] sm:$0xff] %v14114_v15  ;;  %7442 = vmatmul.mubr.bf16.gmra.mrb[24].mxu1 %v16083_v31 }
 0x56e   :  { %16081 = vst [vmem:[#allocation32_spill] sm:$0xff] %v14117_v51  ;;  %7449 = vmatprep.mubr.bf16.mxu1 %v16084_v55 }
 0x56f   :  { %v5672_v26 = vpop.f32.mrb[244].mxu0 }
 0x570   :  { %v9350_v54 = vpop.f32.mrb[176].mxu1  ;;  %v5673_v31 = vadd.f32 %v5672_v26, %v13805_v22  ;;  %v5674_v55 = vpop.f32.mrb[245].mxu0 }
 0x571   :  { %v14123_v6 = vadd.f32 %v9350_v54, %v5641_v9  ;;  %v5921_v50 = vpop.f32.mrb[177].mxu1  ;;  %v5675_v49 = vpop.f32.mrb[246].mxu0  ;;  %v16091_v9 = vld [vmem:[#allocation70_spill] sm:$0xff]  ;;  %v16092_v54 = vld [vmem:[#allocation15_spill] sm:$0xff]  ;;  %v16097_v55 = vld [vmem:[#allocation49_spill] sm:$0xff] }
 0x572   :  { %v14126_v10 = vadd.f32 %v5921_v50, %v14052_v63  ;;  %v9351_v25 = vpop.f32.mrb[178].mxu1  ;;  %v5676_v53 = vadd.f32 %v5675_v49, %v16092_v54  ;;  %v5677_v63 = vpop.f32.mrb[247].mxu0  ;;  %v16099_v54 = vld [vmem:[#allocation72_spill] sm:$0xff] }
 0x573   :  { %16086 = vst [vmem:[#allocation43_spill] sm:$0xff] %v14123_v6  ;;  %v14128_v56 = vadd.f32 %v9351_v25, %v5644_v52  ;;  %v5924_v32 = vpop.f32.mrb[179].mxu1 }
 0x574   :  { %16087 = vst [vmem:[#allocation27_spill] sm:$0xff] %v14126_v10  ;;  %v14131_v24 = vadd.f32 %v5924_v32, %v14057_v40 }
 0x575   :  { %16088 = vst [vmem:[#allocation46_spill] sm:$0xff] %v14128_v56  ;;  %7450 = vmatmul.mubr.bf16.gmra.mrb[28].mxu1 %v16090_v48 }
 0x576   :  { %16089 = vst [vmem:[#allocation41_spill] sm:$0xff] %v14131_v24  ;;  %7457 = vmatprep.mubr.bf16.mxu1 %v16091_v9  ;;  %v16098_v9 = vld [vmem:[#allocation54_spill] sm:$0xff] }
 0x577   :  { %v5680_v26 = vpop.f32.mrb[248].mxu0 }
 0x578   :  { %v9354_v50 = vpop.f32.mrb[180].mxu1  ;;  %v5681_v48 = vadd.f32 %v5680_v26, %v16097_v55  ;;  %v5682_v24 = vpop.f32.mrb[249].mxu0 }
 0x579   :  { %v14137_v6 = vadd.f32 %v9354_v50, %v5657_v23  ;;  %v5937_v52 = vpop.f32.mrb[181].mxu1  ;;  %v5683_v49 = vpop.f32.mrb[250].mxu0  ;;  %v16100_v23 = vld [vmem:[#allocation50_spill] sm:$0xff] }
 0x57a   :  { %v14139_v25 = vadd.f32 %v5937_v52, %v5649_v12  ;;  %v9355_v40 = vpop.f32.mrb[182].mxu1  ;;  %v5684_v63 = vadd.f32 %v5683_v49, %v16100_v23  ;;  %v5685_v50 = vpop.f32.mrb[251].mxu0  ;;  %v16106_v23 = vld [vmem:[#allocation73_spill] sm:$0xff] }
 0x57b   :  { %16093 = vst [vmem:[#allocation40_spill] sm:$0xff] %v14137_v6  ;;  %v14141_v32 = vadd.f32 %v9355_v40, %v5660_v21  ;;  %v5940_v56 = vpop.f32.mrb[183].mxu1 }
 0x57c   :  { %16094 = vst [vmem:[#allocation78_spill] sm:$0xff] %v14139_v25  ;;  %v14143_v22 = vadd.f32 %v5940_v56, %v5652_v47 }
 0x57d   :  { %16095 = vst [vmem:[#allocation76_spill] sm:$0xff] %v14141_v32  ;;  %7458 = vmatmul.mubr.bf16.gmra.mrb[32].mxu1 %v16098_v9 }
 0x57e   :  { %16096 = vst [vmem:[#allocation23_spill] sm:$0xff] %v14143_v22  ;;  %7465 = vmatprep.mubr.bf16.mxu1 %v16099_v54  ;;  %v16105_v54 = vld [vmem:[#allocation19_spill] sm:$0xff] }
 0x57f   :  { %v5688_v24 = vpop.f32.mrb[252].mxu0 }
 0x580   :  { %v9358_v12 = vpop.f32.mrb[184].mxu1  ;;  %v5689_v55 = vadd.f32 %v5688_v24, %v13849_v5  ;;  %v5690_v9 = vpop.f32.mrb[253].mxu0 }
 0x581   :  { %v14149_v52 = vadd.f32 %v9358_v12, %v5673_v31  ;;  %v5953_v21 = vpop.f32.mrb[185].mxu1  ;;  %v5691_v49 = vpop.f32.mrb[254].mxu0  ;;  %v16111_v9 = vld [vmem:[#allocation55_spill] sm:$0xff] }
 0x582   :  { %v14151_v40 = vadd.f32 %v5953_v21, %v5665_v0  ;;  %v9359_v47 = vpop.f32.mrb[186].mxu1  ;;  %v5692_v31 = vadd.f32 %v5691_v49, %v13853_v13  ;;  %v5693_v50 = vpop.f32.mrb[255].mxu0 }
 0x583   :  { %16101 = vst [vmem:[#allocation48_spill] sm:$0xff] %v14149_v52  ;;  %v14153_v56 = vadd.f32 %v9359_v47, %v5676_v53  ;;  %v5956_v32 = vpop.f32.mrb[187].mxu1 }
 0x584   :  { %16102 = vst [vmem:[#allocation64_spill] sm:$0xff] %v14151_v40  ;;  %v14155_v26 = vadd.f32 %v5956_v32, %v5668_v8 }
 0x585   :  { %16103 = vst [vmem:[#allocation47_spill] sm:$0xff] %v14153_v56  ;;  %7466 = vmatmul.mubr.bf16.gmra.mrb[36].mxu1 %v16105_v54 }
 0x586   :  { %16104 = vst [vmem:[#allocation44_spill] sm:$0xff] %v14155_v26  ;;  %7473 = vmatprep.mubr.bf16.mxu1 %v16106_v23  ;;  %v16112_v23 = vld [vmem:[#allocation38_spill] sm:$0xff] }
 0x587   :  { %v9382_v24 = vpop.f32.mrb[0].mxu0 }
 0x588   :  { %v9362_v0 = vpop.f32.mrb[188].mxu1  ;;  %v7556_v54 = vpop.f32.mrb[1].mxu0 }
 0x589   :  { %v14161_v12 = vadd.f32 %v9362_v0, %v5689_v55  ;;  %v5969_v53 = vpop.f32.mrb[189].mxu1  ;;  %v9383_v13 = vpop.f32.mrb[2].mxu0 }
 0x58a   :  { %v14163_v21 = vadd.f32 %v5969_v53, %v5681_v48  ;;  %v9363_v8 = vpop.f32.mrb[190].mxu1  ;;  %v7559_v49 = vpop.f32.mrb[3].mxu0 }
 0x58b   :  { %16107 = vst [vmem:[#allocation79_spill] sm:$0xff] %v14161_v12  ;;  %v14165_v32 = vadd.f32 %v9363_v8, %v5692_v31  ;;  %v5972_v47 = vpop.f32.mrb[191].mxu1 }
 0x58c   :  { %16108 = vst [vmem:[#allocation24_spill] sm:$0xff] %v14163_v21  ;;  %v14167_v5 = vadd.f32 %v5972_v47, %v5684_v63  ;;  %v16115_v47 = vld [vmem:[#allocation71_spill] sm:$0xff] }
 0x58d   :  { %16109 = vst [vmem:[#allocation56_spill] sm:$0xff] %v14165_v32  ;;  %7474 = vmatmul.mubr.bf16.gmra.mrb[40].mxu1 %v16111_v9  ;;  %v16116_v32 = vld [vmem:[#allocation74_spill] sm:$0xff] }
 0x58e   :  { %16110 = vst [vmem:[#allocation65_spill] sm:$0xff] %v14167_v5  ;;  %7481 = vmatprep.mubr.bf16.mxu1 %v16112_v23 }
 0x58f   :  { %v9386_v8 = vpop.f32.mrb[4].mxu0 }
 0x590   :  { %v7267_v50 = vpop.f32.mrb[192].mxu1  ;;  %v7572_v9 = vpop.f32.mrb[5].mxu0 }
 0x591   :  { %v7557_v55 = vadd.f32 %v7556_v54, %v7267_v50  ;;  %v7269_v0 = vpop.f32.mrb[193].mxu1  ;;  %v9387_v23 = vpop.f32.mrb[6].mxu0 }
 0x592   :  { %v7270_v12 = vpop.f32.mrb[194].mxu1  ;;  %v7575_v5 = vpop.f32.mrb[7].mxu0 }
 0x593   :  { %v14172_v48 = vadd.f32 %v7557_v55, %v13875_v39  ;;  %v7560_v31 = vadd.f32 %v7559_v49, %v7270_v12  ;;  %v7272_v53 = vpop.f32.mrb[195].mxu1 }
 0x595   :  { %16113 = vst [vmem:[#allocation26_spill] sm:$0xff] %v14172_v48  ;;  %v14175_v63 = vadd.f32 %v7560_v31, %v13884_v62  ;;  %7482 = vmatmul.mubr.bf16.gmra.mrb[44].mxu1 %v16115_v47  ;;  %v16119_v31 = vld [vmem:[#allocation58_spill] sm:$0xff]  ;;  %v16120_v47 = vld [vmem:[#allocation75_spill] sm:$0xff] }
 0x596   :  { %7489 = vmatprep.mubr.bf16.mxu1 %v16116_v32 }
 0x597   :  { %16114 = vst [vmem:[#allocation16_spill] sm:$0xff] %v14175_v63 }
 0x598   :  { %v7275_v21 = vpop.f32.mrb[196].mxu1 }
 0x599   :  { %v7565_v54 = vadd.f32 %v9382_v24, %v7275_v21  ;;  %v7277_v50 = vpop.f32.mrb[197].mxu1  ;;  %v9390_v55 = vpop.f32.mrb[8].mxu0 }
 0x59a   :  { %v7278_v0 = vpop.f32.mrb[198].mxu1  ;;  %v7588_v53 = vpop.f32.mrb[9].mxu0 }
 0x59b   :  { %v14180_v39 = vadd.f32 %v7565_v54, %v13870_v38  ;;  %v7568_v12 = vadd.f32 %v9383_v13, %v7278_v0  ;;  %v7280_v49 = vpop.f32.mrb[199].mxu1  ;;  %v9391_v32 = vpop.f32.mrb[10].mxu0 }
 0x59c   :  { %v7591_v56 = vpop.f32.mrb[11].mxu0 }
 0x59d   :  { %16117 = vst [vmem:[#allocation13_spill] sm:$0xff] %v14180_v39  ;;  %v14183_v62 = vadd.f32 %v7568_v12, %v13881_v18  ;;  %7490 = vmatmul.mubr.bf16.gmra.mrb[48].mxu1 %v16119_v31  ;;  %v16123_v12 = vld [vmem:[#allocation39_spill] sm:$0xff]  ;;  %v16124_v31 = vld [vmem:[#allocation77_spill] sm:$0xff] }
 0x59e   :  { %7497 = vmatprep.mubr.bf16.mxu1 %v16120_v47 }
 0x59f   :  { %16118 = vst [vmem:[#allocation36_spill] sm:$0xff] %v14183_v62 }
 0x5a0   :  { %v7283_v52 = vpop.f32.mrb[200].mxu1 }
 0x5a1   :  { %v7573_v21 = vadd.f32 %v7572_v9, %v7283_v52  ;;  %v7285_v24 = vpop.f32.mrb[201].mxu1  ;;  %v9394_v0 = vpop.f32.mrb[12].mxu0 }
 0x5a2   :  { %v7286_v50 = vpop.f32.mrb[202].mxu1  ;;  %v7604_v49 = vpop.f32.mrb[13].mxu0 }
 0x5a3   :  { %v14188_v38 = vadd.f32 %v7573_v21, %v13903_v44  ;;  %v7576_v13 = vadd.f32 %v7575_v5, %v7286_v50  ;;  %v7288_v54 = vpop.f32.mrb[203].mxu1  ;;  %v9395_v47 = vpop.f32.mrb[14].mxu0 }
 0x5a4   :  { %v7607_v26 = vpop.f32.mrb[15].mxu0 }
 0x5a5   :  { %16121 = vst [vmem:[#allocation33_spill] sm:$0xff] %v14188_v38  ;;  %v14191_v18 = vadd.f32 %v7576_v13, %v13912_v28  ;;  %7498 = vmatmul.mubr.bf16.gmra.mrb[52].mxu1 %v16123_v12  ;;  %v16127_v13 = vld [vmem:[#allocation60_spill] sm:$0xff] }
 0x5a6   :  { %7505 = vmatprep.mubr.bf16.mxu1 %v16124_v31 }
 0x5a7   :  { %16122 = vst [vmem:[#allocation85_spill] sm:$0xff] %v14191_v18 }
 0x5a8   :  { %v7291_v40 = vpop.f32.mrb[204].mxu1 }
 0x5a9   :  { %v7581_v52 = vadd.f32 %v9386_v8, %v7291_v40  ;;  %v7293_v9 = vpop.f32.mrb[205].mxu1  ;;  %v14198_v50 = vpop.f32.mrb[16].mxu0 }
 0x5aa   :  { %v7294_v24 = vpop.f32.mrb[206].mxu1  ;;  %v7620_v54 = vpop.f32.mrb[17].mxu0 }
 0x5ab   :  { %v14196_v44 = vadd.f32 %v7581_v52, %v13899_v7  ;;  %v7584_v5 = vadd.f32 %v9387_v23, %v7294_v24  ;;  %v7296_v21 = vpop.f32.mrb[207].mxu1  ;;  %v14204_v12 = vpop.f32.mrb[18].mxu0 }
 0x5ac   :  { %v7623_v40 = vpop.f32.mrb[19].mxu0 }
 0x5ad   :  { %16125 = vst [vmem:[#allocation61_spill] sm:$0xff] %v14196_v44  ;;  %v14201_v28 = vadd.f32 %v7584_v5, %v13906_v1  ;;  %7506 = vmatmul.mubr.bf16.gmra.mrb[56].mxu1 %v16127_v13 }
 0x5ae   :  { %7513 = vmatprep.mubr.bf16.mxu1 %v14017_v3 }
 0x5af   :  { %16126 = vst [vmem:[#allocation66_spill] sm:$0xff] %v14201_v28 }
 0x5b0   :  { %v7299_v8 = vpop.f32.mrb[208].mxu1 }
 0x5b1   :  { %v7589_v31 = vadd.f32 %v7588_v53, %v7299_v8  ;;  %v7301_v9 = vpop.f32.mrb[209].mxu1  ;;  %v14210_v21 = vpop.f32.mrb[20].mxu0 }
 0x5b2   :  { %v7302_v7 = vpop.f32.mrb[210].mxu1  ;;  %v14216_v5 = vpop.f32.mrb[21].mxu0 }
 0x5b3   :  { %v14208_v23 = vadd.f32 %v7589_v31, %v13931_v17  ;;  %v7592_v52 = vadd.f32 %v7591_v56, %v7302_v7  ;;  %v7304_v24 = vpop.f32.mrb[211].mxu1  ;;  %v14218_v3 = vpop.f32.mrb[22].mxu0 }
 0x5b4   :  { %v14220_v13 = vpop.f32.mrb[23].mxu0 }
 0x5b5   :  { %16128 = vst [vmem:[#allocation42_spill] sm:$0xff] %v14208_v23  ;;  %v14213_v1 = vadd.f32 %v7592_v52, %v13939_v14  ;;  %7514 = vmatmul.mubr.bf16.gmra.mrb[60].mxu1 %v13992_v37 }
 0x5b7   :  { %16129 = vst [vmem:[#allocation20_spill] sm:$0xff] %v14213_v1 }
 0x5b8   :  { %v7307_v53 = vpop.f32.mrb[212].mxu1 }
 0x5b9   :  { %v7597_v8 = vadd.f32 %v9390_v55, %v7307_v53  ;;  %v7309_v9 = vpop.f32.mrb[213].mxu1  ;;  %v14225_v24 = vpop.f32.mrb[24].mxu0 }
 0x5ba   :  { %v7310_v17 = vpop.f32.mrb[214].mxu1  ;;  %v14230_v37 = vpop.f32.mrb[25].mxu0 }
 0x5bb   :  { %v14223_v56 = vadd.f32 %v7597_v8, %v13927_v27  ;;  %v7600_v31 = vadd.f32 %v9391_v32, %v7310_v17  ;;  %v7312_v7 = vpop.f32.mrb[215].mxu1  ;;  %v14232_v52 = vpop.f32.mrb[26].mxu0 }
 0x5bc   :  { %v14234_v6 = vpop.f32.mrb[27].mxu0 }
 0x5bd   :  { %16130 = vst [vmem:[#allocation51_spill] sm:$0xff] %v14223_v56  ;;  %v14228_v14 = vadd.f32 %v7600_v31, %v13934_v60 }
 0x5bf   :  { %16131 = vst [vmem:[#allocation68_spill] sm:$0xff] %v14228_v14 }
 0x5c0   :  { %v7315_v22 = vpop.f32.mrb[216].mxu1 }
 0x5c1   :  { %v7605_v55 = vadd.f32 %v7604_v49, %v7315_v22  ;;  %v7317_v53 = vpop.f32.mrb[217].mxu1  ;;  %v14239_v17 = vpop.f32.mrb[28].mxu0 }
 0x5c2   :  { %v7318_v9 = vpop.f32.mrb[218].mxu1  ;;  %v14244_v31 = vpop.f32.mrb[29].mxu0 }
 0x5c3   :  { %v14237_v27 = vadd.f32 %v7605_v55, %v13955_v58  ;;  %v7608_v32 = vadd.f32 %v7607_v26, %v7318_v9  ;;  %v7320_v8 = vpop.f32.mrb[219].mxu1  ;;  %v14246_v7 = vpop.f32.mrb[30].mxu0 }
 0x5c4   :  { %v14248_v25 = vpop.f32.mrb[31].mxu0 }
 0x5c5   :  { %16132 = vst [vmem:[#allocation82_spill] sm:$0xff] %v14237_v27  ;;  %v14242_v60 = vadd.f32 %v7608_v32, %v13962_v20 }
 0x5c8   :  { %v7323_v10 = vpop.f32.mrb[220].mxu1 }
 0x5c9   :  { %v7613_v22 = vadd.f32 %v9394_v0, %v7323_v10  ;;  %v7325_v49 = vpop.f32.mrb[221].mxu1  ;;  %v14253_v9 = vpop.f32.mrb[32].mxu0 }
 0x5ca   :  { %v7326_v53 = vpop.f32.mrb[222].mxu1  ;;  %v14258_v32 = vpop.f32.mrb[33].mxu0 }
 0x5cb   :  { %v14251_v58 = vadd.f32 %v7613_v22, %v13951_v42  ;;  %v7616_v26 = vadd.f32 %v9395_v47, %v7326_v53  ;;  %v7328_v55 = vpop.f32.mrb[223].mxu1  ;;  %v14260_v8 = vpop.f32.mrb[34].mxu0 }
 0x5cc   :  { %v14262_v15 = vpop.f32.mrb[35].mxu0 }
 0x5cd   :  { %16133 = vst [vmem:[#allocation81_spill] sm:$0xff] %v14251_v58  ;;  %v14256_v20 = vadd.f32 %v7616_v26, %v13958_v59 }
 0x5cf   :  { %16134 = vst [vmem:[#allocation63_spill] sm:$0xff] %v14256_v20 }
 0x5d0   :  { %v7331_v51 = vpop.f32.mrb[224].mxu1 }
 0x5d1   :  { %v7621_v10 = vadd.f32 %v7620_v54, %v7331_v51  ;;  %v7333_v0 = vpop.f32.mrb[225].mxu1  ;;  %v14267_v53 = vpop.f32.mrb[36].mxu0 }
 0x5d2   :  { %v7334_v49 = vpop.f32.mrb[226].mxu1  ;;  %v14272_v26 = vpop.f32.mrb[37].mxu0 }
 0x5d3   :  { %v14265_v42 = vadd.f32 %v7621_v10, %v13975_v46  ;;  %v7624_v47 = vadd.f32 %v7623_v40, %v7334_v49  ;;  %v7336_v22 = vpop.f32.mrb[227].mxu1  ;;  %v14274_v55 = vpop.f32.mrb[38].mxu0 }
 0x5d4   :  { %16136 = vst [vmem:[#allocation18_spill] sm:$0xff] %v14274_v55  ;;  %v14276_v57 = vpop.f32.mrb[39].mxu0 }
 0x5d5   :  { %16135 = vst [vmem:[#allocation69_spill] sm:$0xff] %v14265_v42  ;;  %v14270_v59 = vadd.f32 %v7624_v47, %v13981_v36  ;;  %v7875_v36 = vadd.f32 %v14175_v63, %v14172_v48 }
 0x5d8   :  { %v7339_v33 = vpop.f32.mrb[228].mxu1 }
 0x5d9   :  { %v7629_v51 = vadd.f32 %v14198_v50, %v7339_v33  ;;  %v7341_v54 = vpop.f32.mrb[229].mxu1  ;;  %v14283_v49 = vpop.f32.mrb[40].mxu0  ;;  %v7876_v33 = vadd.f32 %v7875_v36, %v14180_v39 }
 0x5da   :  { %v7342_v0 = vpop.f32.mrb[230].mxu1  ;;  %v14290_v22 = vpop.f32.mrb[41].mxu0 }
 0x5db   :  { %v14280_v46 = vadd.f32 %v7629_v51, %v13972_v61  ;;  %v7632_v40 = vadd.f32 %v14204_v12, %v7342_v0  ;;  %v7344_v10 = vpop.f32.mrb[231].mxu1  ;;  %v14292_v55 = vpop.f32.mrb[42].mxu0  ;;  %v7877_v0 = vadd.f32 %v7876_v33, %v14183_v62 }
 0x5dc   :  { %v14295_v50 = vpop.f32.mrb[43].mxu0 }
 0x5dd   :  { %v14288_v47 = vadd.f32 %v7632_v40, %v13978_v30  ;;  %v7878_v48 = vadd.f32 %v7877_v0, %v14188_v38  ;;  %v16138_v38 = vld [vmem:[#allocation31_spill] sm:$0xff] }
 0x5e0   :  { %v7347_v61 = vpop.f32.mrb[232].mxu1 }
 0x5e1   :  { %v7637_v12 = vadd.f32 %v14216_v5, %v7347_v61  ;;  %v7349_v51 = vpop.f32.mrb[233].mxu1  ;;  %v14303_v63 = vpop.f32.mrb[44].mxu0 }
 0x5e2   :  { %v7350_v54 = vpop.f32.mrb[234].mxu1  ;;  %v14309_v39 = vpop.f32.mrb[45].mxu0 }
 0x5e3   :  { %v14300_v10 = vadd.f32 %v7637_v12, %v13998_v29  ;;  %v7640_v30 = vadd.f32 %v14220_v13, %v7350_v54  ;;  %v7352_v40 = vpop.f32.mrb[235].mxu1  ;;  %v14311_v5 = vpop.f32.mrb[46].mxu0  ;;  %v7879_v29 = vadd.f32 %v7878_v48, %v14191_v18 }
 0x5e4   :  { %16137 = vst [vmem:[#allocation80_spill] sm:$0xff] %v14311_v5  ;;  %v14313_v61 = vpop.f32.mrb[47].mxu0 }
 0x5e5   :  { %v14307_v36 = vadd.f32 %v7640_v30, %v14006_v34  ;;  %v7880_v54 = vadd.f32 %v7879_v29, %v14196_v44 }
 0x5e8   :  { %v7355_v33 = vpop.f32.mrb[236].mxu1 }
 0x5e9   :  { %v7645_v12 = vadd.f32 %v14210_v21, %v7355_v33  ;;  %v7357_v13 = vpop.f32.mrb[237].mxu1  ;;  %v14322_v40 = vpop.f32.mrb[48].mxu0  ;;  %v7881_v21 = vadd.f32 %v7880_v54, %v14201_v28 }
 0x5ea   :  { %v7358_v51 = vpop.f32.mrb[238].mxu1  ;;  %v14327_v5 = vpop.f32.mrb[49].mxu0 }
 0x5eb   :  { %v14319_v0 = vadd.f32 %v7645_v12, %v13995_v41  ;;  %v7648_v34 = vadd.f32 %v14218_v3, %v7358_v51  ;;  %v7360_v30 = vpop.f32.mrb[239].mxu1  ;;  %v14329_v48 = vpop.f32.mrb[50].mxu0  ;;  %v7882_v41 = vadd.f32 %v7881_v21, %v14208_v23 }
 0x5ec   :  { %v14332_v33 = vpop.f32.mrb[51].mxu0 }
 0x5ed   :  { %v14325_v62 = vadd.f32 %v7648_v34, %v16138_v38  ;;  %v7883_v44 = vadd.f32 %v7882_v41, %v14213_v1 }
 0x5f0   :  { %v7363_v29 = vpop.f32.mrb[240].mxu1 }
 0x5f1   :  { %v7653_v12 = vadd.f32 %v14230_v37, %v7363_v29  ;;  %v7365_v3 = vpop.f32.mrb[241].mxu1  ;;  %v14340_v30 = vpop.f32.mrb[52].mxu0  ;;  %v7884_v37 = vadd.f32 %v7883_v44, %v14223_v56  ;;  %v16139_v44 = vld [vmem:[#allocation14_spill] sm:$0xff] }
 0x5f2   :  { %v7366_v13 = vpop.f32.mrb[242].mxu1  ;;  %v14346_v28 = vpop.f32.mrb[53].mxu0 }
 0x5f3   :  { %v14337_v51 = vadd.f32 %v7653_v12, %v14023_v45  ;;  %v7656_v38 = vadd.f32 %v14234_v6, %v7366_v13  ;;  %v7368_v34 = vpop.f32.mrb[243].mxu1  ;;  %v14348_v21 = vpop.f32.mrb[54].mxu0  ;;  %v7885_v13 = vadd.f32 %v7884_v37, %v14228_v14 }
 0x5f4   :  { %v14351_v29 = vpop.f32.mrb[55].mxu0 }
 0x5f5   :  { %v14344_v54 = vadd.f32 %v7656_v38, %v14029_v2  ;;  %v7886_v1 = vadd.f32 %v7885_v13, %v14237_v27 }
 0x5f8   :  { %v7371_v45 = vpop.f32.mrb[244].mxu1 }
 0x5f9   :  { %v7661_v12 = vadd.f32 %v14225_v24, %v7371_v45  ;;  %v7373_v6 = vpop.f32.mrb[245].mxu1  ;;  %v14359_v34 = vpop.f32.mrb[56].mxu0 }
 0x5fa   :  { %v7374_v3 = vpop.f32.mrb[246].mxu1  ;;  %v14365_v23 = vpop.f32.mrb[57].mxu0 }
 0x5fb   :  { %v14356_v41 = vadd.f32 %v7661_v12, %v14020_v43  ;;  %v7664_v2 = vadd.f32 %v14232_v52, %v7374_v3  ;;  %v7376_v38 = vpop.f32.mrb[247].mxu1  ;;  %v14367_v24 = vpop.f32.mrb[58].mxu0  ;;  %v7887_v43 = vadd.f32 %v7886_v1, %v14242_v60 }
 0x5fc   :  { %v14369_v45 = vpop.f32.mrb[59].mxu0 }
 0x5fd   :  { %v14363_v56 = vadd.f32 %v7664_v2, %v16139_v44  ;;  %v7888_v3 = vadd.f32 %v7887_v43, %v14251_v58 }
 0x5ff   :  { %v7889_v27 = vadd.f32 %v7888_v3, %v14256_v20 }
 0x600   :  { %v7379_v37 = vpop.f32.mrb[248].mxu1 }
 0x601   :  { %v7669_v12 = vadd.f32 %v14244_v31, %v7379_v37  ;;  %v7381_v52 = vpop.f32.mrb[249].mxu1  ;;  %v7890_v1 = vadd.f32 %v7889_v27, %v14265_v42 }
 0x602   :  { %v7382_v6 = vpop.f32.mrb[250].mxu1 }
 0x603   :  { %v14375_v13 = vadd.f32 %v7669_v12, %v14043_v16  ;;  %v7672_v2 = vadd.f32 %v14248_v25, %v7382_v6  ;;  %v7384_v38 = vpop.f32.mrb[251].mxu1  ;;  %v14382_v18 = vpop.f32.mrb[60].mxu0  ;;  %v16140_v25 = vld [vmem:[#allocation29_spill] sm:$0xff] }
 0x604   :  { %v14386_v43 = vpop.f32.mrb[61].mxu0  ;;  %v16141_v38 = vld [vmem:[#allocation30_spill] sm:$0xff] }
 0x605   :  { %v14379_v44 = vadd.f32 %v7672_v2, %v14049_v4  ;;  %v14388_v12 = vpop.f32.mrb[62].mxu0  ;;  %v7891_v2 = vadd.f32 %v7890_v1, %v14270_v59 }
 0x606   :  { %v14394_v3 = vpop.f32.mrb[63].mxu0 }
 0x608   :  { %v7387_v14 = vpop.f32.mrb[252].mxu1 }
 0x609   :  { %v7677_v31 = vadd.f32 %v14239_v17, %v7387_v14  ;;  %v7389_v37 = vpop.f32.mrb[253].mxu1  ;;  %v7892_v14 = vadd.f32 %v7891_v2, %v14280_v46 }
 0x60a   :  { %v7390_v16 = vpop.f32.mrb[254].mxu1 }
 0x60b   :  { %v14391_v52 = vadd.f32 %v7677_v31, %v16140_v25  ;;  %v7680_v4 = vadd.f32 %v14246_v7, %v7390_v16  ;;  %v7392_v6 = vpop.f32.mrb[255].mxu1  ;;  %v7893_v31 = vadd.f32 %v7892_v14, %v14288_v47  ;;  %v16142_v25 = vld [vmem:[#allocation28_spill] sm:$0xff] }
 0x60d   :  { %v14398_v27 = vadd.f32 %v7680_v4, %v16141_v38  ;;  %v7894_v1 = vadd.f32 %v7893_v31, %v14300_v10 }
 0x60f   :  { %v7895_v2 = vadd.f32 %v7894_v1, %v14307_v36 }
 0x610   :  { %v7395_v17 = vpop.f32.mrb[0].mxu1 }
 0x611   :  { %v7685_v37 = vadd.f32 %v14258_v32, %v7395_v17  ;;  %v7397_v42 = vpop.f32.mrb[1].mxu1  ;;  %v7896_v14 = vadd.f32 %v7895_v2, %v14319_v0  ;;  %v16143_v17 = vld [vmem:[#allocation84_spill] sm:$0xff] }
 0x612   :  { %v7398_v20 = vpop.f32.mrb[2].mxu1 }
 0x613   :  { %v14404_v58 = vadd.f32 %v7685_v37, %v16142_v25  ;;  %v7688_v7 = vadd.f32 %v14262_v15, %v7398_v20  ;;  %v7400_v16 = vpop.f32.mrb[3].mxu1 }
 0x615   :  { %v14409_v4 = vadd.f32 %v7688_v7, %v14069_v11  ;;  %v7897_v11 = vadd.f32 %v7896_v14, %v14325_v62 }
 0x617   :  { %v7898_v7 = vadd.f32 %v7897_v11, %v14337_v51  ;;  %v16145_v11 = vld [vmem:[#allocation34_spill] sm:$0xff] }
 0x618   :  { %v7403_v6 = vpop.f32.mrb[4].mxu1 }
 0x619   :  { %v7693_v32 = vadd.f32 %v14253_v9, %v7403_v6  ;;  %v7405_v42 = vpop.f32.mrb[5].mxu1  ;;  %v16144_v6 = vld [vmem:[#allocation83_spill] sm:$0xff] }
 0x61a   :  { %v7406_v38 = vpop.f32.mrb[6].mxu1 }
 0x61b   :  { %v14415_v37 = vadd.f32 %v7693_v32, %v16143_v17  ;;  %v7696_v15 = vadd.f32 %v14260_v8, %v7406_v38  ;;  %v7408_v20 = vpop.f32.mrb[7].mxu1  ;;  %v7899_v8 = vadd.f32 %v7898_v7, %v14344_v54 }
 0x61d   :  { %v14419_v31 = vadd.f32 %v7696_v15, %v14066_v35  ;;  %v7900_v38 = vadd.f32 %v7899_v8, %v14356_v41 }
 0x61f   :  { %v7901_v20 = vadd.f32 %v7900_v38, %v14363_v56 }
 0x620   :  { %v7411_v25 = vpop.f32.mrb[8].mxu1 }
 0x621   :  { %v7701_v9 = vadd.f32 %v14272_v26, %v7411_v25  ;;  %v7413_v16 = vpop.f32.mrb[9].mxu1  ;;  %v7902_v7 = vadd.f32 %v7901_v20, %v14375_v13 }
 0x622   :  { %v7414_v1 = vpop.f32.mrb[10].mxu1 }
 0x623   :  { %v14425_v2 = vadd.f32 %v7701_v9, %v16144_v6  ;;  %v7704_v32 = vadd.f32 %v14276_v57, %v7414_v1  ;;  %v7416_v42 = vpop.f32.mrb[11].mxu1  ;;  %v16146_v9 = vld [vmem:[#allocation18_spill] sm:$0xff]  ;;  %v16147_v1 = vld [vmem:[#allocation59_spill] sm:$0xff] }
 0x625   :  { %v14430_v35 = vadd.f32 %v7704_v32, %v14085_v19  ;;  %v7903_v32 = vadd.f32 %v7902_v7, %v14379_v44 }
 0x627   :  { %v7904_v38 = vadd.f32 %v7903_v32, %v14391_v52 }
 0x628   :  { %v7419_v14 = vpop.f32.mrb[12].mxu1 }
 0x629   :  { %v7709_v17 = vadd.f32 %v14267_v53, %v7419_v14  ;;  %v7421_v15 = vpop.f32.mrb[13].mxu1  ;;  %v16148_v14 = vld [vmem:[#allocation45_spill] sm:$0xff] }
 0x62a   :  { %v7422_v26 = vpop.f32.mrb[14].mxu1 }
 0x62b   :  { %v14436_v25 = vadd.f32 %v7709_v17, %v16145_v11  ;;  %v7712_v57 = vadd.f32 %v16146_v9, %v7422_v26  ;;  %v7424_v16 = vpop.f32.mrb[15].mxu1  ;;  %v16149_v11 = vld [vmem:[#allocation35_spill] sm:$0xff]  ;;  %v7905_v9 = vadd.f32 %v7904_v38, %v14398_v27 }
 0x62d   :  { %v14441_v19 = vadd.f32 %v7712_v57, %v16147_v1  ;;  %v7906_v16 = vadd.f32 %v7905_v9, %v14404_v58 }
 0x630   :  { %v7427_v6 = vpop.f32.mrb[16].mxu1 }
 0x631   :  { %v7717_v53 = vadd.f32 %v14290_v22, %v7427_v6  ;;  %v7429_v42 = vpop.f32.mrb[17].mxu1  ;;  %v16150_v6 = vld [vmem:[#allocation22_spill] sm:$0xff] }
 0x632   :  { %v7430_v8 = vpop.f32.mrb[18].mxu1 }
 0x633   :  { %v14447_v17 = vadd.f32 %v7717_v53, %v16148_v14  ;;  %v7720_v15 = vadd.f32 %v14295_v50, %v7430_v8  ;;  %v7432_v26 = vpop.f32.mrb[19].mxu1  ;;  %v7907_v50 = vadd.f32 %v7906_v16, %v14409_v4  ;;  %v16151_v8 = vld [vmem:[#allocation62_spill] sm:$0xff] }
 0x635   :  { %v14451_v20 = vadd.f32 %v7720_v15, %v16149_v11  ;;  %v7908_v38 = vadd.f32 %v7907_v50, %v14415_v37 }
 0x637   :  { %v7909_v9 = vadd.f32 %v7908_v38, %v14419_v31 }
 0x638   :  { %v7435_v57 = vpop.f32.mrb[20].mxu1 }
 0x639   :  { %v7725_v22 = vadd.f32 %v14283_v49, %v7435_v57  ;;  %v7437_v7 = vpop.f32.mrb[21].mxu1  ;;  %v16152_v57 = vld [vmem:[#allocation21_spill] sm:$0xff]  ;;  %v7910_v16 = vadd.f32 %v7909_v9, %v14425_v2 }
 0x63a   :  { %v7438_v1 = vpop.f32.mrb[22].mxu1 }
 0x63b   :  { %v14457_v32 = vadd.f32 %v7725_v22, %v16150_v6  ;;  %v7728_v53 = vadd.f32 %v14292_v55, %v7438_v1  ;;  %v7440_v42 = vpop.f32.mrb[23].mxu1  ;;  %v16153_v1 = vld [vmem:[#allocation32_spill] sm:$0xff] }
 0x63c   :  { %v7911_v42 = vadd.f32 %v7910_v16, %v14430_v35 }
 0x63d   :  { %v14462_v14 = vadd.f32 %v7728_v53, %v16151_v8 }
 0x63e   :  { %v7912_v38 = vadd.f32 %v7911_v42, %v14436_v25 }
 0x640   :  { %v7443_v15 = vpop.f32.mrb[24].mxu1 }
 0x641   :  { %v7733_v26 = vadd.f32 %v14309_v39, %v7443_v15  ;;  %v7445_v11 = vpop.f32.mrb[25].mxu1  ;;  %v16154_v15 = vld [vmem:[#allocation53_spill] sm:$0xff] }
 0x642   :  { %v7446_v49 = vpop.f32.mrb[26].mxu1  ;;  %v16155_v11 = vld [vmem:[#allocation80_spill] sm:$0xff] }
 0x643   :  { %v14468_v22 = vadd.f32 %v7733_v26, %v16152_v57  ;;  %v7736_v55 = vadd.f32 %v14313_v61, %v7446_v49  ;;  %v7448_v7 = vpop.f32.mrb[27].mxu1  ;;  %v16156_v57 = vld [vmem:[#allocation57_spill] sm:$0xff] }
 0x645   :  { %v14473_v6 = vadd.f32 %v7736_v55, %v16153_v1  ;;  %v7913_v55 = vadd.f32 %v7912_v38, %v14441_v19 }
 0x647   :  { %v7914_v16 = vadd.f32 %v7913_v55, %v14447_v17 }
 0x648   :  { %v7451_v53 = vpop.f32.mrb[28].mxu1 }
 0x649   :  { %v7741_v39 = vadd.f32 %v14303_v63, %v7451_v53  ;;  %v7453_v50 = vpop.f32.mrb[29].mxu1 }
 0x64a   :  { %v7454_v8 = vpop.f32.mrb[30].mxu1  ;;  %v16157_v50 = vld [vmem:[#allocation27_spill] sm:$0xff] }
 0x64b   :  { %v14479_v26 = vadd.f32 %v7741_v39, %v16154_v15  ;;  %v7744_v61 = vadd.f32 %v16155_v11, %v7454_v8  ;;  %v7456_v49 = vpop.f32.mrb[31].mxu1  ;;  %v7915_v8 = vadd.f32 %v7914_v16, %v14451_v20  ;;  %v16158_v11 = vld [vmem:[#allocation41_spill] sm:$0xff] }
 0x64d   :  { %v14483_v9 = vadd.f32 %v7744_v61, %v16156_v57  ;;  %v7916_v38 = vadd.f32 %v7915_v8, %v14457_v32 }
 0x650   :  { %v7459_v7 = vpop.f32.mrb[32].mxu1 }
 0x651   :  { %v7749_v63 = vadd.f32 %v14327_v5, %v7459_v7  ;;  %v7461_v1 = vpop.f32.mrb[33].mxu1  ;;  %v7917_v7 = vadd.f32 %v7916_v38, %v14462_v14 }
 0x652   :  { %v7462_v53 = vpop.f32.mrb[34].mxu1  ;;  %v16159_v1 = vld [vmem:[#allocation43_spill] sm:$0xff] }
 0x653   :  { %v14489_v42 = vadd.f32 %v7749_v63, %v16157_v50  ;;  %v7752_v39 = vadd.f32 %v14332_v33, %v7462_v53  ;;  %v7464_v15 = vpop.f32.mrb[35].mxu1  ;;  %v7918_v16 = vadd.f32 %v7917_v7, %v14468_v22  ;;  %v16160_v50 = vld [vmem:[#allocation46_spill] sm:$0xff] }
 0x655   :  { %v14494_v61 = vadd.f32 %v7752_v39, %v16158_v11  ;;  %v7919_v8 = vadd.f32 %v7918_v16, %v14473_v6 }
 0x657   :  { %v7920_v38 = vadd.f32 %v7919_v8, %v14479_v26 }
 0x658   :  { %v7467_v49 = vpop.f32.mrb[36].mxu1 }
 0x659   :  { %v7757_v57 = vadd.f32 %v14322_v40, %v7467_v49  ;;  %v7469_v55 = vpop.f32.mrb[37].mxu1 }
 0x65a   :  { %v7470_v5 = vpop.f32.mrb[38].mxu1  ;;  %v16162_v55 = vld [vmem:[#allocation78_spill] sm:$0xff] }
 0x65b   :  { %v14500_v63 = vadd.f32 %v7757_v57, %v16159_v1  ;;  %v7760_v33 = vadd.f32 %v14329_v48, %v7470_v5  ;;  %v7472_v53 = vpop.f32.mrb[39].mxu1  ;;  %v16164_v1 = vld [vmem:[#allocation23_spill] sm:$0xff] }
 0x65d   :  { %v14505_v39 = vadd.f32 %v7760_v33, %v16160_v50  ;;  %v7921_v33 = vadd.f32 %v7920_v38, %v14483_v9 }
 0x65f   :  { %16161 = vst [vmem:[#allocation52_spill] sm:$0xff] %v14505_v39  ;;  %v7922_v16 = vadd.f32 %v7921_v33, %v14489_v42 }
 0x660   :  { %v7475_v15 = vpop.f32.mrb[40].mxu1 }
 0x661   :  { %v7765_v40 = vadd.f32 %v14346_v28, %v7475_v15  ;;  %v7477_v11 = vpop.f32.mrb[41].mxu1 }
 0x662   :  { %v7478_v49 = vpop.f32.mrb[42].mxu1  ;;  %v16166_v11 = vld [vmem:[#allocation40_spill] sm:$0xff] }
 0x663   :  { %v14511_v57 = vadd.f32 %v7765_v40, %v16162_v55  ;;  %v7768_v48 = vadd.f32 %v14351_v29, %v7478_v49  ;;  %v7480_v5 = vpop.f32.mrb[43].mxu1  ;;  %v7923_v29 = vadd.f32 %v7922_v16, %v14494_v61  ;;  %v16168_v49 = vld [vmem:[#allocation76_spill] sm:$0xff] }
 0x665   :  { %16163 = vst [vmem:[#allocation17_spill] sm:$0xff] %v14511_v57  ;;  %v14515_v7 = vadd.f32 %v7768_v48, %v16164_v1  ;;  %v7924_v38 = vadd.f32 %v7923_v29, %v14500_v63 }
 0x667   :  { %16165 = vst [vmem:[#allocation25_spill] sm:$0xff] %v14515_v7 }
 0x668   :  { %v7483_v53 = vpop.f32.mrb[44].mxu1 }
 0x669   :  { %v7773_v28 = vadd.f32 %v14340_v30, %v7483_v53  ;;  %v7485_v50 = vpop.f32.mrb[45].mxu1  ;;  %v7925_v53 = vadd.f32 %v7924_v38, %v14505_v39 }
 0x66a   :  { %v7486_v15 = vpop.f32.mrb[46].mxu1  ;;  %v16170_v50 = vld [vmem:[#allocation64_spill] sm:$0xff] }
 0x66b   :  { %v14521_v8 = vadd.f32 %v7773_v28, %v16166_v11  ;;  %v7776_v40 = vadd.f32 %v14348_v21, %v7486_v15  ;;  %v7488_v55 = vpop.f32.mrb[47].mxu1  ;;  %v7926_v16 = vadd.f32 %v7925_v53, %v14511_v57  ;;  %v16172_v11 = vld [vmem:[#allocation44_spill] sm:$0xff] }
 0x66d   :  { %16167 = vst [vmem:[#allocation67_spill] sm:$0xff] %v14521_v8  ;;  %v14526_v48 = vadd.f32 %v7776_v40, %v16168_v49  ;;  %v7927_v29 = vadd.f32 %v7926_v16, %v14515_v7 }
 0x66f   :  { %16169 = vst [vmem:[#allocation70_spill] sm:$0xff] %v14526_v48  ;;  %v7928_v38 = vadd.f32 %v7927_v29, %v14521_v8 }
 0x670   :  { %v7491_v5 = vpop.f32.mrb[48].mxu1 }
 0x671   :  { %v7781_v1 = vadd.f32 %v14365_v23, %v7491_v5  ;;  %v7493_v33 = vpop.f32.mrb[49].mxu1 }
 0x672   :  { %v7494_v30 = vpop.f32.mrb[50].mxu1  ;;  %v16174_v33 = vld [vmem:[#allocation48_spill] sm:$0xff] }
 0x673   :  { %v14532_v28 = vadd.f32 %v7781_v1, %v16170_v50  ;;  %v7784_v21 = vadd.f32 %v14369_v45, %v7494_v30  ;;  %v7496_v15 = vpop.f32.mrb[51].mxu1  ;;  %v16176_v50 = vld [vmem:[#allocation47_spill] sm:$0xff] }
 0x675   :  { %16171 = vst [vmem:[#allocation15_spill] sm:$0xff] %v14532_v28  ;;  %v14537_v40 = vadd.f32 %v7784_v21, %v16172_v11  ;;  %v7929_v21 = vadd.f32 %v7928_v38, %v14526_v48 }
 0x677   :  { %16173 = vst [vmem:[#allocation49_spill] sm:$0xff] %v14537_v40  ;;  %v7930_v16 = vadd.f32 %v7929_v21, %v14532_v28 }
 0x678   :  { %v7499_v55 = vpop.f32.mrb[52].mxu1 }
 0x679   :  { %v7789_v23 = vadd.f32 %v14359_v34, %v7499_v55  ;;  %v7501_v49 = vpop.f32.mrb[53].mxu1 }
 0x67a   :  { %v7502_v5 = vpop.f32.mrb[54].mxu1  ;;  %v16178_v49 = vld [vmem:[#allocation24_spill] sm:$0xff] }
 0x67b   :  { %v14543_v1 = vadd.f32 %v7789_v23, %v16174_v33  ;;  %v7792_v45 = vadd.f32 %v14367_v24, %v7502_v5  ;;  %v7504_v30 = vpop.f32.mrb[55].mxu1  ;;  %v7931_v24 = vadd.f32 %v7930_v16, %v14537_v40  ;;  %v16180_v5 = vld [vmem:[#allocation65_spill] sm:$0xff] }
 0x67d   :  { %16175 = vst [vmem:[#allocation54_spill] sm:$0xff] %v14543_v1  ;;  %v14547_v53 = vadd.f32 %v7792_v45, %v16176_v50  ;;  %v7932_v38 = vadd.f32 %v7931_v24, %v14543_v1  ;;  %v16194_v1 = vld [vmem:[#allocation42_spill] sm:$0xff] }
 0x67f   :  { %16177 = vst [vmem:[#allocation72_spill] sm:$0xff] %v14547_v53 }
 0x680   :  { %v7507_v15 = vpop.f32.mrb[56].mxu1 }
 0x681   :  { %v7797_v34 = vadd.f32 %v14386_v43, %v7507_v15  ;;  %v7509_v11 = vpop.f32.mrb[57].mxu1  ;;  %v7933_v15 = vadd.f32 %v7932_v38, %v14547_v53 }
 0x682   :  { %v7510_v55 = vpop.f32.mrb[58].mxu1  ;;  %v16182_v11 = vld [vmem:[#allocation79_spill] sm:$0xff] }
 0x683   :  { %v14553_v29 = vadd.f32 %v7797_v34, %v16178_v49  ;;  %v7800_v23 = vadd.f32 %v14394_v3, %v7510_v55  ;;  %v7512_v33 = vpop.f32.mrb[59].mxu1  ;;  %v16184_v49 = vld [vmem:[#allocation56_spill] sm:$0xff] }
 0x685   :  { %16179 = vst [vmem:[#allocation50_spill] sm:$0xff] %v14553_v29  ;;  %v14558_v45 = vadd.f32 %v7800_v23, %v16180_v5  ;;  %v7934_v16 = vadd.f32 %v7933_v15, %v14553_v29  ;;  %v16187_v15 = vld [vmem:[#allocation16_spill] sm:$0xff] }
 0x687   :  { %16181 = vst [vmem:[#allocation19_spill] sm:$0xff] %v14558_v45  ;;  %v7935_v33 = vadd.f32 %v7934_v16, %v14558_v45 }
 0x688   :  { %v7515_v30 = vpop.f32.mrb[60].mxu1 }
 0x689   :  { %v7805_v50 = vadd.f32 %v14382_v18, %v7515_v30  ;;  %v7517_v21 = vpop.f32.mrb[61].mxu1 }
 0x68a   :  { %v7518_v43 = vpop.f32.mrb[62].mxu1 }
 0x68b   :  { %v14564_v34 = vadd.f32 %v7805_v50, %v16182_v11  ;;  %v7808_v3 = vadd.f32 %v14388_v12, %v7518_v43  ;;  %v7520_v55 = vpop.f32.mrb[63].mxu1  ;;  %v16186_v12 = vld [vmem:[#allocation26_spill] sm:$0xff] }
 0x68c   :  { %v16188_v55 = vld [vmem:[#allocation13_spill] sm:$0xff] }
 0x68d   :  { %16183 = vst [vmem:[#allocation73_spill] sm:$0xff] %v14564_v34  ;;  %v14569_v23 = vadd.f32 %v7808_v3, %v16184_v49  ;;  %v7936_v24 = vadd.f32 %v7935_v33, %v14564_v34 }
 0x68f   :  { %16185 = vst [vmem:[#allocation55_spill] sm:$0xff] %v14569_v23  ;;  %v7937_v18 = vadd.f32 %v7936_v24, %v14569_v23  ;;  %v16189_v24 = vld [vmem:[#allocation36_spill] sm:$0xff] }
 0x691   :  { %v7938_v5 = vrot.slane %v7937_v18, 4 }
 0x693   :  { %v7939_v30 = vadd.f32 %v7938_v5, %v7937_v18  ;;  %v16190_v5 = vld [vmem:[#allocation33_spill] sm:$0xff] }
 0x695   :  { %v7940_v38 = vrot.slane %v7939_v30, 2 }
 0x697   :  { %v7941_v21 = vadd.f32 %v7940_v38, %v7939_v30 }
 0x699   :  { %v7942_v50 = vrot.slane %v7941_v21, 1 }
 0x69b   :  { %v7943_v11 = vadd.f32 %v7942_v50, %v7941_v21  ;;  %v16191_v50 = vld [vmem:[#allocation85_spill] sm:$0xff] }
 0x69d   :  { %v14574_v53 = vmul.f32 0.001953125, %v7943_v11 }
 0x69f   :  { %v7945_v43 = vsub.f32 %v16186_v12, %v14574_v53  ;;  %v7946_v3 = vsub.f32 %v16187_v15, %v14574_v53  ;;  %v7947_v16 = vsub.f32 %v16188_v55, %v14574_v53  ;;  %v7948_v18 = vsub.f32 %v16189_v24, %v14574_v53  ;;  %v16192_v15 = vld [vmem:[#allocation61_spill] sm:$0xff] }
 0x6a0   :  { %v7949_v30 = vsub.f32 %v16190_v5, %v14574_v53  ;;  %v7950_v11 = vsub.f32 %v16191_v50, %v14574_v53  ;;  %v7951_v34 = vsub.f32 %v16192_v15, %v14574_v53  ;;  %v7953_v5 = vsub.f32 %v16194_v1, %v14574_v53 }
 0x6a1   :  { %v8009_v49 = vmul.f32 %v7945_v43, %v7945_v43  ;;  %v8010_v33 = vmul.f32 %v7946_v3, %v7946_v3  ;;  %v8011_v38 = vmul.f32 %v7947_v16, %v7947_v16  ;;  %v8012_v12 = vmul.f32 %v7948_v18, %v7948_v18  ;;  %v16193_v43 = vld [vmem:[#allocation66_spill] sm:$0xff] }
 0x6a2   :  { %v8013_v45 = vmul.f32 %v7949_v30, %v7949_v30  ;;  %v7952_v3 = vsub.f32 %v16193_v43, %v14574_v53  ;;  %v8014_v29 = vmul.f32 %v7950_v11, %v7950_v11  ;;  %v8015_v16 = vmul.f32 %v7951_v34, %v7951_v34 }
 0x6a3   :  { %v8073_v21 = vadd.f32 %v8010_v33, %v8009_v49  ;;  %v16195_v33 = vld [vmem:[#allocation20_spill] sm:$0xff]  ;;  %v8017_v30 = vmul.f32 %v7953_v5, %v7953_v5 }
 0x6a4   :  { %v7954_v50 = vsub.f32 %v16195_v33, %v14574_v53  ;;  %v8016_v18 = vmul.f32 %v7952_v3, %v7952_v3 }
 0x6a5   :  { %v8074_v23 = vadd.f32 %v8073_v21, %v8011_v38  ;;  %v16196_v21 = vld [vmem:[#allocation51_spill] sm:$0xff] }
 0x6a6   :  { %v7955_v15 = vsub.f32 %v16196_v21, %v14574_v53  ;;  %v8018_v11 = vmul.f32 %v7954_v50, %v7954_v50 }
 0x6a7   :  { %v8075_v55 = vadd.f32 %v8074_v23, %v8012_v12  ;;  %v16197_v12 = vld [vmem:[#allocation68_spill] sm:$0xff] }
 0x6a8   :  { %v7956_v43 = vsub.f32 %v16197_v12, %v14574_v53  ;;  %v8019_v34 = vmul.f32 %v7955_v15, %v7955_v15 }
 0x6a9   :  { %v8076_v24 = vadd.f32 %v8075_v55, %v8013_v45  ;;  %v16198_v55 = vld [vmem:[#allocation82_spill] sm:$0xff] }
 0x6aa   :  { %v7957_v1 = vsub.f32 %v16198_v55, %v14574_v53  ;;  %v8020_v3 = vmul.f32 %v7956_v43, %v7956_v43 }
 0x6ab   :  { %v8077_v49 = vadd.f32 %v8076_v24, %v8014_v29  ;;  %v7958_v24 = vsub.f32 %v14242_v60, %v14574_v53 }
 0x6ac   :  { %v8021_v5 = vmul.f32 %v7957_v1, %v7957_v1 }
 0x6ad   :  { %v8078_v38 = vadd.f32 %v8077_v49, %v8015_v16  ;;  %v16199_v49 = vld [vmem:[#allocation81_spill] sm:$0xff]  ;;  %v8022_v50 = vmul.f32 %v7958_v24, %v7958_v24 }
 0x6ae   :  { %v7959_v21 = vsub.f32 %v16199_v49, %v14574_v53 }
 0x6af   :  { %v8079_v23 = vadd.f32 %v8078_v38, %v8016_v18  ;;  %v16200_v38 = vld [vmem:[#allocation63_spill] sm:$0xff] }
 0x6b0   :  { %v7960_v12 = vsub.f32 %v16200_v38, %v14574_v53  ;;  %v8023_v15 = vmul.f32 %v7959_v21, %v7959_v21 }
 0x6b1   :  { %v8080_v45 = vadd.f32 %v8079_v23, %v8017_v30  ;;  %v16201_v23 = vld [vmem:[#allocation69_spill] sm:$0xff] }
 0x6b2   :  { %v7961_v55 = vsub.f32 %v16201_v23, %v14574_v53  ;;  %v8024_v43 = vmul.f32 %v7960_v12, %v7960_v12 }
 0x6b3   :  { %v8081_v29 = vadd.f32 %v8080_v45, %v8018_v11  ;;  %v7962_v45 = vsub.f32 %v14270_v59, %v14574_v53 }
 0x6b4   :  { %v8025_v1 = vmul.f32 %v7961_v55, %v7961_v55 }
 0x6b5   :  { %v8082_v16 = vadd.f32 %v8081_v29, %v8019_v34  ;;  %v7963_v29 = vsub.f32 %v14280_v46, %v14574_v53  ;;  %v8026_v24 = vmul.f32 %v7962_v45, %v7962_v45 }
 0x6b7   :  { %v8083_v18 = vadd.f32 %v8082_v16, %v8020_v3  ;;  %v7964_v16 = vsub.f32 %v14288_v47, %v14574_v53  ;;  %v8027_v21 = vmul.f32 %v7963_v29, %v7963_v29 }
 0x6b9   :  { %v8084_v30 = vadd.f32 %v8083_v18, %v8021_v5  ;;  %v7965_v18 = vsub.f32 %v14300_v10, %v14574_v53  ;;  %v8028_v12 = vmul.f32 %v7964_v16, %v7964_v16 }
 0x6bb   :  { %v8085_v11 = vadd.f32 %v8084_v30, %v8022_v50  ;;  %v7966_v30 = vsub.f32 %v14307_v36, %v14574_v53  ;;  %v8029_v55 = vmul.f32 %v7965_v18, %v7965_v18 }
 0x6bd   :  { %v8086_v34 = vadd.f32 %v8085_v11, %v8023_v15  ;;  %v7967_v11 = vsub.f32 %v14319_v0, %v14574_v53  ;;  %v8030_v45 = vmul.f32 %v7966_v30, %v7966_v30 }
 0x6bf   :  { %v8087_v3 = vadd.f32 %v8086_v34, %v8024_v43  ;;  %v7968_v34 = vsub.f32 %v14325_v62, %v14574_v53  ;;  %v8031_v29 = vmul.f32 %v7967_v11, %v7967_v11 }
 0x6c1   :  { %v8088_v5 = vadd.f32 %v8087_v3, %v8025_v1  ;;  %v7969_v3 = vsub.f32 %v14337_v51, %v14574_v53  ;;  %v8032_v16 = vmul.f32 %v7968_v34, %v7968_v34 }
 0x6c3   :  { %v8089_v50 = vadd.f32 %v8088_v5, %v8026_v24  ;;  %v7970_v5 = vsub.f32 %v14344_v54, %v14574_v53  ;;  %v8033_v18 = vmul.f32 %v7969_v3, %v7969_v3 }
 0x6c5   :  { %v8090_v15 = vadd.f32 %v8089_v50, %v8027_v21  ;;  %v7971_v50 = vsub.f32 %v14356_v41, %v14574_v53  ;;  %v8034_v30 = vmul.f32 %v7970_v5, %v7970_v5 }
 0x6c7   :  { %v8091_v43 = vadd.f32 %v8090_v15, %v8028_v12  ;;  %v7972_v15 = vsub.f32 %v14363_v56, %v14574_v53  ;;  %v8035_v11 = vmul.f32 %v7971_v50, %v7971_v50 }
 0x6c9   :  { %v8092_v1 = vadd.f32 %v8091_v43, %v8029_v55  ;;  %v7973_v43 = vsub.f32 %v14375_v13, %v14574_v53  ;;  %v8036_v34 = vmul.f32 %v7972_v15, %v7972_v15 }
 0x6cb   :  { %v8093_v24 = vadd.f32 %v8092_v1, %v8030_v45  ;;  %v7974_v1 = vsub.f32 %v14379_v44, %v14574_v53  ;;  %v8037_v3 = vmul.f32 %v7973_v43, %v7973_v43 }
 0x6cd   :  { %v8094_v21 = vadd.f32 %v8093_v24, %v8031_v29  ;;  %v7975_v24 = vsub.f32 %v14391_v52, %v14574_v53  ;;  %v8038_v5 = vmul.f32 %v7974_v1, %v7974_v1 }
 0x6cf   :  { %v8095_v12 = vadd.f32 %v8094_v21, %v8032_v16  ;;  %v7976_v21 = vsub.f32 %v14398_v27, %v14574_v53  ;;  %v8039_v50 = vmul.f32 %v7975_v24, %v7975_v24 }
 0x6d1   :  { %v8096_v55 = vadd.f32 %v8095_v12, %v8033_v18  ;;  %v7977_v12 = vsub.f32 %v14404_v58, %v14574_v53  ;;  %v8040_v15 = vmul.f32 %v7976_v21, %v7976_v21 }
 0x6d3   :  { %v8097_v45 = vadd.f32 %v8096_v55, %v8034_v30  ;;  %v7978_v55 = vsub.f32 %v14409_v4, %v14574_v53  ;;  %v8041_v43 = vmul.f32 %v7977_v12, %v7977_v12 }
 0x6d5   :  { %v8098_v29 = vadd.f32 %v8097_v45, %v8035_v11  ;;  %v7979_v45 = vsub.f32 %v14415_v37, %v14574_v53  ;;  %v8042_v1 = vmul.f32 %v7978_v55, %v7978_v55 }
 0x6d7   :  { %v8099_v16 = vadd.f32 %v8098_v29, %v8036_v34  ;;  %v7980_v29 = vsub.f32 %v14419_v31, %v14574_v53  ;;  %v8043_v24 = vmul.f32 %v7979_v45, %v7979_v45 }
 0x6d9   :  { %v8100_v18 = vadd.f32 %v8099_v16, %v8037_v3  ;;  %v7981_v16 = vsub.f32 %v14425_v2, %v14574_v53  ;;  %v8044_v21 = vmul.f32 %v7980_v29, %v7980_v29 }
 0x6db   :  { %v8101_v30 = vadd.f32 %v8100_v18, %v8038_v5  ;;  %v7982_v18 = vsub.f32 %v14430_v35, %v14574_v53  ;;  %v8045_v12 = vmul.f32 %v7981_v16, %v7981_v16 }
 0x6dd   :  { %v8102_v11 = vadd.f32 %v8101_v30, %v8039_v50  ;;  %v7983_v30 = vsub.f32 %v14436_v25, %v14574_v53  ;;  %v8046_v55 = vmul.f32 %v7982_v18, %v7982_v18 }
 0x6df   :  { %v8103_v34 = vadd.f32 %v8102_v11, %v8040_v15  ;;  %v7984_v11 = vsub.f32 %v14441_v19, %v14574_v53  ;;  %v8047_v45 = vmul.f32 %v7983_v30, %v7983_v30 }
 0x6e1   :  { %v8104_v3 = vadd.f32 %v8103_v34, %v8041_v43  ;;  %v7985_v34 = vsub.f32 %v14447_v17, %v14574_v53  ;;  %v8048_v29 = vmul.f32 %v7984_v11, %v7984_v11 }
 0x6e3   :  { %v8105_v5 = vadd.f32 %v8104_v3, %v8042_v1  ;;  %v7986_v3 = vsub.f32 %v14451_v20, %v14574_v53  ;;  %v8049_v16 = vmul.f32 %v7985_v34, %v7985_v34 }
 0x6e5   :  { %v8106_v50 = vadd.f32 %v8105_v5, %v8043_v24  ;;  %v7987_v5 = vsub.f32 %v14457_v32, %v14574_v53  ;;  %v8050_v18 = vmul.f32 %v7986_v3, %v7986_v3 }
 0x6e7   :  { %v8107_v15 = vadd.f32 %v8106_v50, %v8044_v21  ;;  %v7988_v50 = vsub.f32 %v14462_v14, %v14574_v53  ;;  %v8051_v30 = vmul.f32 %v7987_v5, %v7987_v5 }
 0x6e9   :  { %v8108_v43 = vadd.f32 %v8107_v15, %v8045_v12  ;;  %v7989_v15 = vsub.f32 %v14468_v22, %v14574_v53  ;;  %v8052_v11 = vmul.f32 %v7988_v50, %v7988_v50 }
 0x6eb   :  { %v8109_v1 = vadd.f32 %v8108_v43, %v8046_v55  ;;  %v7990_v43 = vsub.f32 %v14473_v6, %v14574_v53  ;;  %v8053_v34 = vmul.f32 %v7989_v15, %v7989_v15 }
 0x6ed   :  { %v8110_v24 = vadd.f32 %v8109_v1, %v8047_v45  ;;  %v7991_v1 = vsub.f32 %v14479_v26, %v14574_v53  ;;  %v8054_v3 = vmul.f32 %v7990_v43, %v7990_v43 }
 0x6ef   :  { %v8111_v21 = vadd.f32 %v8110_v24, %v8048_v29  ;;  %v7992_v24 = vsub.f32 %v14483_v9, %v14574_v53  ;;  %v8055_v5 = vmul.f32 %v7991_v1, %v7991_v1 }
 0x6f1   :  { %v8112_v12 = vadd.f32 %v8111_v21, %v8049_v16  ;;  %v7993_v21 = vsub.f32 %v14489_v42, %v14574_v53  ;;  %v8056_v50 = vmul.f32 %v7992_v24, %v7992_v24 }
 0x6f3   :  { %v8113_v55 = vadd.f32 %v8112_v12, %v8050_v18  ;;  %v7994_v12 = vsub.f32 %v14494_v61, %v14574_v53  ;;  %v8057_v15 = vmul.f32 %v7993_v21, %v7993_v21 }
 0x6f5   :  { %v8114_v45 = vadd.f32 %v8113_v55, %v8051_v30  ;;  %v7995_v55 = vsub.f32 %v14500_v63, %v14574_v53  ;;  %v8058_v43 = vmul.f32 %v7994_v12, %v7994_v12 }
 0x6f7   :  { %v8115_v29 = vadd.f32 %v8114_v45, %v8052_v11  ;;  %v7996_v45 = vsub.f32 %v14505_v39, %v14574_v53  ;;  %v8059_v1 = vmul.f32 %v7995_v55, %v7995_v55 }
 0x6f9   :  { %v8116_v16 = vadd.f32 %v8115_v29, %v8053_v34  ;;  %v7997_v29 = vsub.f32 %v14511_v57, %v14574_v53  ;;  %v8060_v24 = vmul.f32 %v7996_v45, %v7996_v45 }
 0x6fb   :  { %v8117_v18 = vadd.f32 %v8116_v16, %v8054_v3  ;;  %v7998_v16 = vsub.f32 %v14515_v7, %v14574_v53  ;;  %v8061_v21 = vmul.f32 %v7997_v29, %v7997_v29 }
 0x6fd   :  { %v8118_v30 = vadd.f32 %v8117_v18, %v8055_v5  ;;  %v7999_v18 = vsub.f32 %v14521_v8, %v14574_v53  ;;  %v8062_v12 = vmul.f32 %v7998_v16, %v7998_v16 }
 0x6ff   :  { %v8119_v11 = vadd.f32 %v8118_v30, %v8056_v50  ;;  %v8000_v30 = vsub.f32 %v14526_v48, %v14574_v53  ;;  %v8063_v55 = vmul.f32 %v7999_v18, %v7999_v18 }
 0x701   :  { %v8120_v34 = vadd.f32 %v8119_v11, %v8057_v15  ;;  %v8001_v11 = vsub.f32 %v14532_v28, %v14574_v53  ;;  %v8064_v45 = vmul.f32 %v8000_v30, %v8000_v30 }
 0x703   :  { %v8121_v3 = vadd.f32 %v8120_v34, %v8058_v43  ;;  %v8002_v34 = vsub.f32 %v14537_v40, %v14574_v53  ;;  %v8065_v29 = vmul.f32 %v8001_v11, %v8001_v11 }
 0x705   :  { %v8122_v5 = vadd.f32 %v8121_v3, %v8059_v1  ;;  %v16202_v3 = vld [vmem:[#allocation54_spill] sm:$0xff]  ;;  %v8066_v16 = vmul.f32 %v8002_v34, %v8002_v34 }
 0x706   :  { %v8003_v8 = vsub.f32 %v16202_v3, %v14574_v53 }
 0x707   :  { %v8123_v50 = vadd.f32 %v8122_v5, %v8060_v24  ;;  %v16203_v5 = vld [vmem:[#allocation72_spill] sm:$0xff] }
 0x708   :  { %v8004_v48 = vsub.f32 %v16203_v5, %v14574_v53  ;;  %v8067_v18 = vmul.f32 %v8003_v8, %v8003_v8 }
 0x709   :  { %v8124_v15 = vadd.f32 %v8123_v50, %v8061_v21  ;;  %v16204_v50 = vld [vmem:[#allocation50_spill] sm:$0xff] }
 0x70a   :  { %v8005_v28 = vsub.f32 %v16204_v50, %v14574_v53  ;;  %v8068_v30 = vmul.f32 %v8004_v48, %v8004_v48 }
 0x70b   :  { %v8125_v43 = vadd.f32 %v8124_v15, %v8062_v12  ;;  %v16205_v15 = vld [vmem:[#allocation19_spill] sm:$0xff] }
 0x70c   :  { %v8006_v40 = vsub.f32 %v16205_v15, %v14574_v53  ;;  %v8069_v11 = vmul.f32 %v8005_v28, %v8005_v28  ;;  %v8143_v28 = vld [vmem:[%s15304_s5] sm:$0x1]  ;;  %s9991_s5 = smov [#allocation9]  }
 0x70d   :  { %v8126_v1 = vadd.f32 %v8125_v43, %v8063_v55  ;;  %v16206_v43 = vld [vmem:[#allocation73_spill] sm:$0xff] }
 0x70e   :  { %v8007_v3 = vsub.f32 %v16206_v43, %v14574_v53  ;;  %v8070_v34 = vmul.f32 %v8006_v40, %v8006_v40 }
 0x70f   :  { %v8127_v24 = vadd.f32 %v8126_v1, %v8064_v45  ;;  %v16207_v1 = vld [vmem:[#allocation55_spill] sm:$0xff] }
 0x710   :  { %v8008_v5 = vsub.f32 %v16207_v1, %v14574_v53 }
 0x711   :  { %v8128_v21 = vadd.f32 %v8127_v24, %v8065_v29  ;;  %v8071_v24 = vmul.f32 %v8007_v3, %v8007_v3 }
 0x712   :  { %v8072_v50 = vmul.f32 %v8008_v5, %v8008_v5  ;;  %v16208_v5 = vld [vmem:[#allocation37_spill] sm:$0xff] }
 0x713   :  { %v8129_v12 = vadd.f32 %v8128_v21, %v8066_v16 }
 0x715   :  { %v8130_v55 = vadd.f32 %v8129_v12, %v8067_v18 }
 0x717   :  { %v8131_v45 = vadd.f32 %v8130_v55, %v8068_v30 }
 0x719   :  { %v8132_v29 = vadd.f32 %v8131_v45, %v8069_v11  ;;  %v16211_v45 = vld [vmem:[#allocation13_spill] sm:$0xff] }
 0x71b   :  { %v8133_v7 = vadd.f32 %v8132_v29, %v8070_v34 }
 0x71d   :  { %v8134_v8 = vadd.f32 %v8133_v7, %v8071_v24  ;;  %v8147_v7 = vld [vmem:[%s15305_s6] sm:$0x1]  ;;  %v16213_v24 = vld [vmem:[#allocation33_spill] sm:$0xff]  ;;  %s8423_s6 = sshll.u32 %s9991_s5, 4  ;;  %s8424_s6 = int_to_ptr.vmem [resolvable:$true] %s8423_s6 }
 0x71e   :  { %s9957_s19 = scalar_lea.vmem %s8424_s6, 8192  ;;  %p9962_p11 = scmp.lt.s32.totalorder %s8424_s6, %s8424_s6 }
 0x71f   :  { %v8135_v16 = vadd.f32 %v8134_v8, %v8072_v50  ;;  %p9958_p10 = scmp.ne.s32.totalorder %s8424_s6, %s9957_s19  ;;  %p9963_p12 = scmp.lt.s32.totalorder %s9957_s19, %s9957_s19 }
 0x721   :  { %v8136_v21 = vrot.slane %v8135_v16, 4  ;;  %p9964_p13 = por %p9963_p12, %p9962_p11 }
 0x723   :  { %v8137_v57 = vadd.f32 %v8136_v21, %v8135_v16  ;;  %p9965_p0 = pnand %p9964_p13, %p9958_p10 }
 0x725   :  { %v8138_v15 = vrot.slane %v8137_v57, 2 }
 0x727   :  { %v8139_v48 = vadd.f32 %v8138_v15, %v8137_v57  ;;  %v16209_v15 = vld [vmem:[#allocation26_spill] sm:$0xff] }
 0x729   :  { %v8140_v18 = vrot.slane %v8139_v48, 1 }
 0x72b   :  { %v8141_v12 = vadd.f32 %v8140_v18, %v8139_v48  ;;  %v16215_v48 = vld [vmem:[#allocation61_spill] sm:$0xff] }
 0x72d   :  { %v8142_v39 = vmul.f32 0.001953125, %v8141_v12  ;;  %v16216_v12 = vld [vmem:[#allocation66_spill] sm:$0xff] }
 0x72f   :  { %v8144_v43 = vadd.f32 1e-05, %v8142_v39 }
 0x731   :  { %9855 = vrsqrt.f32 %v8144_v43  ;;  %v16210_v43 = vld [vmem:[#allocation16_spill] sm:$0xff] }
 0x73b   :  { %v9856_v40 = vpop.eup %9855 }
 0x73c   :  { %v8146_v30 = vmul.f32 %v9856_v40, %v8143_v28  ;;  %v16217_v40 = vld [vmem:[#allocation42_spill] sm:$0xff] }
 0x73e   :  { %v8148_v3 = vmul.f32 %v8146_v30, %v14574_v53  ;;  %v14712_v50 = vrot.slane %v8146_v30, %v16208_v5  ;;  %v16212_v53 = vld [vmem:[#allocation36_spill] sm:$0xff] }
 0x740   :  { %v8149_v57 = vsub.f32 %v8147_v7, %v8148_v3  ;;  %v8219_v39 = vmul.f32 %v14712_v50, %v16207_v1  ;;  %v14718_v55 = vmul.f32 %v14712_v50, %v16209_v15  ;;  %v14722_v11 = vmul.f32 %v14712_v50, %v16210_v43  ;;  %v16214_v1 = vld [vmem:[#allocation85_spill] sm:$0xff]  ;;  %v16218_v3 = vld [vmem:[#allocation51_spill] sm:$0xff]  ;;  %v16220_v43 = vld [vmem:[#allocation82_spill] sm:$0xff] }
 0x741   :  { %v14726_v34 = vmul.f32 %v14712_v50, %v16211_v45  ;;  %v14730_v29 = vmul.f32 %v14712_v50, %v16212_v53  ;;  %v14734_v8 = vmul.f32 %v14712_v50, %v16213_v24  ;;  %v14738_v16 = vmul.f32 %v14712_v50, %v16214_v1 }
 0x742   :  { %v14741_v21 = vrot.slane %v8149_v57, %v16208_v5  ;;  %v14745_v18 = vmul.f32 %v14712_v50, %v16215_v48  ;;  %v14749_v28 = vmul.f32 %v14712_v50, %v16216_v12  ;;  %v14753_v30 = vmul.f32 %v14712_v50, %v16217_v40  ;;  %v16219_v57 = vld [vmem:[#allocation68_spill] sm:$0xff] }
 0x743   :  { %v14757_v7 = vmul.f32 %v14712_v50, %v16195_v33  ;;  %v14761_v5 = vmul.f32 %v14712_v50, %v16218_v3  ;;  %v14765_v15 = vmul.f32 %v14712_v50, %v16219_v57  ;;  %v14769_v45 = vmul.f32 %v14712_v50, %v16220_v43  ;;  %v16221_v40 = vld [vmem:[#allocation52_spill] sm:$0xff]  ;;  %v16223_v3 = vld [vmem:[#allocation17_spill] sm:$0xff]  ;;  %v16227_v43 = vld [vmem:[#allocation67_spill] sm:$0xff] }
 0x744   :  { %v8289_v53 = vadd.f32 %v14741_v21, %v8219_v39  ;;  %v14774_v24 = vmul.f32 %v14712_v50, %v14242_v60  ;;  %v14778_v33 = vmul.f32 %v14712_v50, %v16199_v49  ;;  %v14782_v1 = vmul.f32 %v14712_v50, %v16200_v38  ;;  %v16225_v57 = vld [vmem:[#allocation25_spill] sm:$0xff] }
 0x745   :  { %v14786_v48 = vmul.f32 %v14712_v50, %v16201_v23  ;;  %v14790_v12 = vmul.f32 %v14712_v50, %v14270_v59  ;;  %v14794_v60 = vmul.f32 %v14712_v50, %v14280_v46  ;;  %v14798_v49 = vmul.f32 %v14712_v50, %v14288_v47 }
 0x746   :  { %v8353_v39 = vmax.f32 %v8289_v53, 0.0  ;;  %v14802_v38 = vmul.f32 %v14712_v50, %v14300_v10  ;;  %v14806_v23 = vmul.f32 %v14712_v50, %v14307_v36  ;;  %v14810_v59 = vmul.f32 %v14712_v50, %v14319_v0  ;;  %v16229_v53 = vld [vmem:[#allocation70_spill] sm:$0xff] }
 0x747   :  { %v14814_v46 = vmul.f32 %v14712_v50, %v14325_v62  ;;  %v14818_v47 = vmul.f32 %v14712_v50, %v14337_v51  ;;  %v14822_v10 = vmul.f32 %v14712_v50, %v14344_v54  ;;  %v14826_v36 = vmul.f32 %v14712_v50, %v14356_v41 }
 0x748   :  { %8417 = vst [vmem:[#allocation9 + $0x1f8] sm:$0xff] %v8353_v39  ;;  %v14830_v0 = vmul.f32 %v14712_v50, %v14363_v56  ;;  %v14834_v62 = vmul.f32 %v14712_v50, %v14375_v13  ;;  %v14838_v51 = vmul.f32 %v14712_v50, %v14379_v44  ;;  %v14842_v54 = vmul.f32 %v14712_v50, %v14391_v52  ;;  %v16231_v39 = vld [vmem:[#allocation15_spill] sm:$0xff] }
 0x749   :  { %v14846_v41 = vmul.f32 %v14712_v50, %v14398_v27  ;;  %v14850_v56 = vmul.f32 %v14712_v50, %v14404_v58  ;;  %v14854_v13 = vmul.f32 %v14712_v50, %v14409_v4  ;;  %v14858_v44 = vmul.f32 %v14712_v50, %v14415_v37 }
 0x74a   :  { %v14862_v52 = vmul.f32 %v14712_v50, %v14419_v31  ;;  %v14866_v27 = vmul.f32 %v14712_v50, %v14425_v2  ;;  %v14870_v58 = vmul.f32 %v14712_v50, %v14430_v35  ;;  %v14874_v4 = vmul.f32 %v14712_v50, %v14436_v25 }
 0x74b   :  { %v14878_v37 = vmul.f32 %v14712_v50, %v14441_v19  ;;  %v14882_v31 = vmul.f32 %v14712_v50, %v14447_v17  ;;  %v14886_v2 = vmul.f32 %v14712_v50, %v14451_v20  ;;  %v14890_v35 = vmul.f32 %v14712_v50, %v14457_v32 }
 0x74c   :  { %v14894_v25 = vmul.f32 %v14712_v50, %v14462_v14  ;;  %v14898_v19 = vmul.f32 %v14712_v50, %v14468_v22  ;;  %v14902_v17 = vmul.f32 %v14712_v50, %v14473_v6  ;;  %v14906_v20 = vmul.f32 %v14712_v50, %v14479_v26 }
 0x74d   :  { %v14910_v32 = vmul.f32 %v14712_v50, %v14483_v9  ;;  %v14914_v14 = vmul.f32 %v14712_v50, %v14489_v42  ;;  %v14918_v22 = vmul.f32 %v14712_v50, %v14494_v61  ;;  %v14922_v6 = vmul.f32 %v14712_v50, %v14500_v63 }
 0x74e   :  { %v14926_v26 = vmul.f32 %v14712_v50, %v16221_v40  ;;  %v14930_v9 = vmul.f32 %v14712_v50, %v16223_v3  ;;  %v14934_v42 = vmul.f32 %v14712_v50, %v16225_v57  ;;  %v14938_v61 = vmul.f32 %v14712_v50, %v16227_v43 }
 0x74f   :  { %v14942_v63 = vmul.f32 %v14712_v50, %v16229_v53  ;;  %v14946_v40 = vmul.f32 %v14712_v50, %v16231_v39 }
 0x750   :  { %16222 = vst [vmem:[#allocation38_spill] sm:$0xff] %v14926_v26  ;;  %16224 = vst [vmem:[#allocation71_spill] sm:$0xff] %v14930_v9  ;;  %v16233_v26 = vld [vmem:[#allocation49_spill] sm:$0xff]  ;;  %v16234_v9 = vld [vmem:[#allocation54_spill] sm:$0xff] }
 0x751   :  { %16226 = vst [vmem:[#allocation74_spill] sm:$0xff] %v14934_v42  ;;  %16228 = vst [vmem:[#allocation58_spill] sm:$0xff] %v14938_v61  ;;  %v14950_v3 = vmul.f32 %v14712_v50, %v16233_v26  ;;  %v14954_v57 = vmul.f32 %v14712_v50, %v16234_v9  ;;  %v16235_v42 = vld [vmem:[#allocation72_spill] sm:$0xff]  ;;  %v16236_v61 = vld [vmem:[#allocation50_spill] sm:$0xff]  ;;  %v14974_v9 = vadd.f32 %v14741_v21, %v14718_v55 }
 0x752   :  { %16230 = vst [vmem:[#allocation75_spill] sm:$0xff] %v14942_v63  ;;  %16232 = vst [vmem:[#allocation39_spill] sm:$0xff] %v14946_v40  ;;  %v14958_v43 = vmul.f32 %v14712_v50, %v16235_v42  ;;  %v14962_v53 = vmul.f32 %v14712_v50, %v16236_v61  ;;  %v16237_v63 = vld [vmem:[#allocation19_spill] sm:$0xff]  ;;  %v16238_v40 = vld [vmem:[#allocation73_spill] sm:$0xff]  ;;  %v14978_v42 = vadd.f32 %v14741_v21, %v14722_v11 }
 0x753   :  { %v14966_v39 = vmul.f32 %v14712_v50, %v16237_v63  ;;  %v14970_v26 = vmul.f32 %v14712_v50, %v16238_v40  ;;  %v14982_v61 = vadd.f32 %v14741_v21, %v14726_v34  ;;  %v14986_v63 = vadd.f32 %v14741_v21, %v14730_v29 }
 0x754   :  { %v14990_v50 = vadd.f32 %v14741_v21, %v14734_v8  ;;  %v14994_v55 = vadd.f32 %v14741_v21, %v14738_v16  ;;  %v14998_v11 = vadd.f32 %v14741_v21, %v14745_v18  ;;  %v15002_v34 = vadd.f32 %v14741_v21, %v14749_v28 }
 0x755   :  { %v15006_v29 = vadd.f32 %v14741_v21, %v14753_v30  ;;  %v15010_v8 = vadd.f32 %v14741_v21, %v14757_v7  ;;  %v15014_v16 = vadd.f32 %v14741_v21, %v14761_v5  ;;  %v15018_v18 = vadd.f32 %v14741_v21, %v14765_v15 }
 0x756   :  { %v15022_v28 = vadd.f32 %v14741_v21, %v14769_v45  ;;  %v15026_v30 = vadd.f32 %v14741_v21, %v14774_v24  ;;  %v15030_v7 = vadd.f32 %v14741_v21, %v14778_v33  ;;  %v15034_v5 = vadd.f32 %v14741_v21, %v14782_v1 }
 0x757   :  { %v15038_v15 = vadd.f32 %v14741_v21, %v14786_v48  ;;  %v15042_v45 = vadd.f32 %v14741_v21, %v14790_v12  ;;  %v15046_v24 = vadd.f32 %v14741_v21, %v14794_v60  ;;  %v15050_v33 = vadd.f32 %v14741_v21, %v14798_v49  ;;  %v16244_v40 = vld [vmem:[#allocation38_spill] sm:$0xff] }
 0x758   :  { %v15054_v1 = vadd.f32 %v14741_v21, %v14802_v38  ;;  %v15058_v48 = vadd.f32 %v14741_v21, %v14806_v23  ;;  %v15062_v12 = vadd.f32 %v14741_v21, %v14810_v59  ;;  %v15066_v60 = vadd.f32 %v14741_v21, %v14814_v46 }
 0x759   :  { %v15070_v49 = vadd.f32 %v14741_v21, %v14818_v47  ;;  %v15074_v38 = vadd.f32 %v14741_v21, %v14822_v10  ;;  %v15078_v23 = vadd.f32 %v14741_v21, %v14826_v36  ;;  %v15082_v59 = vadd.f32 %v14741_v21, %v14830_v0 }
 0x75a   :  { %v15086_v46 = vadd.f32 %v14741_v21, %v14834_v62  ;;  %v15090_v47 = vadd.f32 %v14741_v21, %v14838_v51  ;;  %v15094_v10 = vadd.f32 %v14741_v21, %v14842_v54  ;;  %v15098_v36 = vadd.f32 %v14741_v21, %v14846_v41 }
 0x75b   :  { %v15102_v0 = vadd.f32 %v14741_v21, %v14850_v56  ;;  %v15106_v62 = vadd.f32 %v14741_v21, %v14854_v13  ;;  %v15110_v51 = vadd.f32 %v14741_v21, %v14858_v44  ;;  %v15114_v54 = vadd.f32 %v14741_v21, %v14862_v52 }
 0x75c   :  { %v15118_v41 = vadd.f32 %v14741_v21, %v14866_v27  ;;  %v15122_v56 = vadd.f32 %v14741_v21, %v14870_v58  ;;  %v15126_v13 = vadd.f32 %v14741_v21, %v14874_v4  ;;  %v15130_v44 = vadd.f32 %v14741_v21, %v14878_v37 }
 0x75d   :  { %v15134_v52 = vadd.f32 %v14741_v21, %v14882_v31  ;;  %v15138_v27 = vadd.f32 %v14741_v21, %v14886_v2  ;;  %v15142_v58 = vadd.f32 %v14741_v21, %v14890_v35  ;;  %v15146_v4 = vadd.f32 %v14741_v21, %v14894_v25 }
 0x75e   :  { %v15150_v37 = vadd.f32 %v14741_v21, %v14898_v19  ;;  %v15154_v31 = vadd.f32 %v14741_v21, %v14902_v17  ;;  %v15158_v2 = vadd.f32 %v14741_v21, %v14906_v20  ;;  %v15162_v35 = vadd.f32 %v14741_v21, %v14910_v32 }
 0x75f   :  { %v15166_v25 = vadd.f32 %v14741_v21, %v14914_v14  ;;  %v15170_v19 = vadd.f32 %v14741_v21, %v14918_v22  ;;  %v15174_v17 = vadd.f32 %v14741_v21, %v14922_v6  ;;  %v15178_v20 = vadd.f32 %v14741_v21, %v16244_v40 }
 0x760   :  { %16239 = vst [vmem:[#allocation77_spill] sm:$0xff] %v15158_v2  ;;  %16240 = vst [vmem:[#allocation60_spill] sm:$0xff] %v15162_v35  ;;  %v16245_v2 = vld [vmem:[#allocation71_spill] sm:$0xff]  ;;  %v16246_v35 = vld [vmem:[#allocation74_spill] sm:$0xff] }
 0x761   :  { %16241 = vst [vmem:[#allocation31_spill] sm:$0xff] %v15166_v25  ;;  %16242 = vst [vmem:[#allocation14_spill] sm:$0xff] %v15170_v19  ;;  %v15182_v32 = vadd.f32 %v14741_v21, %v16245_v2  ;;  %v15186_v14 = vadd.f32 %v14741_v21, %v16246_v35  ;;  %v16247_v25 = vld [vmem:[#allocation58_spill] sm:$0xff]  ;;  %v16248_v19 = vld [vmem:[#allocation75_spill] sm:$0xff]  ;;  %v15202_v2 = vadd.f32 %v14741_v21, %v14950_v3 }
 0x762   :  { %16243 = vst [vmem:[#allocation29_spill] sm:$0xff] %v15174_v17  ;;  %v15190_v22 = vadd.f32 %v14741_v21, %v16247_v25  ;;  %v15194_v6 = vadd.f32 %v14741_v21, %v16248_v19  ;;  %v16249_v17 = vld [vmem:[#allocation39_spill] sm:$0xff]  ;;  %v15206_v35 = vadd.f32 %v14741_v21, %v14954_v57  ;;  %v15210_v25 = vadd.f32 %v14741_v21, %v14958_v43 }
 0x763   :  { %v15198_v40 = vadd.f32 %v14741_v21, %v16249_v17  ;;  %16250 = vst [vmem:[#allocation30_spill] sm:$0xff] %v15202_v2  ;;  %v15214_v19 = vadd.f32 %v14741_v21, %v14962_v53  ;;  %v15218_v17 = vadd.f32 %v14741_v21, %v14966_v39  ;;  %v15222_v3 = vadd.f32 %v14741_v21, %v14970_v26 }
 0x764   :  { %16251 = vst [vmem:[#allocation28_spill] sm:$0xff] %v15206_v35  ;;  %16252 = vst [vmem:[#allocation84_spill] sm:$0xff] %v15210_v25  ;;  %v8290_v2 = vmax.f32 %v14974_v9, 0.0  ;;  %v8291_v57 = vmax.f32 %v14978_v42, 0.0  ;;  %v8292_v35 = vmax.f32 %v14982_v61, 0.0  ;;  %v8293_v43 = vmax.f32 %v14986_v63, 0.0 }
 0x765   :  { %16253 = vst [vmem:[#allocation83_spill] sm:$0xff] %v15214_v19  ;;  %16254 = vst [vmem:[#allocation34_spill] sm:$0xff] %v15218_v17  ;;  %v8294_v25 = vmax.f32 %v14990_v50, 0.0  ;;  %v8295_v53 = vmax.f32 %v14994_v55, 0.0  ;;  %v8296_v19 = vmax.f32 %v14998_v11, 0.0  ;;  %v8297_v39 = vmax.f32 %v15002_v34, 0.0 }
 0x766   :  { %v8298_v17 = vmax.f32 %v15006_v29, 0.0  ;;  %8354 = vst [vmem:[#allocation9] sm:$0xff] %v8290_v2  ;;  %v8299_v21 = vmax.f32 %v15010_v8, 0.0  ;;  %v8300_v26 = vmax.f32 %v15014_v16, 0.0  ;;  %v8301_v9 = vmax.f32 %v15018_v18, 0.0  ;;  %8355 = vst [vmem:[#allocation9 + $0x8] sm:$0xff] %v8291_v57 }
 0x767   :  { %v8302_v42 = vmax.f32 %v15022_v28, 0.0  ;;  %8356 = vst [vmem:[#allocation9 + $0x10] sm:$0xff] %v8292_v35  ;;  %8357 = vst [vmem:[#allocation9 + $0x18] sm:$0xff] %v8293_v43  ;;  %v8303_v61 = vmax.f32 %v15026_v30, 0.0  ;;  %v8304_v63 = vmax.f32 %v15030_v7, 0.0  ;;  %v8305_v50 = vmax.f32 %v15034_v5, 0.0 }
 0x768   :  { %8358 = vst [vmem:[#allocation9 + $0x20] sm:$0xff] %v8294_v25  ;;  %v8306_v55 = vmax.f32 %v15038_v15, 0.0  ;;  %8359 = vst [vmem:[#allocation9 + $0x28] sm:$0xff] %v8295_v53  ;;  %v8307_v11 = vmax.f32 %v15042_v45, 0.0  ;;  %v8308_v34 = vmax.f32 %v15046_v24, 0.0  ;;  %v8309_v29 = vmax.f32 %v15050_v33, 0.0 }
 0x769   :  { %8360 = vst [vmem:[#allocation9 + $0x30] sm:$0xff] %v8296_v19  ;;  %8361 = vst [vmem:[#allocation9 + $0x38] sm:$0xff] %v8297_v39  ;;  %v8310_v8 = vmax.f32 %v15054_v1, 0.0  ;;  %v8311_v16 = vmax.f32 %v15058_v48, 0.0  ;;  %v8312_v18 = vmax.f32 %v15062_v12, 0.0  ;;  %v8313_v28 = vmax.f32 %v15066_v60, 0.0 }
 0x76a   :  { %8362 = vst [vmem:[#allocation9 + $0x40] sm:$0xff] %v8298_v17  ;;  %8363 = vst [vmem:[#allocation9 + $0x48] sm:$0xff] %v8299_v21  ;;  %v8314_v30 = vmax.f32 %v15070_v49, 0.0  ;;  %v8315_v7 = vmax.f32 %v15074_v38, 0.0  ;;  %v8316_v5 = vmax.f32 %v15078_v23, 0.0  ;;  %v8317_v15 = vmax.f32 %v15082_v59, 0.0 }
 0x76b   :  { %8364 = vst [vmem:[#allocation9 + $0x50] sm:$0xff] %v8300_v26  ;;  %8365 = vst [vmem:[#allocation9 + $0x58] sm:$0xff] %v8301_v9  ;;  %v8318_v45 = vmax.f32 %v15086_v46, 0.0  ;;  %v8319_v24 = vmax.f32 %v15090_v47, 0.0  ;;  %v8320_v33 = vmax.f32 %v15094_v10, 0.0  ;;  %v8321_v1 = vmax.f32 %v15098_v36, 0.0 }
 0x76c   :  { %8366 = vst [vmem:[#allocation9 + $0x60] sm:$0xff] %v8302_v42  ;;  %8367 = vst [vmem:[#allocation9 + $0x68] sm:$0xff] %v8303_v61  ;;  %v8322_v48 = vmax.f32 %v15102_v0, 0.0  ;;  %v8323_v12 = vmax.f32 %v15106_v62, 0.0  ;;  %v8324_v60 = vmax.f32 %v15110_v51, 0.0  ;;  %v8325_v49 = vmax.f32 %v15114_v54, 0.0 }
 0x76d   :  { %8368 = vst [vmem:[#allocation9 + $0x70] sm:$0xff] %v8304_v63  ;;  %8369 = vst [vmem:[#allocation9 + $0x78] sm:$0xff] %v8305_v50  ;;  %v8326_v38 = vmax.f32 %v15118_v41, 0.0  ;;  %v8327_v23 = vmax.f32 %v15122_v56, 0.0  ;;  %v8328_v59 = vmax.f32 %v15126_v13, 0.0  ;;  %v8329_v46 = vmax.f32 %v15130_v44, 0.0 }
 0x76e   :  { %8370 = vst [vmem:[#allocation9 + $0x80] sm:$0xff] %v8306_v55  ;;  %8371 = vst [vmem:[#allocation9 + $0x88] sm:$0xff] %v8307_v11  ;;  %v8330_v47 = vmax.f32 %v15134_v52, 0.0  ;;  %v8331_v10 = vmax.f32 %v15138_v27, 0.0  ;;  %v8332_v36 = vmax.f32 %v15142_v58, 0.0  ;;  %v8333_v0 = vmax.f32 %v15146_v4, 0.0 }
 0x76f   :  { %8372 = vst [vmem:[#allocation9 + $0x90] sm:$0xff] %v8308_v34  ;;  %8373 = vst [vmem:[#allocation9 + $0x98] sm:$0xff] %v8309_v29  ;;  %v8334_v62 = vmax.f32 %v15150_v37, 0.0  ;;  %v8335_v51 = vmax.f32 %v15154_v31, 0.0  ;;  %v16255_v54 = vld [vmem:[#allocation77_spill] sm:$0xff]  ;;  %v16256_v56 = vld [vmem:[#allocation60_spill] sm:$0xff] }
 0x770   :  { %8374 = vst [vmem:[#allocation9 + $0xa0] sm:$0xff] %v8310_v8  ;;  %8375 = vst [vmem:[#allocation9 + $0xa8] sm:$0xff] %v8311_v16  ;;  %v8336_v41 = vmax.f32 %v16255_v54, 0.0  ;;  %v8337_v13 = vmax.f32 %v16256_v56, 0.0  ;;  %v16257_v44 = vld [vmem:[#allocation31_spill] sm:$0xff]  ;;  %v16258_v27 = vld [vmem:[#allocation14_spill] sm:$0xff] }
 0x771   :  { %8376 = vst [vmem:[#allocation9 + $0xb0] sm:$0xff] %v8312_v18  ;;  %8377 = vst [vmem:[#allocation9 + $0xb8] sm:$0xff] %v8313_v28  ;;  %v8338_v52 = vmax.f32 %v16257_v44, 0.0  ;;  %v8339_v58 = vmax.f32 %v16258_v27, 0.0  ;;  %v16259_v4 = vld [vmem:[#allocation29_spill] sm:$0xff]  ;;  %v8341_v2 = vmax.f32 %v15178_v20, 0.0 }
 0x772   :  { %8378 = vst [vmem:[#allocation9 + $0xc0] sm:$0xff] %v8314_v30  ;;  %8379 = vst [vmem:[#allocation9 + $0xc8] sm:$0xff] %v8315_v7  ;;  %v8340_v37 = vmax.f32 %v16259_v4, 0.0  ;;  %v8342_v35 = vmax.f32 %v15182_v32, 0.0  ;;  %v8343_v31 = vmax.f32 %v15186_v14, 0.0  ;;  %v8344_v25 = vmax.f32 %v15190_v22, 0.0 }
 0x773   :  { %8380 = vst [vmem:[#allocation9 + $0xd0] sm:$0xff] %v8316_v5  ;;  %8381 = vst [vmem:[#allocation9 + $0xd8] sm:$0xff] %v8317_v15  ;;  %v8345_v19 = vmax.f32 %v15194_v6, 0.0  ;;  %v8346_v17 = vmax.f32 %v15198_v40, 0.0  ;;  %v16260_v20 = vld [vmem:[#allocation30_spill] sm:$0xff]  ;;  %v16261_v57 = vld [vmem:[#allocation28_spill] sm:$0xff] }
 0x774   :  { %8382 = vst [vmem:[#allocation9 + $0xe0] sm:$0xff] %v8318_v45  ;;  %8383 = vst [vmem:[#allocation9 + $0xe8] sm:$0xff] %v8319_v24  ;;  %v8347_v32 = vmax.f32 %v16260_v20, 0.0  ;;  %v8348_v43 = vmax.f32 %v16261_v57, 0.0  ;;  %v16262_v53 = vld [vmem:[#allocation84_spill] sm:$0xff]  ;;  %v16263_v21 = vld [vmem:[#allocation83_spill] sm:$0xff] }
 0x775   :  { %8384 = vst [vmem:[#allocation9 + $0xf0] sm:$0xff] %v8320_v33  ;;  %8385 = vst [vmem:[#allocation9 + $0xf8] sm:$0xff] %v8321_v1  ;;  %v8349_v39 = vmax.f32 %v16262_v53, 0.0  ;;  %v8350_v26 = vmax.f32 %v16263_v21, 0.0  ;;  %v16264_v14 = vld [vmem:[#allocation34_spill] sm:$0xff]  ;;  %v8352_v6 = vmax.f32 %v15222_v3, 0.0 }
 0x776   :  { %8386 = vst [vmem:[#allocation9 + $0x100] sm:$0xff] %v8322_v48  ;;  %8387 = vst [vmem:[#allocation9 + $0x108] sm:$0xff] %v8323_v12  ;;  %v8351_v22 = vmax.f32 %v16264_v14, 0.0 }
 0x777   :  { %8388 = vst [vmem:[#allocation9 + $0x110] sm:$0xff] %v8324_v60  ;;  %8389 = vst [vmem:[#allocation9 + $0x118] sm:$0xff] %v8325_v49 }
 0x778   :  { %8390 = vst [vmem:[#allocation9 + $0x120] sm:$0xff] %v8326_v38  ;;  %8391 = vst [vmem:[#allocation9 + $0x128] sm:$0xff] %v8327_v23 }
 0x779   :  { %8392 = vst [vmem:[#allocation9 + $0x130] sm:$0xff] %v8328_v59  ;;  %8393 = vst [vmem:[#allocation9 + $0x138] sm:$0xff] %v8329_v46 }
 0x77a   :  { %8394 = vst [vmem:[#allocation9 + $0x140] sm:$0xff] %v8330_v47  ;;  %8395 = vst [vmem:[#allocation9 + $0x148] sm:$0xff] %v8331_v10 }
 0x77b   :  { %8396 = vst [vmem:[#allocation9 + $0x150] sm:$0xff] %v8332_v36  ;;  %8397 = vst [vmem:[#allocation9 + $0x158] sm:$0xff] %v8333_v0 }
 0x77c   :  { %8398 = vst [vmem:[#allocation9 + $0x160] sm:$0xff] %v8334_v62  ;;  %8399 = vst [vmem:[#allocation9 + $0x168] sm:$0xff] %v8335_v51 }
 0x77d   :  { %8400 = vst [vmem:[#allocation9 + $0x170] sm:$0xff] %v8336_v41  ;;  %8401 = vst [vmem:[#allocation9 + $0x178] sm:$0xff] %v8337_v13 }
 0x77e   :  { %8402 = vst [vmem:[#allocation9 + $0x180] sm:$0xff] %v8338_v52  ;;  %8403 = vst [vmem:[#allocation9 + $0x188] sm:$0xff] %v8339_v58 }
 0x77f   :  { %8404 = vst [vmem:[#allocation9 + $0x190] sm:$0xff] %v8340_v37  ;;  %8405 = vst [vmem:[#allocation9 + $0x198] sm:$0xff] %v8341_v2 }
 0x780   :  { %8406 = vst [vmem:[#allocation9 + $0x1a0] sm:$0xff] %v8342_v35  ;;  %8407 = vst [vmem:[#allocation9 + $0x1a8] sm:$0xff] %v8343_v31 }
 0x781   :  { %8408 = vst [vmem:[#allocation9 + $0x1b0] sm:$0xff] %v8344_v25  ;;  %8409 = vst [vmem:[#allocation9 + $0x1b8] sm:$0xff] %v8345_v19 }
 0x782   :  { %8410 = vst [vmem:[#allocation9 + $0x1c0] sm:$0xff] %v8346_v17  ;;  %8411 = vst [vmem:[#allocation9 + $0x1c8] sm:$0xff] %v8347_v32 }
 0x783   :  { %8412 = vst [vmem:[#allocation9 + $0x1d0] sm:$0xff] %v8348_v43  ;;  %8413 = vst [vmem:[#allocation9 + $0x1d8] sm:$0xff] %v8349_v39 }
 0x784   :  { %8414 = vst [vmem:[#allocation9 + $0x1e0] sm:$0xff] %v8350_v26  ;;  %8415 = vst [vmem:[#allocation9 + $0x1e8] sm:$0xff] %v8351_v22 }
 0x785   :  { %8416 = vst [vmem:[#allocation9 + $0x1f0] sm:$0xff] %v8352_v6 }
 0x786   :  { %9968 = shalt.err (!%p9965_p0)
}
 0x787   :  { %s9969_s22 = scalar_lea.hbm %s15306_s7, 8192 }
 0x788   :  { %p9970_p1 = scmp.ne.s32.totalorder %s15306_s7, %s9969_s22  ;;  %p9973_p2 = scmp.lt.u32.totalorder %s9969_s22, %s15306_s7 }
 0x78a   :  { %p9975_p3 = pnand %p9973_p2, %p9970_p1 }
 0x78c   :  { %9978 = shalt.err (!%p9975_p3)
}
 0x78d   :  { %s9992_s26 = smov 128   ;;  %s9993_s28 = smov 8  }
 0x78e   :  { %8429 = dma.vmem_to_hbm [thread:$0]  %s8424_s6, 8192, %s15306_s7, [#allocation5], %s9992_s26, %s9992_s26, %s9993_s28  }
 0x78f   :  { %9983 = dma.done.wait [#allocation5], 8192  }
 0x790   :  { %9984 = vsyncadd [#allocation5], 4294959104 }
 0x791   :  { %8433 = vsyncpa [#allocation4], 1 }
 0x792   :  { %8434 = vsyncpa [#allocation7], 1 }
 0x793   :  { %8435 = vsyncpa [#allocation5], 1 }

</bundles_post_ra>
